<compile_context>
chip_gen: v5e
topology: v5e:2x2
jax: 0.10.0
libtpu: 0.0.40
codegen_flags: <defaults>
</compile_context>

<pallas_src>
import jax
import jax.numpy as jnp
from jax import lax
from jax.experimental import pallas as pl
from jax.experimental.pallas import tpu as pltpu


def _round_up(x, m):
    return ((x + m - 1) // m) * m


def ibasic_block_kernel(x_ref, p_ref, w1_ref, w2_ref, o_ref, xp_ref):
    TN, H, W, Cp = x_ref.shape
    Wp = xp_ref.shape[2]
    K3 = 3 * Cp

    # Zero only the 1-pixel halo of the staging buffer each grid step (the
    # interior is fully overwritten before every conv).  Done unconditionally
    # so it is safe under "parallel" dimension semantics -- do NOT guard this
    # on program_id (would corrupt results on v7x megacore).
    zrow = jnp.zeros((TN, 1, Wp, Cp), xp_ref.dtype)
    zcol = jnp.zeros((TN, H + 2, 1, Cp), xp_ref.dtype)
    xp_ref[:, 0:1, :, :] = zrow
    xp_ref[:, H + 1:H + 2, :, :] = zrow
    xp_ref[:, :, 0:1, :] = zcol
    xp_ref[:, :, W + 1:W + 2, :] = zcol

    def conv3x3(w_ref):
        """3x3 'SAME' conv (stride 1) of the bf16 slab staged in xp_ref.

        Tap-row grouping: 3 MXU matmuls with K = 3*Cp instead of one 9x im2col
        slab, accumulated in f32.  Weight rows are ordered (kh*3+kw)*Cp + ci,
        so the dh-th group is a contiguous, sublane-aligned block of 3*Cp rows.
        """
        acc = None
        for dh in range(3):
            taps = jnp.concatenate(
                [xp_ref[:, dh:dh + H, dw:dw + W, :] for dw in range(3)],
                axis=-1)                                # (TN, H, W, 3*Cp) bf16
            taps = taps.reshape(TN * H * W, K3)         # tile-preserving (W%8==0, Cp%128==0)
            part = jnp.dot(taps, w_ref[dh * K3:(dh + 1) * K3, :],
                           preferred_element_type=jnp.float32)
            acc = part if acc is None else acc + part
        return acc.reshape(TN, H, W, Cp)

    x = x_ref[...]                                      # identity branch (f32)
    s1 = p_ref[0:1, :].reshape(1, 1, 1, Cp)
    b1 = p_ref[1:2, :].reshape(1, 1, 1, Cp)
    b2 = p_ref[2:3, :].reshape(1, 1, 1, Cp)
    alpha = p_ref[3:4, :].reshape(1, 1, 1, Cp)
    b3 = p_ref[4:5, :].reshape(1, 1, 1, Cp)

    # bn1, fused directly into the conv1 staging store (bf16).
    xp_ref[:, 1:H + 1, 1:W + 1, :] = (x * s1 + b1).astype(xp_ref.dtype)
    h = conv3x3(w1_ref)                                 # conv1 (bn2 scale folded into weights)
    # bn2 bias + PReLU, fused directly into the conv2 staging store.
    h = h + b2
    h = jnp.where(h > 0, h, alpha * h)
    xp_ref[:, 1:H + 1, 1:W + 1, :] = h.astype(xp_ref.dtype)
    h = conv3x3(w2_ref)                                 # conv2 (bn3 scale folded into weights)
    # bn3 bias + residual, fused into the output store.
    o_ref[...] = (h + b3 + x).astype(o_ref.dtype)


def _vmem_capacity_bytes():
    try:
        return int(pltpu.get_tpu_info().vmem_capacity_bytes)
    except Exception:
        return 64 << 20        # conservative fallback: v7x per-TensorCore VMEM


def _const_spec(shape):
    """Grid-constant operand: fetched once, single-buffered when supported."""
    index_map = lambda n: (0,) * len(shape)
    try:
        return pl.BlockSpec(shape, index_map, pipeline_mode=pl.Buffered(1))
    except TypeError:   # older BlockSpec without pipeline_mode
        return pl.BlockSpec(shape, index_map)


def ibasic_block(x_nhwc, s1, b1, w1_hwio, s2, b2, alpha, w2_hwio, s3, b3,
                 *, batch_tile=None, vmem_limit_bytes=None):
    """Fused IBasicBlock forward (stride=1, no downsample), eval-mode BN.

    x_nhwc  : (N, H, W, C) float32
    s*/b*/alpha : (C,) float32 per-channel vectors (BN folded to scale / bias)
    w*_hwio : (3, 3, C, C) float32 conv weights (HWIO layout)
    Returns (N, H, W, C) float32.
    """
    N, H, W, C = x_nhwc.shape
    if W % 8 != 0:
        # TODO(synk): support W % 8 != 0 (needs a padded-W layout for the
        # tile-preserving reshape used by the grouped-tap matmuls).
        raise NotImplementedError("ibasic_block kernel requires W % 8 == 0")

    Cp = _round_up(C, 128)                 # lane-dense channel padding
    Wp = _round_up(W + 2, 8)               # halo width, rounded to a sublane multiple

    # Exact scale folds: bn2 scale -> conv1 output channels, bn3 scale -> conv2.
    w1f = w1_hwio * s2.reshape(1, 1, 1, C)
    w2f = w2_hwio * s3.reshape(1, 1, 1, C)

    def pad_weight(w):                     # (3,3,C,C) -> (9*Cp, Cp) bf16; row = (kh*3+kw)*Cp + ci
        wp = jnp.zeros((3, 3, Cp, Cp), jnp.float32).at[:, :, :C, :C].set(w)
        return wp.reshape(9 * Cp, Cp).astype(jnp.bfloat16)

    def pad_chan(v):                       # (C,) -> (Cp,)
        return jnp.zeros((Cp,), jnp.float32).at[:C].set(v)

    w1p = pad_weight(w1f)
    w2p = pad_weight(w2f)
    zc = jnp.zeros((Cp,), jnp.float32)
    params = jnp.stack([pad_chan(s1), pad_chan(b1), pad_chan(b2),
                        pad_chan(alpha), pad_chan(b3), zc, zc, zc])   # (8, Cp)

    # Skip the channel-pad HBM round trip when C is already lane-aligned.
    if Cp == C:
        xp = x_nhwc
    else:
        xp = jnp.zeros((N, H, W, Cp), x_nhwc.dtype).at[..., :C].set(x_nhwc)

    # ---- VMEM budget --------------------------------------------------------
    if vmem_limit_bytes is None:
        phys = _vmem_capacity_bytes()
        # ~100 MiB on v5e/v6e (128 MiB physical), ~51 MiB on v7x (64 MiB).
        vmem_limit_bytes = min(int(0.8 * phys), 100 << 20)

    hwc = H * W * Cp
    per_img = (
        2 * 4 * hwc                 # input block, f32, double-buffered
        + 2 * 4 * hwc               # output block, f32, double-buffered
        + 2 * (H + 2) * Wp * Cp     # bf16 halo staging scratch
        + 2 * 2 * 3 * hwc           # grouped bf16 tap slab (budget 2 live)
        + 3 * 4 * hwc               # f32 accumulator + matmul partial
        + 2 * 4 * hwc               # f32 epilogue temporaries
    )
    # Weights budgeted at 2 buffers each in case Buffered(1) is unavailable.
    fixed = 2 * (2 * 9 * Cp * Cp * 2) + 2 * 8 * Cp * 4 + (1 << 20)

    if batch_tile is None:
        usable = max(per_img, vmem_limit_bytes - fixed - (4 << 20))
        batch_tile = max(1, min(N, usable // per_img))
        if N >= 2:
            # Keep >= 2 grid steps so v7x can shard the "parallel" batch axis
            # across both TensorCores (neutral on single-TC v5e/v6e).
            batch_tile = min(batch_tile, max(1, N // 2))
        while N % batch_tile:
            batch_tile -= 1

    out = pl.pallas_call(
        ibasic_block_kernel,
        out_shape=jax.ShapeDtypeStruct((N, H, W, Cp), x_nhwc.dtype),
        grid=(N // batch_tile,),
        in_specs=[
            pl.BlockSpec((batch_tile, H, W, Cp), lambda n: (n, 0, 0, 0)),  # x
            _const_spec((8, Cp)),                                          # packed per-channel params
            _const_spec((9 * Cp, Cp)),                                     # conv1 weights (bf16)
            _const_spec((9 * Cp, Cp)),                                     # conv2 weights (bf16)
        ],
        out_specs=pl.BlockSpec((batch_tile, H, W, Cp), lambda n: (n, 0, 0, 0)),
        scratch_shapes=[
            pltpu.VMEM((batch_tile, H + 2, Wp, Cp), jnp.bfloat16),         # shared bf16 halo staging
        ],
        compiler_params=pltpu.CompilerParams(
            dimension_semantics=("parallel",),          # batch axis carries no accumulator
            vmem_limit_bytes=int(vmem_limit_bytes)),
    )(xp, params, w1p, w2p)

    return out if Cp == C else out[..., :C]


def make_params(key, C):
    ks = jax.random.split(key, 14)

    def bn_fold(kg, kb, km, kv):
        gamma = 1.0 + 0.1 * jax.random.normal(kg, (C,), jnp.float32)
        beta = 0.1 * jax.random.normal(kb, (C,), jnp.float32)
        mean = 0.1 * jax.random.normal(km, (C,), jnp.float32)
        var = jax.random.uniform(kv, (C,), jnp.float32, minval=0.5, maxval=1.5)
        scale = gamma / jnp.sqrt(var + 1e-5)
        bias = beta - mean * scale
        return scale, bias

    s1, b1 = bn_fold(*ks[0:4])
    s2, b2 = bn_fold(*ks[4:8])
    s3, b3 = bn_fold(*ks[8:12])
    w1_hwio = 0.1 * jax.random.normal(ks[12], (3, 3, C, C), jnp.float32)
    w2_hwio = 0.1 * jax.random.normal(ks[13], (3, 3, C, C), jnp.float32)
    alpha = jnp.full((C,), 0.25, jnp.float32)   # PyTorch PReLU default init
    return s1, b1, w1_hwio, s2, b2, alpha, w2_hwio, s3, b3


def ref_block(x, s1, b1, w1_hwio, s2, b2, alpha, w2_hwio, s3, b3):
    """Pure-JAX f32 reference (NHWC) for correctness checking."""
    dn = ("NHWC", "HWIO", "NHWC")
    h = x * s1 + b1
    h = lax.conv_general_dilated(h, w1_hwio, (1, 1), "SAME", dimension_numbers=dn)
    h = h * s2 + b2
    h = jnp.where(h > 0, h, alpha * h)
    h = lax.conv_general_dilated(h, w2_hwio, (1, 1), "SAME", dimension_numbers=dn)
    h = h * s3 + b3
    return h + x


if __name__ == "__main__":
    key = jax.random.PRNGKey(0)
    kx, kp = jax.random.split(key)

    N, C, H, W = 2, 4, 16, 16                                  # inplanes = planes = 4
    x_nchw = jax.random.normal(kx, (N, C, H, W), jnp.float32)  # PyTorch-style NCHW input
    x_nhwc = jnp.transpose(x_nchw, (0, 2, 3, 1))               # kernel layout: NHWC

    p = make_params(kp, C)

    out = ibasic_block(x_nhwc, *p)
    out = jax.block_until_ready(out)

    ref = ref_block(x_nhwc, *p)
    assert out.shape == (N, H, W, C)
    max_err = jnp.max(jnp.abs(out - ref))
    # bf16 matmuls with f32 accumulation -> relaxed tolerance vs the f32 reference.
    if not jnp.allclose(out, ref, atol=5e-2, rtol=5e-2):
        raise AssertionError(f"Pallas result mismatch vs reference, max abs err = {max_err}")
    print("KERNEL_OK")
</pallas_src>

<mosaic_0001>
module attributes {stable_mosaic.version = 11 : i64} {
  func.func @ibasic_block_kernel(%arg0: i32, %arg1: memref<1x16x16x128xf32, #tpu.memory_space<vmem>>, %arg2: memref<8x128xf32, #tpu.memory_space<vmem>>, %arg3: memref<1152x128xbf16, #tpu.memory_space<vmem>>, %arg4: memref<1152x128xbf16, #tpu.memory_space<vmem>>, %arg5: memref<1x16x16x128xf32, #tpu.memory_space<vmem>>, %arg6: memref<1x18x24x128xbf16, #tpu.memory_space<vmem>>) attributes {dimension_semantics = [#tpu.dimension_semantics<parallel>], iteration_bounds = array<i64: 2>, scalar_prefetch = 0 : i64, scratch_operands = 1 : i64, tpu.core_type = #tpu.core_type<tc>, window_params = [{transform_indices = @transform_0, window_bounds = array<i64: 1, 16, 16, 128>}, {pipeline_mode = #tpu.pipeline_mode<synchronous>, transform_indices = @transform_1, window_bounds = array<i64: 8, 128>}, {pipeline_mode = #tpu.pipeline_mode<synchronous>, transform_indices = @transform_2, window_bounds = array<i64: 1152, 128>}, {pipeline_mode = #tpu.pipeline_mode<synchronous>, transform_indices = @transform_3, window_bounds = array<i64: 1152, 128>}, {transform_indices = @transform_4, window_bounds = array<i64: 1, 16, 16, 128>}]} {
    %cst = arith.constant 0.000000e+00 : bf16
    %0 = vector.broadcast %cst : bf16 to vector<1x1x24x128xbf16>
    %cst_0 = arith.constant 0.000000e+00 : bf16
    %1 = vector.broadcast %cst_0 : bf16 to vector<1x18x1x128xbf16>
    %c0 = arith.constant 0 : index
    %c0_1 = arith.constant 0 : index
    %c0_2 = arith.constant 0 : index
    %c0_3 = arith.constant 0 : index
    %2 = vector.load %arg6[%c0, %c0_1, %c0_2, %c0_3] : memref<1x18x24x128xbf16, #tpu.memory_space<vmem>>, vector<1x1x24x128xbf16>
    tpu.vector_store %arg6[%c0, %c0_1, %c0_2, %c0_3], %0 {strides = array<i32>} : memref<1x18x24x128xbf16, #tpu.memory_space<vmem>>, vector<1x1x24x128xbf16>,
    %c0_4 = arith.constant 0 : index
    %c17 = arith.constant 17 : index
    %c0_5 = arith.constant 0 : index
    %c0_6 = arith.constant 0 : index
    %3 = vector.load %arg6[%c0_4, %c17, %c0_5, %c0_6] : memref<1x18x24x128xbf16, #tpu.memory_space<vmem>>, vector<1x1x24x128xbf16>
    tpu.vector_store %arg6[%c0_4, %c17, %c0_5, %c0_6], %0 {strides = array<i32>} : memref<1x18x24x128xbf16, #tpu.memory_space<vmem>>, vector<1x1x24x128xbf16>,
    %c0_7 = arith.constant 0 : index
    %c0_8 = arith.constant 0 : index
    %c0_9 = arith.constant 0 : index
    %c0_10 = arith.constant 0 : index
    %4 = vector.load %arg6[%c0_7, %c0_8, %c0_9, %c0_10] : memref<1x18x24x128xbf16, #tpu.memory_space<vmem>>, vector<1x18x1x128xbf16>
    tpu.vector_store %arg6[%c0_7, %c0_8, %c0_9, %c0_10], %1 {strides = array<i32>} : memref<1x18x24x128xbf16, #tpu.memory_space<vmem>>, vector<1x18x1x128xbf16>,
    %c0_11 = arith.constant 0 : index
    %c0_12 = arith.constant 0 : index
    %c17_13 = arith.constant 17 : index
    %c0_14 = arith.constant 0 : index
    %5 = vector.load %arg6[%c0_11, %c0_12, %c17_13, %c0_14] : memref<1x18x24x128xbf16, #tpu.memory_space<vmem>>, vector<1x18x1x128xbf16>
    tpu.vector_store %arg6[%c0_11, %c0_12, %c17_13, %c0_14], %1 {strides = array<i32>} : memref<1x18x24x128xbf16, #tpu.memory_space<vmem>>, vector<1x18x1x128xbf16>,
    %c0_15 = arith.constant 0 : index
    %c0_16 = arith.constant 0 : index
    %c0_17 = arith.constant 0 : index
    %c0_18 = arith.constant 0 : index
    %6 = vector.load %arg1[%c0_15, %c0_16, %c0_17, %c0_18] : memref<1x16x16x128xf32, #tpu.memory_space<vmem>>, vector<1x16x16x128xf32>
    %c0_19 = arith.constant 0 : index
    %c0_20 = arith.constant 0 : index
    %7 = vector.load %arg2[%c0_19, %c0_20] : memref<8x128xf32, #tpu.memory_space<vmem>>, vector<1x128xf32>
    %8 = vector.shape_cast %7 : vector<1x128xf32> to vector<1x1x1x128xf32>
    %c1 = arith.constant 1 : index
    %c0_21 = arith.constant 0 : index
    %9 = vector.load %arg2[%c1, %c0_21] : memref<8x128xf32, #tpu.memory_space<vmem>>, vector<1x128xf32>
    %10 = vector.shape_cast %9 : vector<1x128xf32> to vector<1x1x1x128xf32>
    %c2 = arith.constant 2 : index
    %c0_22 = arith.constant 0 : index
    %11 = vector.load %arg2[%c2, %c0_22] : memref<8x128xf32, #tpu.memory_space<vmem>>, vector<1x128xf32>
    %12 = vector.shape_cast %11 : vector<1x128xf32> to vector<1x1x1x128xf32>
    %c3 = arith.constant 3 : index
    %c0_23 = arith.constant 0 : index
    %13 = vector.load %arg2[%c3, %c0_23] : memref<8x128xf32, #tpu.memory_space<vmem>>, vector<1x128xf32>
    %14 = vector.shape_cast %13 : vector<1x128xf32> to vector<1x1x1x128xf32>
    %c4 = arith.constant 4 : index
    %c0_24 = arith.constant 0 : index
    %15 = vector.load %arg2[%c4, %c0_24] : memref<8x128xf32, #tpu.memory_space<vmem>>, vector<1x128xf32>
    %16 = vector.shape_cast %15 : vector<1x128xf32> to vector<1x1x1x128xf32>
    %17 = vector.broadcast %8 : vector<1x1x1x128xf32> to vector<1x16x16x128xf32>
    %18 = arith.mulf %6, %17 : vector<1x16x16x128xf32>
    %19 = vector.broadcast %10 : vector<1x1x1x128xf32> to vector<1x16x16x128xf32>
    %20 = arith.addf %18, %19 : vector<1x16x16x128xf32>
    %21 = arith.truncf %20 : vector<1x16x16x128xf32> to vector<1x16x16x128xbf16>
    %c0_25 = arith.constant 0 : index
    %c1_26 = arith.constant 1 : index
    %c1_27 = arith.constant 1 : index
    %c0_28 = arith.constant 0 : index
    %22 = vector.load %arg6[%c0_25, %c1_26, %c1_27, %c0_28] : memref<1x18x24x128xbf16, #tpu.memory_space<vmem>>, vector<1x16x16x128xbf16>
    tpu.vector_store %arg6[%c0_25, %c1_26, %c1_27, %c0_28], %21 {strides = array<i32>} : memref<1x18x24x128xbf16, #tpu.memory_space<vmem>>, vector<1x16x16x128xbf16>,
    %c0_29 = arith.constant 0 : index
    %c0_30 = arith.constant 0 : index
    %c0_31 = arith.constant 0 : index
    %c0_32 = arith.constant 0 : index
    %23 = vector.load %arg6[%c0_29, %c0_30, %c0_31, %c0_32] : memref<1x18x24x128xbf16, #tpu.memory_space<vmem>>, vector<1x16x16x128xbf16>
    %c0_33 = arith.constant 0 : index
    %c0_34 = arith.constant 0 : index
    %c1_35 = arith.constant 1 : index
    %c0_36 = arith.constant 0 : index
    %24 = vector.load %arg6[%c0_33, %c0_34, %c1_35, %c0_36] : memref<1x18x24x128xbf16, #tpu.memory_space<vmem>>, vector<1x16x16x128xbf16>
    %c0_37 = arith.constant 0 : index
    %c0_38 = arith.constant 0 : index
    %c2_39 = arith.constant 2 : index
    %c0_40 = arith.constant 0 : index
    %25 = vector.load %arg6[%c0_37, %c0_38, %c2_39, %c0_40] : memref<1x18x24x128xbf16, #tpu.memory_space<vmem>>, vector<1x16x16x128xbf16>
    %26 = tpu.concatenate %23, %24, %25 in 3 : vector<1x16x16x128xbf16>, vector<1x16x16x128xbf16>, vector<1x16x16x128xbf16> -> vector<1x16x16x384xbf16>
    %27 = vector.shape_cast %26 : vector<1x16x16x384xbf16> to vector<256x384xbf16>
    %c0_41 = arith.constant 0 : index
    %c0_42 = arith.constant 0 : index
    %28 = vector.load %arg3[%c0_41, %c0_42] : memref<1152x128xbf16, #tpu.memory_space<vmem>>, vector<384x128xbf16>
    %cst_43 = arith.constant dense<0.000000e+00> : vector<256x128xf32>
    %29 = tpu.matmul %27, %28, %cst_43 {dimension_numbers = #tpu.dot_dimension_numbers<[1], [0], [0], [1], [0, 0, 1, 1], [], []>} : vector<256x384xbf16>, vector<384x128xbf16>, vector<256x128xf32> -> vector<256x128xf32>
    %c0_44 = arith.constant 0 : index
    %c1_45 = arith.constant 1 : index
    %c0_46 = arith.constant 0 : index
    %c0_47 = arith.constant 0 : index
    %30 = vector.load %arg6[%c0_44, %c1_45, %c0_46, %c0_47] : memref<1x18x24x128xbf16, #tpu.memory_space<vmem>>, vector<1x16x16x128xbf16>
    %c0_48 = arith.constant 0 : index
    %c1_49 = arith.constant 1 : index
    %c1_50 = arith.constant 1 : index
    %c0_51 = arith.constant 0 : index
    %31 = vector.load %arg6[%c0_48, %c1_49, %c1_50, %c0_51] : memref<1x18x24x128xbf16, #tpu.memory_space<vmem>>, vector<1x16x16x128xbf16>
    %c0_52 = arith.constant 0 : index
    %c1_53 = arith.constant 1 : index
    %c2_54 = arith.constant 2 : index
    %c0_55 = arith.constant 0 : index
    %32 = vector.load %arg6[%c0_52, %c1_53, %c2_54, %c0_55] : memref<1x18x24x128xbf16, #tpu.memory_space<vmem>>, vector<1x16x16x128xbf16>
    %33 = tpu.concatenate %30, %31, %32 in 3 : vector<1x16x16x128xbf16>, vector<1x16x16x128xbf16>, vector<1x16x16x128xbf16> -> vector<1x16x16x384xbf16>
    %34 = vector.shape_cast %33 : vector<1x16x16x384xbf16> to vector<256x384xbf16>
    %c384 = arith.constant 384 : index
    %c0_56 = arith.constant 0 : index
    %35 = vector.load %arg3[%c384, %c0_56] : memref<1152x128xbf16, #tpu.memory_space<vmem>>, vector<384x128xbf16>
    %cst_57 = arith.constant dense<0.000000e+00> : vector<256x128xf32>
    %36 = tpu.matmul %34, %35, %cst_57 {dimension_numbers = #tpu.dot_dimension_numbers<[1], [0], [0], [1], [0, 0, 1, 1], [], []>} : vector<256x384xbf16>, vector<384x128xbf16>, vector<256x128xf32> -> vector<256x128xf32>
    %37 = arith.addf %29, %36 : vector<256x128xf32>
    %c0_58 = arith.constant 0 : index
    %c2_59 = arith.constant 2 : index
    %c0_60 = arith.constant 0 : index
    %c0_61 = arith.constant 0 : index
    %38 = vector.load %arg6[%c0_58, %c2_59, %c0_60, %c0_61] : memref<1x18x24x128xbf16, #tpu.memory_space<vmem>>, vector<1x16x16x128xbf16>
    %c0_62 = arith.constant 0 : index
    %c2_63 = arith.constant 2 : index
    %c1_64 = arith.constant 1 : index
    %c0_65 = arith.constant 0 : index
    %39 = vector.load %arg6[%c0_62, %c2_63, %c1_64, %c0_65] : memref<1x18x24x128xbf16, #tpu.memory_space<vmem>>, vector<1x16x16x128xbf16>
    %c0_66 = arith.constant 0 : index
    %c2_67 = arith.constant 2 : index
    %c2_68 = arith.constant 2 : index
    %c0_69 = arith.constant 0 : index
    %40 = vector.load %arg6[%c0_66, %c2_67, %c2_68, %c0_69] : memref<1x18x24x128xbf16, #tpu.memory_space<vmem>>, vector<1x16x16x128xbf16>
    %41 = tpu.concatenate %38, %39, %40 in 3 : vector<1x16x16x128xbf16>, vector<1x16x16x128xbf16>, vector<1x16x16x128xbf16> -> vector<1x16x16x384xbf16>
    %42 = vector.shape_cast %41 : vector<1x16x16x384xbf16> to vector<256x384xbf16>
    %c768 = arith.constant 768 : index
    %c0_70 = arith.constant 0 : index
    %43 = vector.load %arg3[%c768, %c0_70] : memref<1152x128xbf16, #tpu.memory_space<vmem>>, vector<384x128xbf16>
    %cst_71 = arith.constant dense<0.000000e+00> : vector<256x128xf32>
    %44 = tpu.matmul %42, %43, %cst_71 {dimension_numbers = #tpu.dot_dimension_numbers<[1], [0], [0], [1], [0, 0, 1, 1], [], []>} : vector<256x384xbf16>, vector<384x128xbf16>, vector<256x128xf32> -> vector<256x128xf32>
    %45 = arith.addf %37, %44 : vector<256x128xf32>
    %46 = vector.shape_cast %45 : vector<256x128xf32> to vector<1x16x16x128xf32>
    %47 = vector.broadcast %12 : vector<1x1x1x128xf32> to vector<1x16x16x128xf32>
    %48 = arith.addf %46, %47 : vector<1x16x16x128xf32>
    %cst_72 = arith.constant 0.000000e+00 : f32
    %49 = vector.broadcast %cst_72 : f32 to vector<1x16x16x128xf32>
    %50 = arith.cmpf ogt, %48, %49 : vector<1x16x16x128xf32>
    %51 = vector.broadcast %14 : vector<1x1x1x128xf32> to vector<1x16x16x128xf32>
    %52 = arith.mulf %51, %48 : vector<1x16x16x128xf32>
    %53 = arith.select %50, %48, %52 : vector<1x16x16x128xi1>, vector<1x16x16x128xf32>
    %54 = arith.truncf %53 : vector<1x16x16x128xf32> to vector<1x16x16x128xbf16>
    %c0_73 = arith.constant 0 : index
    %c1_74 = arith.constant 1 : index
    %c1_75 = arith.constant 1 : index
    %c0_76 = arith.constant 0 : index
    %55 = vector.load %arg6[%c0_73, %c1_74, %c1_75, %c0_76] : memref<1x18x24x128xbf16, #tpu.memory_space<vmem>>, vector<1x16x16x128xbf16>
    tpu.vector_store %arg6[%c0_73, %c1_74, %c1_75, %c0_76], %54 {strides = array<i32>} : memref<1x18x24x128xbf16, #tpu.memory_space<vmem>>, vector<1x16x16x128xbf16>,
    %c0_77 = arith.constant 0 : index
    %c0_78 = arith.constant 0 : index
    %c0_79 = arith.constant 0 : index
    %c0_80 = arith.constant 0 : index
    %56 = vector.load %arg6[%c0_77, %c0_78, %c0_79, %c0_80] : memref<1x18x24x128xbf16, #tpu.memory_space<vmem>>, vector<1x16x16x128xbf16>
    %c0_81 = arith.constant 0 : index
    %c0_82 = arith.constant 0 : index
    %c1_83 = arith.constant 1 : index
    %c0_84 = arith.constant 0 : index
    %57 = vector.load %arg6[%c0_81, %c0_82, %c1_83, %c0_84] : memref<1x18x24x128xbf16, #tpu.memory_space<vmem>>, vector<1x16x16x128xbf16>
    %c0_85 = arith.constant 0 : index
    %c0_86 = arith.constant 0 : index
    %c2_87 = arith.constant 2 : index
    %c0_88 = arith.constant 0 : index
    %58 = vector.load %arg6[%c0_85, %c0_86, %c2_87, %c0_88] : memref<1x18x24x128xbf16, #tpu.memory_space<vmem>>, vector<1x16x16x128xbf16>
    %59 = tpu.concatenate %56, %57, %58 in 3 : vector<1x16x16x128xbf16>, vector<1x16x16x128xbf16>, vector<1x16x16x128xbf16> -> vector<1x16x16x384xbf16>
    %60 = vector.shape_cast %59 : vector<1x16x16x384xbf16> to vector<256x384xbf16>
    %c0_89 = arith.constant 0 : index
    %c0_90 = arith.constant 0 : index
    %61 = vector.load %arg4[%c0_89, %c0_90] : memref<1152x128xbf16, #tpu.memory_space<vmem>>, vector<384x128xbf16>
    %cst_91 = arith.constant dense<0.000000e+00> : vector<256x128xf32>
    %62 = tpu.matmul %60, %61, %cst_91 {dimension_numbers = #tpu.dot_dimension_numbers<[1], [0], [0], [1], [0, 0, 1, 1], [], []>} : vector<256x384xbf16>, vector<384x128xbf16>, vector<256x128xf32> -> vector<256x128xf32>
    %c0_92 = arith.constant 0 : index
    %c1_93 = arith.constant 1 : index
    %c0_94 = arith.constant 0 : index
    %c0_95 = arith.constant 0 : index
    %63 = vector.load %arg6[%c0_92, %c1_93, %c0_94, %c0_95] : memref<1x18x24x128xbf16, #tpu.memory_space<vmem>>, vector<1x16x16x128xbf16>
    %c0_96 = arith.constant 0 : index
    %c1_97 = arith.constant 1 : index
    %c1_98 = arith.constant 1 : index
    %c0_99 = arith.constant 0 : index
    %64 = vector.load %arg6[%c0_96, %c1_97, %c1_98, %c0_99] : memref<1x18x24x128xbf16, #tpu.memory_space<vmem>>, vector<1x16x16x128xbf16>
    %c0_100 = arith.constant 0 : index
    %c1_101 = arith.constant 1 : index
    %c2_102 = arith.constant 2 : index
    %c0_103 = arith.constant 0 : index
    %65 = vector.load %arg6[%c0_100, %c1_101, %c2_102, %c0_103] : memref<1x18x24x128xbf16, #tpu.memory_space<vmem>>, vector<1x16x16x128xbf16>
    %66 = tpu.concatenate %63, %64, %65 in 3 : vector<1x16x16x128xbf16>, vector<1x16x16x128xbf16>, vector<1x16x16x128xbf16> -> vector<1x16x16x384xbf16>
    %67 = vector.shape_cast %66 : vector<1x16x16x384xbf16> to vector<256x384xbf16>
    %c384_104 = arith.constant 384 : index
    %c0_105 = arith.constant 0 : index
    %68 = vector.load %arg4[%c384_104, %c0_105] : memref<1152x128xbf16, #tpu.memory_space<vmem>>, vector<384x128xbf16>
    %cst_106 = arith.constant dense<0.000000e+00> : vector<256x128xf32>
    %69 = tpu.matmul %67, %68, %cst_106 {dimension_numbers = #tpu.dot_dimension_numbers<[1], [0], [0], [1], [0, 0, 1, 1], [], []>} : vector<256x384xbf16>, vector<384x128xbf16>, vector<256x128xf32> -> vector<256x128xf32>
    %70 = arith.addf %62, %69 : vector<256x128xf32>
    %c0_107 = arith.constant 0 : index
    %c2_108 = arith.constant 2 : index
    %c0_109 = arith.constant 0 : index
    %c0_110 = arith.constant 0 : index
    %71 = vector.load %arg6[%c0_107, %c2_108, %c0_109, %c0_110] : memref<1x18x24x128xbf16, #tpu.memory_space<vmem>>, vector<1x16x16x128xbf16>
    %c0_111 = arith.constant 0 : index
    %c2_112 = arith.constant 2 : index
    %c1_113 = arith.constant 1 : index
    %c0_114 = arith.constant 0 : index
    %72 = vector.load %arg6[%c0_111, %c2_112, %c1_113, %c0_114] : memref<1x18x24x128xbf16, #tpu.memory_space<vmem>>, vector<1x16x16x128xbf16>
    %c0_115 = arith.constant 0 : index
    %c2_116 = arith.constant 2 : index
    %c2_117 = arith.constant 2 : index
    %c0_118 = arith.constant 0 : index
    %73 = vector.load %arg6[%c0_115, %c2_116, %c2_117, %c0_118] : memref<1x18x24x128xbf16, #tpu.memory_space<vmem>>, vector<1x16x16x128xbf16>
    %74 = tpu.concatenate %71, %72, %73 in 3 : vector<1x16x16x128xbf16>, vector<1x16x16x128xbf16>, vector<1x16x16x128xbf16> -> vector<1x16x16x384xbf16>
    %75 = vector.shape_cast %74 : vector<1x16x16x384xbf16> to vector<256x384xbf16>
    %c768_119 = arith.constant 768 : index
    %c0_120 = arith.constant 0 : index
    %76 = vector.load %arg4[%c768_119, %c0_120] : memref<1152x128xbf16, #tpu.memory_space<vmem>>, vector<384x128xbf16>
    %cst_121 = arith.constant dense<0.000000e+00> : vector<256x128xf32>
    %77 = tpu.matmul %75, %76, %cst_121 {dimension_numbers = #tpu.dot_dimension_numbers<[1], [0], [0], [1], [0, 0, 1, 1], [], []>} : vector<256x384xbf16>, vector<384x128xbf16>, vector<256x128xf32> -> vector<256x128xf32>
    %78 = arith.addf %70, %77 : vector<256x128xf32>
    %79 = vector.shape_cast %78 : vector<256x128xf32> to vector<1x16x16x128xf32>
    %80 = vector.broadcast %16 : vector<1x1x1x128xf32> to vector<1x16x16x128xf32>
    %81 = arith.addf %79, %80 : vector<1x16x16x128xf32>
    %82 = arith.addf %81, %6 : vector<1x16x16x128xf32>
    %c0_122 = arith.constant 0 : index
    %c0_123 = arith.constant 0 : index
    %c0_124 = arith.constant 0 : index
    %c0_125 = arith.constant 0 : index
    %83 = vector.load %arg5[%c0_122, %c0_123, %c0_124, %c0_125] : memref<1x16x16x128xf32, #tpu.memory_space<vmem>>, vector<1x16x16x128xf32>
    tpu.vector_store %arg5[%c0_122, %c0_123, %c0_124, %c0_125], %82 {strides = array<i32>} : memref<1x16x16x128xf32, #tpu.memory_space<vmem>>, vector<1x16x16x128xf32>,
    return
  }
  func.func @transform_0(%arg0: i32) -> (i32, i32, i32, i32) {
    %c0_i32 = arith.constant 0 : i32
    %c0_i32_0 = arith.constant 0 : i32
    %c0_i32_1 = arith.constant 0 : i32
    %c0_i32_2 = arith.constant 0 : i32
    return %arg0, %c0_i32, %c0_i32_0, %c0_i32_1 : i32, i32, i32, i32
  }
  func.func @transform_1(%arg0: i32) -> (i32, i32) {
    %c0_i32 = arith.constant 0 : i32
    %c0_i32_0 = arith.constant 0 : i32
    %c0_i32_1 = arith.constant 0 : i32
    return %c0_i32, %c0_i32_0 : i32, i32
  }
  func.func @transform_2(%arg0: i32) -> (i32, i32) {
    %c0_i32 = arith.constant 0 : i32
    %c0_i32_0 = arith.constant 0 : i32
    %c0_i32_1 = arith.constant 0 : i32
    return %c0_i32, %c0_i32_0 : i32, i32
  }
  func.func @transform_3(%arg0: i32) -> (i32, i32) {
    %c0_i32 = arith.constant 0 : i32
    %c0_i32_0 = arith.constant 0 : i32
    %c0_i32_1 = arith.constant 0 : i32
    return %c0_i32, %c0_i32_0 : i32, i32
  }
  func.func @transform_4(%arg0: i32) -> (i32, i32, i32, i32) {
    %c0_i32 = arith.constant 0 : i32
    %c0_i32_0 = arith.constant 0 : i32
    %c0_i32_1 = arith.constant 0 : i32
    %c0_i32_2 = arith.constant 0 : i32
    return %arg0, %c0_i32, %c0_i32_0, %c0_i32_1 : i32, i32, i32, i32
  }
}

</mosaic_0001>

<bundles_post_ra>
// kernel: tpu_custom_call.1
= control target key start
LH: loop header
LB: loop body
LE: loop exit
PB: predicated region body
PF: predicated region fallthrough
CT: control target
= control target key end

     0   :  { %9 = vsyncpa [#allocation4], 0  ;;  %s11916_s0 = inlined_call_operand.hbm [shape: f32[2,16,16,128], index: 0, kind: input, shape index: {}]   ;;  %s11917_s1 = inlined_call_operand.hbm [shape: f32[8,128], index: 1, kind: input, shape index: {}]   ;;  %s11918_s2 = inlined_call_operand.hbm [shape: bf16[1152,128], index: 2, kind: input, shape index: {}]   ;;  %s11919_s3 = inlined_call_operand.hbm [shape: bf16[1152,128], index: 3, kind: input, shape index: {}]   ;;  %s11920_s4 = inlined_call_operand.hbm [shape: f32[2,16,16,128], index: 4, kind: output, shape index: {}]  }
   0x1   :  { %11 = vsyncpa [#allocation4 + $0x1], 0 }
   0x2   :  { %12 = vsyncpa [#allocation7], 0 }
   0x3   :  { %13 = vsyncpa [#allocation10], 0 }
   0x4   :  { %14 = vsyncpa [#allocation5], 0 }
   0x5   :  { %16 = vsyncpa [#allocation5 + $0x1], 0  ;;  %s9397_s15 = smov 0   ;;  %s9399_s16 = smov 0  }
   0x6   :  { %s9401_s17 = smov 0   ;;  %s9403_s18 = smov 0  }
   0x7 LB: > { %s9418_s19 = sadd.s32 4294967295, %s9360_s18   ;;  %s7756_s20 = sadd.s32 4294967294, %s9360_s18   ;;  %s9360_s18 = sphi %s9403_s18, %s12127_s18   ;;  %s9356_s17 = sphi %s9401_s17, %s12126_s17   ;;  %s9352_s16 = sphi %s9399_s16, %s12125_s16   ;;  %s9348_s15 = sphi %s9397_s15, %s12124_s15  }
   0x8   : > { %p42_p0 = scmp.ne.s32.totalorder %s9352_s16, %s9348_s15  ;;  %p43_p1 = scmp.eq.s32.totalorder %s9418_s19, 0 }
   0x9   : > { %p129_p2 = scmp.eq.s32.totalorder %s9418_s19, 1  ;;  %p135_p3 = scmp.eq.s32.totalorder %s7756_s20, 1 }
   0xa   : > { %p9427_p4 = por %p43_p1, %p42_p0  ;;  %p7757_p5 = scmp.ge.s32.totalorder %s9360_s18, 1 }
   0xb   : > { %p9432_p6 = por %p135_p3, %p42_p0  ;;  %p142_p7 = scmp.lt.s32.totalorder %s9360_s18, 3 }
   0xc   : > { %s154_s25 = sshll.u32 %s11917_s1, 4  ;;  %s9362_s27 = smov [#allocation6]   ;;  %s155_s25 = int_to_ptr.hbm [resolvable:$true] %s154_s25 }
   0xd   : > { %p9440_p8 = pnand %p7757_p5, %p142_p7  ;;  %s156_s28 = sshll.u32 %s9362_s27, 4  ;;  %s157_s28 = int_to_ptr.vmem [resolvable:$true] %s156_s28 }
   0xe   : > { %s165_s5 = sshll.u32 %s11918_s2, 4  ;;  %s9363_s7 = smov [#allocation8]   ;;  %s166_s5 = int_to_ptr.hbm [resolvable:$true] %s165_s5 }
   0xf   : > { %p8910_p10 = pneg %p9440_p8  ;;  %s167_s8 = sshll.u32 %s9363_s7, 4  ;;  %s168_s8 = int_to_ptr.vmem [resolvable:$true] %s167_s8 }
  0x10   : > { %s9364_s9 = smov 64   ;;  %s9365_s10 = smov 4  }
  0x11   : > { %p9452_p11 = pnand %p8910_p10, %p43_p1  ;;  %s179_s13 = sshll.u32 %s11919_s3, 4  ;;  %s180_s13 = int_to_ptr.hbm [resolvable:$true] %s179_s13 }
  0x12   : > { %s9366_s14 = smov [#allocation9]   ;;  %s9466_s23 = sadd.s32 1, %s9360_s18  }
  0x13   : > { %8913 = dma.hbm_to_vmem [thread:$0]  (!%p9452_p11), %s155_s25, 128, %s157_s28, [#allocation7]  }
  0x14   : > { %8916 = dma.hbm_to_vmem [thread:$0]  (!%p9452_p11), %s166_s5, 9216, %s168_s8, [#allocation7], %s9364_s9, %s9364_s9, %s9365_s10  }
  0x15   : > { %s181_s20 = sshll.u32 %s9366_s14, 4  ;;  %s26_s24 = ssub.s32 %s9360_s18, %s9466_s23  ;;  %s182_s20 = int_to_ptr.vmem [resolvable:$true] %s181_s20 }
  0x16   : > { %8919 = dma.hbm_to_vmem [thread:$0]  (!%p9452_p11), %s180_s13, 9216, %s182_s20, [#allocation10], %s9364_s9, %s9364_s9, %s9365_s10  }
  0x17   : > { %s29_s25 = sadd.s32 1, %s9356_s17  ;;  %p27_p12 = scmp.eq.s32.totalorder %s26_s24, 0 }
  0x18   : > { %p36_p13 = scmp.ne.s32.totalorder %s9356_s17, %s9352_s16  ;;  %p37_p0 = scmp.eq.s32.totalorder %s9360_s18, 0 }
  0x19   : > { %p8931_p3 = scmp.lt.s32.totalorder %s9360_s18, 2  ;;  %s195_s29 = sand.u32 1, %s9356_s17  }
  0x1a   : > { %s9476_s27 = scalar_select %p27_p12, %s9356_s17, %s29_s25  }
  0x1b   : > { %p38_p5 = por %p37_p0, %p36_p13  ;;  %p9480_p7 = por %p129_p2, %p36_p13 }
  0x1c   : > { %s8352_s30 = sshll.u32 %s9360_s18, 8  ;;  %s7762_s5 = sshll.u32 %s195_s29, 8 }
  0x1d   : > { %s204_s8 = scalar_lea.hbm %s11916_s0, %s8352_s30  ;;  %s199_s10 = scalar_lea.vmem [#allocation3], %s7762_s5 }
  0x1e   : > { %s205_s9 = sshll.u32 %s204_s8, 4  ;;  %s207_s11 = sshll.u32 %s199_s10, 4  ;;  %s206_s9 = int_to_ptr.hbm [resolvable:$true] %s205_s9  ;;  %s208_s11 = int_to_ptr.vmem [resolvable:$true] %s207_s11 }
  0x1f   : > { %p9491_p10 = pnand %p8931_p3, %p38_p5  ;;  %s196_s13 = scalar_lea.sflag [#allocation4], %s195_s29 }
  0x20   : > { %s9223_s14 = sshra.s32 %s206_s9, 4  ;;  %s9230_s30 = scalar_lea.hbm %s11916_s0, 512  ;;  %s9224_s14 = int_to_ptr.hbm [resolvable:$true] %s9223_s14 }
  0x21   : > { %s9225_s20 = scalar_lea.hbm %s9224_s14, 256  ;;  %p9227_p11 = pneg %p9491_p10 }
  0x22   : > { %p9226_p2 = scmp.ne.s32.totalorder %s9224_s14, %s9225_s20  ;;  %p9231_p0 = scmp.lt.s32.totalorder %s9224_s14, %s11916_s0 }
  0x23   : > { %p9232_p3 = scmp.lt.s32.totalorder %s9230_s30, %s9225_s20 }
  0x24   : > { %p9228_p12 = pnand %p9227_p11, %p9226_p2 }
  0x25   : > { %p9233_p5 = por %p9232_p3, %p9231_p0 }
  0x26   : > { %p9229_p13 = pneg %p9228_p12 }
  0x28   : > { %p9234_p9 = pnand %p9233_p5, %p9229_p13 }
  0x2a   : > { %9237 = shalt.err (!%p9234_p9)
}
  0x2b   : > { %s9367_s29 = smov 128   ;;  %s9368_s7 = smov 8  }
  0x2c   : > { %8923 = dma.hbm_to_vmem [thread:$0]  (!%p9491_p10), %s206_s9, 4096, %s208_s11, %s196_s13, %s9367_s29, %s9367_s29, %s9368_s7  }
  0x2d   : > { %219 = sbr.rel (%p9440_p8) target bundleno = 1551 (0x60f), region = 36 }
  0x32   : > { %s9508_s8 = sand.u32 1, %s9352_s16  }
  0x33   : > { %s7766_s10 = sshll.u32 %s9508_s8, 8  ;;  %s222_s14 = scalar_lea.sflag [#allocation4], %s9508_s8 }
  0x34   : > { %s9514_s20 = scalar_lea.vmem [#allocation3], %s7766_s10 }
  0x35   : > { %9298 = dma.done.wait (%p9427_p4), %s222_s14, 4096  }
  0x36   : > { %9300 = vsyncadd (%p9427_p4), %s222_s14, 4294963200 }
  0x37   : > { %9302 = dma.done.wait (%p43_p1), [#allocation7], 9344  }
  0x38   : > { %9304 = vsyncadd (%p43_p1), [#allocation7], 4294957952 }
  0x39   : > { %9306 = dma.done.wait (%p43_p1), [#allocation10], 9216  }
  0x3a   : > { %9308 = vsyncadd (%p43_p1), [#allocation10], 4294958080  ;;  %v8384_v0 = vld [vmem:[#allocation8 + $0xf8] sm:$0xff]  ;;  %vm274_vm0 = vcmask 1040384   ;;  %vm275_vm1 = vsmask.f32 256 }
  0x3b   : > { %v8392_v1 = vld [vmem:[#allocation8 + $0x138] sm:$0xff]  ;;  %2257 = vmatpush.bf16.msra.mxu0 %v8384_v0  ;;  %8878 = vmatpush.bf16.msra.mxu2 %v8384_v0  ;;  %v8383_v2 = vld [vmem:[#allocation8 + $0xf0] sm:$0xff]  ;;  %vm9530_vm2 = vmand %vm274_vm0, %vm275_vm1  ;;  %v11945_v4 = vmov 0  ;;  %vm331_vm3 = vsmask.f32 7938  ;;  %v11948_v13 = vmov 0 }
  0x3c   : > { %2346 = vmatpush.bf16.msra.mxu1 %v8392_v1  ;;  %8886 = vmatpush.bf16.msra.mxu3 %v8392_v1  ;;  %v8391_v3 = vld [vmem:[#allocation8 + $0x130] sm:$0xff]  ;;  %v11946_v4 = vsel %vm9530_vm2, 4294967295, %v11945_v4  ;;  %v8382_v5 = vld [vmem:[#allocation8 + $0xe8] sm:$0xff]  ;;  %v387_v8 = vld [vmem:[%s9514_s20] sm:$0xff]  ;;  %vm845_vm5 = vcmask 1043456   ;;  %v11951_v59 = vmov 0 }
  0x3d   : > { %11947 = vst [vmem:[#allocation16_spill] sm:$0xff] %v11946_v4  ;;  %v8390_v6 = vld [vmem:[#allocation8 + $0x128] sm:$0xff]  ;;  %v388_v10 = vld [vmem:[%s9514_s20 + $0x8] sm:$0xff]  ;;  %v9538_v11 = vld [vmem:[#allocation6] ss:$0 sm:$0xff]  ;;  %vm1424_vm10 = vcmask 1046528  }
  0x3e   : > { %v280_v7 = vld [vmem:[#allocation2 + $0xc] sm:$0x1]  ;;  %v9540_v12 = vld [vmem:[#allocation6 + $0x1] ss:$0 sm:$0xff]  ;;  %vm9544_vm4 = vmand %vm274_vm0, %vm331_vm3  ;;  %v425_v18 = vmul.f32 %v9538_v11, %v387_v8  ;;  %v426_v19 = vmul.f32 %v9538_v11, %v388_v10  ;;  %vm522_vm6 = vsmask.f32 4368 }
  0x3f   : > { %2258 = vmatpush.bf16.msra.mxu0 %v8383_v2  ;;  %8879 = vmatpush.bf16.msra.mxu2 %v8383_v2  ;;  %v281_v9 = vsel %vm9530_vm2, 0, %v280_v7  ;;  %v11949_v13 = vsel %vm9544_vm4, 4294967295, %v11948_v13  ;;  %v8381_v14 = vld [vmem:[#allocation8 + $0xe0] sm:$0xff]  ;;  %v304_v15 = vld [vmem:[#allocation2 + $0x6c] sm:$0x1]  ;;  %v403_v16 = vld [vmem:[%s9514_s20 + $0x80] sm:$0xff] }
  0x40   : > { %2347 = vmatpush.bf16.msra.mxu1 %v8391_v3  ;;  %8887 = vmatpush.bf16.msra.mxu3 %v8391_v3  ;;  %282 = vst [vmem:[#allocation2 + $0xc] sm:$0x1] %v281_v9  ;;  %v404_v17 = vld [vmem:[%s9514_s20 + $0x88] sm:$0xff]  ;;  %v305_v20 = vsel %vm9530_vm2, 0, %v304_v15  ;;  %v441_v21 = vmul.f32 %v9538_v11, %v403_v16  ;;  %v336_v22 = vld [vmem:[#allocation2 + $0x14] sm:$0x1]  ;;  %v458_v31 = vadd.f32 %v9540_v12, %v425_v18  ;;  %vm9579_vm7 = vmor %vm275_vm1, %vm522_vm6 }
  0x41   : > { %11950 = vst [vmem:[#allocation17_spill] sm:$0xff] %v11949_v13  ;;  %v360_v23 = vld [vmem:[#allocation2 + $0x74] sm:$0x1]  ;;  %v389_v24 = vld [vmem:[%s9514_s20 + $0x10] sm:$0xff]  ;;  %v442_v25 = vmul.f32 %v9538_v11, %v404_v17  ;;  %v337_v26 = vsel %vm9544_vm4, 0, %v336_v22  ;;  %v8389_v30 = vld [vmem:[#allocation8 + $0x120] sm:$0xff]  ;;  %v459_v32 = vadd.f32 %v9540_v12, %v426_v19 }
  0x42   : > { %306 = vst [vmem:[#allocation2 + $0x6c] sm:$0x1] %v305_v20  ;;  %v361_v27 = vsel %vm9544_vm4, 0, %v360_v23  ;;  %v283_v28 = vld [vmem:[#allocation2 + $0x18] sm:$0x1]  ;;  %v427_v29 = vmul.f32 %v9538_v11, %v389_v24  ;;  %v474_v33 = vadd.f32 %v9540_v12, %v441_v21  ;;  %v390_v34 = vld [vmem:[%s9514_s20 + $0x18] sm:$0xff]  ;;  %v490_v40 = vpack.c.bf16 %v458_v31, %v458_v31  ;;  %vm9588_vm8 = vmand %vm845_vm5, %vm331_vm3 }
  0x43   : > { %2259 = vmatpush.bf16.msra.mxu0 %v8382_v5  ;;  %8880 = vmatpush.bf16.msra.mxu2 %v8382_v5  ;;  %338 = vst [vmem:[#allocation2 + $0x14] sm:$0x1] %v337_v26  ;;  %v307_v35 = vld [vmem:[#allocation2 + $0x78] sm:$0x1]  ;;  %v475_v36 = vadd.f32 %v9540_v12, %v442_v25  ;;  %v284_v37 = vsel %vm9530_vm2, 0, %v283_v28  ;;  %v428_v38 = vmul.f32 %v9538_v11, %v390_v34  ;;  %v405_v53 = vld [vmem:[%s9514_s20 + $0x90] sm:$0xff] }
  0x44   : > { %2348 = vmatpush.bf16.msra.mxu1 %v8390_v6  ;;  %8888 = vmatpush.bf16.msra.mxu3 %v8390_v6  ;;  %362 = vst [vmem:[#allocation2 + $0x74] sm:$0x1] %v361_v27  ;;  %v460_v39 = vadd.f32 %v9540_v12, %v427_v29  ;;  %v491_v41 = vpack.c.bf16 %v459_v32, %v459_v32  ;;  %v308_v43 = vsel %vm9530_vm2, 0, %v307_v35  ;;  %v8380_v44 = vld [vmem:[#allocation8 + $0xd8] sm:$0xff]  ;;  %v525_v49 = vshrl.u32 %v490_v40, 16  ;;  %v8379_v58 = vld [vmem:[#allocation8 + $0xd0] sm:$0xff] }
  0x45   : > { %v506_v42 = vpack.c.bf16 %v474_v33, %v474_v33  ;;  %285 = vst [vmem:[#allocation2 + $0x18] sm:$0x1] %v284_v37  ;;  %v507_v45 = vpack.c.bf16 %v475_v36, %v475_v36  ;;  %v461_v46 = vadd.f32 %v9540_v12, %v428_v38  ;;  %v8388_v48 = vld [vmem:[#allocation8 + $0x118] sm:$0xff]  ;;  %v528_v50 = vshll.u32 %v490_v40, 16  ;;  %v8387_v1 = vld [vmem:[#allocation8 + $0x110] sm:$0xff]  ;;  %v8378_v19 = vld [vmem:[#allocation8 + $0xc8] sm:$0xff] }
  0x46   : > { %v9574_v47 = vpack.c.bf16 %v460_v39, %v460_v39  ;;  %309 = vst [vmem:[#allocation2 + $0x78] sm:$0x1] %v308_v43  ;;  %v533_v51 = vshrl.u32 %v491_v41, 16  ;;  %v536_v52 = vshll.u32 %v491_v41, 16  ;;  %v11952_v59 = vsel %vm9579_vm7, 4294967295, %v11951_v59  ;;  %v406_v18 = vld [vmem:[%s9514_s20 + $0x98] sm:$0xff] }
  0x47   : > { %2260 = vmatpush.bf16.msra.mxu0 %v8381_v14  ;;  %8881 = vmatpush.bf16.msra.mxu2 %v8381_v14  ;;  %v661_v54 = vshrl.u32 %v506_v42, 16  ;;  %v664_v55 = vshll.u32 %v506_v42, 16  ;;  %v669_v56 = vshrl.u32 %v507_v45, 16  ;;  %v672_v57 = vshll.u32 %v507_v45, 16  ;;  %11953 = vst [vmem:[#allocation18_spill] sm:$0xff] %v11952_v59  ;;  %v8386_v26 = vld [vmem:[#allocation8 + $0x108] sm:$0xff] }
  0x48   : > { %2349 = vmatpush.bf16.msra.mxu1 %v8389_v30  ;;  %8889 = vmatpush.bf16.msra.mxu3 %v8389_v30  ;;  %v527_v60 = vrot.slane %v525_v49, 7  ;;  %v535_v61 = vrot.slane %v533_v51, 7  ;;  %v847_v62 = vld [vmem:[#allocation2 + $0xc] sm:$0xf]  ;;  %v9583_v63 = vpack.c.bf16 %v461_v46, %v461_v46  ;;  %v542_v0 = vshrl.u32 %v9574_v47, 16  ;;  %v391_v33 = vld [vmem:[%s9514_s20 + $0x20] sm:$0xff] }
  0x49   : > { %v11954_v2 = vmov 0  ;;  %v663_v3 = vrot.slane %v661_v54, 7  ;;  %v671_v5 = vrot.slane %v669_v56, 7  ;;  %v545_v7 = vshll.u32 %v9574_v47, 16  ;;  %v903_v16 = vld [vmem:[#allocation2 + $0x6c] sm:$0xf] }
  0x4a   : > { %v11955_v2 = vsel %vm9588_vm8, 4294967295, %v11954_v2  ;;  %v851_v6 = vld [vmem:[#allocation2 + $0x14] sm:$0x1]  ;;  %v443_v8 = vmul.f32 %v9538_v11, %v405_v53  ;;  %v530_v9 = vor.u32 %v528_v50, %v527_v60  ;;  %v531_v10 = vrot.slane %v527_v60, 4  ;;  %v9595_v24 = vld [vmem:[#allocation2 + $0x20] sm:$0x1] }
  0x4b   : > { %2261 = vmatpush.bf16.msra.mxu0 %v8380_v44  ;;  %8882 = vmatpush.bf16.msra.mxu2 %v8380_v44  ;;  %11956 = vst [vmem:[#allocation19_spill] sm:$0xff] %v11955_v2  ;;  %v538_v14 = vor.u32 %v536_v52, %v535_v61  ;;  %v540_v15 = vrot.slane %v535_v61, 4  ;;  %v907_v17 = vld [vmem:[#allocation2 + $0x74] sm:$0x1]  ;;  %v666_v20 = vor.u32 %v664_v55, %v663_v3  ;;  %v667_v21 = vrot.slane %v663_v3, 4  ;;  %v392_v42 = vld [vmem:[%s9514_s20 + $0x28] sm:$0xff] }
  0x4c   : > { %2350 = vmatpush.bf16.msra.mxu1 %v8388_v48  ;;  %8890 = vmatpush.bf16.msra.mxu3 %v8388_v48  ;;  %v674_v22 = vor.u32 %v672_v57, %v671_v5  ;;  %v676_v23 = vrot.slane %v671_v5, 4  ;;  %v9597_v25 = vld [vmem:[#allocation2 + $0x80] sm:$0x1]  ;;  %v848_v28 = vsel %vm9588_vm8, %v530_v9, %v847_v62  ;;  %v544_v30 = vrot.slane %v542_v0, 7  ;;  %v854_v31 = vld [vmem:[#allocation2 + $0x18] sm:$0xf] }
  0x4d   : > { %v539_v27 = vsel %vm9579_vm7, %v531_v10, %v538_v14  ;;  %v852_v29 = vsel %vm9530_vm2, %v540_v15, %v851_v6  ;;  %v9605_v32 = vld [vmem:[#allocation2 + $0x24] sm:$0x1]  ;;  %849 = vst [vmem:[#allocation2 + $0xc] sm:$0xf] %v848_v28  ;;  %v904_v35 = vsel %vm9588_vm8, %v666_v20, %v903_v16  ;;  %v550_v40 = vshrl.u32 %v9583_v63, 16  ;;  %v407_v55 = vld [vmem:[%s9514_s20 + $0xa0] sm:$0xff] }
  0x4e   : > { %v675_v34 = vsel %vm9579_vm7, %v667_v21, %v674_v22  ;;  %v908_v36 = vsel %vm9530_vm2, %v676_v23, %v907_v17  ;;  %v9614_v37 = vld [vmem:[#allocation2 + $0x84] sm:$0x1]  ;;  %850 = vst [vmem:[#allocation2 + $0x10] sm:$0xf] %v539_v27  ;;  %v547_v38 = vor.u32 %v545_v7, %v544_v30  ;;  %v548_v39 = vrot.slane %v544_v30, 4  ;;  %v8360_v0 = vld [vmem:[#allocation8 + $0x38] sm:$0xff] }
  0x4f   : > { %2262 = vmatpush.bf16.msra.mxu0 %v8379_v58  ;;  %8883 = vmatpush.bf16.msra.mxu2 %v8379_v58  ;;  %v553_v41 = vshll.u32 %v9583_v63, 16  ;;  %905 = vst [vmem:[#allocation2 + $0x6c] sm:$0xf] %v904_v35  ;;  %v444_v43 = vmul.f32 %v9538_v11, %v406_v18  ;;  %v476_v44 = vadd.f32 %v9540_v12, %v443_v8  ;;  %v340_v45 = vsel %vm9544_vm4, 0, %v9595_v24  ;;  %v8377_v51 = vld [vmem:[#allocation8 + $0xc0] sm:$0xff]  ;;  %v8400_v58 = vld [vmem:[#allocation8 + $0x178] sm:$0xff] }
  0x50   : > { %2351 = vmatpush.bf16.msra.mxu1 %v8387_v1  ;;  %8891 = vmatpush.bf16.msra.mxu3 %v8387_v1  ;;  %v364_v46 = vsel %vm9544_vm4, 0, %v9597_v25  ;;  %906 = vst [vmem:[#allocation2 + $0x70] sm:$0xf] %v675_v34  ;;  %v9627_v47 = vrot.slane %v550_v40, 7  ;;  %v855_v48 = vsel %vm9588_vm8, %v547_v38, %v854_v31  ;;  %v287_v49 = vsel %vm9530_vm2, 0, %v9605_v32  ;;  %v408_v56 = vld [vmem:[%s9514_s20 + $0xa8] sm:$0xff] }
  0x51   : > { %v429_v50 = vmul.f32 %v9538_v11, %v391_v33  ;;  %853 = vst [vmem:[#allocation2 + $0x14] sm:$0x1] %v852_v29  ;;  %v477_v52 = vadd.f32 %v9540_v12, %v444_v43  ;;  %v508_v53 = vpack.c.bf16 %v476_v44, %v476_v44  ;;  %v430_v54 = vmul.f32 %v9538_v11, %v392_v42  ;;  %v8385_v57 = vld [vmem:[#allocation8 + $0x100] sm:$0xff]  ;;  %v8368_v1 = vld [vmem:[#allocation8 + $0x78] sm:$0xff]  ;;  %v8399_v21 = vld [vmem:[#allocation8 + $0x170] sm:$0xff]  ;;  %s11658_s21 = scalar_lea.vmem [#allocation11], %s7766_s10 }
  0x52   : > { %909 = vst [vmem:[#allocation2 + $0x74] sm:$0x1] %v908_v36  ;;  %v555_v60 = vor.u32 %v553_v41, %v9627_v47  ;;  %v557_v61 = vrot.slane %v9627_v47, 4  ;;  %v311_v63 = vsel %vm9530_vm2, 0, %v9614_v37  ;;  %v910_v10 = vld [vmem:[#allocation2 + $0x78] sm:$0xf]  ;;  %v9649_v15 = vmul.f32 %v9538_v11, %v407_v55 }
  0x53   : > { %2263 = vmatpush.bf16.msra.mxu0 %v8378_v19  ;;  %8884 = vmatpush.bf16.msra.mxu2 %v8378_v19  ;;  %v462_v62 = vadd.f32 %v9540_v12, %v429_v50  ;;  %856 = vst [vmem:[#allocation2 + $0x18] sm:$0xf] %v855_v48  ;;  %v509_v3 = vpack.c.bf16 %v477_v52, %v477_v52  ;;  %v678_v5 = vshrl.u32 %v508_v53, 16  ;;  %v681_v6 = vshll.u32 %v508_v53, 16  ;;  %v8359_v25 = vld [vmem:[#allocation8 + $0x30] sm:$0xff]  ;;  %s8497_s26 = sshll.u32 %s9418_s19, 8 }
  0x54   : > { %2352 = vmatpush.bf16.msra.mxu1 %v8386_v26  ;;  %8892 = vmatpush.bf16.msra.mxu3 %v8386_v26  ;;  %v463_v7 = vadd.f32 %v9540_v12, %v430_v54  ;;  %v1537_v8 = vld [vmem:[#allocation2 + $0xc] sm:$0xf]  ;;  %v556_v9 = vsel %vm9579_vm7, %v548_v39, %v555_v60  ;;  %341 = vst [vmem:[#allocation2 + $0x20] sm:$0x1] %v340_v45  ;;  %vm1167_vm9 = vsmask.f32 7424  ;;  %s7650_s12 = scalar_lea.hbm %s11920_s4, %s8497_s26 }
  0x55   : > { %v494_v14 = vpack.c.bf16 %v462_v62, %v462_v62  ;;  %v9652_v16 = vmul.f32 %v9538_v11, %v408_v56  ;;  %v9654_v17 = vld [vmem:[#allocation2 + $0x10] sm:$0xf]  ;;  %v1633_v18 = vunpack.c.l.b16 %v1537_v8  ;;  %857 = vst [vmem:[#allocation2 + $0x1c] sm:$0xf] %v556_v9  ;;  %v680_v19 = vrot.slane %v678_v5, 7  ;;  %s7651_s13 = sshll.u32 %s11658_s21, 4  ;;  %s7652_s13 = int_to_ptr.vmem [resolvable:$true] %s7651_s13 }
  0x56   : > { %v686_v20 = vshrl.u32 %v509_v3, 16  ;;  %v9656_v22 = vpack.c.bf16 %v463_v7, %v463_v7  ;;  %v1634_v23 = vunpack.c.l.b16 %v9654_v17  ;;  %v689_v24 = vshll.u32 %v509_v3, 16  ;;  %365 = vst [vmem:[#allocation2 + $0x80] sm:$0x1] %v364_v46  ;;  %v8367_v36 = vld [vmem:[#allocation8 + $0x70] sm:$0xff]  ;;  %s7653_s19 = sshll.u32 %s7650_s12, 4  ;;  %s7654_s19 = int_to_ptr.hbm [resolvable:$true] %s7653_s19 }
  0x57   : > { %2264 = vmatpush.bf16.msra.mxu0 %v8377_v51  ;;  %8885 = vmatpush.bf16.msra.mxu2 %v8377_v51  ;;  %v559_v26 = vshrl.u32 %v494_v14, 16  ;;  %v562_v27 = vshll.u32 %v494_v14, 16  ;;  %v1553_v28 = vld [vmem:[#allocation2 + $0x6c] sm:$0xff]   ;;  %v683_v30 = vor.u32 %v681_v6, %v680_v19  ;;  %v684_v31 = vrot.slane %v680_v19, 4  ;;  %288 = vst [vmem:[#allocation2 + $0x24] sm:$0x1] %v287_v49 }
  0x58   : > { %2353 = vmatpush.bf16.msra.mxu1 %v8385_v57  ;;  %8893 = vmatpush.bf16.msra.mxu3 %v8385_v57  ;;  %v9659_v29 = vld [vmem:[#allocation2 + $0x6c] sm:$0xf0]  ;;  %v688_v32 = vrot.slane %v686_v20, 7  ;;  %v567_v33 = vshrl.u32 %v9656_v22, 16  ;;  %v1665_v34 = vpack.c.b16 %v1634_v23, %v1633_v18  ;;  %v1569_v35 = vld [vmem:[#allocation2 + $0x14] sm:$0x1]  ;;  %v478_v19 = vadd.f32 %v9540_v12, %v9649_v15 }
  0x59   : > { %v9664_v37 = vrot.slane %v559_v26, 7  ;;  %312 = vst [vmem:[#allocation2 + $0x84] sm:$0x1] %v311_v63  ;;  %v1713_v38 = vunpack.c.l.b16 %v1569_v35  ;;  %v1577_v39 = vld [vmem:[#allocation2 + $0x74] sm:$0x1]  ;;  %v911_v42 = vsel %vm9588_vm8, %v683_v30, %v910_v10  ;;  %v1842_v54 = vshrl.u32 %v1553_v28, 16 }
  0x5a   : > { %v691_v40 = vor.u32 %v689_v24, %v688_v32  ;;  %v693_v41 = vrot.slane %v688_v32, 4  ;;  %2265 = vmatmul.bf16.vlgmr.msra.gmra.mxu0 %v1665_v34  ;;  %v1746_v43 = vshrl.u32 %v1665_v34, 16  ;;  %v1748_v44 = vshll.u32 %v1665_v34, 16  ;;  %912 = vst [vmem:[#allocation2 + $0x78] sm:$0xf] %v911_v42  ;;  %2305 = vmatmul.bf16.vlgmr.msra.gmra.mxu2 %v1553_v28  ;;  %v394_v24 = vld [vmem:[%s9514_s20 + $0x38] sm:$0xff] }
  0x5b   : > { %2435 = vmatpush.bf16.msrb.mxu2 %v8400_v58  ;;  %2757 = vmatpush.bf16.msrb.mxu0 %v8368_v1  ;;  %v1721_v45 = vunpack.c.l.b16 %v1577_v39  ;;  %v9668_v46 = vpack.c.b16 %v1713_v38, %v1713_v38  ;;  %v858_v49 = vld [vmem:[#allocation2 + $0x20] sm:$0x1]  ;;  %v564_v50 = vor.u32 %v562_v27, %v9664_v37  ;;  %v565_v51 = vrot.slane %v9664_v37, 4  ;;  %v366_v20 = vld [vmem:[#allocation2 + $0x8c] sm:$0x1]  ;;  %s7639_s24 = scalar_lea.sflag [#allocation5], %s9508_s8 }
  0x5c   : > { %2668 = vmatpush.bf16.msrb.mxu3 %v8360_v0  ;;  %v692_v48 = vsel %vm9579_vm7, %v684_v31, %v691_v40  ;;  %v1750_v52 = vrot.slane %v1748_v44, 1  ;;  %v1844_v55 = vshll.u32 %v1553_v28, 16  ;;  %v9676_v56 = vld [vmem:[#allocation2 + $0x18] sm:$0xff]   ;;  %v859_v58 = vsel %vm9530_vm2, %v557_v61, %v858_v49  ;;  %v342_v0 = vld [vmem:[#allocation2 + $0x2c] sm:$0x1]  ;;  %s9267_s25 = sshra.s32 %s7654_s19, 4  ;;  %s9268_s25 = int_to_ptr.hbm [resolvable:$true] %s9267_s25 }
  0x5d   : > { %v9674_v53 = vpack.c.b16 %v1721_v45, %v1721_v45  ;;  %913 = vst [vmem:[#allocation2 + $0x7c] sm:$0xf] %v692_v48  ;;  %v1753_v57 = vshll.u32 %v9668_v46, 16  ;;  %v1758_v60 = vshrl.u32 %v9676_v56, 16  ;;  %v1760_v62 = vshll.u32 %v9676_v56, 16  ;;  %v8358_v37 = vld [vmem:[#allocation8 + $0x28] sm:$0xff]  ;;  %p9274_p9 = scmp.lt.s32.totalorder %s9268_s25, %s11920_s4 }
  0x5e   : > { %v914_v63 = vld [vmem:[#allocation2 + $0x80] sm:$0x1]  ;;  %v1751_v1 = vor.u32 %v1750_v52, %v1746_v43  ;;  %v1846_v3 = vrot.slane %v1844_v55, 1  ;;  %860 = vst [vmem:[#allocation2 + $0x20] sm:$0x1] %v859_v58  ;;  %v9688_v61 = vrot.slane %v567_v33, 7  ;;  %v479_v30 = vadd.f32 %v9540_v12, %v9652_v16 }
  0x5f   : > { %2436 = vmatpush.bf16.msrb.mxu2 %v8399_v21  ;;  %2758 = vmatpush.bf16.msrb.mxu0 %v8367_v36  ;;  %v1849_v5 = vshll.u32 %v9674_v53, 16  ;;  %v915_v6 = vsel %vm9530_vm2, %v693_v41, %v914_v63  ;;  %v861_v47 = vld [vmem:[#allocation2 + $0x24] sm:$0xf]  ;;  %v1755_v7 = vrot.slane %v1753_v57, 1  ;;  %v1762_v8 = vrot.slane %v1760_v62, 1  ;;  %v393_v21 = vld [vmem:[%s9514_s20 + $0x30] sm:$0xff] }
  0x60   : > { %2669 = vmatpush.bf16.msrb.mxu3 %v8359_v25  ;;  %916 = vst [vmem:[#allocation2 + $0x80] sm:$0x1] %v915_v6  ;;  %v570_v9 = vshll.u32 %v9656_v22, 16  ;;  %v1847_v10 = vor.u32 %v1846_v3, %v1842_v54  ;;  %v862_v18 = vsel %vm9588_vm8, %v564_v50, %v861_v47  ;;  %v574_v28 = vrot.slane %v9688_v61, 4  ;;  %v289_v32 = vld [vmem:[#allocation2 + $0x30] sm:$0x1] }
  0x61   : > { %v1851_v14 = vrot.slane %v1849_v5, 1  ;;  %v1756_v25 = vsel %vm1167_vm9, %v1751_v1, %v1755_v7  ;;  %v9698_v26 = vor.u32 %v1762_v8, %v1758_v60  ;;  %863 = vst [vmem:[#allocation2 + $0x24] sm:$0xf] %v862_v18  ;;  %v510_v31 = vpack.c.bf16 %v478_v19, %v478_v19  ;;  %v8398_v36 = vld [vmem:[#allocation8 + $0x168] sm:$0xff]  ;;  %v917_v62 = vld [vmem:[#allocation2 + $0x84] sm:$0xf] }
  0x62   : > { %v572_v27 = vor.u32 %v570_v9, %v9688_v61  ;;  %2354 = vmatmul.bf16.vlgmr.msra.gmra.mxu1 %v1756_v25  ;;  %v343_v15 = vsel %vm9544_vm4, 0, %v342_v0  ;;  %v367_v35 = vsel %vm9544_vm4, 0, %v366_v20  ;;  %v431_v38 = vmul.f32 %v9538_v11, %v393_v21  ;;  %v8366_v43 = vld [vmem:[#allocation8 + $0x68] sm:$0xff]  ;;  %v313_v21 = vld [vmem:[#allocation2 + $0x90] sm:$0x1]  ;;  %s9269_s30 = scalar_lea.hbm %s9268_s25, 256 }
  0x63   : > { %v1852_v22 = vsel %vm1167_vm9, %v1847_v10, %v1851_v14  ;;  %344 = vst [vmem:[#allocation2 + $0x2c] sm:$0x1] %v343_v15  ;;  %v432_v16 = vmul.f32 %v9538_v11, %v394_v24  ;;  %v511_v41 = vpack.c.bf16 %v479_v30, %v479_v30  ;;  %v695_v42 = vshrl.u32 %v510_v31, 16  ;;  %2437 = vmatpush.bf16.msrb.mxu2 %v8398_v36  ;;  %v345_v61 = vld [vmem:[#allocation2 + $0x38] sm:$0x1]  ;;  %p9270_p1 = scmp.ne.s32.totalorder %s9268_s25, %s9269_s30  ;;  %s9273_s29 = scalar_lea.hbm %s11920_s4, 512 }
  0x64   : > { %2394 = vmatmul.bf16.vlgmr.msra.gmra.mxu3 %v1852_v22  ;;  %v8725_v33 = vld [vmem:[#allocation2 + $0x78] sm:$0xff]   ;;  %v573_v34 = vsel %vm9579_vm7, %v565_v51, %v572_v27  ;;  %v698_v45 = vshll.u32 %v510_v31, 16  ;;  %368 = vst [vmem:[#allocation2 + $0x8c] sm:$0x1] %v367_v35  ;;  %v290_v48 = vsel %vm9530_vm2, 0, %v289_v32  ;;  %v464_v49 = vadd.f32 %v9540_v12, %v431_v38  ;;  %2759 = vmatpush.bf16.msrb.mxu0 %v8366_v43  ;;  %v409_v31 = vld [vmem:[%s9514_s20 + $0xb0] sm:$0xff]  ;;  %p9275_p10 = scmp.lt.s32.totalorder %s9273_s29, %s9269_s30 }
  0x65   : > { %v1854_v39 = vshrl.u32 %v8725_v33, 16  ;;  %v1856_v40 = vshll.u32 %v8725_v33, 16  ;;  %864 = vst [vmem:[#allocation2 + $0x28] sm:$0xf] %v573_v34  ;;  %v1570_v44 = vld [vmem:[#allocation2 + $0x20] sm:$0x1]  ;;  %2670 = vmatpush.bf16.msrb.mxu3 %v8358_v37  ;;  %v465_v50 = vadd.f32 %v9540_v12, %v432_v16  ;;  %p9271_p4 = pnand %p9270_p1, %p9480_p7 }
  0x66   : > { %v1714_v51 = vunpack.c.l.b16 %v1570_v44  ;;  %v697_v55 = vrot.slane %v695_v42, 7  ;;  %v703_v57 = vshrl.u32 %v511_v41, 16  ;;  %v706_v60 = vshll.u32 %v511_v41, 16  ;;  %291 = vst [vmem:[#allocation2 + $0x30] sm:$0x1] %v290_v48  ;;  %v410_v35 = vld [vmem:[%s9514_s20 + $0xb8] sm:$0xff]  ;;  %p9276_p2 = por %p9275_p10, %p9274_p9 }
  0x67   : > { %v1578_v52 = vld [vmem:[#allocation2 + $0x80] sm:$0x1]  ;;  %v1858_v54 = vrot.slane %v1856_v40, 1  ;;  %v496_v63 = vpack.c.bf16 %v464_v49, %v464_v49  ;;  %v497_v0 = vpack.c.bf16 %v465_v50, %v465_v50  ;;  %v395_v42 = vld [vmem:[%s9514_s20 + $0x40] sm:$0xff]  ;;  %v314_v48 = vsel %vm9530_vm2, 0, %v313_v21  ;;  %p9272_p8 = pneg %p9271_p4 }
  0x68   : > { %v1722_v58 = vunpack.c.l.b16 %v1578_v52  ;;  %v9717_v1 = vpack.c.b16 %v1714_v51, %v1714_v51  ;;  %v700_v5 = vor.u32 %v698_v45, %v697_v55  ;;  %v701_v6 = vrot.slane %v697_v55, 4  ;;  %v292_v49 = vld [vmem:[#allocation2 + $0x3c] sm:$0x1]  ;;  %315 = vst [vmem:[#allocation2 + $0x90] sm:$0x1] %v314_v48 }
  0x69   : > { %v1859_v3 = vor.u32 %v1858_v54, %v1854_v39  ;;  %v705_v7 = vrot.slane %v703_v57, 7  ;;  %v576_v8 = vshrl.u32 %v496_v63, 16  ;;  %v579_v9 = vshll.u32 %v496_v63, 16  ;;  %v369_v39 = vld [vmem:[#allocation2 + $0x98] sm:$0x1]  ;;  %v396_v54 = vld [vmem:[%s9514_s20 + $0x48] sm:$0xff]  ;;  %p9277_p11 = pnand %p9276_p2, %p9272_p8 }
  0x6a   : > { %v9719_v47 = vpack.c.b16 %v1722_v58, %v1722_v58  ;;  %2270 = vmatmul.bf16.gmra.mxu0 %v9676_v56  ;;  %v1765_v10 = vshll.u32 %v9717_v1, 16  ;;  %v918_v14 = vsel %vm9588_vm8, %v700_v5, %v917_v62  ;;  %v865_v18 = vld [vmem:[#allocation2 + $0x2c] sm:$0x1]  ;;  %v584_v19 = vshrl.u32 %v497_v0, 16  ;;  %2310 = vmatmul.bf16.gmra.mxu2 %v8725_v33  ;;  %v411_v55 = vld [vmem:[%s9514_s20 + $0xc0] sm:$0xff] }
  0x6b   : > { %v587_v20 = vshll.u32 %v497_v0, 16  ;;  %v708_v22 = vor.u32 %v706_v60, %v705_v7  ;;  %v710_v30 = vrot.slane %v705_v7, 4  ;;  %919 = vst [vmem:[#allocation2 + $0x84] sm:$0xf] %v918_v14  ;;  %v866_v56 = vsel %vm9530_vm2, %v574_v28, %v865_v18  ;;  %v921_v32 = vld [vmem:[#allocation2 + $0x8c] sm:$0x1] }
  0x6c   : > { %v1861_v24 = vshll.u32 %v9719_v47, 16  ;;  %v9726_v25 = vld [vmem:[#allocation2 + $0x24] sm:$0xff]   ;;  %v1767_v15 = vrot.slane %v1765_v10, 1  ;;  %867 = vst [vmem:[#allocation2 + $0x2c] sm:$0x1] %v866_v56  ;;  %v578_v34 = vrot.slane %v576_v8, 7  ;;  %v447_v52 = vmul.f32 %v9538_v11, %v409_v31 }
  0x6d   : > { %v9728_v27 = vld [vmem:[#allocation2 + $0x24] sm:$0xf0]  ;;  %v709_v37 = vsel %vm9579_vm7, %v701_v6, %v708_v22  ;;  %v922_v38 = vsel %vm9530_vm2, %v710_v30, %v921_v32  ;;  %v9740_v16 = vrot.slane %v584_v19, 7  ;;  %v868_v41 = vld [vmem:[#allocation2 + $0x30] sm:$0xf]  ;;  %v1772_v50 = vshll.u32 %v9726_v25, 16 }
  0x6e   : > { %v1863_v36 = vrot.slane %v1861_v24, 1  ;;  %v1768_v28 = vsel %vm1167_vm9, %v9698_v26, %v1767_v15  ;;  %920 = vst [vmem:[#allocation2 + $0x88] sm:$0xf] %v709_v37  ;;  %v581_v33 = vor.u32 %v579_v9, %v578_v34  ;;  %v582_v40 = vrot.slane %v578_v34, 4  ;;  %v316_v63 = vld [vmem:[#allocation2 + $0x9c] sm:$0x1] }
  0x6f   : > { %923 = vst [vmem:[#allocation2 + $0x8c] sm:$0x1] %v922_v38  ;;  %v589_v44 = vor.u32 %v587_v20, %v9740_v16  ;;  %v591_v45 = vrot.slane %v9740_v16, 4  ;;  %v1770_v26 = vshrl.u32 %v9726_v25, 16  ;;  %v448_v58 = vmul.f32 %v9538_v11, %v410_v35  ;;  %v348_v7 = vld [vmem:[#allocation2 + $0x44] sm:$0x1] }
  0x70   : > { %v1864_v43 = vsel %vm1167_vm9, %v1859_v3, %v1863_v36  ;;  %v869_v51 = vsel %vm9588_vm8, %v581_v33, %v868_v41  ;;  %v346_v60 = vsel %vm9544_vm4, 0, %v345_v61  ;;  %v370_v62 = vsel %vm9544_vm4, 0, %v369_v39  ;;  %v8397_v10 = vld [vmem:[#allocation8 + $0x160] sm:$0xff] }
  0x71   : > { %v590_v57 = vsel %vm9579_vm7, %v582_v40, %v589_v44  ;;  %870 = vst [vmem:[#allocation2 + $0x30] sm:$0xf] %v869_v51  ;;  %v1774_v0 = vrot.slane %v1772_v50, 1  ;;  %v480_v3 = vadd.f32 %v9540_v12, %v447_v52  ;;  %v293_v5 = vsel %vm9530_vm2, 0, %v292_v49  ;;  %v8357_v14 = vld [vmem:[#allocation8 + $0x20] sm:$0xff]  ;;  %2438 = vmatpush.bf16.msrb.mxu2 %v8397_v10 }
  0x72   : > { %2359 = vmatmul.bf16.gmra.mxu1 %v1768_v28  ;;  %871 = vst [vmem:[#allocation2 + $0x34] sm:$0xf] %v590_v57  ;;  %v433_v6 = vmul.f32 %v9538_v11, %v395_v42  ;;  %v481_v9 = vadd.f32 %v9540_v12, %v448_v58  ;;  %v434_v18 = vmul.f32 %v9538_v11, %v396_v54  ;;  %v8365_v22 = vld [vmem:[#allocation8 + $0x60] sm:$0xff]  ;;  %v317_v34 = vsel %vm9530_vm2, 0, %v316_v63  ;;  %v924_v49 = vld [vmem:[#allocation2 + $0x90] sm:$0xf] }
  0x73   : > { %v1571_v8 = vld [vmem:[#allocation2 + $0x2c] sm:$0x1]  ;;  %347 = vst [vmem:[#allocation2 + $0x38] sm:$0x1] %v346_v60  ;;  %v9771_v19 = vmul.f32 %v9538_v11, %v411_v55  ;;  %v1775_v21 = vor.u32 %v1774_v0, %v1770_v26  ;;  %v512_v24 = vpack.c.bf16 %v480_v3, %v480_v3  ;;  %2671 = vmatpush.bf16.msrb.mxu3 %v8357_v14  ;;  %v349_v35 = vsel %vm9544_vm4, 0, %v348_v7  ;;  %v412_v61 = vld [vmem:[%s9514_s20 + $0xc8] sm:$0xff] }
  0x74   : > { %2399 = vmatmul.bf16.gmra.mxu3 %v1864_v43  ;;  %v1715_v20 = vunpack.c.l.b16 %v1571_v8  ;;  %371 = vst [vmem:[#allocation2 + $0x98] sm:$0x1] %v370_v62  ;;  %v466_v30 = vadd.f32 %v9540_v12, %v433_v6  ;;  %v513_v15 = vpack.c.bf16 %v481_v9, %v481_v9  ;;  %v467_v32 = vadd.f32 %v9540_v12, %v434_v18  ;;  %v372_v8 = vld [vmem:[#allocation2 + $0xa4] sm:$0x1] }
  0x75   : > { %v1557_v56 = vld [vmem:[#allocation2 + $0x84] sm:$0xff]   ;;  %294 = vst [vmem:[#allocation2 + $0x3c] sm:$0x1] %v293_v5  ;;  %v712_v38 = vshrl.u32 %v512_v24, 16  ;;  %2760 = vmatpush.bf16.msrb.mxu0 %v8365_v22  ;;  %v715_v28 = vshll.u32 %v512_v24, 16  ;;  %v450_v50 = vmul.f32 %v9538_v11, %v412_v61  ;;  %v373_v61 = vsel %vm9544_vm4, 0, %v372_v8 }
  0x76   : > { %v9774_v31 = vld [vmem:[#allocation2 + $0x84] sm:$0xf0]  ;;  %v9781_v36 = vpack.c.b16 %v1715_v20, %v1715_v20  ;;  %v1579_v37 = vld [vmem:[#allocation2 + $0x8c] sm:$0x1]  ;;  %318 = vst [vmem:[#allocation2 + $0x9c] sm:$0x1] %v317_v34  ;;  %v498_v43 = vpack.c.bf16 %v466_v30, %v466_v30  ;;  %v499_v26 = vpack.c.bf16 %v467_v32, %v467_v32 }
  0x77   : > { %v1723_v39 = vunpack.c.l.b16 %v1579_v37  ;;  %v720_v33 = vshrl.u32 %v513_v15, 16  ;;  %v723_v40 = vshll.u32 %v513_v15, 16  ;;  %v714_v42 = vrot.slane %v712_v38, 7  ;;  %350 = vst [vmem:[#allocation2 + $0x44] sm:$0x1] %v349_v35  ;;  %v397_v32 = vld [vmem:[%s9514_s20 + $0x50] sm:$0xff] }
  0x78   : > { %v1777_v41 = vshll.u32 %v9781_v36, 16  ;;  %v1866_v52 = vshrl.u32 %v1557_v56, 16  ;;  %v1868_v54 = vshll.u32 %v1557_v56, 16  ;;  %v596_v24 = vshll.u32 %v498_v43, 16  ;;  %v398_v34 = vld [vmem:[%s9514_s20 + $0x58] sm:$0xff] }
  0x79   : > { %v9785_v44 = vpack.c.b16 %v1723_v39, %v1723_v39  ;;  %v722_v48 = vrot.slane %v720_v33, 7  ;;  %v9789_v55 = vld [vmem:[#allocation2 + $0x30] sm:$0xff]   ;;  %v717_v57 = vor.u32 %v715_v28, %v714_v42  ;;  %v718_v62 = vrot.slane %v714_v42, 4  ;;  %v319_v39 = vld [vmem:[#allocation2 + $0xa8] sm:$0x1] }
  0x7a   : > { %2275 = vmatmul.bf16.gmra.mxu0 %v9726_v25  ;;  %v1779_v51 = vrot.slane %v1777_v41, 1  ;;  %v872_v58 = vld [vmem:[#allocation2 + $0x38] sm:$0x1]  ;;  %2315 = vmatmul.bf16.gmra.mxu2 %v1557_v56  ;;  %v1870_v6 = vrot.slane %v1868_v54, 1  ;;  %v1782_v14 = vshrl.u32 %v9789_v55, 16  ;;  %v1784_v18 = vshll.u32 %v9789_v55, 16 }
  0x7b   : > { %v1873_v60 = vshll.u32 %v9785_v44, 16  ;;  %v725_v63 = vor.u32 %v723_v40, %v722_v48  ;;  %v727_v0 = vrot.slane %v722_v48, 4  ;;  %v928_v3 = vld [vmem:[#allocation2 + $0x98] sm:$0x1]  ;;  %v925_v25 = vsel %vm9588_vm8, %v717_v57, %v924_v49  ;;  %374 = vst [vmem:[#allocation2 + $0xa4] sm:$0x1] %v373_v61 }
  0x7c   : > { %v1780_v5 = vsel %vm1167_vm9, %v1775_v21, %v1779_v51  ;;  %v873_v7 = vsel %vm9530_vm2, %v591_v45, %v872_v58  ;;  %926 = vst [vmem:[#allocation2 + $0x90] sm:$0xf] %v925_v25  ;;  %v1871_v20 = vor.u32 %v1870_v6, %v1866_v52  ;;  %v593_v21 = vshrl.u32 %v498_v43, 16  ;;  %v295_v45 = vld [vmem:[#allocation2 + $0x48] sm:$0x1]  ;;  %v8396_v57 = vld [vmem:[#allocation8 + $0x158] sm:$0xff] }
  0x7d   : > { %v1875_v9 = vrot.slane %v1873_v60, 1  ;;  %v726_v10 = vsel %vm9579_vm7, %v718_v62, %v725_v63  ;;  %v929_v16 = vsel %vm9530_vm2, %v727_v0, %v928_v3  ;;  %874 = vst [vmem:[#allocation2 + $0x38] sm:$0x1] %v873_v7  ;;  %v1786_v22 = vrot.slane %v1784_v18, 1  ;;  %v875_v40 = vld [vmem:[#allocation2 + $0x3c] sm:$0xf]  ;;  %2439 = vmatpush.bf16.msrb.mxu2 %v8396_v57 }
  0x7e   : > { %927 = vst [vmem:[#allocation2 + $0x94] sm:$0xf] %v726_v10  ;;  %v601_v30 = vshrl.u32 %v499_v26, 16  ;;  %v604_v56 = vshll.u32 %v499_v26, 16  ;;  %v482_v15 = vadd.f32 %v9540_v12, %v9771_v19  ;;  %v595_v37 = vrot.slane %v593_v21, 7  ;;  %v8356_v58 = vld [vmem:[#allocation8 + $0x18] sm:$0xff] }
  0x7f   : > { %v1876_v35 = vsel %vm1167_vm9, %v1871_v20, %v1875_v9  ;;  %930 = vst [vmem:[#allocation2 + $0x98] sm:$0x1] %v929_v16  ;;  %v483_v38 = vadd.f32 %v9540_v12, %v450_v50  ;;  %v9813_v28 = vor.u32 %v1786_v22, %v1782_v14  ;;  %v296_v19 = vsel %vm9530_vm2, 0, %v295_v45  ;;  %v879_v49 = vld [vmem:[#allocation2 + $0x44] sm:$0x1]  ;;  %v8364_v60 = vld [vmem:[#allocation8 + $0x58] sm:$0xff]  ;;  %2672 = vmatpush.bf16.msrb.mxu3 %v8356_v58 }
  0x80   : > { %v603_v33 = vrot.slane %v601_v30, 7  ;;  %v514_v41 = vpack.c.bf16 %v482_v15, %v482_v15  ;;  %v598_v42 = vor.u32 %v596_v24, %v595_v37  ;;  %v599_v43 = vrot.slane %v595_v37, 4  ;;  %297 = vst [vmem:[#allocation2 + $0x48] sm:$0x1] %v296_v19  ;;  %v931_v3 = vld [vmem:[#allocation2 + $0x9c] sm:$0xf]  ;;  %2761 = vmatpush.bf16.msrb.mxu0 %v8364_v60 }
  0x81   : > { %v515_v48 = vpack.c.bf16 %v483_v38, %v483_v38  ;;  %v435_v26 = vmul.f32 %v9538_v11, %v397_v32  ;;  %v320_v9 = vsel %vm9530_vm2, 0, %v319_v39  ;;  %v413_v61 = vld [vmem:[%s9514_s20 + $0xd0] sm:$0xff]  ;;  %v414_v39 = vld [vmem:[%s9514_s20 + $0xd8] sm:$0xff] }
  0x82   : > { %2364 = vmatmul.bf16.gmra.mxu1 %v1780_v5  ;;  %v606_v50 = vor.u32 %v604_v56, %v603_v33  ;;  %v608_v51 = vrot.slane %v603_v33, 4  ;;  %v729_v52 = vshrl.u32 %v514_v41, 16  ;;  %v732_v54 = vshll.u32 %v514_v41, 16  ;;  %v935_v15 = vld [vmem:[#allocation2 + $0xa4] sm:$0x1] }
  0x83   : > { %v876_v62 = vsel %vm9588_vm8, %v598_v42, %v875_v40  ;;  %v737_v63 = vshrl.u32 %v515_v48, 16  ;;  %v740_v0 = vshll.u32 %v515_v48, 16  ;;  %v436_v5 = vmul.f32 %v9538_v11, %v398_v34  ;;  %321 = vst [vmem:[#allocation2 + $0xa8] sm:$0x1] %v320_v9  ;;  %v351_v42 = vld [vmem:[#allocation2 + $0x50] sm:$0x1] }
  0x84   : > { %2404 = vmatmul.bf16.gmra.mxu3 %v1876_v35  ;;  %v607_v25 = vsel %vm9579_vm7, %v599_v43, %v606_v50  ;;  %877 = vst [vmem:[#allocation2 + $0x3c] sm:$0xf] %v876_v62  ;;  %v731_v7 = vrot.slane %v729_v52, 7  ;;  %v880_v8 = vsel %vm9530_vm2, %v608_v51, %v879_v49  ;;  %v1572_v10 = vld [vmem:[#allocation2 + $0x38] sm:$0x1]  ;;  %v468_v11 = vadd.f32 %v9540_v12, %v435_v26 }
  0x85   : > { %v8726_v6 = vld [vmem:[#allocation2 + $0x90] sm:$0xff]   ;;  %878 = vst [vmem:[#allocation2 + $0x40] sm:$0xf] %v607_v25  ;;  %v469_v20 = vadd.f32 %v9540_v12, %v436_v5  ;;  %v1716_v16 = vunpack.c.l.b16 %v1572_v10  ;;  %v739_v22 = vrot.slane %v737_v63, 7 }
  0x86   : > { %v1878_v14 = vshrl.u32 %v8726_v6, 16  ;;  %v1880_v18 = vshll.u32 %v8726_v6, 16  ;;  %v1580_v21 = vld [vmem:[#allocation2 + $0x98] sm:$0x1]  ;;  %v734_v24 = vor.u32 %v732_v54, %v731_v7  ;;  %v735_v45 = vrot.slane %v731_v7, 4 }
  0x87   : > { %881 = vst [vmem:[#allocation2 + $0x44] sm:$0x1] %v880_v8  ;;  %v1724_v30 = vunpack.c.l.b16 %v1580_v21  ;;  %v500_v32 = vpack.c.bf16 %v468_v11, %v468_v11  ;;  %v501_v34 = vpack.c.bf16 %v469_v20, %v469_v20  ;;  %v9829_v35 = vpack.c.b16 %v1716_v16, %v1716_v16  ;;  %v882_v50 = vld [vmem:[#allocation2 + $0x48] sm:$0xf]  ;;  %v9844_v54 = vld [vmem:[#allocation6] ss:$0 sm:$0xff] }
  0x88   : > { %v1882_v56 = vrot.slane %v1880_v18, 1  ;;  %v742_v37 = vor.u32 %v740_v0, %v739_v22  ;;  %v744_v38 = vrot.slane %v739_v22, 4  ;;  %v932_v12 = vsel %vm9588_vm8, %v734_v24, %v931_v3  ;;  %v298_v18 = vld [vmem:[#allocation2 + $0x54] sm:$0x1]  ;;  %v399_v21 = vld [vmem:[%s9514_s20 + $0x60] sm:$0xff] }
  0x89   : > { %v9836_v33 = vpack.c.b16 %v1724_v30, %v1724_v30  ;;  %933 = vst [vmem:[#allocation2 + $0x9c] sm:$0xf] %v932_v12  ;;  %v610_v41 = vshrl.u32 %v500_v32, 16  ;;  %v613_v19 = vshll.u32 %v500_v32, 16  ;;  %v1789_v43 = vshll.u32 %v9829_v35, 16 }
  0x8a   : > { %2280 = vmatmul.bf16.gmra.mxu0 %v9789_v55  ;;  %v1883_v40 = vor.u32 %v1882_v56, %v1878_v14  ;;  %v743_v48 = vsel %vm9579_vm7, %v735_v45, %v742_v37  ;;  %v936_v49 = vsel %vm9530_vm2, %v744_v38, %v935_v15  ;;  %v618_v26 = vshrl.u32 %v501_v34, 16  ;;  %2320 = vmatmul.bf16.gmra.mxu2 %v8726_v6  ;;  %v375_v14 = vld [vmem:[#allocation2 + $0xb0] sm:$0x1]  ;;  %v400_v56 = vld [vmem:[%s9514_s20 + $0x68] sm:$0xff] }
  0x8b   : > { %v1885_v55 = vshll.u32 %v9836_v33, 16  ;;  %934 = vst [vmem:[#allocation2 + $0xa0] sm:$0xf] %v743_v48  ;;  %v612_v51 = vrot.slane %v610_v41, 7  ;;  %v621_v52 = vshll.u32 %v501_v34, 16  ;;  %v451_v57 = vmul.f32 %v9844_v54, %v413_v61  ;;  %v8395_v41 = vld [vmem:[#allocation8 + $0x150] sm:$0xff] }
  0x8c   : > { %v1791_v58 = vrot.slane %v1789_v43, 1  ;;  %v9847_v60 = vld [vmem:[#allocation2 + $0x3c] sm:$0xff]   ;;  %937 = vst [vmem:[#allocation2 + $0xa4] sm:$0x1] %v936_v49  ;;  %v620_v63 = vrot.slane %v618_v26, 7  ;;  %v452_v0 = vmul.f32 %v9844_v54, %v414_v39  ;;  %v352_v3 = vsel %vm9544_vm4, 0, %v351_v42  ;;  %2440 = vmatpush.bf16.msrb.mxu2 %v8395_v41 }
  0x8d   : > { %v9849_v62 = vld [vmem:[#allocation2 + $0x3c] sm:$0xf0]  ;;  %v1887_v5 = vrot.slane %v1885_v55, 1  ;;  %v615_v25 = vor.u32 %v613_v19, %v612_v51  ;;  %353 = vst [vmem:[#allocation2 + $0x50] sm:$0x1] %v352_v3  ;;  %v616_v9 = vrot.slane %v612_v51, 4  ;;  %v437_v42 = vmul.f32 %v9844_v54, %v399_v21 }
  0x8e   : > { %v1573_v6 = vld [vmem:[#allocation2 + $0x44] sm:$0x1]  ;;  %v1792_v7 = vsel %vm1167_vm9, %v9813_v28, %v1791_v58  ;;  %v623_v10 = vor.u32 %v621_v52, %v620_v63  ;;  %v625_v20 = vrot.slane %v620_v63, 4  ;;  %v9864_v28 = vld [vmem:[#allocation6 + $0x1] ss:$0 sm:$0xff]  ;;  %v1794_v15 = vshrl.u32 %v9847_v60, 16 }
  0x8f   : > { %v1717_v8 = vunpack.c.l.b16 %v1573_v6  ;;  %v1888_v11 = vsel %vm1167_vm9, %v1883_v40, %v1887_v5  ;;  %v883_v16 = vsel %vm9588_vm8, %v615_v25, %v882_v50  ;;  %v484_v22 = vadd.f32 %v9864_v28, %v451_v57  ;;  %v8355_v19 = vld [vmem:[#allocation8 + $0x10] sm:$0xff]  ;;  %v938_v6 = vld [vmem:[#allocation2 + $0xa8] sm:$0xf]  ;;  %v354_v41 = vld [vmem:[#allocation2 + $0x5c] sm:$0x1] }
  0x90   : > { %v624_v45 = vsel %vm9579_vm7, %v616_v9, %v623_v10  ;;  %884 = vst [vmem:[#allocation2 + $0x48] sm:$0xf] %v883_v16  ;;  %v485_v30 = vadd.f32 %v9864_v28, %v452_v0  ;;  %v1796_v32 = vshll.u32 %v9847_v60, 16  ;;  %v376_v34 = vsel %vm9544_vm4, 0, %v375_v14  ;;  %v8363_v49 = vld [vmem:[#allocation8 + $0x50] sm:$0xff]  ;;  %2673 = vmatpush.bf16.msrb.mxu3 %v8355_v19 }
  0x91   : > { %v9860_v24 = vpack.c.b16 %v1717_v8, %v1717_v8  ;;  %885 = vst [vmem:[#allocation2 + $0x4c] sm:$0xf] %v624_v45  ;;  %v299_v37 = vsel %vm9530_vm2, 0, %v298_v18  ;;  %v516_v39 = vpack.c.bf16 %v484_v22, %v484_v22  ;;  %v438_v26 = vmul.f32 %v9844_v54, %v400_v56  ;;  %2762 = vmatpush.bf16.msrb.mxu0 %v8363_v49  ;;  %v415_v45 = vld [vmem:[%s9514_s20 + $0xe0] sm:$0xff]  ;;  %v416_v22 = vld [vmem:[%s9514_s20 + $0xe8] sm:$0xff] }
  0x92   : > { %2369 = vmatmul.bf16.gmra.mxu1 %v1792_v7  ;;  %v1561_v38 = vld [vmem:[#allocation2 + $0x9c] sm:$0xff]   ;;  %v517_v40 = vpack.c.bf16 %v485_v30, %v485_v30  ;;  %377 = vst [vmem:[#allocation2 + $0xb0] sm:$0x1] %v376_v34  ;;  %v1798_v43 = vrot.slane %v1796_v32, 1  ;;  %v470_v7 = vadd.f32 %v9864_v28, %v437_v42  ;;  %v322_v34 = vld [vmem:[#allocation2 + $0xb4] sm:$0x1] }
  0x93   : > { %v9875_v12 = vld [vmem:[#allocation2 + $0x9c] sm:$0xf0]  ;;  %v1801_v61 = vshll.u32 %v9860_v24, 16  ;;  %v1581_v48 = vld [vmem:[#allocation2 + $0xa4] sm:$0x1]  ;;  %v746_v51 = vshrl.u32 %v516_v39, 16  ;;  %v471_v21 = vadd.f32 %v9864_v28, %v438_v26 }
  0x94   : > { %2409 = vmatmul.bf16.gmra.mxu3 %v1888_v11  ;;  %300 = vst [vmem:[#allocation2 + $0x54] sm:$0x1] %v299_v37  ;;  %v1725_v55 = vunpack.c.l.b16 %v1581_v48  ;;  %v749_v52 = vshll.u32 %v516_v39, 16  ;;  %v886_v57 = vld [vmem:[#allocation2 + $0x50] sm:$0x1]  ;;  %v1799_v58 = vor.u32 %v1798_v43, %v1794_v15  ;;  %v754_v63 = vshrl.u32 %v517_v40, 16 }
  0x95   : > { %v1803_v50 = vrot.slane %v1801_v61, 1  ;;  %v757_v0 = vshll.u32 %v517_v40, 16  ;;  %v748_v5 = vrot.slane %v746_v51, 7  ;;  %v887_v25 = vsel %vm9530_vm2, %v625_v20, %v886_v57  ;;  %v378_v19 = vld [vmem:[#allocation2 + $0xbc] sm:$0x1] }
  0x96   : > { %v9880_v3 = vpack.c.b16 %v1725_v55, %v1725_v55  ;;  %v1890_v8 = vshrl.u32 %v1561_v38, 16  ;;  %v1892_v9 = vshll.u32 %v1561_v38, 16  ;;  %v756_v10 = vrot.slane %v754_v63, 7  ;;  %888 = vst [vmem:[#allocation2 + $0x50] sm:$0x1] %v887_v25 }
  0x97   : > { %v751_v11 = vor.u32 %v749_v52, %v748_v5  ;;  %v752_v16 = vrot.slane %v748_v5, 4  ;;  %v1804_v20 = vsel %vm1167_vm9, %v1799_v58, %v1803_v50  ;;  %v502_v40 = vpack.c.bf16 %v470_v7, %v470_v7  ;;  %v301_v49 = vld [vmem:[#allocation2 + $0x60] sm:$0x1] }
  0x98   : > { %v1897_v14 = vshll.u32 %v9880_v3, 16  ;;  %v9886_v18 = vld [vmem:[#allocation2 + $0x48] sm:$0xff]   ;;  %v1894_v30 = vrot.slane %v1892_v9, 1  ;;  %v759_v56 = vor.u32 %v757_v0, %v756_v10  ;;  %v761_v15 = vrot.slane %v756_v10, 4  ;;  %v325_v63 = vld [vmem:[#allocation2 + $0xc0] sm:$0x1] }
  0x99   : > { %v942_v32 = vld [vmem:[#allocation2 + $0xb0] sm:$0x1]  ;;  %v939_v61 = vsel %vm9588_vm8, %v751_v11, %v938_v6  ;;  %v1808_v39 = vshll.u32 %v9886_v18, 16  ;;  %v1806_v43 = vshrl.u32 %v9886_v18, 16  ;;  %v503_v26 = vpack.c.bf16 %v471_v21, %v471_v21 }
  0x9a   : > { %2285 = vmatmul.bf16.gmra.mxu0 %v9847_v60  ;;  %v1899_v37 = vrot.slane %v1897_v14, 1  ;;  %2325 = vmatmul.bf16.gmra.mxu2 %v1561_v38  ;;  %v1895_v42 = vor.u32 %v1894_v30, %v1890_v8  ;;  %v760_v60 = vsel %vm9579_vm7, %v752_v16, %v759_v56  ;;  %940 = vst [vmem:[#allocation2 + $0xa8] sm:$0xf] %v939_v61  ;;  %v627_v50 = vshrl.u32 %v502_v40, 16  ;;  %v401_v16 = vld [vmem:[%s9514_s20 + $0x70] sm:$0xff]  ;;  %v402_v56 = vld [vmem:[%s9514_s20 + $0x78] sm:$0xff] }
  0x9b   : > { %v943_v48 = vsel %vm9530_vm2, %v761_v15, %v942_v32  ;;  %941 = vst [vmem:[#allocation2 + $0xac] sm:$0xf] %v760_v60  ;;  %v630_v55 = vshll.u32 %v502_v40, 16  ;;  %v323_v51 = vsel %vm9530_vm2, 0, %v322_v34  ;;  %v1810_v52 = vrot.slane %v1808_v39, 1 }
  0x9c   : > { %944 = vst [vmem:[#allocation2 + $0xb0] sm:$0x1] %v943_v48  ;;  %v453_v38 = vmul.f32 %v9844_v54, %v415_v45  ;;  %v454_v57 = vmul.f32 %v9844_v54, %v416_v22  ;;  %v355_v58 = vsel %vm9544_vm4, 0, %v354_v41  ;;  %v1900_v0 = vsel %vm1167_vm9, %v1895_v42, %v1899_v37  ;;  %v889_v9 = vld [vmem:[#allocation2 + $0x54] sm:$0xf]  ;;  %v8394_v41 = vld [vmem:[#allocation8 + $0x148] sm:$0xff] }
  0x9d   : > { %v1574_v5 = vld [vmem:[#allocation2 + $0x50] sm:$0x1]  ;;  %v629_v6 = vrot.slane %v627_v50, 7  ;;  %v635_v25 = vshrl.u32 %v503_v26, 16  ;;  %v638_v7 = vshll.u32 %v503_v26, 16  ;;  %v379_v11 = vsel %vm9544_vm4, 0, %v378_v19  ;;  %2441 = vmatpush.bf16.msrb.mxu2 %v8394_v41 }
  0x9e   : > { %v1718_v8 = vunpack.c.l.b16 %v1574_v5  ;;  %324 = vst [vmem:[#allocation2 + $0xb4] sm:$0x1] %v323_v51  ;;  %v486_v10 = vadd.f32 %v9864_v28, %v453_v38  ;;  %v487_v14 = vadd.f32 %v9864_v28, %v454_v57  ;;  %v302_v30 = vsel %vm9530_vm2, 0, %v301_v49  ;;  %v8354_v19 = vld [vmem:[#allocation8 + $0x8] sm:$0xff] }
  0x9f   : > { %v632_v21 = vor.u32 %v630_v55, %v629_v6  ;;  %v633_v45 = vrot.slane %v629_v6, 4  ;;  %v637_v22 = vrot.slane %v635_v25, 7  ;;  %356 = vst [vmem:[#allocation2 + $0x5c] sm:$0x1] %v355_v58  ;;  %v326_v37 = vsel %vm9530_vm2, 0, %v325_v63  ;;  %v8362_v42 = vld [vmem:[#allocation8 + $0x48] sm:$0xff]  ;;  %2674 = vmatpush.bf16.msrb.mxu3 %v8354_v19 }
  0xa0   : > { %v9916_v15 = vpack.c.b16 %v1718_v8, %v1718_v8  ;;  %v518_v32 = vpack.c.bf16 %v486_v10, %v486_v10  ;;  %v519_v34 = vpack.c.bf16 %v487_v14, %v487_v14  ;;  %380 = vst [vmem:[#allocation2 + $0xbc] sm:$0x1] %v379_v11  ;;  %v440_v50 = vmul.f32 %v9844_v54, %v402_v56  ;;  %v8376_v63 = vld [vmem:[#allocation8 + $0xb8] sm:$0xff] }
  0xa1   : > { %v640_v61 = vor.u32 %v638_v7, %v637_v22  ;;  %v642_v39 = vrot.slane %v637_v22, 4  ;;  %v890_v40 = vsel %vm9588_vm8, %v632_v21, %v889_v9  ;;  %303 = vst [vmem:[#allocation2 + $0x60] sm:$0x1] %v302_v30  ;;  %2763 = vmatpush.bf16.msrb.mxu0 %v8362_v42  ;;  %2846 = vmatpush.bf16.msrb.mxu1 %v8376_v63  ;;  %v418_v22 = vld [vmem:[%s9514_s20 + $0xf8] sm:$0xff]  ;;  %v357_v42 = vld [vmem:[#allocation2 + $0x68] sm:$0x1] }
  0xa2   : > { %2374 = vmatmul.bf16.gmra.mxu1 %v1804_v20  ;;  %v439_v20 = vmul.f32 %v9844_v54, %v401_v16  ;;  %v8727_v60 = vld [vmem:[#allocation2 + $0xa8] sm:$0xff]   ;;  %v1813_v48 = vshll.u32 %v9916_v15, 16  ;;  %891 = vst [vmem:[#allocation2 + $0x54] sm:$0xf] %v890_v40  ;;  %v763_v49 = vshrl.u32 %v518_v32, 16  ;;  %v766_v26 = vshll.u32 %v518_v32, 16 }
  0xa3   : > { %v1582_v55 = vld [vmem:[#allocation2 + $0xb0] sm:$0x1]  ;;  %v1902_v51 = vshrl.u32 %v8727_v60, 16  ;;  %v1904_v38 = vshll.u32 %v8727_v60, 16  ;;  %v641_v57 = vsel %vm9579_vm7, %v633_v45, %v640_v61  ;;  %v771_v58 = vshrl.u32 %v519_v34, 16  ;;  %v417_v45 = vld [vmem:[%s9514_s20 + $0xf0] sm:$0xff] }
  0xa4   : > { %2414 = vmatmul.bf16.gmra.mxu3 %v1900_v0  ;;  %v1811_v0 = vor.u32 %v1810_v52, %v1806_v43  ;;  %v1726_v5 = vunpack.c.l.b16 %v1582_v55  ;;  %892 = vst [vmem:[#allocation2 + $0x58] sm:$0xf] %v641_v57  ;;  %v765_v6 = vrot.slane %v763_v49, 7  ;;  %v774_v25 = vshll.u32 %v519_v34, 16  ;;  %v381_v49 = vld [vmem:[#allocation2 + $0xc8] sm:$0x1] }
  0xa5   : > { %v1906_v7 = vrot.slane %v1904_v38, 1  ;;  %v773_v8 = vrot.slane %v771_v58, 7  ;;  %v945_v9 = vld [vmem:[#allocation2 + $0xb4] sm:$0xf]  ;;  %v472_v10 = vadd.f32 %v9864_v28, %v439_v20  ;;  %v473_v14 = vadd.f32 %v9864_v28, %v440_v50  ;;  %327 = vst [vmem:[#allocation2 + $0xc0] sm:$0x1] %v326_v37 }
  0xa6   : > { %v1815_v11 = vrot.slane %v1813_v48, 1  ;;  %v9929_v16 = vpack.c.b16 %v1726_v5, %v1726_v5  ;;  %v768_v43 = vor.u32 %v766_v26, %v765_v6  ;;  %v769_v52 = vrot.slane %v765_v6, 4  ;;  %v893_v21 = vld [vmem:[#allocation2 + $0x5c] sm:$0x1] }
  0xa7   : > { %v1907_v30 = vor.u32 %v1906_v7, %v1902_v51  ;;  %v776_v56 = vor.u32 %v774_v25, %v773_v8  ;;  %v778_v32 = vrot.slane %v773_v8, 4  ;;  %v894_v34 = vsel %vm9530_vm2, %v642_v39, %v893_v21  ;;  %v949_v61 = vld [vmem:[#allocation2 + $0xbc] sm:$0x1] }
  0xa8   : > { %v1909_v40 = vshll.u32 %v9929_v16, 16  ;;  %v946_v37 = vsel %vm9588_vm8, %v768_v43, %v945_v9  ;;  %895 = vst [vmem:[#allocation2 + $0x5c] sm:$0x1] %v894_v34  ;;  %v504_v41 = vpack.c.bf16 %v472_v10, %v472_v10  ;;  %v505_v19 = vpack.c.bf16 %v473_v14, %v473_v14  ;;  %v896_v7 = vld [vmem:[#allocation2 + $0x60] sm:$0xf] }
  0xa9   : > { %v777_v20 = vsel %vm9579_vm7, %v769_v52, %v776_v56  ;;  %947 = vst [vmem:[#allocation2 + $0xb4] sm:$0xf] %v946_v37  ;;  %v950_v48 = vsel %vm9530_vm2, %v778_v32, %v949_v61  ;;  %v455_v39 = vmul.f32 %v9844_v54, %v417_v45  ;;  %v382_v10 = vsel %vm9544_vm4, 0, %v381_v49  ;;  %v8375_v56 = vld [vmem:[#allocation8 + $0xb0] sm:$0xff]  ;;  %v8393_v49 = vld [vmem:[#allocation8 + $0x140] sm:$0xff] }
  0xaa   : > { %2290 = vmatmul.bf16.gmra.mxu0 %v9886_v18  ;;  %v456_v18 = vmul.f32 %v9844_v54, %v418_v22  ;;  %2330 = vmatmul.bf16.gmra.mxu2 %v8727_v60  ;;  %v1911_v26 = vrot.slane %v1909_v40, 1  ;;  %948 = vst [vmem:[#allocation2 + $0xb8] sm:$0xf] %v777_v20  ;;  %v644_v50 = vshrl.u32 %v504_v41, 16  ;;  %v647_v55 = vshll.u32 %v504_v41, 16 }
  0xab   : > { %v652_v51 = vshrl.u32 %v505_v19, 16  ;;  %v9945_v38 = vld [vmem:[#allocation2 + $0x54] sm:$0xff]   ;;  %951 = vst [vmem:[#allocation2 + $0xbc] sm:$0x1] %v950_v48  ;;  %v655_v58 = vshll.u32 %v505_v19, 16  ;;  %v488_v63 = vadd.f32 %v9864_v28, %v455_v39  ;;  %v358_v54 = vsel %vm9544_vm4, 0, %v357_v42  ;;  %2847 = vmatpush.bf16.msrb.mxu1 %v8375_v56  ;;  %2442 = vmatpush.bf16.msrb.mxu2 %v8393_v49 }
  0xac   : > { %v9947_v57 = vld [vmem:[#allocation2 + $0x54] sm:$0xf0]  ;;  %v489_v5 = vadd.f32 %v9864_v28, %v456_v18  ;;  %v1816_v60 = vsel %vm1167_vm9, %v1811_v0, %v1815_v11  ;;  %v646_v6 = vrot.slane %v644_v50, 7  ;;  %359 = vst [vmem:[#allocation2 + $0x68] sm:$0x1] %v358_v54  ;;  %v1912_v14 = vsel %vm1167_vm9, %v1907_v30, %v1911_v26 }
  0xad   : > { %v654_v25 = vrot.slane %v652_v51, 7  ;;  %v520_v8 = vpack.c.bf16 %v488_v63, %v488_v63  ;;  %383 = vst [vmem:[#allocation2 + $0xc8] sm:$0x1] %v382_v10  ;;  %v1820_v11 = vshll.u32 %v9945_v38, 16  ;;  %v952_v61 = vld [vmem:[#allocation2 + $0xc0] sm:$0xf] }
  0xae   : > { %v521_v9 = vpack.c.bf16 %v489_v5, %v489_v5  ;;  %v649_v43 = vor.u32 %v647_v55, %v646_v6  ;;  %v650_v52 = vrot.slane %v646_v6, 4  ;;  %v9369_v40 = vmov 0   ;;  %v8353_v63 = vld [vmem:[#allocation8] sm:$0xff]  ;;  %v8374_v5 = vld [vmem:[#allocation8 + $0xa8] sm:$0xff] }
  0xaf   : > { %v1575_v28 = vld [vmem:[#allocation2 + $0x5c] sm:$0x1]  ;;  %v657_v21 = vor.u32 %v655_v58, %v654_v25  ;;  %v780_v45 = vshrl.u32 %v520_v8, 16  ;;  %v783_v22 = vshll.u32 %v520_v8, 16  ;;  %v659_v32 = vrot.slane %v654_v25, 4  ;;  %v8361_v25 = vld [vmem:[#allocation8 + $0x40] sm:$0xff]  ;;  %2675 = vmatpush.bf16.msrb.mxu3 %v8353_v63  ;;  %2848 = vmatpush.bf16.msrb.mxu1 %v8374_v5 }
  0xb0   : > { %v1719_v0 = vunpack.c.l.b16 %v1575_v28  ;;  %v897_v34 = vsel %vm9588_vm8, %v649_v43, %v896_v7  ;;  %267 = vst [vmem:[#allocation2] sm:$0xf] %v9369_v40  ;;  %v788_v42 = vshrl.u32 %v521_v9, 16  ;;  %v791_v20 = vshll.u32 %v521_v9, 16  ;;  %2764 = vmatpush.bf16.msrb.mxu0 %v8361_v25  ;;  %v8373_v28 = vld [vmem:[#allocation8 + $0xa0] sm:$0xff]  ;;  %v8408_v63 = vld [vmem:[#allocation8 + $0x1b8] sm:$0xff] }
  0xb1   : > { %v1565_v30 = vld [vmem:[#allocation2 + $0xb4] sm:$0xff]   ;;  %v658_v41 = vsel %vm9579_vm7, %v650_v52, %v657_v21  ;;  %898 = vst [vmem:[#allocation2 + $0x60] sm:$0xf] %v897_v34  ;;  %v782_v19 = vrot.slane %v780_v45, 7  ;;  %v1818_v39 = vshrl.u32 %v9945_v38, 16  ;;  %v1822_v54 = vrot.slane %v1820_v11, 1  ;;  %3656 = vmatpush.bf16.msra.mxu2 %v8408_v63 }
  0xb2   : > { %2379 = vmatmul.bf16.gmra.mxu1 %v1816_v60  ;;  %v9961_v37 = vld [vmem:[#allocation2 + $0xb4] sm:$0xf0]  ;;  %v9965_v48 = vpack.c.b16 %v1719_v0, %v1719_v0  ;;  %v1583_v18 = vld [vmem:[#allocation2 + $0xbc] sm:$0x1]  ;;  %899 = vst [vmem:[#allocation2 + $0x64] sm:$0xf] %v658_v41 }
  0xb3   : > { %v1727_v26 = vunpack.c.l.b16 %v1583_v18  ;;  %v785_v50 = vor.u32 %v783_v22, %v782_v19  ;;  %v786_v55 = vrot.slane %v782_v19, 4  ;;  %v790_v51 = vrot.slane %v788_v42, 7  ;;  %v900_v58 = vld [vmem:[#allocation2 + $0x68] sm:$0x1]  ;;  %268 = vst [vmem:[#allocation2 + $0x4] sm:$0xf] %v9369_v40  ;;  %2849 = vmatpush.bf16.msrb.mxu1 %v8373_v28 }
  0xb4   : > { %2419 = vmatmul.bf16.gmra.mxu3 %v1912_v14  ;;  %v1825_v60 = vshll.u32 %v9965_v48, 16  ;;  %v901_v6 = vsel %vm9530_vm2, %v659_v32, %v900_v58  ;;  %v956_v14 = vld [vmem:[#allocation2 + $0xc8] sm:$0x1]  ;;  %v1914_v43 = vshrl.u32 %v1565_v30, 16  ;;  %v1916_v52 = vshll.u32 %v1565_v30, 16  ;;  %v8372_v19 = vld [vmem:[#allocation8 + $0x98] sm:$0xff] }
  0xb5   : > { %v9972_v7 = vpack.c.b16 %v1727_v26, %v1727_v26  ;;  %v793_v8 = vor.u32 %v791_v20, %v790_v51  ;;  %v795_v9 = vrot.slane %v790_v51, 4  ;;  %v953_v10 = vsel %vm9588_vm8, %v785_v50, %v952_v61  ;;  %902 = vst [vmem:[#allocation2 + $0x68] sm:$0x1] %v901_v6  ;;  %v8371_v50 = vld [vmem:[#allocation8 + $0x90] sm:$0xff]  ;;  %v8416_v5 = vld [vmem:[#allocation8 + $0x1f8] sm:$0xff]  ;;  %v8370_v6 = vld [vmem:[#allocation8 + $0x88] sm:$0xff] }
  0xb6   : > { %954 = vst [vmem:[#allocation2 + $0xc0] sm:$0xf] %v953_v10  ;;  %v1918_v0 = vrot.slane %v1916_v52, 1  ;;  %v1823_v32 = vor.u32 %v1822_v54, %v1818_v39  ;;  %v1827_v34 = vrot.slane %v1825_v60, 1  ;;  %3745 = vmatpush.bf16.msra.mxu3 %v8416_v5  ;;  %v8369_v28 = vld [vmem:[#allocation8 + $0x80] sm:$0xff] }
  0xb7   : > { %v1921_v21 = vshll.u32 %v9972_v7, 16  ;;  %v794_v45 = vsel %vm9579_vm7, %v786_v55, %v793_v8  ;;  %v957_v22 = vsel %vm9530_vm2, %v795_v9, %v956_v14  ;;  %269 = vst [vmem:[#allocation2 + $0x8] sm:$0xf] %v9369_v40  ;;  %v277_v56 = vld [vmem:[#allocation2] sm:$0x1]  ;;  %2850 = vmatpush.bf16.msrb.mxu1 %v8372_v19 }
  0xb8   : > { %955 = vst [vmem:[#allocation2 + $0xc4] sm:$0xf] %v794_v45  ;;  %v278_v11 = vsel %vm9530_vm2, 0, %v277_v56  ;;  %v1919_v61 = vor.u32 %v1918_v0, %v1914_v43  ;;  %v8698_v63 = vld [vmem:[#allocation2] sm:$0xe] }
  0xb9   : > { %958 = vst [vmem:[#allocation2 + $0xc8] sm:$0x1] %v957_v22  ;;  %v1923_v41 = vrot.slane %v1921_v21, 1  ;;  %v9990_v18 = vld [vmem:[#allocation2 + $0x60] sm:$0xff]   ;;  %v8424_v21 = vld [vmem:[#allocation8 + $0x238] sm:$0xff] }
  0xba   : > { %2295 = vmatmul.bf16.gmra.mxu0 %v9945_v38  ;;  %2335 = vmatmul.bf16.gmra.mxu2 %v1565_v30  ;;  %279 = vst [vmem:[#allocation2] sm:$0x1] %v278_v11  ;;  %v1828_v38 = vsel %vm1167_vm9, %v1823_v32, %v1827_v34  ;;  %v1832_v58 = vshll.u32 %v9990_v18, 16  ;;  %v1830_v25 = vshrl.u32 %v9990_v18, 16  ;;  %v1585_v22 = vld [vmem:[#allocation2 + $0xc] sm:$0xe] }
  0xbb   : > { %271 = vst [vmem:[#allocation2 + $0xcc] sm:$0xf] %v9369_v40  ;;  %v1924_v39 = vsel %vm1167_vm9, %v1919_v61, %v1923_v41  ;;  %2851 = vmatpush.bf16.msrb.mxu1 %v8371_v50  ;;  %3834 = vmatpush.bf16.msra.mxu0 %v8424_v21  ;;  %v1969_v19 = vunpack.c.l.b16 %v1585_v22  ;;  %v9025_v50 = vld [vmem:[#allocation2 + $0xc] sm:$0xf0]  ;;  %v992_v5 = vld [vmem:[#allocation2 + $0x14] sm:$0x1] }
  0xbc   : > { %v1576_v42 = vld [vmem:[#allocation2 + $0x68] sm:$0x1]  ;;  %272 = vst [vmem:[#allocation2 + $0xd0] sm:$0xf] %v9369_v40  ;;  %v1834_v8 = vrot.slane %v1832_v58, 1 }
  0xbd   : > { %v1720_v20 = vunpack.c.l.b16 %v1576_v42  ;;  %273 = vst [vmem:[#allocation2 + $0xd4] sm:$0xf] %v9369_v40  ;;  %v8729_v21 = vld [vmem:[#allocation2 + $0x18] sm:$0xf0] }
  0xbe   : > { %v333_v30 = vld [vmem:[#allocation2 + $0x8] sm:$0x1]  ;;  %v10003_v0 = vor.u32 %v1834_v8, %v1830_v25 }
  0xbf   : > { %v8728_v49 = vld [vmem:[#allocation2 + $0xc0] sm:$0xff]   ;;  %v334_v26 = vsel %vm9544_vm4, 0, %v333_v30  ;;  %v9994_v51 = vpack.c.b16 %v1720_v20, %v1720_v20  ;;  %2852 = vmatpush.bf16.msrb.mxu1 %v8370_v6  ;;  %v2002_v6 = vrot.slane %v9668_v46, 1 }
  0xc0   : > { %v1584_v55 = vld [vmem:[#allocation2 + $0xc8] sm:$0x1]  ;;  %335 = vst [vmem:[#allocation2 + $0x8] sm:$0x1] %v334_v26  ;;  %v1928_v54 = vshll.u32 %v8728_v49, 16  ;;  %v1926_v10 = vshrl.u32 %v8728_v49, 16 }
  0xc1   : > { %v1728_v40 = vunpack.c.l.b16 %v1584_v55  ;;  %v1837_v9 = vshll.u32 %v9994_v51, 16  ;;  %v8499_v52 = vld [vmem:[#allocation2] sm:$0xff]   ;;  %v10008_v26 = vld [vmem:[#allocation2 + $0xc] sm:$0xff]   ;;  %v1985_v55 = vpack.c.b16 %v1634_v23, %v1969_v19 }
  0xc2   : > { %2384 = vmatmul.bf16.gmra.mxu1 %v1828_v38  ;;  %v1930_v14 = vrot.slane %v1928_v54, 1  ;;  %v1171_v32 = vshll.u32 %v8499_v52, 16  ;;  %v1169_v38 = vshrl.u32 %v8499_v52, 16 }
  0xc3   : > { %v9997_v60 = vpack.c.b16 %v1728_v40, %v1728_v40  ;;  %v1839_v11 = vrot.slane %v1837_v9, 1  ;;  %2853 = vmatpush.bf16.msrb.mxu1 %v8369_v28  ;;  %v8697_v40 = vld [vmem:[#allocation2] sm:$0xf0]  ;;  %v2001_v54 = vrot.slane %v1985_v55, 1  ;;  %v1183_v28 = vshll.u32 %v10008_v26, 16 }
  0xc4   : > { %2424 = vmatmul.bf16.gmra.mxu3 %v1924_v39  ;;  %v1931_v34 = vor.u32 %v1930_v14, %v1926_v10  ;;  %v1173_v20 = vrot.slane %v1171_v32, 1  ;;  %v8699_v9 = vor.u32 %v8698_v63, %v8697_v40  ;;  %v1136_v10 = vunpack.c.l.b16 %v992_v5  ;;  %v993_v55 = vld [vmem:[#allocation2 + $0x20] sm:$0x1] }
  0xc5   : > { %v1933_v43 = vshll.u32 %v9997_v60, 16  ;;  %v1840_v42 = vsel %vm1167_vm9, %v10003_v0, %v1839_v11  ;;  %v2003_v14 = vsel %vm1424_vm10, %v2001_v54, %v2002_v6  ;;  %v1181_v11 = vshrl.u32 %v10008_v26, 16 }
  0xc6   : > { %v1425_v17 = vrot.slane %v8699_v9, 1  ;;  %v1185_v32 = vrot.slane %v1183_v28, 1  ;;  %v9029_v28 = vld [vmem:[#allocation2 + $0x24] sm:$0xe] }
  0xc7   : > { %v991_v45 = vld [vmem:[#allocation2 + $0x8] sm:$0x1]  ;;  %v1935_v61 = vrot.slane %v1933_v43, 1  ;;  %v1152_v43 = vpack.c.b16 %v1136_v10, %v1136_v10  ;;  %v10026_v10 = vld [vmem:[#allocation2 + $0x18] sm:$0xff]  }
  0xc8   : > { %v1135_v56 = vunpack.c.l.b16 %v991_v45  ;;  %v8730_v45 = vld [vmem:[#allocation2 + $0x18] sm:$0xe] }
  0xc9   : > { %v1936_v30 = vsel %vm1167_vm9, %v1931_v34, %v1935_v61  ;;  %v1188_v34 = vshll.u32 %v1152_v43, 16  ;;  %v9026_v61 = vld [vmem:[#allocation2 + $0xc] sm:$0xe] }
  0xca   : > { %2300 = vmatmul.bf16.gmra.mxu0 %v9990_v18  ;;  %2340 = vmatmul.bf16.gmra.mxu2 %v8728_v49  ;;  %v1151_v41 = vpack.c.b16 %v1135_v56, %v1135_v56  ;;  %v1174_v49 = vor.u32 %v1173_v20, %v1169_v38  ;;  %v8731_v38 = vor.u32 %v8730_v45, %v8729_v21  ;;  %v1195_v21 = vshll.u32 %v10026_v10, 16 }
  0xcb   : > { %v1190_v20 = vrot.slane %v1188_v34, 1  ;;  %v9027_v63 = vor.u32 %v9026_v61, %v9025_v50 }
  0xcc   : > { %v1176_v39 = vshll.u32 %v1151_v41, 16  ;;  %v1426_v23 = vrot.slane %v1151_v41, 1  ;;  %v1186_v41 = vor.u32 %v1185_v32, %v1181_v11  ;;  %v1193_v32 = vshrl.u32 %v10026_v10, 16 }
  0xcd   : > { %v1197_v34 = vrot.slane %v1195_v21, 1 }
  0xce   : > { %v1178_v58 = vrot.slane %v1176_v39, 1  ;;  %v1427_v46 = vsel %vm1424_vm10, %v1425_v17, %v1426_v23  ;;  %v8407_v39 = vld [vmem:[#allocation8 + $0x1b0] sm:$0xff]  ;;  %v1429_v23 = vrot.slane %v1152_v43, 1 }
  0xcf   : > { %3657 = vmatpush.bf16.msra.mxu2 %v8407_v39  ;;  %v1198_v39 = vor.u32 %v1197_v34, %v1193_v32 }
  0xd0   : > { %v1179_v8 = vsel %vm1167_vm9, %v1174_v49, %v1178_v58  ;;  %v2004_v49 = vrot.slane %v8731_v38, 1  ;;  %v2005_v58 = vrot.slane %v9717_v1, 1  ;;  %v1428_v1 = vrot.slane %v9027_v63, 1  ;;  %v10036_v38 = vld [vmem:[#allocation2 + $0x24] sm:$0xff]  }
  0xd1   : > { %v2008_v63 = vrot.slane %v9781_v36, 1  ;;  %v1207_v36 = vshll.u32 %v10036_v38, 16 }
  0xd2   : > { %2389 = vmatmul.bf16.gmra.mxu1 %v1840_v42  ;;  %v2006_v17 = vsel %vm1424_vm10, %v2004_v49, %v2005_v58  ;;  %v8701_v49 = vld [vmem:[#allocation2 + $0x18] sm:$0xe]  ;;  %v994_v58 = vld [vmem:[#allocation2 + $0x2c] sm:$0x1] }
  0xd4   : > { %2429 = vmatmul.bf16.gmra.mxu3 %v1936_v30  ;;  %v8415_v30 = vld [vmem:[#allocation8 + $0x1f0] sm:$0xff] }
  0xd5   : > { %3746 = vmatpush.bf16.msra.mxu3 %v8415_v30 }
  0xd7   : > { %v2266_v25 = vpop.f32.mrf.mxu0 }
  0xda   : > { %2765 = vmatmul.bf16.vlgmr.msrb.gmra.mxu0 %v1179_v8  ;;  %2443 = vmatmul.bf16.vlgmr.msrb.gmra.mxu2 %v2003_v14  ;;  %v1137_v8 = vunpack.c.l.b16 %v993_v55  ;;  %v8423_v14 = vld [vmem:[#allocation8 + $0x230] sm:$0xff]  ;;  %v8700_v55 = vld [vmem:[#allocation2 + $0x18] sm:$0xf0] }
  0xdb   : > { %3835 = vmatpush.bf16.msra.mxu0 %v8423_v14 }
  0xdc   : > { %v1153_v50 = vpack.c.b16 %v1137_v8, %v1137_v8 }
  0xdd   : > { %v2306_v56 = vpop.f32.mrf.mxu2 }
  0xde   : > { %v1200_v61 = vshll.u32 %v1153_v50, 16 }
  0xdf   : > { %v2355_v22 = vpop.f32.mrf.mxu1  ;;  %v2268_v42 = vpop.f32.mrf.mxu0 }
  0xe0   : > { %v10018_v19 = vadd.f32 %v2355_v22, %v2266_v25  ;;  %v1191_v25 = vsel %vm1167_vm9, %v1186_v41, %v1190_v20  ;;  %v1430_v22 = vsel %vm1424_vm10, %v1428_v1, %v1429_v23  ;;  %v10038_v41 = vld [vmem:[#allocation2 + $0x24] sm:$0xf0]  ;;  %v9030_v20 = vor.u32 %v9029_v28, %v9728_v27 }
  0xe1   : > { %v1202_v30 = vrot.slane %v1200_v61, 1  ;;  %v1138_v27 = vunpack.c.l.b16 %v994_v58  ;;  %v1432_v28 = vrot.slane %v1153_v50, 1 }
  0xe2   : > { %2854 = vmatmul.bf16.vlgmr.msrb.gmra.mxu1 %v1427_v46 }
  0xe3   : > { %v1203_v14 = vsel %vm1167_vm9, %v1198_v39, %v1202_v30  ;;  %v1154_v21 = vpack.c.b16 %v1138_v27, %v1138_v27  ;;  %v9032_v30 = vld [vmem:[#allocation2 + $0x24] sm:$0xe] }
  0xe4   : > { %2676 = vmatmul.bf16.vlgmr.msrb.gmra.mxu3 %v8499_v52  ;;  %v9033_v27 = vor.u32 %v9032_v30, %v10038_v41 }
  0xe5   : > { %v2308_v6 = vpop.f32.mrf.mxu2  ;;  %v1212_v39 = vshll.u32 %v1154_v21, 16 }
  0xe7   : > { %v2395_v40 = vpop.f32.mrf.mxu3  ;;  %v2357_v54 = vpop.f32.mrf.mxu1 }
  0xe8   : > { %v10021_v5 = vadd.f32 %v2395_v40, %v2306_v56  ;;  %v10024_v52 = vadd.f32 %v2357_v54, %v2268_v42  ;;  %v2271_v9 = vpop.f32.mrf.mxu0  ;;  %v2007_v40 = vrot.slane %v9030_v20, 1  ;;  %v1209_v20 = vrot.slane %v1207_v36, 1 }
  0xea   : > { %2770 = vmatmul.bf16.gmra.mxu0 %v1191_v25  ;;  %2448 = vmatmul.bf16.gmra.mxu2 %v2006_v17  ;;  %v2009_v1 = vsel %vm1424_vm10, %v2007_v40, %v2008_v63  ;;  %v1214_v40 = vrot.slane %v1212_v39, 1  ;;  %v8406_v63 = vld [vmem:[#allocation8 + $0x1a8] sm:$0xff] }
  0xeb   : > { %3658 = vmatpush.bf16.msra.mxu2 %v8406_v63 }
  0xed   : > { %v2311_v11 = vpop.f32.mrf.mxu2 }
  0xef   : > { %v2397_v45 = vpop.f32.mrf.mxu3  ;;  %v2360_v46 = vpop.f32.mrf.mxu1 }
  0xf0   : > { %v10031_v56 = vadd.f32 %v2397_v45, %v2308_v6  ;;  %v10034_v42 = vadd.f32 %v2360_v46, %v2271_v9  ;;  %v2273_v43 = vpop.f32.mrf.mxu0  ;;  %v8702_v6 = vor.u32 %v8701_v49, %v8700_v55  ;;  %v8732_v46 = vld [vmem:[#allocation2 + $0x30] sm:$0xf0] }
  0xf2   : > { %2859 = vmatmul.bf16.gmra.mxu1 %v1430_v22  ;;  %v1431_v23 = vrot.slane %v8702_v6, 1  ;;  %v995_v6 = vld [vmem:[#allocation2 + $0x38] sm:$0x1] }
  0xf4   : > { %2681 = vmatmul.bf16.gmra.mxu3 %v10008_v26  ;;  %v1433_v22 = vsel %vm1424_vm10, %v1431_v23, %v1432_v28 }
  0xf5   : > { %v2313_v9 = vpop.f32.mrf.mxu2 }
  0xf7   : > { %v2400_v54 = vpop.f32.mrf.mxu3  ;;  %v2362_v8 = vpop.f32.mrf.mxu1 }
  0xf8   : > { %v10043_v25 = vadd.f32 %v2400_v54, %v2311_v11  ;;  %v10046_v17 = vadd.f32 %v2362_v8, %v2273_v43  ;;  %v2276_v26 = vpop.f32.mrf.mxu0  ;;  %v8733_v11 = vld [vmem:[#allocation2 + $0x30] sm:$0xe]  ;;  %v1205_v43 = vshrl.u32 %v10036_v38, 16  ;;  %v8414_v54 = vld [vmem:[#allocation8 + $0x1e8] sm:$0xff] }
  0xf9   : > { %v8734_v49 = vor.u32 %v8733_v11, %v8732_v46  ;;  %3747 = vmatpush.bf16.msra.mxu3 %v8414_v54  ;;  %v8422_v46 = vld [vmem:[#allocation8 + $0x228] sm:$0xff]  ;;  %v1434_v11 = vrot.slane %v9033_v27, 1 }
  0xfa   : > { %2775 = vmatmul.bf16.gmra.mxu0 %v1203_v14  ;;  %2453 = vmatmul.bf16.gmra.mxu2 %v2009_v1  ;;  %v1210_v58 = vor.u32 %v1209_v20, %v1205_v43  ;;  %v9035_v43 = vld [vmem:[#allocation2 + $0x3c] sm:$0xe] }
  0xfb   : > { %v2010_v8 = vrot.slane %v8734_v49, 1  ;;  %3836 = vmatpush.bf16.msra.mxu0 %v8422_v46  ;;  %v2014_v46 = vrot.slane %v9860_v24, 1 }
  0xfc   : > { %v1215_v28 = vsel %vm1167_vm9, %v1210_v58, %v1214_v40 }
  0xfd   : > { %v2316_v61 = vpop.f32.mrf.mxu2 }
  0xff   : > { %v2402_v45 = vpop.f32.mrf.mxu3  ;;  %v2365_v34 = vpop.f32.mrf.mxu1 }
 0x100   : > { %v10051_v32 = vadd.f32 %v2402_v45, %v2313_v9  ;;  %v10054_v55 = vadd.f32 %v2365_v34, %v2276_v26  ;;  %v2278_v50 = vpop.f32.mrf.mxu0  ;;  %v2011_v9 = vrot.slane %v9829_v35, 1  ;;  %v1435_v34 = vrot.slane %v1154_v21, 1 }
 0x102   : > { %2864 = vmatmul.bf16.gmra.mxu1 %v1433_v22  ;;  %v10064_v22 = vld [vmem:[#allocation2 + $0x30] sm:$0xff]   ;;  %v2012_v35 = vsel %vm1424_vm10, %v2010_v8, %v2011_v9  ;;  %v1436_v39 = vsel %vm1424_vm10, %v1434_v11, %v1435_v34  ;;  %v10076_v8 = vld [vmem:[#allocation2 + $0x3c] sm:$0xf0]  ;;  %v9036_v9 = vor.u32 %v9035_v43, %v9849_v62 }
 0x103   : > { %v1217_v58 = vshrl.u32 %v10064_v22, 16 }
 0x104   : > { %2686 = vmatmul.bf16.gmra.mxu3 %v10026_v10  ;;  %v1139_v10 = vunpack.c.l.b16 %v995_v6  ;;  %v10074_v6 = vld [vmem:[#allocation2 + $0x3c] sm:$0xff]  }
 0x105   : > { %v2318_v23 = vpop.f32.mrf.mxu2  ;;  %v1231_v24 = vshll.u32 %v10074_v6, 16 }
 0x106   : > { %v1155_v41 = vpack.c.b16 %v1139_v10, %v1139_v10  ;;  %v2013_v10 = vrot.slane %v9036_v9, 1  ;;  %v8735_v9 = vld [vmem:[#allocation2 + $0x48] sm:$0xf0] }
 0x107   : > { %v2405_v14 = vpop.f32.mrf.mxu3  ;;  %v2367_v1 = vpop.f32.mrf.mxu1 }
 0x108   : > { %v10059_v26 = vadd.f32 %v2405_v14, %v2316_v61  ;;  %v10062_v36 = vadd.f32 %v2367_v1, %v2278_v50  ;;  %v2281_v45 = vpop.f32.mrf.mxu0  ;;  %v1219_v61 = vshll.u32 %v10064_v22, 16  ;;  %v1224_v63 = vshll.u32 %v1155_v41, 16  ;;  %v8703_v1 = vld [vmem:[#allocation2 + $0x30] sm:$0xf0] }
 0x10a   : > { %2780 = vmatmul.bf16.gmra.mxu0 %v1215_v28  ;;  %2458 = vmatmul.bf16.gmra.mxu2 %v2012_v35  ;;  %v1221_v40 = vrot.slane %v1219_v61, 1  ;;  %v1226_v27 = vrot.slane %v1224_v63, 1  ;;  %v996_v28 = vld [vmem:[#allocation2 + $0x44] sm:$0x1] }
 0x10b   : > { %v1140_v62 = vunpack.c.l.b16 %v996_v28  ;;  %v1233_v28 = vrot.slane %v1231_v24, 1 }
 0x10c   : > { %v1222_v14 = vor.u32 %v1221_v40, %v1217_v58  ;;  %v1438_v58 = vrot.slane %v1155_v41, 1 }
 0x10d   : > { %v2321_v49 = vpop.f32.mrf.mxu2  ;;  %v1156_v40 = vpack.c.b16 %v1140_v62, %v1140_v62  ;;  %v8405_v62 = vld [vmem:[#allocation8 + $0x1a0] sm:$0xff] }
 0x10e   : > { %3659 = vmatpush.bf16.msra.mxu2 %v8405_v62 }
 0x10f   : > { %v2407_v20 = vpop.f32.mrf.mxu3  ;;  %v2370_v50 = vpop.f32.mrf.mxu1  ;;  %v1441_v62 = vrot.slane %v1156_v40, 1 }
 0x110   : > { %v10069_v30 = vadd.f32 %v2407_v20, %v2318_v23  ;;  %v10072_v54 = vadd.f32 %v2370_v50, %v2281_v45  ;;  %v2283_v21 = vpop.f32.mrf.mxu0  ;;  %v8704_v23 = vld [vmem:[#allocation2 + $0x30] sm:$0xe]  ;;  %v1227_v20 = vsel %vm1167_vm9, %v1222_v14, %v1226_v27  ;;  %v1229_v27 = vshrl.u32 %v10074_v6, 16 }
 0x111   : > { %v8705_v35 = vor.u32 %v8704_v23, %v8703_v1  ;;  %v8736_v1 = vld [vmem:[#allocation2 + $0x48] sm:$0xe] }
 0x112   : > { %2869 = vmatmul.bf16.gmra.mxu1 %v1436_v39  ;;  %v2015_v39 = vsel %vm1424_vm10, %v2013_v10, %v2014_v46  ;;  %v1236_v10 = vshll.u32 %v1156_v40, 16  ;;  %v9038_v46 = vld [vmem:[#allocation2 + $0x3c] sm:$0xe] }
 0x113   : > { %v1437_v50 = vrot.slane %v8705_v35, 1  ;;  %v8737_v35 = vor.u32 %v8736_v1, %v8735_v9 }
 0x114   : > { %2691 = vmatmul.bf16.gmra.mxu3 %v10036_v38 }
 0x115   : > { %v2323_v61 = vpop.f32.mrf.mxu2 }
 0x117   : > { %v2410_v45 = vpop.f32.mrf.mxu3  ;;  %v2372_v34 = vpop.f32.mrf.mxu1 }
 0x118   : > { %v10081_v11 = vadd.f32 %v2410_v45, %v2321_v49  ;;  %v10084_v43 = vadd.f32 %v2372_v34, %v2283_v21  ;;  %v2286_v38 = vpop.f32.mrf.mxu0  ;;  %v1439_v49 = vsel %vm1424_vm10, %v1437_v50, %v1438_v58  ;;  %v1234_v34 = vor.u32 %v1233_v28, %v1229_v27  ;;  %v10102_v28 = vld [vmem:[#allocation2 + $0x48] sm:$0xff]  }
 0x119   : > { %v2016_v50 = vrot.slane %v8737_v35, 1  ;;  %v2017_v58 = vrot.slane %v9916_v15, 1 }
 0x11a   : > { %2785 = vmatmul.bf16.gmra.mxu0 %v1227_v20  ;;  %2463 = vmatmul.bf16.gmra.mxu2 %v2015_v39  ;;  %v1238_v20 = vrot.slane %v1236_v10, 1  ;;  %v8413_v39 = vld [vmem:[#allocation8 + $0x1e0] sm:$0xff] }
 0x11b   : > { %3748 = vmatpush.bf16.msra.mxu3 %v8413_v39  ;;  %v8421_v10 = vld [vmem:[#allocation8 + $0x220] sm:$0xff]  ;;  %v2018_v15 = vsel %vm1424_vm10, %v2016_v50, %v2017_v58  ;;  %v9041_v39 = vld [vmem:[#allocation2 + $0x54] sm:$0xe] }
 0x11c   : > { %3837 = vmatpush.bf16.msra.mxu0 %v8421_v10 }
 0x11d   : > { %v2326_v21 = vpop.f32.mrf.mxu2 }
 0x11f   : > { %v2412_v63 = vpop.f32.mrf.mxu3  ;;  %v2375_v14 = vpop.f32.mrf.mxu1 }
 0x120   : > { %v10089_v23 = vadd.f32 %v2412_v63, %v2323_v61  ;;  %v10092_v45 = vadd.f32 %v2375_v14, %v2286_v38  ;;  %v2288_v41 = vpop.f32.mrf.mxu0  ;;  %v997_v61 = vld [vmem:[#allocation2 + $0x50] sm:$0x1]  ;;  %v9039_v63 = vor.u32 %v9038_v46, %v10076_v8 }
 0x122   : > { %2874 = vmatmul.bf16.gmra.mxu1 %v1439_v49  ;;  %v1239_v49 = vsel %vm1167_vm9, %v1234_v34, %v1238_v20  ;;  %v1440_v35 = vrot.slane %v9039_v63, 1  ;;  %v10112_v63 = vld [vmem:[#allocation2 + $0x54] sm:$0xff]  }
 0x124   : > { %2696 = vmatmul.bf16.gmra.mxu3 %v10064_v22  ;;  %v1141_v22 = vunpack.c.l.b16 %v997_v61  ;;  %v1442_v34 = vsel %vm1424_vm10, %v1440_v35, %v1441_v62  ;;  %v8707_v35 = vld [vmem:[#allocation2 + $0x48] sm:$0xe]  ;;  %v998_v62 = vld [vmem:[#allocation2 + $0x5c] sm:$0x1] }
 0x125   : > { %v2328_v9 = vpop.f32.mrf.mxu2 }
 0x126   : > { %v1157_v8 = vpack.c.b16 %v1141_v22, %v1141_v22  ;;  %v9042_v22 = vor.u32 %v9041_v39, %v9947_v57  ;;  %v1142_v57 = vunpack.c.l.b16 %v998_v62 }
 0x127   : > { %v2415_v24 = vpop.f32.mrf.mxu3  ;;  %v2377_v14 = vpop.f32.mrf.mxu1 }
 0x128   : > { %v10097_v38 = vadd.f32 %v2415_v24, %v2326_v21  ;;  %v10100_v1 = vadd.f32 %v2377_v14, %v2288_v41  ;;  %v2291_v27 = vpop.f32.mrf.mxu0  ;;  %v1243_v21 = vshll.u32 %v10102_v28, 16  ;;  %v1241_v24 = vshrl.u32 %v10102_v28, 16 }
 0x129   : > { %v1248_v50 = vshll.u32 %v1157_v8, 16 }
 0x12a   : > { %2790 = vmatmul.bf16.gmra.mxu0 %v1239_v49  ;;  %2468 = vmatmul.bf16.gmra.mxu2 %v2018_v15  ;;  %v1245_v14 = vrot.slane %v1243_v21, 1  ;;  %v10114_v49 = vld [vmem:[#allocation2 + $0x54] sm:$0xf0]  ;;  %v8706_v15 = vld [vmem:[#allocation2 + $0x48] sm:$0xf0]  ;;  %v2020_v21 = vrot.slane %v9965_v48, 1 }
 0x12b   : > { %v1250_v10 = vrot.slane %v1248_v50, 1  ;;  %v1158_v50 = vpack.c.b16 %v1142_v57, %v1142_v57  ;;  %v1255_v48 = vshll.u32 %v10112_v63, 16 }
 0x12d   : > { %v2331_v61 = vpop.f32.mrf.mxu2  ;;  %v1260_v62 = vshll.u32 %v1158_v50, 16 }
 0x12f   : > { %v2417_v46 = vpop.f32.mrf.mxu3  ;;  %v2380_v20 = vpop.f32.mrf.mxu1  ;;  %v1262_v57 = vrot.slane %v1260_v62, 1  ;;  %v9047_v62 = vld [vmem:[#allocation2 + $0x6c] sm:$0xe] }
 0x130   : > { %v10107_v41 = vadd.f32 %v2417_v46, %v2328_v9  ;;  %v10110_v58 = vadd.f32 %v2380_v20, %v2291_v27  ;;  %v2293_v40 = vpop.f32.mrf.mxu0  ;;  %v1246_v9 = vor.u32 %v1245_v14, %v1241_v24  ;;  %v2019_v46 = vrot.slane %v9042_v22, 1 }
 0x131   : > { %v8708_v20 = vor.u32 %v8707_v35, %v8706_v15  ;;  %v1444_v14 = vrot.slane %v1157_v8, 1  ;;  %v8738_v15 = vld [vmem:[#allocation2 + $0x60] sm:$0xf0]  ;;  %v8739_v35 = vld [vmem:[#allocation2 + $0x60] sm:$0xe] }
 0x132   : > { %2879 = vmatmul.bf16.gmra.mxu1 %v1442_v34  ;;  %v1251_v2 = vsel %vm1167_vm9, %v1246_v9, %v1250_v10  ;;  %v2021_v34 = vsel %vm1424_vm10, %v2019_v46, %v2020_v21  ;;  %v1257_v10 = vrot.slane %v1255_v48, 1  ;;  %v9044_v46 = vld [vmem:[#allocation2 + $0x54] sm:$0xe]  ;;  %v8740_v21 = vor.u32 %v8739_v35, %v8738_v15 }
 0x133   : > { %v1443_v24 = vrot.slane %v8708_v20, 1 }
 0x134   : > { %2701 = vmatmul.bf16.gmra.mxu3 %v10074_v6 }
 0x135   : > { %v2333_v59 = vpop.f32.mrf.mxu2 }
 0x137   : > { %v2420_v27 = vpop.f32.mrf.mxu3  ;;  %v2382_v4 = vpop.f32.mrf.mxu1 }
 0x138   : > { %v10119_v13 = vadd.f32 %v2420_v27, %v2331_v61  ;;  %v10122_v39 = vadd.f32 %v2382_v4, %v2293_v40  ;;  %v2296_v6 = vpop.f32.mrf.mxu0  ;;  %v1445_v61 = vsel %vm1424_vm10, %v1443_v24, %v1444_v14  ;;  %v1253_v40 = vshrl.u32 %v10112_v63, 16  ;;  %v8412_v24 = vld [vmem:[#allocation8 + $0x1d8] sm:$0xff] }
 0x139   : > { %v2022_v14 = vrot.slane %v8740_v21, 1  ;;  %3749 = vmatpush.bf16.msra.mxu3 %v8412_v24  ;;  %v1447_v21 = vrot.slane %v1158_v50, 1  ;;  %v8420_v24 = vld [vmem:[#allocation8 + $0x218] sm:$0xff]  ;;  %v9048_v50 = vor.u32 %v9047_v62, %v9659_v29 }
 0x13a   : > { %2795 = vmatmul.bf16.gmra.mxu0 %v1251_v2  ;;  %2473 = vmatmul.bf16.gmra.mxu2 %v2021_v34  ;;  %v1258_v20 = vor.u32 %v1257_v10, %v1253_v40  ;;  %v8404_v34 = vld [vmem:[#allocation8 + $0x198] sm:$0xff] }
 0x13b   : > { %3660 = vmatpush.bf16.msra.mxu2 %v8404_v34  ;;  %3838 = vmatpush.bf16.msra.mxu0 %v8420_v24 }
 0x13c   : > { %v1263_v15 = vsel %vm1167_vm9, %v1258_v20, %v1262_v57 }
 0x13d   : > { %v2336_v4 = vpop.f32.mrf.mxu2 }
 0x13f   : > { %v2422_v22 = vpop.f32.mrf.mxu3  ;;  %v2385_v9 = vpop.f32.mrf.mxu1 }
 0x140   : > { %v10127_v27 = vadd.f32 %v2422_v22, %v2333_v59  ;;  %v10130_v2 = vadd.f32 %v2385_v9, %v2296_v6  ;;  %v2298_v8 = vpop.f32.mrf.mxu0  ;;  %v999_v59 = vld [vmem:[#allocation2 + $0x68] sm:$0x1]  ;;  %v2023_v22 = vrot.slane %v9994_v51, 1 }
 0x142   : > { %11957 = vst [vmem:[#allocation20_spill] sm:$0xff] %v10127_v27  ;;  %2884 = vmatmul.bf16.gmra.mxu1 %v1445_v61  ;;  %v9045_v61 = vor.u32 %v9044_v46, %v10114_v49  ;;  %v2024_v10 = vsel %vm1424_vm10, %v2022_v14, %v2023_v22  ;;  %v10146_v14 = vld [vmem:[#allocation2 + $0x6c] sm:$0xff]  }
 0x143   : > { %v10148_v22 = vld [vmem:[#allocation2 + $0x6c] sm:$0xf0] }
 0x144   : > { %2706 = vmatmul.bf16.gmra.mxu3 %v10102_v28  ;;  %v1143_v28 = vunpack.c.l.b16 %v999_v59  ;;  %v1446_v51 = vrot.slane %v9045_v61, 1  ;;  %v1000_v61 = vld [vmem:[#allocation2 + $0x74] sm:$0x1] }
 0x145   : > { %v2338_v9 = vpop.f32.mrf.mxu2  ;;  %v1144_v29 = vunpack.c.l.b16 %v1000_v61 }
 0x146   : > { %v1159_v34 = vpack.c.b16 %v1143_v28, %v1143_v28  ;;  %v1448_v49 = vsel %vm1424_vm10, %v1446_v51, %v1447_v21  ;;  %v2025_v28 = vrot.slane %v9048_v50, 1 }
 0x147   : > { %v2425_v48 = vpop.f32.mrf.mxu3  ;;  %v2387_v6 = vpop.f32.mrf.mxu1 }
 0x148   : > { %v10134_v27 = vadd.f32 %v2425_v48, %v2336_v4  ;;  %v10138_v35 = vadd.f32 %v2387_v6, %v2298_v8  ;;  %v2301_v40 = vpop.f32.mrf.mxu0  ;;  %v1272_v8 = vshll.u32 %v1159_v34, 16  ;;  %v1450_v50 = vrot.slane %v1159_v34, 1 }
 0x14a   : > { %11958 = vst [vmem:[#allocation21_spill] sm:$0xff] %v10134_v27  ;;  %2800 = vmatmul.bf16.gmra.mxu0 %v1263_v15  ;;  %2478 = vmatmul.bf16.gmra.mxu2 %v2024_v10  ;;  %v1274_v6 = vrot.slane %v1272_v8, 1  ;;  %v8710_v15 = vld [vmem:[#allocation2 + $0x60] sm:$0xe]  ;;  %v2026_v10 = vrot.slane %v9674_v53, 1  ;;  %v1279_v53 = vshll.u32 %v10146_v14, 16 }
 0x14c   : > { %v1281_v61 = vrot.slane %v1279_v53, 1 }
 0x14d   : > { %v2341_v57 = vpop.f32.mrf.mxu2 }
 0x14f   : > { %v2427_v4 = vpop.f32.mrf.mxu3  ;;  %v2390_v20 = vpop.f32.mrf.mxu1 }
 0x150   : > { %v10141_v48 = vadd.f32 %v2427_v4, %v2338_v9  ;;  %v10144_v46 = vadd.f32 %v2390_v20, %v2301_v40  ;;  %v2303_v59 = vpop.f32.mrf.mxu0  ;;  %v8709_v9 = vld [vmem:[#allocation2 + $0x60] sm:$0xf0]  ;;  %v1275_v20 = vsel %vm1167_vm9, %v10003_v0, %v1274_v6  ;;  %v1277_v6 = vshrl.u32 %v10146_v14, 16 }
 0x151   : > { %v8711_v40 = vor.u32 %v8710_v15, %v8709_v9  ;;  %v8741_v15 = vld [vmem:[#allocation2 + $0x78] sm:$0xf0] }
 0x152   : > { %11959 = vst [vmem:[#allocation22_spill] sm:$0xff] %v10141_v48  ;;  %2889 = vmatmul.bf16.gmra.mxu1 %v1448_v49  ;;  %v2027_v49 = vsel %vm1424_vm10, %v2025_v28, %v2026_v10  ;;  %v1160_v48 = vpack.c.b16 %v1144_v29, %v1144_v29 }
 0x153   : > { %v1449_v8 = vrot.slane %v8711_v40, 1  ;;  %v9050_v40 = vld [vmem:[#allocation2 + $0x6c] sm:$0xe] }
 0x154   : > { %2711 = vmatmul.bf16.gmra.mxu3 %v10112_v63  ;;  %v1284_v28 = vshll.u32 %v1160_v48, 16 }
 0x155   : > { %v2343_v4 = vpop.f32.mrf.mxu2  ;;  %v1451_v9 = vsel %vm1424_vm10, %v1449_v8, %v1450_v50  ;;  %v8403_v8 = vld [vmem:[#allocation8 + $0x190] sm:$0xff] }
 0x156   : > { %v1286_v29 = vrot.slane %v1284_v28, 1  ;;  %3661 = vmatpush.bf16.msra.mxu2 %v8403_v8 }
 0x157   : > { %v2430_v51 = vpop.f32.mrf.mxu3  ;;  %v2392_v24 = vpop.f32.mrf.mxu1 }
 0x158   : > { %v10153_v21 = vadd.f32 %v2430_v51, %v2341_v57  ;;  %v10157_v62 = vadd.f32 %v2392_v24, %v2303_v59  ;;  %v2766_v63 = vpop.f32.mrf.mxu0  ;;  %v8742_v51 = vld [vmem:[#allocation2 + $0x78] sm:$0xe] }
 0x159   : > { %v8743_v24 = vor.u32 %v8742_v51, %v8741_v15 }
 0x15a   : > { %11960 = vst [vmem:[#allocation23_spill] sm:$0xff] %v10153_v21  ;;  %2805 = vmatmul.bf16.gmra.mxu0 %v1275_v20  ;;  %2483 = vmatmul.bf16.gmra.mxu2 %v2027_v49  ;;  %v1282_v20 = vor.u32 %v1281_v61, %v1277_v6  ;;  %v1001_v49 = vld [vmem:[#allocation2 + $0x80] sm:$0x1]  ;;  %v10171_v6 = vld [vmem:[#allocation2 + $0x78] sm:$0xff]  }
 0x15b   : > { %v2028_v50 = vrot.slane %v8743_v24, 1 }
 0x15d   : > { %v2444_v0 = vpop.f32.mrf.mxu2 }
 0x15e   : > { %v2445_v10 = vadd.f32 %v2444_v0, %v10018_v19  ;;  %v1287_v0 = vsel %vm1167_vm9, %v1282_v20, %v1286_v29  ;;  %v1291_v20 = vshll.u32 %v10171_v6, 16  ;;  %v8419_v29 = vld [vmem:[#allocation8 + $0x210] sm:$0xff] }
 0x15f   : > { %v2432_v57 = vpop.f32.mrf.mxu3  ;;  %v2855_v59 = vpop.f32.mrf.mxu1  ;;  %3839 = vmatpush.bf16.msra.mxu0 %v8419_v29  ;;  %v2032_v29 = vrot.slane %v9785_v44, 1 }
 0x160   : > { %v10162_v21 = vadd.f32 %v2432_v57, %v2343_v4  ;;  %v2768_v34 = vpop.f32.mrf.mxu0  ;;  %v8411_v4 = vld [vmem:[#allocation8 + $0x1d0] sm:$0xff]  ;;  %v2029_v57 = vrot.slane %v9719_v47, 1  ;;  %v9053_v47 = vld [vmem:[#allocation2 + $0x84] sm:$0xe] }
 0x161   : > { %3750 = vmatpush.bf16.msra.mxu3 %v8411_v4 }
 0x162   : > { %11961 = vst [vmem:[#allocation24_spill] sm:$0xff] %v10162_v21  ;;  %2894 = vmatmul.bf16.gmra.mxu1 %v1451_v9  ;;  %v1145_v21 = vunpack.c.l.b16 %v1001_v49  ;;  %v9051_v9 = vor.u32 %v9050_v40, %v10148_v22  ;;  %v2030_v28 = vsel %vm1424_vm10, %v2028_v50, %v2029_v57  ;;  %v1453_v49 = vrot.slane %v1160_v48, 1  ;;  %v10180_v48 = vld [vmem:[#allocation2 + $0x84] sm:$0xff]  }
 0x163   : > { %v1293_v50 = vrot.slane %v1291_v20, 1  ;;  %v1002_v20 = vld [vmem:[#allocation2 + $0x8c] sm:$0x1] }
 0x164   : > { %2716 = vmatmul.bf16.gmra.mxu3 %v9990_v18  ;;  %v1161_v24 = vpack.c.b16 %v1145_v21, %v1145_v21  ;;  %v8456_v21 = vld [vmem:[#allocation9 + $0xf8] sm:$0xff] }
 0x165   : > { %v2446_v19 = vpop.f32.mrf.mxu2  ;;  %5844 = vmatpush.bf16.msra.mxu1 %v8456_v21 }
 0x166   : > { %v2447_v18 = vadd.f32 %v2446_v19, %v10024_v52  ;;  %v1296_v52 = vshll.u32 %v1161_v24, 16  ;;  %v10182_v19 = vld [vmem:[#allocation2 + $0x84] sm:$0xf0] }
 0x167   : > { %v2677_v53 = vpop.f32.mrf.mxu3  ;;  %v2857_v15 = vpop.f32.mrf.mxu1 }
 0x168   : > { %v2678_v27 = vadd.f32 %v2677_v53, %v2445_v10  ;;  %v2771_v51 = vpop.f32.mrf.mxu0  ;;  %v1452_v10 = vrot.slane %v9051_v9, 1  ;;  %v9054_v9 = vor.u32 %v9053_v47, %v9774_v31 }
 0x16a   : > { %v2767_v61 = vadd.f32 %v2766_v63, %v2678_v27  ;;  %2810 = vmatmul.bf16.gmra.mxu0 %v1287_v0  ;;  %2488 = vmatmul.bf16.gmra.mxu2 %v2030_v28  ;;  %v1454_v27 = vsel %vm1424_vm10, %v1452_v10, %v1453_v49  ;;  %v1289_v63 = vshrl.u32 %v10171_v6, 16  ;;  %v8712_v10 = vld [vmem:[#allocation2 + $0x78] sm:$0xf0]  ;;  %v8713_v49 = vld [vmem:[#allocation2 + $0x78] sm:$0xe] }
 0x16c   : > { %v10174_v8 = vadd.f32 %v2855_v59, %v2767_v61  ;;  %v1294_v28 = vor.u32 %v1293_v50, %v1289_v63  ;;  %v1456_v50 = vrot.slane %v1161_v24, 1 }
 0x16d   : > { %v2449_v4 = vpop.f32.mrf.mxu2 }
 0x16e   : > { %11962 = vst [vmem:[#allocation25_spill] sm:$0xff] %v10174_v8  ;;  %v2450_v59 = vadd.f32 %v2449_v4, %v10034_v42  ;;  %v2031_v42 = vrot.slane %v9054_v9, 1  ;;  %v8714_v4 = vor.u32 %v8713_v49, %v8712_v10 }
 0x16f   : > { %v2679_v22 = vpop.f32.mrf.mxu3  ;;  %v2860_v53 = vpop.f32.mrf.mxu1 }
 0x170   : > { %v2680_v40 = vadd.f32 %v2679_v22, %v2447_v18  ;;  %v2773_v57 = vpop.f32.mrf.mxu0  ;;  %v1298_v18 = vrot.slane %v1296_v52, 1  ;;  %v1455_v63 = vrot.slane %v8714_v4, 1 }
 0x172   : > { %v2769_v0 = vadd.f32 %v2768_v34, %v2680_v40  ;;  %2899 = vmatmul.bf16.gmra.mxu1 %v1454_v27  ;;  %v1299_v31 = vsel %vm1167_vm9, %v1294_v28, %v1298_v18  ;;  %v1146_v40 = vunpack.c.l.b16 %v1002_v20  ;;  %v2033_v27 = vsel %vm1424_vm10, %v2031_v42, %v2032_v29  ;;  %v8744_v18 = vld [vmem:[#allocation2 + $0x90] sm:$0xf0]  ;;  %v8745_v28 = vld [vmem:[#allocation2 + $0x90] sm:$0xe]  ;;  %v9056_v42 = vld [vmem:[#allocation2 + $0x84] sm:$0xe] }
 0x173   : > { %v1457_v9 = vsel %vm1424_vm10, %v1455_v63, %v1456_v50  ;;  %v2035_v63 = vrot.slane %v9836_v33, 1  ;;  %v9059_v33 = vld [vmem:[#allocation2 + $0x9c] sm:$0xe] }
 0x174   : > { %2721 = vmatmul.bf16.gmra.mxu3 %v10146_v14  ;;  %v10186_v61 = vadd.f32 %v2857_v15, %v2769_v0  ;;  %v1162_v44 = vpack.c.b16 %v1146_v40, %v1146_v40  ;;  %v1303_v0 = vshll.u32 %v10180_v48, 16  ;;  %v8402_v40 = vld [vmem:[#allocation8 + $0x188] sm:$0xff] }
 0x175   : > { %v2451_v34 = vpop.f32.mrf.mxu2  ;;  %3662 = vmatpush.bf16.msra.mxu2 %v8402_v40 }
 0x176   : > { %v2452_v52 = vadd.f32 %v2451_v34, %v10046_v17  ;;  %v1308_v20 = vshll.u32 %v1162_v44, 16 }
 0x177   : > { %v2682_v22 = vpop.f32.mrf.mxu3  ;;  %v2862_v47 = vpop.f32.mrf.mxu1 }
 0x178   : > { %v2683_v8 = vadd.f32 %v2682_v22, %v2450_v59  ;;  %v2776_v14 = vpop.f32.mrf.mxu0  ;;  %v8746_v22 = vor.u32 %v8745_v28, %v8744_v18 }
 0x17a   : > { %v2772_v15 = vadd.f32 %v2771_v51, %v2683_v8  ;;  %2815 = vmatmul.bf16.gmra.mxu0 %v1299_v31  ;;  %2493 = vmatmul.bf16.gmra.mxu2 %v2033_v27  ;;  %v1301_v51 = vshrl.u32 %v10180_v48, 16  ;;  %v1305_v8 = vrot.slane %v1303_v0, 1  ;;  %v1310_v31 = vrot.slane %v1308_v20, 1 }
 0x17b   : > { %v2034_v27 = vrot.slane %v8746_v22, 1  ;;  %v8418_v22 = vld [vmem:[#allocation8 + $0x208] sm:$0xff] }
 0x17c   : > { %v10192_v21 = vadd.f32 %v2860_v53, %v2772_v15  ;;  %v1306_v34 = vor.u32 %v1305_v8, %v1301_v51  ;;  %v1003_v15 = vld [vmem:[#allocation2 + $0x98] sm:$0x1]  ;;  %3840 = vmatpush.bf16.msra.mxu0 %v8418_v22 }
 0x17d   : > { %v2454_v17 = vpop.f32.mrf.mxu2 }
 0x17e   : > { %v2455_v24 = vadd.f32 %v2454_v17, %v10054_v55  ;;  %v2036_v17 = vsel %vm1424_vm10, %v2034_v27, %v2035_v63  ;;  %v10214_v63 = vld [vmem:[#allocation2 + $0x9c] sm:$0xff]  }
 0x17f   : > { %v2684_v59 = vpop.f32.mrf.mxu3  ;;  %v2865_v49 = vpop.f32.mrf.mxu1 }
 0x180   : > { %v2685_v10 = vadd.f32 %v2684_v59, %v2452_v52  ;;  %v2778_v53 = vpop.f32.mrf.mxu0  ;;  %v8410_v52 = vld [vmem:[#allocation8 + $0x1c8] sm:$0xff] }
 0x181   : > { %3751 = vmatpush.bf16.msra.mxu3 %v8410_v52 }
 0x182   : > { %v2774_v29 = vadd.f32 %v2773_v57, %v2685_v10  ;;  %2904 = vmatmul.bf16.gmra.mxu1 %v1457_v9  ;;  %v1311_v57 = vsel %vm1167_vm9, %v1306_v34, %v1310_v31  ;;  %v1147_v9 = vunpack.c.l.b16 %v1003_v15  ;;  %v8455_v15 = vld [vmem:[#allocation9 + $0xf0] sm:$0xff] }
 0x183   : > { %5845 = vmatpush.bf16.msra.mxu1 %v8455_v15 }
 0x184   : > { %2726 = vmatmul.bf16.gmra.mxu3 %v10171_v6  ;;  %v10199_v4 = vadd.f32 %v2862_v47, %v2774_v29  ;;  %v9057_v6 = vor.u32 %v9056_v42, %v10182_v19  ;;  %v10204_v47 = vld [vmem:[#allocation2 + $0x90] sm:$0xff]   ;;  %v1163_v29 = vpack.c.b16 %v1147_v9, %v1147_v9 }
 0x185   : > { %v2456_v0 = vpop.f32.mrf.mxu2  ;;  %v1315_v51 = vshll.u32 %v10204_v47, 16  ;;  %v1313_v42 = vshrl.u32 %v10204_v47, 16  ;;  %v8715_v9 = vld [vmem:[#allocation2 + $0x90] sm:$0xf0] }
 0x186   : > { %v2457_v18 = vadd.f32 %v2456_v0, %v10062_v36  ;;  %v1458_v20 = vrot.slane %v9057_v6, 1  ;;  %v1320_v52 = vshll.u32 %v1163_v29, 16 }
 0x187   : > { %v2687_v55 = vpop.f32.mrf.mxu3  ;;  %v2867_v59 = vpop.f32.mrf.mxu1  ;;  %v1317_v36 = vrot.slane %v1315_v51, 1 }
 0x188   : > { %v2688_v50 = vadd.f32 %v2687_v55, %v2455_v24  ;;  %v2781_v28 = vpop.f32.mrf.mxu0  ;;  %v1459_v24 = vrot.slane %v1162_v44, 1  ;;  %v10216_v44 = vld [vmem:[#allocation2 + $0x9c] sm:$0xf0]  ;;  %v1322_v6 = vrot.slane %v1320_v52, 1 }
 0x189   : > { %v1318_v0 = vor.u32 %v1317_v36, %v1313_v42 }
 0x18a   : > { %v2777_v10 = vadd.f32 %v2776_v14, %v2688_v50  ;;  %2820 = vmatmul.bf16.gmra.mxu0 %v1311_v57  ;;  %2498 = vmatmul.bf16.gmra.mxu2 %v2036_v17  ;;  %v1460_v40 = vsel %vm1424_vm10, %v1458_v20, %v1459_v24  ;;  %v9060_v50 = vor.u32 %v9059_v33, %v9875_v12  ;;  %v2038_v17 = vrot.slane %v9880_v3, 1 }
 0x18b   : > { %v1323_v12 = vsel %vm1167_vm9, %v1318_v0, %v1322_v6 }
 0x18c   : > { %v10209_v8 = vadd.f32 %v2865_v49, %v2777_v10  ;;  %v1004_v10 = vld [vmem:[#allocation2 + $0xa4] sm:$0x1] }
 0x18d   : > { %v2459_v14 = vpop.f32.mrf.mxu2  ;;  %v1148_v22 = vunpack.c.l.b16 %v1004_v10 }
 0x18e   : > { %v2460_v49 = vadd.f32 %v2459_v14, %v10072_v54  ;;  %v2037_v54 = vrot.slane %v9060_v50, 1 }
 0x18f   : > { %v2689_v19 = vpop.f32.mrf.mxu3  ;;  %v2870_v31 = vpop.f32.mrf.mxu1  ;;  %v1164_v3 = vpack.c.b16 %v1148_v22, %v1148_v22 }
 0x190   : > { %v2690_v34 = vadd.f32 %v2689_v19, %v2457_v18  ;;  %v2783_v27 = vpop.f32.mrf.mxu0  ;;  %v8716_v18 = vld [vmem:[#allocation2 + $0x90] sm:$0xe]  ;;  %v2039_v42 = vsel %vm1424_vm10, %v2037_v54, %v2038_v17 }
 0x191   : > { %v8717_v20 = vor.u32 %v8716_v18, %v8715_v9  ;;  %v1332_v9 = vshll.u32 %v1164_v3, 16  ;;  %v9062_v18 = vld [vmem:[#allocation2 + $0x9c] sm:$0xe] }
 0x192   : > { %v2779_v55 = vadd.f32 %v2778_v53, %v2690_v34  ;;  %2909 = vmatmul.bf16.gmra.mxu1 %v1460_v40  ;;  %v1462_v34 = vrot.slane %v1163_v29, 1  ;;  %v1327_v40 = vshll.u32 %v10214_v63, 16 }
 0x193   : > { %v1461_v36 = vrot.slane %v8717_v20, 1  ;;  %v1334_v20 = vrot.slane %v1332_v9, 1 }
 0x194   : > { %2731 = vmatmul.bf16.gmra.mxu3 %v10180_v48  ;;  %v10220_v57 = vadd.f32 %v2867_v59, %v2779_v55  ;;  %v8748_v55 = vld [vmem:[#allocation2 + $0xa8] sm:$0xe]  ;;  %v1329_v6 = vrot.slane %v1327_v40, 1 }
 0x195   : > { %v2461_v53 = vpop.f32.mrf.mxu2  ;;  %v1463_v15 = vsel %vm1424_vm10, %v1461_v36, %v1462_v34 }
 0x196   : > { %v2462_v19 = vadd.f32 %v2461_v53, %v10084_v43  ;;  %v8409_v53 = vld [vmem:[#allocation8 + $0x1c0] sm:$0xff] }
 0x197   : > { %v2692_v51 = vpop.f32.mrf.mxu3  ;;  %v2872_v33 = vpop.f32.mrf.mxu1  ;;  %3752 = vmatpush.bf16.msra.mxu3 %v8409_v53  ;;  %v10252_v53 = vld [vmem:[#allocation2 + $0xb4] sm:$0xf0] }
 0x198   : > { %v2693_v24 = vadd.f32 %v2692_v51, %v2460_v49  ;;  %v2786_v48 = vpop.f32.mrf.mxu0  ;;  %v8747_v49 = vld [vmem:[#allocation2 + $0xa8] sm:$0xf0] }
 0x199   : > { %v8749_v54 = vor.u32 %v8748_v55, %v8747_v49  ;;  %v1465_v55 = vrot.slane %v1164_v3, 1  ;;  %v8454_v3 = vld [vmem:[#allocation9 + $0xe8] sm:$0xff] }
 0x19a   : > { %v2782_v59 = vadd.f32 %v2781_v28, %v2693_v24  ;;  %2825 = vmatmul.bf16.gmra.mxu0 %v1323_v12  ;;  %2503 = vmatmul.bf16.gmra.mxu2 %v2039_v42  ;;  %v1325_v28 = vshrl.u32 %v10214_v63, 16  ;;  %v8401_v24 = vld [vmem:[#allocation8 + $0x180] sm:$0xff]  ;;  %v1005_v12 = vld [vmem:[#allocation2 + $0xb0] sm:$0x1] }
 0x19b   : > { %v2040_v22 = vrot.slane %v8749_v54, 1  ;;  %3663 = vmatpush.bf16.msra.mxu2 %v8401_v24  ;;  %v10250_v24 = vld [vmem:[#allocation2 + $0xb4] sm:$0xff]   ;;  %5846 = vmatpush.bf16.msra.mxu1 %v8454_v3 }
 0x19c   : > { %v10226_v14 = vadd.f32 %v2870_v31, %v2782_v59  ;;  %v1330_v51 = vor.u32 %v1329_v6, %v1325_v28  ;;  %v8417_v6 = vld [vmem:[#allocation8 + $0x200] sm:$0xff] }
 0x19d   : > { %v2464_v43 = vpop.f32.mrf.mxu2  ;;  %3841 = vmatpush.bf16.msra.mxu0 %v8417_v6 }
 0x19e   : > { %v2465_v29 = vadd.f32 %v2464_v43, %v10092_v45  ;;  %v9063_v45 = vor.u32 %v9062_v18, %v10216_v44  ;;  %v1335_v36 = vsel %vm1167_vm9, %v1330_v51, %v1334_v20 }
 0x19f   : > { %v2694_v52 = vpop.f32.mrf.mxu3  ;;  %v2875_v0 = vpop.f32.mrf.mxu1 }
 0x1a0   : > { %v2695_v50 = vadd.f32 %v2694_v52, %v2462_v19  ;;  %v2788_v31 = vpop.f32.mrf.mxu0  ;;  %v2041_v19 = vrot.slane %v9929_v16, 1  ;;  %v10241_v52 = vld [vmem:[#allocation2 + $0xa8] sm:$0xff]   ;;  %v1464_v49 = vrot.slane %v9063_v45, 1 }
 0x1a1   : > { %v1339_v28 = vshll.u32 %v10241_v52, 16  ;;  %v8718_v45 = vld [vmem:[#allocation2 + $0xa8] sm:$0xf0] }
 0x1a2   : > { %v2784_v10 = vadd.f32 %v2783_v27, %v2695_v50  ;;  %2914 = vmatmul.bf16.gmra.mxu1 %v1463_v15  ;;  %v2042_v16 = vsel %vm1424_vm10, %v2040_v22, %v2041_v19  ;;  %v9065_v50 = vld [vmem:[#allocation2 + $0xb4] sm:$0xe] }
 0x1a3   : > { %v1341_v54 = vrot.slane %v1339_v28, 1  ;;  %v9066_v22 = vor.u32 %v9065_v50, %v9961_v37 }
 0x1a4   : > { %2736 = vmatmul.bf16.gmra.mxu3 %v10204_v47  ;;  %v10233_v17 = vadd.f32 %v2872_v33, %v2784_v10  ;;  %v1149_v33 = vunpack.c.l.b16 %v1005_v12  ;;  %v1337_v10 = vshrl.u32 %v10241_v52, 16 }
 0x1a5   : > { %v2466_v42 = vpop.f32.mrf.mxu2 }
 0x1a6   : > { %v2467_v34 = vadd.f32 %v2466_v42, %v10100_v1  ;;  %v1165_v43 = vpack.c.b16 %v1149_v33, %v1149_v33  ;;  %v1466_v1 = vsel %vm1424_vm10, %v1464_v49, %v1465_v55  ;;  %v1342_v19 = vor.u32 %v1341_v54, %v1337_v10  ;;  %v1006_v42 = vld [vmem:[#allocation2 + $0xbc] sm:$0x1]  ;;  %v8750_v54 = vld [vmem:[#allocation2 + $0xc0] sm:$0xf0] }
 0x1a7   : > { %v2697_v59 = vpop.f32.mrf.mxu3  ;;  %v10238_v47 = vpop.f32.mrf.mxu1  ;;  %v1150_v37 = vunpack.c.l.b16 %v1006_v42 }
 0x1a8   : > { %v2698_v27 = vadd.f32 %v2697_v59, %v2465_v29  ;;  %v2791_v40 = vpop.f32.mrf.mxu0  ;;  %v1344_v51 = vshll.u32 %v1165_v43, 16 }
 0x1aa   : > { %v2787_v15 = vadd.f32 %v2786_v48, %v2698_v27  ;;  %2830 = vmatmul.bf16.gmra.mxu0 %v1335_v36  ;;  %2508 = vmatmul.bf16.gmra.mxu2 %v2042_v16  ;;  %v1346_v59 = vrot.slane %v1344_v51, 1  ;;  %v8719_v27 = vld [vmem:[#allocation2 + $0xa8] sm:$0xe]  ;;  %v2043_v36 = vrot.slane %v9066_v22, 1  ;;  %v8751_v51 = vld [vmem:[#allocation2 + $0xc0] sm:$0xe] }
 0x1ac   : > { %v10244_v44 = vadd.f32 %v2875_v0, %v2787_v15 }
 0x1ad   : > { %v2469_v29 = vpop.f32.mrf.mxu2 }
 0x1ae   : > { %v2470_v0 = vadd.f32 %v2469_v29, %v10110_v58  ;;  %v2044_v58 = vrot.slane %v9972_v7, 1  ;;  %v1166_v7 = vpack.c.b16 %v1150_v37, %v1150_v37 }
 0x1af   : > { %v2699_v9 = vpop.f32.mrf.mxu3  ;;  %v2880_v48 = vpop.f32.mrf.mxu1 }
 0x1b0   : > { %v2700_v18 = vadd.f32 %v2699_v9, %v2467_v34  ;;  %v2793_v20 = vpop.f32.mrf.mxu0  ;;  %v8720_v34 = vor.u32 %v8719_v27, %v8718_v45  ;;  %v2045_v28 = vsel %vm1424_vm10, %v2043_v36, %v2044_v58  ;;  %v1468_v9 = vrot.slane %v1165_v43, 1 }
 0x1b1   : > { %v8752_v27 = vor.u32 %v8751_v51, %v8750_v54 }
 0x1b2   : > { %v10254_v12 = vadd.f32 %v2788_v31, %v2700_v18  ;;  %2919 = vmatmul.bf16.gmra.mxu1 %v1466_v1  ;;  %v1347_v31 = vsel %vm1167_vm9, %v1342_v19, %v1346_v59  ;;  %v1467_v6 = vrot.slane %v8720_v34, 1  ;;  %v1351_v18 = vshll.u32 %v10250_v24, 16  ;;  %v9068_v59 = vld [vmem:[#allocation2 + $0xb4] sm:$0xe] }
 0x1b3   : > { %v1356_v19 = vshll.u32 %v1166_v7, 16  ;;  %v2046_v58 = vrot.slane %v8752_v27, 1 }
 0x1b4   : > { %2741 = vmatmul.bf16.gmra.mxu3 %v10214_v63  ;;  %v1469_v10 = vsel %vm1424_vm10, %v1467_v6, %v1468_v9  ;;  %v1353_v22 = vrot.slane %v1351_v18, 1  ;;  %v1471_v9 = vrot.slane %v1166_v7, 1 }
 0x1b5   : > { %v2471_v16 = vpop.f32.mrf.mxu2  ;;  %v1358_v36 = vrot.slane %v1356_v19, 1 }
 0x1b6   : > { %v2472_v55 = vadd.f32 %v2471_v16, %v10122_v39 }
 0x1b7   : > { %v2702_v33 = vpop.f32.mrf.mxu3  ;;  %v10260_v49 = vpop.f32.mrf.mxu1 }
 0x1b8   : > { %v2703_v15 = vadd.f32 %v2702_v33, %v2470_v0  ;;  %v2796_v63 = vpop.f32.mrf.mxu0  ;;  %v2047_v33 = vrot.slane %v9997_v60, 1 }
 0x1ba   : > { %v2792_v50 = vadd.f32 %v2791_v40, %v2703_v15  ;;  %2835 = vmatmul.bf16.gmra.mxu0 %v1347_v31  ;;  %2513 = vmatmul.bf16.gmra.mxu2 %v2045_v28  ;;  %v1349_v40 = vshrl.u32 %v10250_v24, 16 }
 0x1bc   : > { %v10264_v1 = vadd.f32 %v2880_v48, %v2792_v50  ;;  %v1354_v42 = vor.u32 %v1353_v22, %v1349_v40  ;;  %v2968_v50 = vld [vmem:[#allocation2 + $0x20] sm:$0x1] }
 0x1bd   : > { %v2474_v39 = vpop.f32.mrf.mxu2  ;;  %v3112_v18 = vunpack.c.l.b16 %v2968_v50 }
 0x1be   : > { %v2475_v43 = vadd.f32 %v2474_v39, %v10130_v2  ;;  %v1359_v31 = vsel %vm1167_vm9, %v1354_v42, %v1358_v36  ;;  %v9069_v2 = vor.u32 %v9068_v59, %v10252_v53 }
 0x1bf   : > { %v2704_v29 = vpop.f32.mrf.mxu3  ;;  %v2885_v0 = vpop.f32.mrf.mxu1  ;;  %v3128_v39 = vpack.c.b16 %v3112_v18, %v3112_v18 }
 0x1c0   : > { %v2705_v3 = vadd.f32 %v2704_v29, %v2472_v55  ;;  %v2798_v48 = vpop.f32.mrf.mxu0  ;;  %v1470_v60 = vrot.slane %v9069_v2, 1  ;;  %v8760_v29 = vld [vmem:[#allocation2 + $0x18] sm:$0xf0]  ;;  %v2969_v2 = vld [vmem:[#allocation2 + $0x2c] sm:$0x1] }
 0x1c1   : > { %v3401_v59 = vrot.slane %v3128_v39, 1 }
 0x1c2   : > { %v10270_v45 = vadd.f32 %v2793_v20, %v2705_v3  ;;  %2924 = vmatmul.bf16.gmra.mxu1 %v1469_v10  ;;  %v8761_v10 = vld [vmem:[#allocation2 + $0x18] sm:$0xe] }
 0x1c3   : > { %v8762_v40 = vor.u32 %v8761_v10, %v8760_v29 }
 0x1c4   : > { %2746 = vmatmul.bf16.gmra.mxu3 %v10241_v52  ;;  %v2048_v52 = vsel %vm1424_vm10, %v2046_v58, %v2047_v33 }
 0x1c5   : > { %v2476_v16 = vpop.f32.mrf.mxu2  ;;  %v3400_v7 = vrot.slane %v8762_v40, 1 }
 0x1c6   : > { %v2477_v20 = vadd.f32 %v2476_v16, %v10138_v35  ;;  %v1472_v35 = vsel %vm1424_vm10, %v1470_v60, %v1471_v9  ;;  %v3113_v60 = vunpack.c.l.b16 %v2969_v2 }
 0x1c7   : > { %v2707_v34 = vpop.f32.mrf.mxu3  ;;  %v10275_v37 = vpop.f32.mrf.mxu1 }
 0x1c8   : > { %v2708_v15 = vadd.f32 %v2707_v34, %v2475_v43  ;;  %v2801_v55 = vpop.f32.mrf.mxu0  ;;  %v8563_v43 = vld [vmem:[#allocation2 + $0x18] sm:$0xff]   ;;  %v3402_v34 = vsel %vm1424_vm10, %v3400_v7, %v3401_v59 }
 0x1c9   : > { %v3147_v27 = vshll.u32 %v8563_v43, 16  ;;  %v3145_v33 = vshrl.u32 %v8563_v43, 16 }
 0x1ca   : > { %v2797_v28 = vadd.f32 %v2796_v63, %v2708_v15  ;;  %2840 = vmatmul.bf16.gmra.mxu0 %v1359_v31  ;;  %2518 = vmatmul.bf16.gmra.mxu2 %v2048_v52  ;;  %v8453_v63 = vld [vmem:[#allocation9 + $0xe0] sm:$0xff]  ;;  %v3152_v31 = vshll.u32 %v3128_v39, 16 }
 0x1cb   : > { %5847 = vmatpush.bf16.msra.mxu1 %v8453_v63  ;;  %v3149_v16 = vrot.slane %v3147_v27, 1 }
 0x1cc   : > { %v10280_v6 = vadd.f32 %v2885_v0, %v2797_v28  ;;  %v9313_v28 = vld [vmem:[#allocation2 + $0x24] sm:$0xf0]  ;;  %v3154_v18 = vrot.slane %v3152_v31, 1 }
 0x1cd   : > { %v2479_v3 = vpop.f32.mrf.mxu2  ;;  %v3150_v9 = vor.u32 %v3149_v16, %v3145_v33 }
 0x1ce   : > { %v2480_v22 = vadd.f32 %v2479_v3, %v10144_v46 }
 0x1cf   : > { %v2709_v54 = vpop.f32.mrf.mxu3  ;;  %v2890_v53 = vpop.f32.mrf.mxu1 }
 0x1d0   : > { %v2710_v51 = vadd.f32 %v2709_v54, %v2477_v20  ;;  %v2803_v19 = vpop.f32.mrf.mxu0  ;;  %v9314_v20 = vld [vmem:[#allocation2 + $0x24] sm:$0xe] }
 0x1d1   : > { %v9315_v3 = vor.u32 %v9314_v20, %v9313_v28  ;;  %v8764_v28 = vld [vmem:[#allocation2 + $0x30] sm:$0xe] }
 0x1d2   : > { %v10284_v0 = vadd.f32 %v2798_v48, %v2710_v51  ;;  %2929 = vmatmul.bf16.gmra.mxu1 %v1472_v35  ;;  %v3155_v35 = vsel %vm1167_vm9, %v3150_v9, %v3154_v18 }
 0x1d4   : > { %2751 = vmatmul.bf16.gmra.mxu3 %v10250_v24  ;;  %v2938_v24 = vld [vmem:[#allocation2 + $0x24] sm:$0xff]  }
 0x1d5   : > { %v2481_v58 = vpop.f32.mrf.mxu2  ;;  %v3157_v33 = vshrl.u32 %v2938_v24, 16 }
 0x1d6   : > { %v2482_v46 = vadd.f32 %v2481_v58, %v10157_v62  ;;  %v3129_v62 = vpack.c.b16 %v3113_v60, %v3113_v60 }
 0x1d7   : > { %v2712_v42 = vpop.f32.mrf.mxu3  ;;  %v10288_v15 = vpop.f32.mrf.mxu1 }
 0x1d8   : > { %v2713_v36 = vadd.f32 %v2712_v42, %v2480_v22  ;;  %v2806_v48 = vpop.f32.mrf.mxu0  ;;  %v3404_v63 = vrot.slane %v3129_v62, 1  ;;  %v3159_v22 = vshll.u32 %v2938_v24, 16 }
 0x1da   : > { %v2802_v50 = vadd.f32 %v2801_v55, %v2713_v36  ;;  %3842 = vmatmul.bf16.vlgmr.msra.gmra.mxu0 %v3402_v34  ;;  %3664 = vmatmul.bf16.vlgmr.msra.gmra.mxu2 %v8563_v43  ;;  %v3161_v34 = vrot.slane %v3159_v22, 1 }
 0x1dc   : > { %v10291_v52 = vadd.f32 %v2890_v53, %v2802_v50  ;;  %v3403_v53 = vrot.slane %v9315_v3, 1  ;;  %v3162_v2 = vor.u32 %v3161_v34, %v3157_v33  ;;  %v8763_v50 = vld [vmem:[#allocation2 + $0x30] sm:$0xf0]  ;;  %v2971_v34 = vld [vmem:[#allocation2 + $0x44] sm:$0x1] }
 0x1dd   : > { %v2484_v54 = vpop.f32.mrf.mxu2 }
 0x1de   : > { %v2485_v39 = vadd.f32 %v2484_v54, %v10021_v5  ;;  %v3405_v27 = vsel %vm1424_vm10, %v3403_v53, %v3404_v63  ;;  %v3164_v5 = vshll.u32 %v3129_v62, 16  ;;  %v8452_v54 = vld [vmem:[#allocation9 + $0xd8] sm:$0xff] }
 0x1df   : > { %v2714_v29 = vpop.f32.mrf.mxu3  ;;  %v2895_v51 = vpop.f32.mrf.mxu1  ;;  %5848 = vmatpush.bf16.msra.mxu1 %v8452_v54 }
 0x1e0   : > { %v2715_v10 = vadd.f32 %v2714_v29, %v2482_v46  ;;  %v2808_v55 = vpop.f32.mrf.mxu0  ;;  %v2970_v46 = vld [vmem:[#allocation2 + $0x38] sm:$0x1]  ;;  %v3166_v20 = vrot.slane %v3164_v5, 1  ;;  %v9317_v5 = vld [vmem:[#allocation2 + $0x3c] sm:$0xe] }
 0x1e1   : > { %v3114_v31 = vunpack.c.l.b16 %v2970_v46 }
 0x1e2   : > { %v10295_v40 = vadd.f32 %v2803_v19, %v2715_v10  ;;  %v8765_v10 = vor.u32 %v8764_v28, %v8763_v50  ;;  %v3167_v62 = vsel %vm1167_vm9, %v3162_v2, %v3166_v20  ;;  %v3115_v20 = vunpack.c.l.b16 %v2971_v34 }
 0x1e4   : > { %3753 = vmatmul.bf16.vlgmr.msra.gmra.mxu3 %v3155_v35  ;;  %v8753_v35 = vld [vmem:[#allocation2 + $0x30] sm:$0xff]  }
 0x1e5   : > { %v2486_v59 = vpop.f32.mrf.mxu2  ;;  %v3171_v53 = vshll.u32 %v8753_v35, 16 }
 0x1e6   : > { %v2487_v36 = vadd.f32 %v2486_v59, %v10031_v56  ;;  %v3130_v56 = vpack.c.b16 %v3114_v31, %v3114_v31  ;;  %v9316_v31 = vld [vmem:[#allocation2 + $0x3c] sm:$0xf0] }
 0x1e7   : > { %v2717_v43 = vpop.f32.mrf.mxu3  ;;  %v10298_v42 = vpop.f32.mrf.mxu1  ;;  %v3173_v33 = vrot.slane %v3171_v53, 1  ;;  %v9318_v54 = vor.u32 %v9317_v5, %v9316_v31 }
 0x1e8   : > { %v2718_v7 = vadd.f32 %v2717_v43, %v2485_v39  ;;  %v2811_v58 = vpop.f32.mrf.mxu0  ;;  %v3407_v39 = vrot.slane %v3130_v56, 1 }
 0x1ea   : > { %v2807_v19 = vadd.f32 %v2806_v48, %v2718_v7  ;;  %3847 = vmatmul.bf16.gmra.mxu0 %v3405_v27  ;;  %3669 = vmatmul.bf16.gmra.mxu2 %v2938_v24  ;;  %v3406_v24 = vrot.slane %v8765_v10, 1  ;;  %v3169_v27 = vshrl.u32 %v8753_v35, 16 }
 0x1ec   : > { %v10301_v16 = vadd.f32 %v2895_v51, %v2807_v19  ;;  %v3408_v7 = vsel %vm1424_vm10, %v3406_v24, %v3407_v39  ;;  %v2942_v19 = vld [vmem:[#allocation2 + $0x3c] sm:$0xff]   ;;  %v3174_v50 = vor.u32 %v3173_v33, %v3169_v27 }
 0x1ed   : > { %v2489_v18 = vpop.f32.mrf.mxu2  ;;  %v3183_v39 = vshll.u32 %v2942_v19, 16 }
 0x1ee   : > { %v2490_v48 = vadd.f32 %v2489_v18, %v10043_v25 }
 0x1ef   : > { %v2719_v60 = vpop.f32.mrf.mxu3  ;;  %v2900_v29 = vpop.f32.mrf.mxu1  ;;  %v3185_v33 = vrot.slane %v3183_v39, 1 }
 0x1f0   : > { %v2720_v9 = vadd.f32 %v2719_v60, %v2487_v36  ;;  %v2813_v3 = vpop.f32.mrf.mxu0 }
 0x1f2   : > { %v10305_v51 = vadd.f32 %v2808_v55, %v2720_v9  ;;  %v3176_v55 = vshll.u32 %v3130_v56, 16 }
 0x1f4   : > { %3758 = vmatmul.bf16.gmra.mxu3 %v3167_v62  ;;  %v3178_v28 = vrot.slane %v3176_v55, 1  ;;  %v2972_v55 = vld [vmem:[#allocation2 + $0x50] sm:$0x1] }
 0x1f5   : > { %v2491_v43 = vpop.f32.mrf.mxu2  ;;  %v3116_v5 = vunpack.c.l.b16 %v2972_v55  ;;  %v2973_v55 = vld [vmem:[#allocation2 + $0x5c] sm:$0x1] }
 0x1f6   : > { %v2492_v36 = vadd.f32 %v2491_v43, %v10051_v32  ;;  %v3131_v32 = vpack.c.b16 %v3115_v20, %v3115_v20  ;;  %v3179_v56 = vsel %vm1167_vm9, %v3174_v50, %v3178_v28  ;;  %v8766_v20 = vld [vmem:[#allocation2 + $0x48] sm:$0xf0]  ;;  %v8767_v50 = vld [vmem:[#allocation2 + $0x48] sm:$0xe] }
 0x1f7   : > { %v2722_v63 = vpop.f32.mrf.mxu3  ;;  %v10308_v59 = vpop.f32.mrf.mxu1 }
 0x1f8   : > { %v2723_v22 = vadd.f32 %v2722_v63, %v2490_v48  ;;  %v2816_v25 = vpop.f32.mrf.mxu0  ;;  %v3410_v24 = vrot.slane %v3131_v32, 1 }
 0x1fa   : > { %v2812_v46 = vadd.f32 %v2811_v58, %v2723_v22  ;;  %3852 = vmatmul.bf16.gmra.mxu0 %v3408_v7  ;;  %3674 = vmatmul.bf16.gmra.mxu2 %v8753_v35 }
 0x1fc   : > { %v10311_v2 = vadd.f32 %v2900_v29, %v2812_v46  ;;  %v3409_v29 = vrot.slane %v9318_v54, 1  ;;  %v8768_v54 = vor.u32 %v8767_v50, %v8766_v20  ;;  %v3117_v50 = vunpack.c.l.b16 %v2973_v55 }
 0x1fd   : > { %v2494_v18 = vpop.f32.mrf.mxu2 }
 0x1fe   : > { %v2495_v62 = vadd.f32 %v2494_v18, %v10059_v26  ;;  %v3411_v22 = vsel %vm1424_vm10, %v3409_v29, %v3410_v24  ;;  %v3188_v26 = vshll.u32 %v3131_v32, 16  ;;  %v8754_v29 = vld [vmem:[#allocation2 + $0x48] sm:$0xff]  }
 0x1ff   : > { %v2724_v60 = vpop.f32.mrf.mxu3  ;;  %v2905_v10 = vpop.f32.mrf.mxu1  ;;  %v3195_v39 = vshll.u32 %v8754_v29, 16 }
 0x200   : > { %v2725_v9 = vadd.f32 %v2724_v60, %v2492_v36  ;;  %v2818_v58 = vpop.f32.mrf.mxu0  ;;  %v3181_v36 = vshrl.u32 %v2942_v19, 16  ;;  %v3190_v31 = vrot.slane %v3188_v26, 1 }
 0x201   : > { %v3197_v26 = vrot.slane %v3195_v39, 1 }
 0x202   : > { %v10315_v48 = vadd.f32 %v2813_v3, %v2725_v9  ;;  %v3186_v46 = vor.u32 %v3185_v33, %v3181_v36  ;;  %v3193_v36 = vshrl.u32 %v8754_v29, 16 }
 0x204   : > { %3763 = vmatmul.bf16.gmra.mxu3 %v3179_v56  ;;  %v8451_v56 = vld [vmem:[#allocation9 + $0xd0] sm:$0xff]  ;;  %v3191_v32 = vsel %vm1167_vm9, %v3186_v46, %v3190_v31  ;;  %v9319_v31 = vld [vmem:[#allocation2 + $0x54] sm:$0xf0] }
 0x205   : > { %v2496_v63 = vpop.f32.mrf.mxu2  ;;  %5849 = vmatpush.bf16.msra.mxu1 %v8451_v56  ;;  %v2946_v46 = vld [vmem:[#allocation2 + $0x54] sm:$0xff]  }
 0x206   : > { %v2497_v7 = vadd.f32 %v2496_v63, %v10069_v30  ;;  %v3132_v30 = vpack.c.b16 %v3116_v5, %v3116_v5 }
 0x207   : > { %v2727_v35 = vpop.f32.mrf.mxu3  ;;  %v10318_v43 = vpop.f32.mrf.mxu1 }
 0x208   : > { %v2728_v53 = vadd.f32 %v2727_v35, %v2495_v62  ;;  %v2821_v27 = vpop.f32.mrf.mxu0  ;;  %v3413_v24 = vrot.slane %v3132_v30, 1 }
 0x20a   : > { %v2817_v3 = vadd.f32 %v2816_v25, %v2728_v53  ;;  %3857 = vmatmul.bf16.gmra.mxu0 %v3411_v22  ;;  %3679 = vmatmul.bf16.gmra.mxu2 %v2942_v19  ;;  %v3412_v19 = vrot.slane %v8768_v54, 1 }
 0x20c   : > { %v10321_v34 = vadd.f32 %v2905_v10, %v2817_v3  ;;  %v3414_v22 = vsel %vm1424_vm10, %v3412_v19, %v3413_v24  ;;  %v9320_v3 = vld [vmem:[#allocation2 + $0x54] sm:$0xe] }
 0x20d   : > { %v2499_v9 = vpop.f32.mrf.mxu2 }
 0x20e   : > { %v2500_v25 = vadd.f32 %v2499_v9, %v10081_v11 }
 0x20f   : > { %v2729_v28 = vpop.f32.mrf.mxu3  ;;  %v2910_v18 = vpop.f32.mrf.mxu1 }
 0x210   : > { %v2730_v60 = vadd.f32 %v2729_v28, %v2497_v7  ;;  %v2823_v62 = vpop.f32.mrf.mxu0  ;;  %v3198_v28 = vor.u32 %v3197_v26, %v3193_v36 }
 0x212   : > { %v10325_v10 = vadd.f32 %v2818_v58, %v2730_v60  ;;  %v3200_v58 = vshll.u32 %v3132_v30, 16 }
 0x214   : > { %3768 = vmatmul.bf16.gmra.mxu3 %v3191_v32  ;;  %v3202_v60 = vrot.slane %v3200_v58, 1  ;;  %v3205_v58 = vshrl.u32 %v2946_v46, 16 }
 0x215   : > { %v2501_v63 = vpop.f32.mrf.mxu2 }
 0x216   : > { %v2502_v33 = vadd.f32 %v2501_v63, %v10089_v23  ;;  %v3133_v23 = vpack.c.b16 %v3117_v50, %v3117_v50  ;;  %v3203_v30 = vsel %vm1167_vm9, %v3198_v28, %v3202_v60  ;;  %v8769_v60 = vld [vmem:[#allocation2 + $0x60] sm:$0xf0] }
 0x217   : > { %v2732_v35 = vpop.f32.mrf.mxu3  ;;  %v10328_v7 = vpop.f32.mrf.mxu1 }
 0x218   : > { %v2733_v53 = vadd.f32 %v2732_v35, %v2500_v25  ;;  %v2826_v11 = vpop.f32.mrf.mxu0  ;;  %v9321_v25 = vor.u32 %v9320_v3, %v9319_v31  ;;  %v3416_v39 = vrot.slane %v3133_v23, 1  ;;  %v3207_v35 = vshll.u32 %v2946_v46, 16  ;;  %v2974_v3 = vld [vmem:[#allocation2 + $0x68] sm:$0x1] }
 0x219   : > { %v3118_v31 = vunpack.c.l.b16 %v2974_v3 }
 0x21a   : > { %v2822_v5 = vadd.f32 %v2821_v27, %v2733_v53  ;;  %3862 = vmatmul.bf16.gmra.mxu0 %v3414_v22  ;;  %3684 = vmatmul.bf16.gmra.mxu2 %v8754_v29  ;;  %v3209_v55 = vrot.slane %v3207_v35, 1  ;;  %v8755_v35 = vld [vmem:[#allocation2 + $0x60] sm:$0xff]  }
 0x21c   : > { %v10331_v20 = vadd.f32 %v2910_v18, %v2822_v5  ;;  %v3415_v18 = vrot.slane %v9321_v25, 1  ;;  %v3210_v50 = vor.u32 %v3209_v55, %v3205_v58  ;;  %v3217_v55 = vshrl.u32 %v8755_v35, 16 }
 0x21d   : > { %v2504_v56 = vpop.f32.mrf.mxu2 }
 0x21e   : > { %v2505_v19 = vadd.f32 %v2504_v56, %v10097_v38  ;;  %v3417_v22 = vsel %vm1424_vm10, %v3415_v18, %v3416_v39  ;;  %v3212_v38 = vshll.u32 %v3133_v23, 16 }
 0x21f   : > { %v2734_v9 = vpop.f32.mrf.mxu3  ;;  %v2915_v32 = vpop.f32.mrf.mxu1 }
 0x220   : > { %v2735_v54 = vadd.f32 %v2734_v9, %v2502_v33  ;;  %v2828_v27 = vpop.f32.mrf.mxu0  ;;  %v3214_v28 = vrot.slane %v3212_v38, 1  ;;  %v8770_v9 = vld [vmem:[#allocation2 + $0x60] sm:$0xe] }
 0x221   : > { %v11965_v38 = vld [vmem:[#allocation20_spill] sm:$0xff] }
 0x222   : > { %v10335_v24 = vadd.f32 %v2823_v62, %v2735_v54  ;;  %v3215_v18 = vsel %vm1167_vm9, %v3210_v50, %v3214_v28  ;;  %v2975_v50 = vld [vmem:[#allocation2 + $0x74] sm:$0x1] }
 0x224   : > { %3773 = vmatmul.bf16.gmra.mxu3 %v3203_v30  ;;  %v3134_v30 = vpack.c.b16 %v3118_v31, %v3118_v31 }
 0x225   : > { %v2506_v63 = vpop.f32.mrf.mxu2 }
 0x226   : > { %v2507_v33 = vadd.f32 %v2506_v63, %v10107_v41  ;;  %v8771_v41 = vor.u32 %v8770_v9, %v8769_v60  ;;  %v3224_v31 = vshll.u32 %v3134_v30, 16  ;;  %v2950_v60 = vld [vmem:[#allocation2 + $0x6c] sm:$0xff]  }
 0x227   : > { %v2737_v29 = vpop.f32.mrf.mxu3  ;;  %v10338_v36 = vpop.f32.mrf.mxu1  ;;  %v9322_v9 = vld [vmem:[#allocation2 + $0x6c] sm:$0xf0] }
 0x228   : > { %v2738_v53 = vadd.f32 %v2737_v29, %v2505_v19  ;;  %11963 = vst [vmem:[#allocation26_spill] sm:$0xff] %v10338_v36  ;;  %v2831_v26 = vpop.f32.mrf.mxu0  ;;  %v8450_v19 = vld [vmem:[#allocation9 + $0xc8] sm:$0xff]  ;;  %v3419_v29 = vrot.slane %v3134_v30, 1 }
 0x229   : > { %5850 = vmatpush.bf16.msra.mxu1 %v8450_v19  ;;  %v3226_v19 = vrot.slane %v3224_v31, 1  ;;  %v11970_v31 = vld [vmem:[#allocation22_spill] sm:$0xff] }
 0x22a   : > { %v2827_v62 = vadd.f32 %v2826_v11, %v2738_v53  ;;  %3867 = vmatmul.bf16.gmra.mxu0 %v3417_v22  ;;  %3689 = vmatmul.bf16.gmra.mxu2 %v2946_v46  ;;  %v3418_v46 = vrot.slane %v8771_v41, 1  ;;  %v3219_v53 = vshll.u32 %v8755_v35, 16 }
 0x22c   : > { %v10341_v5 = vadd.f32 %v2915_v32, %v2827_v62  ;;  %v3420_v58 = vsel %vm1424_vm10, %v3418_v46, %v3419_v29 }
 0x22d   : > { %v2509_v25 = vpop.f32.mrf.mxu2 }
 0x22e   : > { %v2510_v23 = vadd.f32 %v2509_v25, %v10119_v13  ;;  %v3221_v13 = vrot.slane %v3219_v53, 1  ;;  %v3119_v25 = vunpack.c.l.b16 %v2975_v50  ;;  %v3231_v50 = vshll.u32 %v2950_v60, 16 }
 0x22f   : > { %v2739_v54 = vpop.f32.mrf.mxu3  ;;  %v2920_v39 = vpop.f32.mrf.mxu1 }
 0x230   : > { %v2740_v56 = vadd.f32 %v2739_v54, %v2507_v33  ;;  %v2833_v11 = vpop.f32.mrf.mxu0  ;;  %v3222_v41 = vor.u32 %v3221_v13, %v3217_v55  ;;  %v3135_v29 = vpack.c.b16 %v3119_v25, %v3119_v25  ;;  %v3233_v25 = vrot.slane %v3231_v50, 1  ;;  %v11973_v50 = vld [vmem:[#allocation23_spill] sm:$0xff] }
 0x232   : > { %v10345_v32 = vadd.f32 %v2828_v27, %v2740_v56  ;;  %v9323_v27 = vld [vmem:[#allocation2 + $0x6c] sm:$0xe]  ;;  %v3227_v30 = vsel %vm1167_vm9, %v3222_v41, %v3226_v19  ;;  %v3236_v41 = vshll.u32 %v3135_v29, 16  ;;  %v2976_v19 = vld [vmem:[#allocation2 + $0x80] sm:$0x1] }
 0x233   : > { %v9324_v53 = vor.u32 %v9323_v27, %v9322_v9  ;;  %v3229_v9 = vshrl.u32 %v2950_v60, 16 }
 0x234   : > { %11964 = vst [vmem:[#allocation27_spill] sm:$0xff] %v10345_v32  ;;  %3778 = vmatmul.bf16.gmra.mxu3 %v3215_v18  ;;  %v8432_v32 = vld [vmem:[#allocation9 + $0x38] sm:$0xff] }
 0x235   : > { %v2511_v33 = vpop.f32.mrf.mxu2  ;;  %6255 = vmatpush.bf16.msrb.mxu0 %v8432_v32 }
 0x236   : > { %v2512_v3 = vadd.f32 %v2511_v33, %v11965_v38 }
 0x237   : > { %v2742_v63 = vpop.f32.mrf.mxu3  ;;  %v10349_v54 = vpop.f32.mrf.mxu1 }
 0x238   : > { %v2743_v22 = vadd.f32 %v2742_v63, %v2510_v23  ;;  %v2836_v62 = vpop.f32.mrf.mxu0  ;;  %11966 = vst [vmem:[#allocation20_spill] sm:$0xff] %v10349_v54  ;;  %v11968_v63 = vld [vmem:[#allocation21_spill] sm:$0xff] }
 0x23a   : > { %v2832_v28 = vadd.f32 %v2831_v26, %v2743_v22  ;;  %3872 = vmatmul.bf16.gmra.mxu0 %v3420_v58  ;;  %3694 = vmatmul.bf16.gmra.mxu2 %v8755_v35  ;;  %v3421_v58 = vrot.slane %v9324_v53, 1  ;;  %v3238_v53 = vrot.slane %v3236_v41, 1 }
 0x23c   : > { %v10351_v56 = vadd.f32 %v2920_v39, %v2832_v28  ;;  %v3422_v39 = vrot.slane %v3135_v29, 1 }
 0x23d   : > { %v2514_v46 = vpop.f32.mrf.mxu2 }
 0x23e   : > { %11967 = vst [vmem:[#allocation28_spill] sm:$0xff] %v10351_v56  ;;  %v2515_v26 = vadd.f32 %v2514_v46, %v11968_v63  ;;  %v3234_v46 = vor.u32 %v3233_v25, %v3229_v9  ;;  %v8773_v63 = vld [vmem:[#allocation2 + $0x78] sm:$0xe] }
 0x23f   : > { %v2744_v18 = vpop.f32.mrf.mxu3  ;;  %v2925_v38 = vpop.f32.mrf.mxu1 }
 0x240   : > { %v2745_v23 = vadd.f32 %v2744_v18, %v2512_v3  ;;  %v2838_v22 = vpop.f32.mrf.mxu0  ;;  %v3423_v3 = vsel %vm1424_vm10, %v3421_v58, %v3422_v39  ;;  %v3239_v29 = vsel %vm1167_vm9, %v3234_v46, %v3238_v53 }
 0x242   : > { %v10355_v33 = vadd.f32 %v2833_v11, %v2745_v23  ;;  %v3120_v23 = vunpack.c.l.b16 %v2976_v19 }
 0x244   : > { %11969 = vst [vmem:[#allocation21_spill] sm:$0xff] %v10355_v33  ;;  %3783 = vmatmul.bf16.gmra.mxu3 %v3227_v30  ;;  %v8772_v30 = vld [vmem:[#allocation2 + $0x78] sm:$0xf0] }
 0x245   : > { %v2516_v13 = vpop.f32.mrf.mxu2 }
 0x246   : > { %v2517_v28 = vadd.f32 %v2516_v13, %v11970_v31  ;;  %v3136_v13 = vpack.c.b16 %v3120_v23, %v3120_v23  ;;  %v8774_v31 = vor.u32 %v8773_v63, %v8772_v30  ;;  %v11975_v30 = vld [vmem:[#allocation24_spill] sm:$0xff] }
 0x247   : > { %v2747_v35 = vpop.f32.mrf.mxu3 }
 0x248   : > { %v2748_v55 = vadd.f32 %v2747_v35, %v2515_v26  ;;  %v2841_v27 = vpop.f32.mrf.mxu0  ;;  %v10361_v35 = vpop.f32.mrf.mxu1  ;;  %v3425_v9 = vrot.slane %v3136_v13, 1 }
 0x249   : > { %11972 = vst [vmem:[#allocation29_spill] sm:$0xff] %v10361_v35  ;;  %v2954_v35 = vld [vmem:[#allocation2 + $0x84] sm:$0xff]  }
 0x24a   : > { %v2837_v18 = vadd.f32 %v2836_v62, %v2748_v55  ;;  %3877 = vmatmul.bf16.gmra.mxu0 %v3423_v3  ;;  %3699 = vmatmul.bf16.gmra.mxu2 %v2950_v60  ;;  %v8756_v3 = vld [vmem:[#allocation2 + $0x78] sm:$0xff]   ;;  %v3424_v60 = vrot.slane %v8774_v31, 1 }
 0x24b   : > { %v3243_v25 = vshll.u32 %v8756_v3, 16 }
 0x24c   : > { %v10359_v11 = vadd.f32 %v2925_v38, %v2837_v18 }
 0x24d   : > { %v2519_v39 = vpop.f32.mrf.mxu2  ;;  %v3245_v53 = vrot.slane %v3243_v25, 1 }
 0x24e   : > { %11971 = vst [vmem:[#allocation22_spill] sm:$0xff] %v10359_v11  ;;  %v2520_v62 = vadd.f32 %v2519_v39, %v11973_v50  ;;  %v3248_v39 = vshll.u32 %v3136_v13, 16  ;;  %v2977_v50 = vld [vmem:[#allocation2 + $0x8c] sm:$0x1] }
 0x24f   : > { %v2749_v26 = vpop.f32.mrf.mxu3 }
 0x250   : > { %v2750_v58 = vadd.f32 %v2749_v26, %v2517_v28  ;;  %v2843_v55 = vpop.f32.mrf.mxu0  ;;  %v3426_v28 = vsel %vm1424_vm10, %v3424_v60, %v3425_v9  ;;  %v3241_v26 = vshrl.u32 %v8756_v3, 16  ;;  %v2930_v23 = vpop.f32.mrf.mxu1 }
 0x252   : > { %v10365_v38 = vadd.f32 %v2838_v22, %v2750_v58  ;;  %v9326_v22 = vld [vmem:[#allocation2 + $0x84] sm:$0xe] }
 0x254   : > { %11974 = vst [vmem:[#allocation23_spill] sm:$0xff] %v10365_v38  ;;  %3788 = vmatmul.bf16.gmra.mxu3 %v3239_v29  ;;  %v9325_v29 = vld [vmem:[#allocation2 + $0x84] sm:$0xf0]  ;;  %v3121_v38 = vunpack.c.l.b16 %v2977_v50 }
 0x255   : > { %v2521_v18 = vpop.f32.mrf.mxu2 }
 0x256   : > { %v2522_v63 = vadd.f32 %v2521_v18, %v11975_v30  ;;  %v3137_v54 = vpack.c.b16 %v3121_v38, %v3121_v38  ;;  %v9327_v18 = vor.u32 %v9326_v22, %v9325_v29  ;;  %v3253_v38 = vshrl.u32 %v2954_v35, 16 }
 0x257   : > { %v2752_v41 = vpop.f32.mrf.mxu3 }
 0x258   : > { %v2753_v19 = vadd.f32 %v2752_v41, %v2520_v62  ;;  %v3843_v46 = vpop.f32.mrf.mxu0  ;;  %v3246_v62 = vor.u32 %v3245_v53, %v3241_v26  ;;  %v3250_v41 = vrot.slane %v3248_v39, 1  ;;  %v3260_v22 = vshll.u32 %v3137_v54, 16 }
 0x25a   : > { %v2842_v58 = vadd.f32 %v2841_v27, %v2753_v19  ;;  %3882 = vmatmul.bf16.gmra.mxu0 %v3426_v28  ;;  %3704 = vmatmul.bf16.gmra.mxu2 %v8756_v3  ;;  %v3251_v25 = vsel %vm1167_vm9, %v3246_v62, %v3250_v41  ;;  %v3427_v27 = vrot.slane %v9327_v18, 1  ;;  %v3428_v19 = vrot.slane %v3137_v54, 1  ;;  %v8449_v28 = vld [vmem:[#allocation9 + $0xc0] sm:$0xff]  ;;  %v10375_v62 = vld [vmem:[#allocation6 + $0x2] ss:$0 sm:$0xff]  ;;  %v11978_v41 = vld [vmem:[#allocation25_spill] sm:$0xff] }
 0x25b   : > { %5851 = vmatpush.bf16.msra.mxu1 %v8449_v28  ;;  %v8776_v28 = vld [vmem:[#allocation2 + $0x90] sm:$0xe] }
 0x25c   : > { %v10369_v31 = vadd.f32 %v2930_v23, %v2842_v58  ;;  %v3255_v23 = vshll.u32 %v2954_v35, 16  ;;  %v3429_v53 = vsel %vm1424_vm10, %v3427_v27, %v3428_v19 }
 0x25d   : > { %v3665_v11 = vpop.f32.mrf.mxu2 }
 0x25e   : > { %11976 = vst [vmem:[#allocation24_spill] sm:$0xff] %v10369_v31  ;;  %v3257_v50 = vrot.slane %v3255_v23, 1 }
 0x25f   : > { %v2754_v60 = vpop.f32.mrf.mxu3 }
 0x260   : > { %v2755_v9 = vadd.f32 %v2754_v60, %v2522_v63  ;;  %v3845_v13 = vpop.f32.mrf.mxu0  ;;  %v2978_v63 = vld [vmem:[#allocation2 + $0x98] sm:$0x1]  ;;  %v3258_v18 = vor.u32 %v3257_v50, %v3253_v38 }
 0x262   : > { %v10372_v30 = vadd.f32 %v2843_v55, %v2755_v9  ;;  %v3122_v55 = vunpack.c.l.b16 %v2978_v63  ;;  %v10378_v9 = vld [vmem:[#allocation6 + $0x3] ss:$0 sm:$0xff] }
 0x264   : > { %11977 = vst [vmem:[#allocation30_spill] sm:$0xff] %v10372_v30  ;;  %3793 = vmatmul.bf16.gmra.mxu3 %v3251_v25  ;;  %v8775_v25 = vld [vmem:[#allocation2 + $0x90] sm:$0xf0]  ;;  %v3138_v23 = vpack.c.b16 %v3122_v55, %v3122_v55 }
 0x265   : > { %v3667_v26 = vpop.f32.mrf.mxu2 }
 0x266   : > { %v3431_v30 = vrot.slane %v3138_v23, 1 }
 0x267   : > { %v3754_v58 = vpop.f32.mrf.mxu3 }
 0x268   : > { %v3755_v3 = vadd.f32 %v3754_v58, %v3665_v11  ;;  %v3848_v39 = vpop.f32.mrf.mxu0  ;;  %v3262_v11 = vrot.slane %v3260_v22, 1  ;;  %v8757_v58 = vld [vmem:[#allocation2 + $0x90] sm:$0xff]  }
 0x269   : > { %v3267_v50 = vshll.u32 %v8757_v58, 16  ;;  %v3265_v33 = vshrl.u32 %v8757_v58, 16 }
 0x26a   : > { %v3844_v29 = vadd.f32 %v3843_v46, %v3755_v3  ;;  %3887 = vmatmul.bf16.gmra.mxu0 %v3429_v53  ;;  %3709 = vmatmul.bf16.gmra.mxu2 %v2954_v35  ;;  %v8777_v53 = vor.u32 %v8776_v28, %v8775_v25  ;;  %v3263_v63 = vsel %vm1167_vm9, %v3258_v18, %v3262_v11  ;;  %v3272_v18 = vshll.u32 %v3138_v23, 16 }
 0x26c   : > { %v3923_v60 = vadd.f32 %v3844_v29, %v11978_v41 }
 0x26d   : > { %v3670_v3 = vpop.f32.mrf.mxu2 }
 0x26e   : > { %v3956_v27 = vadd.f32 %v10375_v62, %v3923_v60  ;;  %v3430_v60 = vrot.slane %v8777_v53, 1 }
 0x26f   : > { %v3756_v19 = vpop.f32.mrf.mxu3 }
 0x270   : > { %vm3988_vm11 = vcmp.gt.f32.partialorder %v3956_v27, 0.0  ;;  %v4021_v54 = vmul.f32 %v10378_v9, %v3956_v27  ;;  %v3757_v46 = vadd.f32 %v3756_v19, %v3667_v26  ;;  %v10383_v29 = vpop.f32.mrf.mxu0  ;;  %v3269_v26 = vrot.slane %v3267_v50, 1  ;;  %v10391_v50 = vld [vmem:[#allocation2 + $0x9c] sm:$0xff]  }
 0x272   : > { %v4053_v35 = vsel %vm3988_vm11, %v3956_v27, %v4021_v54  ;;  %v3846_v38 = vadd.f32 %v3845_v13, %v3757_v46  ;;  %v3432_v54 = vsel %vm1424_vm10, %v3430_v60, %v3431_v30  ;;  %v8472_v60 = vld [vmem:[#allocation9 + $0x178] sm:$0xff] }
 0x273   : > { %v4085_v22 = vpack.c.bf16 %v4053_v35, %v4053_v35  ;;  %6022 = vmatpush.bf16.msrb.mxu3 %v8472_v60 }
 0x274   : > { %v3924_v41 = vadd.f32 %v3846_v38, %v10186_v61  ;;  %3798 = vmatmul.bf16.gmra.mxu3 %v3263_v63  ;;  %v2979_v61 = vld [vmem:[#allocation2 + $0xa4] sm:$0x1]  ;;  %v9329_v63 = vld [vmem:[#allocation2 + $0x9c] sm:$0xe] }
 0x275   : > { %v4118_v55 = vshrl.u32 %v4085_v22, 16  ;;  %v4121_v25 = vshll.u32 %v4085_v22, 16  ;;  %v3672_v27 = vpop.f32.mrf.mxu2  ;;  %v9328_v22 = vld [vmem:[#allocation2 + $0x9c] sm:$0xf0] }
 0x276   : > { %v3957_v31 = vadd.f32 %v10375_v62, %v3924_v41  ;;  %v3270_v41 = vor.u32 %v3269_v26, %v3265_v33 }
 0x277   : > { %v4120_v19 = vrot.slane %v4118_v55, 7  ;;  %v3759_v28 = vpop.f32.mrf.mxu3  ;;  %v8985_v55 = vld [vmem:[#allocation2 + $0xc] sm:$0xf] }
 0x278   : > { %vm3989_vm12 = vcmp.gt.f32.partialorder %v3957_v31, 0.0  ;;  %v4022_v11 = vmul.f32 %v10378_v9, %v3957_v31  ;;  %v3760_v13 = vadd.f32 %v3759_v28, %v3670_v3  ;;  %v10389_v53 = vpop.f32.mrf.mxu0  ;;  %v3274_v3 = vrot.slane %v3272_v18, 1 }
 0x279   : > { %v4123_v46 = vor.u32 %v4121_v25, %v4120_v19  ;;  %v3123_v28 = vunpack.c.l.b16 %v2979_v61  ;;  %v8464_v25 = vld [vmem:[#allocation9 + $0x138] sm:$0xff] }
 0x27a   : > { %v4054_v35 = vsel %vm3989_vm12, %v3957_v31, %v4022_v11  ;;  %v3849_v38 = vadd.f32 %v3848_v39, %v3760_v13  ;;  %3892 = vmatmul.bf16.gmra.mxu0 %v3432_v54  ;;  %3714 = vmatmul.bf16.gmra.mxu2 %v8757_v58  ;;  %v3275_v13 = vsel %vm1167_vm9, %v3270_v41, %v3274_v3  ;;  %v4440_v54 = vld [vmem:[#allocation2 + $0x14] sm:$0x1] }
 0x27b   : > { %v4437_v56 = vsel %vm9588_vm8, %v4123_v46, %v8985_v55  ;;  %v4086_v36 = vpack.c.bf16 %v4054_v35, %v4054_v35  ;;  %5933 = vmatpush.bf16.msrb.mxu2 %v8464_v25  ;;  %v3139_v18 = vpack.c.b16 %v3123_v28, %v3123_v28  ;;  %v9330_v46 = vor.u32 %v9329_v63, %v9328_v22  ;;  %v8440_v25 = vld [vmem:[#allocation9 + $0x78] sm:$0xff] }
 0x27c   : > { %4438 = vst [vmem:[#allocation2 + $0xc] sm:$0xf] %v4437_v56  ;;  %v3925_v30 = vadd.f32 %v3849_v38, %v10192_v21  ;;  %v4124_v35 = vrot.slane %v4120_v19, 4  ;;  %6344 = vmatpush.bf16.msrb.mxu1 %v8440_v25 }
 0x27d   : > { %v4126_v31 = vshrl.u32 %v4086_v36, 16  ;;  %v4129_v26 = vshll.u32 %v4086_v36, 16  ;;  %v3675_v61 = vpop.f32.mrf.mxu2  ;;  %v3433_v63 = vrot.slane %v9330_v46, 1  ;;  %v3434_v19 = vrot.slane %v3139_v18, 1 }
 0x27e   : > { %v3958_v33 = vadd.f32 %v10375_v62, %v3925_v30 }
 0x27f   : > { %v4128_v39 = vrot.slane %v4126_v31, 7  ;;  %v3761_v11 = vpop.f32.mrf.mxu3  ;;  %v3279_v31 = vshll.u32 %v10391_v50, 16 }
 0x280   : > { %vm3990_vm13 = vcmp.gt.f32.partialorder %v3958_v33, 0.0  ;;  %v4023_v21 = vmul.f32 %v10378_v9, %v3958_v33  ;;  %v3762_v56 = vadd.f32 %v3761_v11, %v3672_v27  ;;  %v10399_v55 = vpop.f32.mrf.mxu0  ;;  %v4443_v11 = vld [vmem:[#allocation2 + $0x18] sm:$0xf] }
 0x281   : > { %v4131_v58 = vor.u32 %v4129_v26, %v4128_v39  ;;  %v4133_v38 = vrot.slane %v4128_v39, 4 }
 0x282   : > { %v4055_v30 = vsel %vm3990_vm13, %v3958_v33, %v4023_v21  ;;  %v3851_v36 = vadd.f32 %v10383_v29, %v3762_v56  ;;  %v2980_v56 = vld [vmem:[#allocation2 + $0xb0] sm:$0x1] }
 0x283   : > { %v4132_v41 = vsel %vm9579_vm7, %v4124_v35, %v4131_v58  ;;  %v4441_v3 = vsel %vm9530_vm2, %v4133_v38, %v4440_v54  ;;  %v4087_v28 = vpack.c.bf16 %v4055_v30, %v4055_v30  ;;  %v3277_v58 = vshrl.u32 %v10391_v50, 16 }
 0x284   : > { %4439 = vst [vmem:[#allocation2 + $0x10] sm:$0xf] %v4132_v41  ;;  %v3926_v27 = vadd.f32 %v3851_v36, %v10199_v4  ;;  %3803 = vmatmul.bf16.gmra.mxu3 %v3275_v13  ;;  %v3435_v13 = vsel %vm1424_vm10, %v3433_v63, %v3434_v19  ;;  %v3281_v38 = vrot.slane %v3279_v31, 1  ;;  %v3284_v30 = vshll.u32 %v3139_v18, 16  ;;  %v8778_v31 = vld [vmem:[#allocation2 + $0xa8] sm:$0xf0] }
 0x285   : > { %4442 = vst [vmem:[#allocation2 + $0x14] sm:$0x1] %v4441_v3  ;;  %v4135_v22 = vshrl.u32 %v4087_v28, 16  ;;  %v4138_v39 = vshll.u32 %v4087_v28, 16  ;;  %v3677_v4 = vpop.f32.mrf.mxu2  ;;  %v3124_v63 = vunpack.c.l.b16 %v2980_v56 }
 0x286   : > { %v3959_v29 = vadd.f32 %v10375_v62, %v3926_v27  ;;  %v3282_v18 = vor.u32 %v3281_v38, %v3277_v58  ;;  %v3286_v25 = vrot.slane %v3284_v30, 1 }
 0x287   : > { %v4137_v33 = vrot.slane %v4135_v22, 7  ;;  %v3764_v26 = vpop.f32.mrf.mxu3 }
 0x288   : > { %vm3991_vm14 = vcmp.gt.f32.partialorder %v3959_v29, 0.0  ;;  %v4024_v54 = vmul.f32 %v10378_v9, %v3959_v29  ;;  %v3765_v21 = vadd.f32 %v3764_v26, %v3675_v61  ;;  %v10411_v35 = vpop.f32.mrf.mxu0 }
 0x289   : > { %v4140_v46 = vor.u32 %v4138_v39, %v4137_v33  ;;  %v4141_v58 = vrot.slane %v4137_v33, 4 }
 0x28a   : > { %v4056_v36 = vsel %vm3991_vm14, %v3959_v29, %v4024_v54  ;;  %v3854_v41 = vadd.f32 %v10389_v53, %v3765_v21  ;;  %3897 = vmatmul.bf16.gmra.mxu0 %v3435_v13  ;;  %3719 = vmatmul.bf16.gmra.mxu2 %v10391_v50  ;;  %v8779_v53 = vld [vmem:[#allocation2 + $0xa8] sm:$0xe]  ;;  %v3140_v21 = vpack.c.b16 %v3124_v63, %v3124_v63 }
 0x28b   : > { %v4444_v3 = vsel %vm9588_vm8, %v4140_v46, %v4443_v11  ;;  %v4088_v28 = vpack.c.bf16 %v4056_v36, %v4056_v36  ;;  %v10417_v27 = vld [vmem:[#allocation2 + $0xc] sm:$0xff]   ;;  %v4447_v46 = vld [vmem:[#allocation2 + $0x20] sm:$0x1]  ;;  %v8780_v50 = vor.u32 %v8779_v53, %v8778_v31  ;;  %v3287_v36 = vsel %vm1167_vm9, %v3282_v18, %v3286_v25 }
 0x28c   : > { %v10419_v61 = vld [vmem:[#allocation2 + $0xc] sm:$0xf0]  ;;  %4445 = vst [vmem:[#allocation2 + $0x18] sm:$0xf] %v4444_v3  ;;  %v3927_v19 = vadd.f32 %v3854_v41, %v10209_v8  ;;  %v8758_v54 = vld [vmem:[#allocation2 + $0xa8] sm:$0xff]   ;;  %5852 = vmatmul.bf16.vlgmr.msra.gmra.mxu1 %v10417_v27  ;;  %v3437_v53 = vrot.slane %v3140_v21, 1 }
 0x28d   : > { %v4143_v22 = vshrl.u32 %v4088_v28, 16  ;;  %v4146_v26 = vshll.u32 %v4088_v28, 16  ;;  %v3680_v8 = vpop.f32.mrf.mxu2  ;;  %v3291_v63 = vshll.u32 %v8758_v54, 16  ;;  %v3436_v31 = vrot.slane %v8780_v50, 1  ;;  %v2981_v50 = vld [vmem:[#allocation2 + $0xbc] sm:$0x1] }
 0x28e   : > { %v3960_v29 = vadd.f32 %v10375_v62, %v3927_v19 }
 0x28f   : > { %v4145_v39 = vrot.slane %v4143_v22, 7  ;;  %v3766_v11 = vpop.f32.mrf.mxu3 }
 0x290   : > { %vm3992_vm15 = vcmp.gt.f32.partialorder %v3960_v29, 0.0  ;;  %v4025_v13 = vmul.f32 %v10378_v9, %v3960_v29  ;;  %v3767_v56 = vadd.f32 %v3766_v11, %v3677_v4  ;;  %v10427_v41 = vpop.f32.mrf.mxu0 }
 0x291   : > { %v4148_v38 = vor.u32 %v4146_v26, %v4145_v39  ;;  %v4150_v30 = vrot.slane %v4145_v39, 4 }
 0x292   : > { %v4057_v3 = vsel %vm3992_vm15, %v3960_v29, %v4025_v13  ;;  %v3856_v28 = vadd.f32 %v10399_v55, %v3767_v56  ;;  %v3289_v29 = vshrl.u32 %v8758_v54, 16  ;;  %v3293_v55 = vrot.slane %v3291_v63, 1  ;;  %v4450_v56 = vld [vmem:[#allocation2 + $0x24] sm:$0xf] }
 0x293   : > { %v4149_v19 = vsel %vm9579_vm7, %v4141_v58, %v4148_v38  ;;  %v4448_v4 = vsel %vm9530_vm2, %v4150_v30, %v4447_v46  ;;  %v4089_v22 = vpack.c.bf16 %v4057_v3, %v4057_v3  ;;  %v3296_v13 = vshll.u32 %v3140_v21, 16  ;;  %v9332_v3 = vld [vmem:[#allocation2 + $0xb4] sm:$0xe]  ;;  %v9331_v21 = vld [vmem:[#allocation2 + $0xb4] sm:$0xf0] }
 0x294   : > { %4446 = vst [vmem:[#allocation2 + $0x1c] sm:$0xf] %v4149_v19  ;;  %v3928_v33 = vadd.f32 %v3856_v28, %v10220_v57  ;;  %3808 = vmatmul.bf16.gmra.mxu3 %v3287_v36  ;;  %v3438_v57 = vsel %vm1424_vm10, %v3436_v31, %v3437_v53  ;;  %v3294_v19 = vor.u32 %v3293_v55, %v3289_v29  ;;  %v8471_v53 = vld [vmem:[#allocation9 + $0x170] sm:$0xff] }
 0x295   : > { %4449 = vst [vmem:[#allocation2 + $0x20] sm:$0x1] %v4448_v4  ;;  %v4152_v18 = vshrl.u32 %v4089_v22, 16  ;;  %v4155_v26 = vshll.u32 %v4089_v22, 16  ;;  %v3682_v38 = vpop.f32.mrf.mxu2  ;;  %v10441_v4 = vld [vmem:[#allocation2 + $0xb4] sm:$0xff]   ;;  %6023 = vmatpush.bf16.msrb.mxu3 %v8471_v53 }
 0x296   : > { %v3961_v25 = vadd.f32 %v10375_v62, %v3928_v33 }
 0x297   : > { %v4154_v39 = vrot.slane %v4152_v18, 7  ;;  %v3769_v11 = vpop.f32.mrf.mxu3  ;;  %v3125_v18 = vunpack.c.l.b16 %v2981_v50 }
 0x298   : > { %vm3993_vm0 = vcmp.gt.f32.partialorder %v3961_v25, 0.0  ;;  %v4026_v46 = vmul.f32 %v10378_v9, %v3961_v25  ;;  %v3770_v58 = vadd.f32 %v3769_v11, %v3680_v8  ;;  %v10438_v36 = vpop.f32.mrf.mxu0  ;;  %v3298_v8 = vrot.slane %v3296_v13, 1 }
 0x299   : > { %v4157_v30 = vor.u32 %v4155_v26, %v4154_v39  ;;  %v8463_v26 = vld [vmem:[#allocation9 + $0x130] sm:$0xff] }
 0x29a   : > { %v4058_v28 = vsel %vm3993_vm0, %v3961_v25, %v4026_v46  ;;  %v3859_v63 = vadd.f32 %v10411_v35, %v3770_v58  ;;  %3902 = vmatmul.bf16.gmra.mxu0 %v3438_v57  ;;  %3724 = vmatmul.bf16.gmra.mxu2 %v8758_v54  ;;  %v8431_v25 = vld [vmem:[#allocation9 + $0x30] sm:$0xff]  ;;  %v3299_v13 = vsel %vm1167_vm9, %v3294_v19, %v3298_v8 }
 0x29b   : > { %v4451_v22 = vsel %vm9588_vm8, %v4157_v30, %v4450_v56  ;;  %v4090_v33 = vpack.c.bf16 %v4058_v28, %v4058_v28  ;;  %5934 = vmatpush.bf16.msrb.mxu2 %v8463_v26  ;;  %v10447_v56 = vld [vmem:[#allocation2 + $0x18] sm:$0xff]   ;;  %6256 = vmatpush.bf16.msrb.mxu0 %v8431_v25  ;;  %v10450_v58 = vpack.c.b16 %v3125_v18, %v3125_v18  ;;  %v4158_v28 = vrot.slane %v4154_v39, 4  ;;  %v384_v8 = vld [vmem:[#allocation2 + $0xd4] sm:$0x1] }
 0x29c   : > { %4452 = vst [vmem:[#allocation2 + $0x24] sm:$0xf] %v4451_v22  ;;  %v3929_v31 = vadd.f32 %v3859_v63, %v10226_v14  ;;  %v4454_v14 = vld [vmem:[#allocation2 + $0x2c] sm:$0x1]  ;;  %5857 = vmatmul.bf16.gmra.mxu1 %v10447_v56  ;;  %v9333_v30 = vor.u32 %v9332_v3, %v9331_v21  ;;  %v8439_v25 = vld [vmem:[#allocation9 + $0x70] sm:$0xff] }
 0x29d   : > { %v4160_v11 = vshrl.u32 %v4090_v33, 16  ;;  %v4163_v55 = vshll.u32 %v4090_v33, 16  ;;  %v3685_v50 = vpop.f32.mrf.mxu2  ;;  %v3440_v21 = vrot.slane %v10450_v58, 1  ;;  %6345 = vmatpush.bf16.msrb.mxu1 %v8439_v25  ;;  %v8430_v25 = vld [vmem:[#allocation9 + $0x28] sm:$0xff] }
 0x29e   : > { %v3962_v35 = vadd.f32 %v10375_v62, %v3929_v31  ;;  %v328_v31 = vld [vmem:[#allocation2 + $0xcc] sm:$0x1]  ;;  %v3439_v39 = vrot.slane %v9333_v30, 1 }
 0x29f   : > { %v4162_v29 = vrot.slane %v4160_v11, 7  ;;  %v3771_v46 = vpop.f32.mrf.mxu3  ;;  %v329_v11 = vsel %vm9530_vm2, 0, %v328_v31  ;;  %6257 = vmatpush.bf16.msrb.mxu0 %v8430_v25 }
 0x2a0   : > { %vm3994_vm1 = vcmp.gt.f32.partialorder %v3962_v35, 0.0  ;;  %v4027_v57 = vmul.f32 %v10378_v9, %v3962_v35  ;;  %v3772_v54 = vadd.f32 %v3771_v46, %v3682_v38  ;;  %v10454_v33 = vpop.f32.mrf.mxu0  ;;  %330 = vst [vmem:[#allocation2 + $0xcc] sm:$0x1] %v329_v11 }
 0x2a1   : > { %v4165_v63 = vor.u32 %v4163_v55, %v4162_v29  ;;  %v4167_v22 = vrot.slane %v4162_v29, 4  ;;  %v385_v55 = vsel %vm9544_vm4, 0, %v384_v8  ;;  %v8470_v29 = vld [vmem:[#allocation9 + $0x168] sm:$0xff] }
 0x2a2   : > { %v4059_v53 = vsel %vm3994_vm1, %v3962_v35, %v4027_v57  ;;  %v3861_v19 = vadd.f32 %v10427_v41, %v3772_v54  ;;  %v3303_v35 = vshll.u32 %v10441_v4, 16  ;;  %386 = vst [vmem:[#allocation2 + $0xd4] sm:$0x1] %v385_v55  ;;  %v4457_v57 = vld [vmem:[#allocation2 + $0x30] sm:$0xf]  ;;  %6024 = vmatpush.bf16.msrb.mxu3 %v8470_v29 }
 0x2a3   : > { %v4166_v18 = vsel %vm9579_vm7, %v4158_v28, %v4165_v63  ;;  %v4455_v38 = vsel %vm9530_vm2, %v4167_v22, %v4454_v14  ;;  %v4091_v26 = vpack.c.bf16 %v4059_v53, %v4059_v53  ;;  %v3441_v63 = vsel %vm1424_vm10, %v3439_v39, %v3440_v21  ;;  %v2982_v22 = vld [vmem:[#allocation2 + $0xc8] sm:$0x1] }
 0x2a4   : > { %4453 = vst [vmem:[#allocation2 + $0x28] sm:$0xf] %v4166_v18  ;;  %v3930_v3 = vadd.f32 %v3861_v19, %v10233_v17  ;;  %3813 = vmatmul.bf16.gmra.mxu3 %v3299_v13  ;;  %v3301_v19 = vshrl.u32 %v10441_v4, 16  ;;  %v3305_v8 = vrot.slane %v3303_v35, 1  ;;  %v3308_v18 = vshll.u32 %v10450_v58, 16 }
 0x2a5   : > { %4456 = vst [vmem:[#allocation2 + $0x2c] sm:$0x1] %v4455_v38  ;;  %v4169_v41 = vshrl.u32 %v4091_v26, 16  ;;  %v4172_v17 = vshll.u32 %v4091_v26, 16  ;;  %v3687_v28 = vpop.f32.mrf.mxu2  ;;  %v3126_v21 = vunpack.c.l.b16 %v2982_v22 }
 0x2a6   : > { %v3963_v46 = vadd.f32 %v10375_v62, %v3930_v3  ;;  %v3310_v55 = vrot.slane %v3308_v18, 1 }
 0x2a7   : > { %v10469_v14 = vrot.slane %v4169_v41, 7  ;;  %v3774_v13 = vpop.f32.mrf.mxu3  ;;  %v8462_v41 = vld [vmem:[#allocation9 + $0x128] sm:$0xff]  ;;  %v10490_v22 = vpack.c.b16 %v3126_v21, %v3126_v21 }
 0x2a8   : > { %vm3995_vm3 = vcmp.gt.f32.partialorder %v3963_v46, 0.0  ;;  %v4028_v54 = vmul.f32 %v10378_v9, %v3963_v46  ;;  %v3775_v30 = vadd.f32 %v3774_v13, %v3685_v50  ;;  %v10474_v53 = vpop.f32.mrf.mxu0  ;;  %5935 = vmatpush.bf16.msrb.mxu2 %v8462_v41 }
 0x2a9   : > { %v4174_v31 = vor.u32 %v4172_v17, %v10469_v14  ;;  %v8782_v17 = vld [vmem:[#allocation2 + $0xc0] sm:$0xe] }
 0x2aa   : > { %v4060_v38 = vsel %vm3995_vm3, %v3963_v46, %v4028_v54  ;;  %v3864_v26 = vadd.f32 %v10438_v36, %v3775_v30  ;;  %3907 = vmatmul.bf16.gmra.mxu0 %v3441_v63  ;;  %3729 = vmatmul.bf16.gmra.mxu2 %v10441_v4  ;;  %v3306_v36 = vor.u32 %v3305_v8, %v3301_v19  ;;  %v8781_v46 = vld [vmem:[#allocation2 + $0xc0] sm:$0xf0] }
 0x2ab   : > { %v4458_v3 = vsel %vm9588_vm8, %v4174_v31, %v4457_v57  ;;  %v4092_v50 = vpack.c.bf16 %v4060_v38, %v4060_v38  ;;  %v10481_v11 = vld [vmem:[#allocation2 + $0x24] sm:$0xff]   ;;  %v4461_v38 = vld [vmem:[#allocation2 + $0x38] sm:$0x1]  ;;  %v8783_v18 = vor.u32 %v8782_v17, %v8781_v46 }
 0x2ac   : > { %v10483_v39 = vld [vmem:[#allocation2 + $0x24] sm:$0xf0]  ;;  %4459 = vst [vmem:[#allocation2 + $0x30] sm:$0xf] %v4458_v3  ;;  %v3931_v35 = vadd.f32 %v3864_v26, %v10244_v44  ;;  %v10488_v63 = vld [vmem:[#allocation2 + $0xc0] sm:$0xff]   ;;  %5862 = vmatmul.bf16.gmra.mxu1 %v10481_v11  ;;  %v4175_v3 = vrot.slane %v10469_v14, 4  ;;  %v3311_v25 = vsel %vm1167_vm9, %v3306_v36, %v3310_v55 }
 0x2ad   : > { %v4177_v58 = vshrl.u32 %v4092_v50, 16  ;;  %v4180_v54 = vshll.u32 %v4092_v50, 16  ;;  %v8461_v44 = vld [vmem:[#allocation9 + $0x120] sm:$0xff]  ;;  %v3690_v8 = vpop.f32.mrf.mxu2  ;;  %v8460_v55 = vld [vmem:[#allocation9 + $0x118] sm:$0xff] }
 0x2ae   : > { %v3964_v13 = vadd.f32 %v10375_v62, %v3931_v35  ;;  %v8429_v31 = vld [vmem:[#allocation9 + $0x20] sm:$0xff]  ;;  %v2878_v35 = vadd.f32 %v10238_v47, %v10254_v12  ;;  %5936 = vmatpush.bf16.msrb.mxu2 %v8461_v44  ;;  %v8428_v17 = vld [vmem:[#allocation9 + $0x18] sm:$0xff]  ;;  %v3442_v47 = vrot.slane %v8783_v18, 1  ;;  %v3443_v12 = vrot.slane %v10490_v22, 1  ;;  %v8459_v18 = vld [vmem:[#allocation9 + $0x110] sm:$0xff] }
 0x2af   : > { %v4179_v57 = vrot.slane %v4177_v58, 7  ;;  %v3776_v30 = vpop.f32.mrf.mxu3  ;;  %v8469_v26 = vld [vmem:[#allocation9 + $0x160] sm:$0xff]  ;;  %6258 = vmatpush.bf16.msrb.mxu0 %v8429_v31  ;;  %v3315_v58 = vshll.u32 %v10488_v63, 16 }
 0x2b0   : > { %vm3996_vm4 = vcmp.gt.f32.partialorder %v3964_v13, 0.0  ;;  %v4029_v4 = vmul.f32 %v10378_v9, %v3964_v13  ;;  %v3777_v19 = vadd.f32 %v3776_v30, %v3687_v28  ;;  %v10496_v21 = vpop.f32.mrf.mxu0  ;;  %6025 = vmatpush.bf16.msrb.mxu3 %v8469_v26  ;;  %v3313_v30 = vshrl.u32 %v10488_v63, 16  ;;  %v8427_v26 = vld [vmem:[#allocation9 + $0x10] sm:$0xff] }
 0x2b1   : > { %v4182_v50 = vor.u32 %v4180_v54, %v4179_v57  ;;  %v4184_v41 = vrot.slane %v4179_v57, 4  ;;  %v3317_v44 = vrot.slane %v3315_v58, 1 }
 0x2b2   : > { %v4061_v29 = vsel %vm3996_vm4, %v3964_v13, %v4029_v4  ;;  %v3866_v28 = vadd.f32 %v10454_v33, %v3777_v19  ;;  %v8468_v33 = vld [vmem:[#allocation9 + $0x158] sm:$0xff]  ;;  %5937 = vmatpush.bf16.msrb.mxu2 %v8460_v55  ;;  %v3320_v19 = vshll.u32 %v10490_v22, 16 }
 0x2b3   : > { %v4183_v14 = vsel %vm9579_vm7, %v4175_v3, %v4182_v50  ;;  %v4462_v46 = vsel %vm9530_vm2, %v4184_v41, %v4461_v38  ;;  %v4093_v36 = vpack.c.bf16 %v4061_v29, %v4061_v29  ;;  %6259 = vmatpush.bf16.msrb.mxu0 %v8428_v17  ;;  %v4464_v3 = vld [vmem:[#allocation2 + $0x3c] sm:$0xf]  ;;  %v2983_v29 = vld [vmem:[#allocation2 + $0xd4] sm:$0x1]  ;;  %v3318_v55 = vor.u32 %v3317_v44, %v3313_v30  ;;  %v10518_v17 = vld [vmem:[#allocation2 + $0xcc] sm:$0xff]  }
 0x2b4   : > { %4460 = vst [vmem:[#allocation2 + $0x34] sm:$0xf] %v4183_v14  ;;  %v3932_v57 = vadd.f32 %v3866_v28, %v2878_v35  ;;  %3818 = vmatmul.bf16.gmra.mxu3 %v3311_v25  ;;  %v3444_v35 = vsel %vm1424_vm10, %v3442_v47, %v3443_v12  ;;  %v8467_v28 = vld [vmem:[#allocation9 + $0x150] sm:$0xff]  ;;  %v3322_v12 = vrot.slane %v3320_v19, 1 }
 0x2b5   : > { %4463 = vst [vmem:[#allocation2 + $0x38] sm:$0x1] %v4462_v46  ;;  %v4186_v13 = vshrl.u32 %v4093_v36, 16  ;;  %6026 = vmatpush.bf16.msrb.mxu3 %v8468_v33  ;;  %v4189_v38 = vshll.u32 %v4093_v36, 16  ;;  %v3692_v25 = vpop.f32.mrf.mxu2  ;;  %v9335_v46 = vld [vmem:[#allocation2 + $0xcc] sm:$0xe]  ;;  %v3127_v33 = vunpack.c.l.b16 %v2983_v29 }
 0x2b6   : > { %v3965_v54 = vadd.f32 %v10375_v62, %v3932_v57  ;;  %v9334_v57 = vld [vmem:[#allocation2 + $0xcc] sm:$0xf0]  ;;  %5938 = vmatpush.bf16.msrb.mxu2 %v8459_v18  ;;  %v3323_v19 = vsel %vm1167_vm9, %v3318_v55, %v3322_v12  ;;  %v2883_v55 = vadd.f32 %v10260_v49, %v10270_v45  ;;  %v8438_v49 = vld [vmem:[#allocation9 + $0x68] sm:$0xff]  ;;  %v3327_v45 = vshll.u32 %v10518_v17, 16 }
 0x2b7   : > { %v10509_v31 = vrot.slane %v4186_v13, 7  ;;  %v3779_v4 = vpop.f32.mrf.mxu3  ;;  %6260 = vmatpush.bf16.msrb.mxu0 %v8427_v26  ;;  %v8458_v13 = vld [vmem:[#allocation9 + $0x108] sm:$0xff]  ;;  %6346 = vmatpush.bf16.msrb.mxu1 %v8438_v49  ;;  %v4475_v49 = vld [vmem:[#allocation2 + $0x50] sm:$0x1] }
 0x2b8   : > { %vm3997_vm5 = vcmp.gt.f32.partialorder %v3965_v54, 0.0  ;;  %v4030_v50 = vmul.f32 %v10378_v9, %v3965_v54  ;;  %v3780_v41 = vadd.f32 %v3779_v4, %v3690_v8  ;;  %v10515_v14 = vpop.f32.mrf.mxu0  ;;  %v8466_v4 = vld [vmem:[#allocation9 + $0x148] sm:$0xff] }
 0x2b9   : > { %v4191_v58 = vor.u32 %v4189_v38, %v10509_v31  ;;  %6027 = vmatpush.bf16.msrb.mxu3 %v8467_v28  ;;  %v8426_v38 = vld [vmem:[#allocation9 + $0x8] sm:$0xff] }
 0x2ba   : > { %v4062_v36 = vsel %vm3997_vm5, %v3965_v54, %v4030_v50  ;;  %v3869_v22 = vadd.f32 %v10474_v53, %v3780_v41  ;;  %3912 = vmatmul.bf16.gmra.mxu0 %v3444_v35  ;;  %3734 = vmatmul.bf16.gmra.mxu2 %v10488_v63  ;;  %v3143_v50 = vpack.c.b16 %v3127_v33, %v3127_v33  ;;  %v8457_v41 = vld [vmem:[#allocation9 + $0x100] sm:$0xff] }
 0x2bb   : > { %v4465_v8 = vsel %vm9588_vm8, %v4191_v58, %v4464_v3  ;;  %v4094_v47 = vpack.c.bf16 %v4062_v36, %v4062_v36  ;;  %6261 = vmatpush.bf16.msrb.mxu0 %v8426_v38  ;;  %5939 = vmatpush.bf16.msrb.mxu2 %v8458_v13  ;;  %v10525_v3 = vld [vmem:[#allocation2 + $0x30] sm:$0xff]   ;;  %v8425_v35 = vld [vmem:[#allocation9] sm:$0xff]  ;;  %v9336_v58 = vor.u32 %v9335_v46, %v9334_v57 }
 0x2bc   : > { %4466 = vst [vmem:[#allocation2 + $0x3c] sm:$0xf] %v4465_v8  ;;  %v3933_v54 = vadd.f32 %v3869_v22, %v10264_v1  ;;  %v4468_v1 = vld [vmem:[#allocation2 + $0x44] sm:$0x1]  ;;  %5867 = vmatmul.bf16.gmra.mxu1 %v10525_v3  ;;  %v4192_v22 = vrot.slane %v10509_v31, 4 }
 0x2bd   : > { %v4194_v53 = vshrl.u32 %v4094_v47, 16  ;;  %6028 = vmatpush.bf16.msrb.mxu3 %v8466_v4  ;;  %v4197_v18 = vshll.u32 %v4094_v47, 16  ;;  %v3695_v28 = vpop.f32.mrf.mxu2  ;;  %v8465_v36 = vld [vmem:[#allocation9 + $0x140] sm:$0xff]  ;;  %v3445_v38 = vrot.slane %v9336_v58, 1  ;;  %v3329_v58 = vrot.slane %v3327_v45, 1 }
 0x2be   : > { %v3966_v30 = vadd.f32 %v10375_v62, %v3933_v54  ;;  %v3446_v54 = vrot.slane %v3143_v50, 1 }
 0x2bf   : > { %v4196_v44 = vrot.slane %v4194_v53, 7  ;;  %v3781_v26 = vpop.f32.mrf.mxu3  ;;  %6262 = vmatpush.bf16.msrb.mxu0 %v8425_v35  ;;  %5940 = vmatpush.bf16.msrb.mxu2 %v8457_v41 }
 0x2c0   : > { %vm3998_vm6 = vcmp.gt.f32.partialorder %v3966_v30, 0.0  ;;  %v4031_v29 = vmul.f32 %v10378_v9, %v3966_v30  ;;  %v3782_v63 = vadd.f32 %v3781_v26, %v3692_v25  ;;  %v10531_v13 = vpop.f32.mrf.mxu0 }
 0x2c1   : > { %v4199_v8 = vor.u32 %v4197_v18, %v4196_v44  ;;  %v4201_v47 = vrot.slane %v4196_v44, 4  ;;  %6029 = vmatpush.bf16.msrb.mxu3 %v8465_v36  ;;  %v4471_v18 = vld [vmem:[#allocation2 + $0x48] sm:$0xf]  ;;  %v3332_v36 = vshll.u32 %v3143_v50, 16 }
 0x2c2   : > { %v4063_v12 = vsel %vm3998_vm6, %v3966_v30, %v4031_v29  ;;  %v3871_v33 = vadd.f32 %v10496_v21, %v3782_v63  ;;  %v3325_v63 = vshrl.u32 %v10518_v17, 16 }
 0x2c3   : > { %v4200_v25 = vsel %vm9579_vm7, %v4192_v22, %v4199_v8  ;;  %v4469_v46 = vsel %vm9530_vm2, %v4201_v47, %v4468_v1  ;;  %v4095_v31 = vpack.c.bf16 %v4063_v12, %v4063_v12 }
 0x2c4   : > { %4467 = vst [vmem:[#allocation2 + $0x40] sm:$0xf] %v4200_v25  ;;  %v3934_v57 = vadd.f32 %v3871_v33, %v2883_v55  ;;  %3823 = vmatmul.bf16.gmra.mxu3 %v3323_v19  ;;  %v3447_v19 = vsel %vm1424_vm10, %v3445_v38, %v3446_v54  ;;  %v5156_v33 = vld [vmem:[#allocation2 + $0x14] sm:$0x1]  ;;  %v3330_v50 = vor.u32 %v3329_v58, %v3325_v63 }
 0x2c5   : > { %4470 = vst [vmem:[#allocation2 + $0x44] sm:$0x1] %v4469_v46  ;;  %v4203_v4 = vshrl.u32 %v4095_v31, 16  ;;  %v4206_v30 = vshll.u32 %v4095_v31, 16  ;;  %v3697_v35 = vpop.f32.mrf.mxu2  ;;  %v3334_v31 = vrot.slane %v3332_v36, 1 }
 0x2c6   : > { %v3967_v21 = vadd.f32 %v10375_v62, %v3934_v57  ;;  %v5300_v57 = vunpack.c.l.b16 %v5156_v33 }
 0x2c7   : > { %v4205_v53 = vrot.slane %v4203_v4, 7  ;;  %v3784_v44 = vpop.f32.mrf.mxu3 }
 0x2c8   : > { %vm3999_vm11 = vcmp.gt.f32.partialorder %v3967_v21, 0.0  ;;  %v4032_v26 = vmul.f32 %v10378_v9, %v3967_v21  ;;  %v3785_v41 = vadd.f32 %v3784_v44, %v3695_v28  ;;  %v10544_v29 = vpop.f32.mrf.mxu0  ;;  %v10566_v58 = vpack.c.b16 %v5300_v57, %v5300_v57 }
 0x2c9   : > { %v4208_v1 = vor.u32 %v4206_v30, %v4205_v53  ;;  %v4209_v44 = vrot.slane %v4205_v53, 4 }
 0x2ca   : > { %v4064_v22 = vsel %vm3999_vm11, %v3967_v21, %v4032_v26  ;;  %v3874_v8 = vadd.f32 %v10515_v14, %v3785_v41  ;;  %3917 = vmatmul.bf16.gmra.mxu0 %v3447_v19  ;;  %3739 = vmatmul.bf16.gmra.mxu2 %v10518_v17  ;;  %v3335_v26 = vsel %vm1167_vm9, %v3330_v50, %v3334_v31  ;;  %v4478_v50 = vld [vmem:[#allocation2 + $0x54] sm:$0xf] }
 0x2cb   : > { %v4472_v47 = vsel %vm9588_vm8, %v4208_v1, %v4471_v18  ;;  %v4096_v55 = vpack.c.bf16 %v4064_v22, %v4064_v22  ;;  %v10550_v12 = vld [vmem:[#allocation2 + $0x3c] sm:$0xff]   ;;  %v2888_v19 = vadd.f32 %v10275_v37, %v10284_v0  ;;  %v5333_v0 = vshrl.u32 %v10417_v27, 16 }
 0x2cc   : > { %v10552_v28 = vld [vmem:[#allocation2 + $0x3c] sm:$0xf0]  ;;  %4473 = vst [vmem:[#allocation2 + $0x48] sm:$0xf] %v4472_v47  ;;  %v3935_v25 = vadd.f32 %v3874_v8, %v10280_v6  ;;  %5872 = vmatmul.bf16.gmra.mxu1 %v10550_v12  ;;  %v5335_v6 = vshll.u32 %v10417_v27, 16 }
 0x2cd   : > { %v4211_v46 = vshrl.u32 %v4096_v55, 16  ;;  %v4214_v54 = vshll.u32 %v4096_v55, 16  ;;  %v3700_v30 = vpop.f32.mrf.mxu2  ;;  %v9071_v55 = vld [vmem:[#allocation2 + $0xc] sm:$0xe] }
 0x2ce   : > { %v3968_v14 = vadd.f32 %v10375_v62, %v3935_v25  ;;  %v5337_v8 = vrot.slane %v5335_v6, 1 }
 0x2cf   : > { %v4213_v38 = vrot.slane %v4211_v46, 7  ;;  %v3786_v4 = vpop.f32.mrf.mxu3 }
 0x2d0   : > { %vm4000_vm12 = vcmp.gt.f32.partialorder %v3968_v14, 0.0  ;;  %v4033_v45 = vmul.f32 %v10378_v9, %v3968_v14  ;;  %v3787_v21 = vadd.f32 %v3786_v4, %v3697_v35  ;;  %v10561_v41 = vpop.f32.mrf.mxu0 }
 0x2d1   : > { %v4216_v17 = vor.u32 %v4214_v54, %v4213_v38  ;;  %v4218_v18 = vrot.slane %v4213_v38, 4  ;;  %v5338_v38 = vor.u32 %v5337_v8, %v5333_v0  ;;  %v8595_v54 = vld [vmem:[#allocation2] sm:$0xff]   ;;  %v5589_v8 = vrot.slane %v10566_v58, 1 }
 0x2d2   : > { %v4065_v1 = vsel %vm4000_vm12, %v3968_v14, %v4033_v45  ;;  %v3876_v63 = vadd.f32 %v10531_v13, %v3787_v21  ;;  %v5340_v13 = vshll.u32 %v10566_v58, 16  ;;  %v5157_v45 = vld [vmem:[#allocation2 + $0x20] sm:$0x1]  ;;  %v5347_v58 = vshll.u32 %v10447_v56, 16 }
 0x2d3   : > { %v4217_v35 = vsel %vm9579_vm7, %v4209_v44, %v4216_v17  ;;  %v4476_v53 = vsel %vm9530_vm2, %v4218_v18, %v4475_v49  ;;  %v4097_v36 = vpack.c.bf16 %v4065_v1, %v4065_v1  ;;  %v9072_v18 = vor.u32 %v9071_v55, %v10419_v61 }
 0x2d4   : > { %4474 = vst [vmem:[#allocation2 + $0x4c] sm:$0xf] %v4217_v35  ;;  %v3936_v22 = vadd.f32 %v3876_v63, %v2888_v19  ;;  %3828 = vmatmul.bf16.gmra.mxu3 %v3335_v26  ;;  %v5342_v6 = vrot.slane %v5340_v13, 1  ;;  %v5301_v19 = vunpack.c.l.b16 %v5157_v45  ;;  %v5349_v45 = vrot.slane %v5347_v58, 1  ;;  %v8824_v58 = vld [vmem:[#allocation2 + $0x18] sm:$0xe] }
 0x2d5   : > { %4477 = vst [vmem:[#allocation2 + $0x50] sm:$0x1] %v4476_v53  ;;  %v4220_v47 = vshrl.u32 %v4097_v36, 16  ;;  %v4223_v25 = vshll.u32 %v4097_v36, 16  ;;  %v3702_v57 = vpop.f32.mrf.mxu2 }
 0x2d6   : > { %v3969_v37 = vadd.f32 %v10375_v62, %v3936_v22  ;;  %v5343_v26 = vsel %vm1167_vm9, %v5338_v38, %v5342_v6  ;;  %v5588_v22 = vrot.slane %v9072_v18, 1  ;;  %v10590_v0 = vpack.c.b16 %v5301_v19, %v5301_v19 }
 0x2d7   : > { %v4222_v33 = vrot.slane %v4220_v47, 7  ;;  %v3789_v46 = vpop.f32.mrf.mxu3  ;;  %v4482_v47 = vld [vmem:[#allocation2 + $0x5c] sm:$0x1]  ;;  %v5345_v6 = vshrl.u32 %v10447_v56, 16 }
 0x2d8   : > { %vm4001_vm13 = vcmp.gt.f32.partialorder %v3969_v37, 0.0  ;;  %v4034_v31 = vmul.f32 %v10378_v9, %v3969_v37  ;;  %v3790_v14 = vadd.f32 %v3789_v46, %v3700_v30  ;;  %v10576_v49 = vpop.f32.mrf.mxu0  ;;  %v2893_v46 = vadd.f32 %v10288_v15, %v10295_v40 }
 0x2d9   : > { %v4225_v4 = vor.u32 %v4223_v25, %v4222_v33  ;;  %v4226_v13 = vrot.slane %v4222_v33, 4  ;;  %v5352_v40 = vshll.u32 %v10590_v0, 16 }
 0x2da   : > { %v4066_v21 = vsel %vm4001_vm13, %v3969_v37, %v4034_v31  ;;  %v3879_v27 = vadd.f32 %v10544_v29, %v3790_v14  ;;  %6263 = vmatmul.bf16.vlgmr.msrb.gmra.mxu0 %v8595_v54  ;;  %5941 = vmatmul.bf16.vlgmr.msrb.gmra.mxu2 %v5343_v26  ;;  %v10600_v14 = vld [vmem:[#allocation2 + $0xc] sm:$0xf0]  ;;  %v5590_v54 = vsel %vm1424_vm10, %v5588_v22, %v5589_v8  ;;  %v10612_v26 = vld [vmem:[#allocation6 + $0x3] ss:$0 sm:$0xff] }
 0x2db   : > { %v4479_v44 = vsel %vm9588_vm8, %v4225_v4, %v4478_v50  ;;  %v4098_v17 = vpack.c.bf16 %v4066_v21, %v4066_v21  ;;  %v10585_v36 = vld [vmem:[#allocation2 + $0x48] sm:$0xff]   ;;  %v8437_v4 = vld [vmem:[#allocation9 + $0x60] sm:$0xff]  ;;  %v10608_v21 = vld [vmem:[#allocation6 + $0x2] ss:$0 sm:$0xff]  ;;  %v5350_v22 = vor.u32 %v5349_v45, %v5345_v6 }
 0x2dc   : > { %4480 = vst [vmem:[#allocation2 + $0x54] sm:$0xf] %v4479_v44  ;;  %v3937_v30 = vadd.f32 %v3879_v27, %v10291_v52  ;;  %5877 = vmatmul.bf16.gmra.mxu1 %v10585_v36 }
 0x2dd   : > { %v4228_v1 = vshrl.u32 %v4098_v17, 16  ;;  %v4231_v29 = vshll.u32 %v4098_v17, 16  ;;  %v3705_v37 = vpop.f32.mrf.mxu2  ;;  %6347 = vmatpush.bf16.msrb.mxu1 %v8437_v4 }
 0x2de   : > { %v3970_v63 = vadd.f32 %v10375_v62, %v3937_v30  ;;  %v4485_v30 = vld [vmem:[#allocation2 + $0x60] sm:$0xf] }
 0x2df   : > { %v4230_v35 = vrot.slane %v4228_v1, 7  ;;  %v3791_v53 = vpop.f32.mrf.mxu3 }
 0x2e0   : > { %vm4002_vm14 = vcmp.gt.f32.partialorder %v3970_v63, 0.0  ;;  %v4035_v61 = vmul.f32 %v10378_v9, %v3970_v63  ;;  %v3792_v52 = vadd.f32 %v3791_v53, %v3702_v57  ;;  %v10592_v25 = vpop.f32.mrf.mxu0  ;;  %v10598_v9 = vld [vmem:[#allocation2 + $0xc] sm:$0xff]  }
 0x2e1   : > { %v4233_v62 = vor.u32 %v4231_v29, %v4230_v35  ;;  %v4235_v55 = vrot.slane %v4230_v35, 4  ;;  %v5354_v35 = vrot.slane %v5352_v40, 1  ;;  %v5359_v40 = vshll.u32 %v10481_v11, 16 }
 0x2e2   : > { %v4067_v50 = vsel %vm4002_vm14, %v3970_v63, %v4035_v61  ;;  %v3881_v31 = vadd.f32 %v10561_v41, %v3792_v52 }
 0x2e3   : > { %v4234_v57 = vsel %vm9579_vm7, %v4226_v13, %v4233_v62  ;;  %v4483_v33 = vsel %vm9530_vm2, %v4235_v55, %v4482_v47  ;;  %v4099_v38 = vpack.c.bf16 %v4067_v50, %v4067_v50  ;;  %v8823_v47 = vld [vmem:[#allocation2 + $0x18] sm:$0xf0] }
 0x2e4   : > { %4481 = vst [vmem:[#allocation2 + $0x58] sm:$0xf] %v4234_v57  ;;  %v3938_v15 = vadd.f32 %v3881_v31, %v2893_v46  ;;  %6030 = vmatmul.bf16.vlgmr.msrb.gmra.mxu3 %v5590_v54  ;;  %v5355_v46 = vsel %vm1167_vm9, %v5350_v22, %v5354_v35 }
 0x2e5   : > { %4484 = vst [vmem:[#allocation2 + $0x5c] sm:$0x1] %v4483_v33  ;;  %v4237_v41 = vshrl.u32 %v4099_v38, 16  ;;  %v4240_v17 = vshll.u32 %v4099_v38, 16  ;;  %v3707_v63 = vpop.f32.mrf.mxu2 }
 0x2e6   : > { %v3971_v27 = vadd.f32 %v10608_v21, %v3938_v15  ;;  %v5592_v15 = vrot.slane %v10590_v0, 1 }
 0x2e7   : > { %v4239_v44 = vrot.slane %v4237_v41, 7  ;;  %v3794_v18 = vpop.f32.mrf.mxu3  ;;  %v4489_v41 = vld [vmem:[#allocation2 + $0x68] sm:$0x1] }
 0x2e8   : > { %vm4003_vm15 = vcmp.gt.f32.partialorder %v3971_v27, 0.0  ;;  %v4036_v19 = vmul.f32 %v10612_v26, %v3971_v27  ;;  %v3795_v1 = vadd.f32 %v3794_v18, %v3705_v37  ;;  %v10615_v53 = vpop.f32.mrf.mxu0  ;;  %v5158_v37 = vld [vmem:[#allocation2 + $0x2c] sm:$0x1] }
 0x2e9   : > { %v4242_v29 = vor.u32 %v4240_v17, %v4239_v44  ;;  %v5302_v57 = vunpack.c.l.b16 %v5158_v37 }
 0x2ea   : > { %v4068_v8 = vsel %vm4003_vm15, %v3971_v27, %v4036_v19  ;;  %v3884_v56 = vadd.f32 %v10576_v49, %v3795_v1  ;;  %6268 = vmatmul.bf16.gmra.mxu0 %v10598_v9  ;;  %5946 = vmatmul.bf16.gmra.mxu2 %v5355_v46  ;;  %v8825_v49 = vor.u32 %v8824_v58, %v8823_v47  ;;  %v4243_v27 = vrot.slane %v4239_v44, 4  ;;  %v9074_v47 = vld [vmem:[#allocation2 + $0x24] sm:$0xe]  ;;  %v4492_v46 = vld [vmem:[#allocation2 + $0x6c] sm:$0xf] }
 0x2eb   : > { %v4486_v61 = vsel %vm9588_vm8, %v4242_v29, %v4485_v30  ;;  %v4100_v52 = vpack.c.bf16 %v4068_v8, %v4068_v8  ;;  %v10620_v13 = vld [vmem:[#allocation2 + $0x54] sm:$0xff]   ;;  %v2898_v19 = vadd.f32 %v10298_v42, %v10305_v51  ;;  %v10637_v35 = vpack.c.b16 %v5302_v57, %v5302_v57 }
 0x2ec   : > { %v10622_v62 = vld [vmem:[#allocation2 + $0x54] sm:$0xf0]  ;;  %4487 = vst [vmem:[#allocation2 + $0x60] sm:$0xf] %v4486_v61  ;;  %v3939_v55 = vadd.f32 %v3884_v56, %v10301_v16  ;;  %5882 = vmatmul.bf16.gmra.mxu1 %v10620_v13  ;;  %v5591_v18 = vrot.slane %v8825_v49, 1  ;;  %v5361_v56 = vrot.slane %v5359_v40, 1 }
 0x2ed   : > { %v4245_v50 = vshrl.u32 %v4100_v52, 16  ;;  %v4248_v38 = vshll.u32 %v4100_v52, 16  ;;  %v3710_v45 = vpop.f32.mrf.mxu2  ;;  %v5364_v61 = vshll.u32 %v10637_v35, 16  ;;  %v5159_v57 = vld [vmem:[#allocation2 + $0x38] sm:$0x1] }
 0x2ee   : > { %v3972_v31 = vadd.f32 %v10608_v21, %v3939_v55  ;;  %v5593_v22 = vsel %vm1424_vm10, %v5591_v18, %v5592_v15  ;;  %v8784_v40 = vld [vmem:[#allocation2 + $0x18] sm:$0xff]  }
 0x2ef   : > { %v4247_v33 = vrot.slane %v4245_v50, 7  ;;  %v3796_v54 = vpop.f32.mrf.mxu3 }
 0x2f0   : > { %vm4004_vm0 = vcmp.gt.f32.partialorder %v3972_v31, 0.0  ;;  %v4037_v16 = vmul.f32 %v10612_v26, %v3972_v31  ;;  %v3797_v4 = vadd.f32 %v3796_v54, %v3707_v63  ;;  %v10632_v30 = vpop.f32.mrf.mxu0 }
 0x2f1   : > { %v4250_v6 = vor.u32 %v4248_v38, %v4247_v33  ;;  %v4252_v17 = vrot.slane %v4247_v33, 4 }
 0x2f2   : > { %v4069_v0 = vsel %vm4004_vm0, %v3972_v31, %v4037_v16  ;;  %v3886_v1 = vadd.f32 %v10592_v25, %v3797_v4  ;;  %v5357_v25 = vshrl.u32 %v10481_v11, 16  ;;  %v5366_v11 = vrot.slane %v5364_v61, 1 }
 0x2f3   : > { %v4251_v63 = vsel %vm9579_vm7, %v4243_v27, %v4250_v6  ;;  %v4490_v29 = vsel %vm9530_vm2, %v4252_v17, %v4489_v41  ;;  %v4101_v44 = vpack.c.bf16 %v4069_v0, %v4069_v0  ;;  %v9075_v41 = vor.u32 %v9074_v47, %v10483_v39  ;;  %v9337_v6 = vld [vmem:[#allocation2 + $0x24] sm:$0xf0]  ;;  %v9338_v39 = vld [vmem:[#allocation2 + $0x24] sm:$0xe] }
 0x2f4   : > { %4488 = vst [vmem:[#allocation2 + $0x64] sm:$0xf] %v4251_v63  ;;  %v3940_v8 = vadd.f32 %v3886_v1, %v2898_v19  ;;  %6035 = vmatmul.bf16.gmra.mxu3 %v5593_v22  ;;  %v5362_v31 = vor.u32 %v5361_v56, %v5357_v25  ;;  %v5303_v27 = vunpack.c.l.b16 %v5159_v57  ;;  %v4583_v19 = vld [vmem:[#allocation2 + $0x2c] sm:$0x1]  ;;  %v5371_v25 = vshll.u32 %v10525_v3, 16 }
 0x2f5   : > { %4491 = vst [vmem:[#allocation2 + $0x68] sm:$0x1] %v4490_v29  ;;  %v4254_v42 = vshrl.u32 %v4101_v44, 16  ;;  %v4257_v37 = vshll.u32 %v4101_v44, 16  ;;  %v3712_v49 = vpop.f32.mrf.mxu2  ;;  %v5594_v63 = vrot.slane %v9075_v41, 1  ;;  %v5595_v29 = vrot.slane %v10637_v35, 1 }
 0x2f6   : > { %v3973_v51 = vadd.f32 %v10608_v21, %v3940_v8  ;;  %v5367_v18 = vsel %vm1167_vm9, %v5362_v31, %v5366_v11  ;;  %v4727_v47 = vunpack.c.l.b16 %v4583_v19  ;;  %v9339_v31 = vor.u32 %v9338_v39, %v9337_v6  ;;  %v10680_v11 = vpop.f32.mrf.mxu1 }
 0x2f7   : > { %v4256_v52 = vrot.slane %v4254_v42, 7  ;;  %v3799_v55 = vpop.f32.mrf.mxu3  ;;  %v4496_v42 = vld [vmem:[#allocation2 + $0x74] sm:$0x1]  ;;  %v5373_v41 = vrot.slane %v5371_v25, 1 }
 0x2f8   : > { %vm4005_vm1 = vcmp.gt.f32.partialorder %v3973_v51, 0.0  ;;  %v4038_v58 = vmul.f32 %v10612_v26, %v3973_v51  ;;  %v3800_v50 = vadd.f32 %v3799_v55, %v3710_v45  ;;  %v10648_v38 = vpop.f32.mrf.mxu0  ;;  %v10654_v45 = vld [vmem:[#allocation2 + $0x24] sm:$0xff]  }
 0x2f9   : > { %v4259_v33 = vor.u32 %v4257_v37, %v4256_v52  ;;  %v4260_v61 = vrot.slane %v4256_v52, 4 }
 0x2fa   : > { %v4070_v54 = vsel %vm4005_vm1, %v3973_v51, %v4038_v58  ;;  %v3889_v15 = vadd.f32 %v10615_v53, %v3800_v50  ;;  %6273 = vmatmul.bf16.gmra.mxu0 %v8784_v40  ;;  %v2903_v53 = vadd.f32 %v10308_v59, %v10315_v48  ;;  %5951 = vmatmul.bf16.gmra.mxu2 %v5367_v18  ;;  %v8436_v40 = vld [vmem:[#allocation9 + $0x58] sm:$0xff] }
 0x2fb   : > { %v4493_v16 = vsel %vm9588_vm8, %v4259_v33, %v4492_v46  ;;  %v4102_v4 = vpack.c.bf16 %v4070_v54, %v4070_v54  ;;  %v10662_v56 = vld [vmem:[#allocation2 + $0x60] sm:$0xff]   ;;  %v5596_v50 = vsel %vm1424_vm10, %v5594_v63, %v5595_v29  ;;  %v10677_v54 = vpack.c.b16 %v4727_v47, %v4727_v47  ;;  %6348 = vmatpush.bf16.msrb.mxu1 %v8436_v40  ;;  %v8826_v47 = vld [vmem:[#allocation2 + $0x30] sm:$0xf0] }
 0x2fc   : > { %4494 = vst [vmem:[#allocation2 + $0x6c] sm:$0xf] %v4493_v16  ;;  %v3941_v17 = vadd.f32 %v3889_v15, %v10311_v2  ;;  %v10664_v2 = vpack.c.b16 %v5303_v27, %v5303_v27  ;;  %5887 = vmatmul.bf16.gmra.mxu1 %v10662_v56  ;;  %v5369_v27 = vshrl.u32 %v10525_v3, 16  ;;  %v4503_v40 = vld [vmem:[#allocation2 + $0x80] sm:$0x1] }
 0x2fd   : > { %v4262_v0 = vshrl.u32 %v4102_v4, 16  ;;  %v4265_v22 = vshll.u32 %v4102_v4, 16  ;;  %v3715_v51 = vpop.f32.mrf.mxu2  ;;  %v5021_v4 = vrot.slane %v9339_v31, 1  ;;  %v5022_v19 = vrot.slane %v10677_v54, 1 }
 0x2fe   : > { %v3974_v1 = vadd.f32 %v10608_v21, %v3941_v17  ;;  %v5376_v15 = vshll.u32 %v10664_v2, 16 }
 0x2ff   : > { %v4264_v44 = vrot.slane %v4262_v0, 7  ;;  %v3801_v8 = vpop.f32.mrf.mxu3 }
 0x300   : > { %vm4006_vm3 = vcmp.gt.f32.partialorder %v3974_v1, 0.0  ;;  %v4039_v59 = vmul.f32 %v10612_v26, %v3974_v1  ;;  %v3802_v48 = vadd.f32 %v3801_v8, %v3712_v49  ;;  %v10669_v55 = vpop.f32.mrf.mxu0  ;;  %v5378_v63 = vrot.slane %v5376_v15, 1 }
 0x301   : > { %v4267_v35 = vor.u32 %v4265_v22, %v4264_v44  ;;  %v4269_v37 = vrot.slane %v4264_v44, 4  ;;  %v5374_v22 = vor.u32 %v5373_v41, %v5369_v27  ;;  %v5598_v15 = vrot.slane %v10664_v2, 1 }
 0x302   : > { %v4071_v46 = vsel %vm4006_vm3, %v3974_v1, %v4039_v59  ;;  %v3891_v58 = vadd.f32 %v10632_v30, %v3802_v48 }
 0x303   : > { %v4268_v57 = vsel %vm9579_vm7, %v4260_v61, %v4267_v35  ;;  %v4497_v49 = vsel %vm9530_vm2, %v4269_v37, %v4496_v42  ;;  %v4103_v33 = vpack.c.bf16 %v4071_v46, %v4071_v46  ;;  %v10690_v42 = vsel %vm1424_vm10, %v5021_v4, %v5022_v19  ;;  %v5160_v61 = vld [vmem:[#allocation2 + $0x44] sm:$0x1]  ;;  %v8827_v37 = vld [vmem:[#allocation2 + $0x30] sm:$0xe] }
 0x304   : > { %4495 = vst [vmem:[#allocation2 + $0x70] sm:$0xf] %v4268_v57  ;;  %v3942_v52 = vadd.f32 %v3891_v58, %v2903_v53  ;;  %6040 = vmatmul.bf16.gmra.mxu3 %v5596_v50  ;;  %v4499_v53 = vld [vmem:[#allocation2 + $0x78] sm:$0xf]  ;;  %v8828_v50 = vor.u32 %v8827_v37, %v8826_v47  ;;  %v5304_v57 = vunpack.c.l.b16 %v5160_v61 }
 0x305   : > { %4498 = vst [vmem:[#allocation2 + $0x74] sm:$0x1] %v4497_v49  ;;  %v4271_v30 = vshrl.u32 %v4103_v33, 16  ;;  %v4274_v17 = vshll.u32 %v4103_v33, 16  ;;  %v3717_v1 = vpop.f32.mrf.mxu2 }
 0x306   : > { %v3975_v16 = vadd.f32 %v10608_v21, %v3942_v52 }
 0x307   : > { %v4273_v6 = vrot.slane %v4271_v30, 7  ;;  %v3804_v18 = vpop.f32.mrf.mxu3  ;;  %v5383_v30 = vshll.u32 %v10550_v12, 16 }
 0x308   : > { %vm4007_vm4 = vcmp.gt.f32.partialorder %v3975_v16, 0.0  ;;  %v4040_v0 = vmul.f32 %v10612_v26, %v3975_v16  ;;  %v3805_v39 = vadd.f32 %v3804_v18, %v3715_v51  ;;  %v10686_v44 = vpop.f32.mrf.mxu0  ;;  %v5597_v18 = vrot.slane %v8828_v50, 1 }
 0x309   : > { %v4276_v29 = vor.u32 %v4274_v17, %v4273_v6  ;;  %v10701_v58 = vpop.f32.mrf.mxu1  ;;  %v4277_v4 = vrot.slane %v4273_v6, 4 }
 0x30a   : > { %v4072_v8 = vsel %vm4007_vm4, %v3975_v16, %v4040_v0  ;;  %v3894_v3 = vadd.f32 %v10648_v38, %v3805_v39  ;;  %6278 = vmatmul.bf16.gmra.mxu0 %v10654_v45  ;;  %v5379_v38 = vsel %vm1167_vm9, %v5374_v22, %v5378_v63  ;;  %v10713_v39 = vpack.c.b16 %v5304_v57, %v5304_v57 }
 0x30b   : > { %v4500_v59 = vsel %vm9588_vm8, %v4276_v29, %v4499_v53  ;;  %v4104_v48 = vpack.c.bf16 %v4072_v8, %v4072_v8  ;;  %v10694_v25 = vld [vmem:[#allocation2 + $0x6c] sm:$0xff]   ;;  %5956 = vmatmul.bf16.gmra.mxu2 %v5379_v38  ;;  %v2908_v53 = vadd.f32 %v10318_v43, %v10325_v10  ;;  %v5599_v29 = vsel %vm1424_vm10, %v5597_v18, %v5598_v15  ;;  %v4506_v38 = vld [vmem:[#allocation2 + $0x84] sm:$0xf] }
 0x30c   : > { %v10696_v51 = vld [vmem:[#allocation2 + $0x6c] sm:$0xf0]  ;;  %4501 = vst [vmem:[#allocation2 + $0x78] sm:$0xf] %v4500_v59  ;;  %v3943_v35 = vadd.f32 %v3894_v3, %v10321_v34  ;;  %5892 = vmatmul.bf16.gmra.mxu1 %v10694_v25  ;;  %v5385_v8 = vrot.slane %v5383_v30, 1  ;;  %v5381_v3 = vshrl.u32 %v10550_v12, 16 }
 0x30d   : > { %v4279_v46 = vshrl.u32 %v4104_v48, 16  ;;  %v4282_v33 = vshll.u32 %v4104_v48, 16  ;;  %v3720_v16 = vpop.f32.mrf.mxu2  ;;  %v5388_v47 = vshll.u32 %v10713_v39, 16  ;;  %v9077_v59 = vld [vmem:[#allocation2 + $0x3c] sm:$0xe]  ;;  %v8785_v30 = vld [vmem:[#allocation2 + $0x30] sm:$0xff]  }
 0x30e   : > { %v3976_v31 = vadd.f32 %v10608_v21, %v3943_v35 }
 0x30f   : > { %v4281_v49 = vrot.slane %v4279_v46, 7  ;;  %v3806_v52 = vpop.f32.mrf.mxu3  ;;  %v5390_v15 = vrot.slane %v5388_v47, 1 }
 0x310   : > { %vm4008_vm5 = vcmp.gt.f32.partialorder %v3976_v31, 0.0  ;;  %v4041_v34 = vmul.f32 %v10612_v26, %v3976_v31  ;;  %v3807_v41 = vadd.f32 %v3806_v52, %v3717_v1  ;;  %v10708_v19 = vpop.f32.mrf.mxu0 }
 0x311   : > { %v4284_v27 = vor.u32 %v4282_v33, %v4281_v49  ;;  %v4286_v17 = vrot.slane %v4281_v49, 4  ;;  %v10720_v10 = vpop.f32.mrf.mxu1  ;;  %v5161_v33 = vld [vmem:[#allocation2 + $0x50] sm:$0x1] }
 0x312   : > { %v4073_v2 = vsel %vm4008_vm5, %v3976_v31, %v4041_v34  ;;  %v3896_v0 = vadd.f32 %v10669_v55, %v3807_v41  ;;  %v5386_v31 = vor.u32 %v5385_v8, %v5381_v3  ;;  %v9078_v41 = vor.u32 %v9077_v59, %v10552_v28 }
 0x313   : > { %v4285_v1 = vsel %vm9579_vm7, %v4277_v4, %v4284_v27  ;;  %v4504_v63 = vsel %vm9530_vm2, %v4286_v17, %v4503_v40  ;;  %v4105_v6 = vpack.c.bf16 %v4073_v2, %v4073_v2  ;;  %v5305_v27 = vunpack.c.l.b16 %v5161_v33  ;;  %v8435_v33 = vld [vmem:[#allocation9 + $0x50] sm:$0xff] }
 0x314   : > { %4502 = vst [vmem:[#allocation2 + $0x7c] sm:$0xf] %v4285_v1  ;;  %v3944_v22 = vadd.f32 %v3896_v0, %v2908_v53  ;;  %6045 = vmatmul.bf16.gmra.mxu3 %v5599_v29  ;;  %v5391_v4 = vsel %vm1167_vm9, %v5386_v31, %v5390_v15  ;;  %v5601_v28 = vrot.slane %v10713_v39, 1  ;;  %v2913_v59 = vadd.f32 %v10328_v7, %v10335_v24 }
 0x315   : > { %4505 = vst [vmem:[#allocation2 + $0x80] sm:$0x1] %v4504_v63  ;;  %v4288_v43 = vshrl.u32 %v4105_v6, 16  ;;  %v4291_v61 = vshll.u32 %v4105_v6, 16  ;;  %v3722_v50 = vpop.f32.mrf.mxu2  ;;  %v5600_v63 = vrot.slane %v9078_v41, 1  ;;  %v10742_v8 = vpack.c.b16 %v5305_v27, %v5305_v27  ;;  %6349 = vmatpush.bf16.msrb.mxu1 %v8435_v33 }
 0x316   : > { %v3977_v55 = vadd.f32 %v10608_v21, %v3944_v22  ;;  %v4510_v6 = vld [vmem:[#allocation2 + $0x8c] sm:$0x1]  ;;  %v5395_v39 = vshll.u32 %v10585_v36, 16  ;;  %v5393_v15 = vshrl.u32 %v10585_v36, 16  ;;  %v4513_v41 = vld [vmem:[#allocation2 + $0x90] sm:$0xf] }
 0x317   : > { %v4290_v48 = vrot.slane %v4288_v43, 7  ;;  %v3809_v35 = vpop.f32.mrf.mxu3  ;;  %v5602_v31 = vsel %vm1424_vm10, %v5600_v63, %v5601_v28  ;;  %v5400_v24 = vshll.u32 %v10742_v8, 16  ;;  %v8829_v28 = vld [vmem:[#allocation2 + $0x48] sm:$0xf0] }
 0x318   : > { %vm4009_vm6 = vcmp.gt.f32.partialorder %v3977_v55, 0.0  ;;  %v4042_v37 = vmul.f32 %v10612_v26, %v3977_v55  ;;  %v3810_v46 = vadd.f32 %v3809_v35, %v3720_v16  ;;  %v10726_v49 = vpop.f32.mrf.mxu0 }
 0x319   : > { %v4293_v57 = vor.u32 %v4291_v61, %v4290_v48  ;;  %v10734_v18 = vpop.f32.mrf.mxu1  ;;  %v4294_v43 = vrot.slane %v4290_v48, 4 }
 0x31a   : > { %v4074_v52 = vsel %vm4009_vm6, %v3977_v55, %v4042_v37  ;;  %v3899_v12 = vadd.f32 %v10686_v44, %v3810_v46  ;;  %6283 = vmatmul.bf16.gmra.mxu0 %v8785_v30  ;;  %v10752_v37 = vld [vmem:[#allocation2 + $0x3c] sm:$0xf0] }
 0x31b   : > { %v4507_v40 = vsel %vm9588_vm8, %v4293_v57, %v4506_v38  ;;  %v4106_v34 = vpack.c.bf16 %v4074_v52, %v4074_v52  ;;  %5961 = vmatmul.bf16.gmra.mxu2 %v5391_v4  ;;  %v10737_v1 = vld [vmem:[#allocation2 + $0x78] sm:$0xff]   ;;  %v5397_v52 = vrot.slane %v5395_v39, 1 }
 0x31c   : > { %4508 = vst [vmem:[#allocation2 + $0x84] sm:$0xf] %v4507_v40  ;;  %v3945_v16 = vadd.f32 %v3899_v12, %v10331_v20  ;;  %5897 = vmatmul.bf16.gmra.mxu1 %v10737_v1  ;;  %v10750_v38 = vld [vmem:[#allocation2 + $0x3c] sm:$0xff]  }
 0x31d   : > { %v4296_v17 = vshrl.u32 %v4106_v34, 16  ;;  %v4299_v2 = vshll.u32 %v4106_v34, 16  ;;  %v3725_v22 = vpop.f32.mrf.mxu2 }
 0x31e   : > { %v3978_v44 = vadd.f32 %v10608_v21, %v3945_v16 }
 0x31f   : > { %v4298_v53 = vrot.slane %v4296_v17, 7  ;;  %v3811_v0 = vpop.f32.mrf.mxu3  ;;  %v5402_v17 = vrot.slane %v5400_v24, 1  ;;  %v5407_v24 = vshll.u32 %v10620_v13, 16 }
 0x320   : > { %vm4010_vm11 = vcmp.gt.f32.partialorder %v3978_v44, 0.0  ;;  %v4043_v20 = vmul.f32 %v10612_v26, %v3978_v44  ;;  %v3812_v29 = vadd.f32 %v3811_v0, %v3722_v50  ;;  %v10744_v47 = vpop.f32.mrf.mxu0 }
 0x321   : > { %v4301_v55 = vor.u32 %v4299_v2, %v4298_v53  ;;  %v4303_v3 = vrot.slane %v4298_v53, 4  ;;  %v10760_v57 = vpop.f32.mrf.mxu1  ;;  %v10767_v2 = vor.u32 %v5397_v52, %v5393_v15 }
 0x322   : > { %v4075_v61 = vsel %vm4010_vm11, %v3978_v44, %v4043_v20  ;;  %v3901_v35 = vadd.f32 %v10708_v19, %v3812_v29 }
 0x323   : > { %v4302_v46 = vsel %vm9579_vm7, %v4294_v43, %v4301_v55  ;;  %v4511_v48 = vsel %vm9530_vm2, %v4303_v3, %v4510_v6  ;;  %v4107_v50 = vpack.c.bf16 %v4075_v61, %v4075_v61  ;;  %v5403_v3 = vsel %vm1167_vm9, %v10767_v2, %v5402_v17 }
 0x324   : > { %4509 = vst [vmem:[#allocation2 + $0x88] sm:$0xf] %v4302_v46  ;;  %v3946_v7 = vadd.f32 %v3901_v35, %v2913_v59  ;;  %6050 = vmatmul.bf16.gmra.mxu3 %v5602_v31  ;;  %v8830_v59 = vld [vmem:[#allocation2 + $0x48] sm:$0xe] }
 0x325   : > { %4512 = vst [vmem:[#allocation2 + $0x8c] sm:$0x1] %v4511_v48  ;;  %v4305_v19 = vshrl.u32 %v4107_v50, 16  ;;  %v4308_v40 = vshll.u32 %v4107_v50, 16  ;;  %v3727_v27 = vpop.f32.mrf.mxu2  ;;  %v8831_v61 = vor.u32 %v8830_v59, %v8829_v28 }
 0x326   : > { %v3979_v12 = vadd.f32 %v10608_v21, %v3946_v7  ;;  %v5604_v7 = vrot.slane %v10742_v8, 1 }
 0x327   : > { %v4307_v30 = vrot.slane %v4305_v19, 7  ;;  %v3814_v34 = vpop.f32.mrf.mxu3 }
 0x328   : > { %vm4011_vm12 = vcmp.gt.f32.partialorder %v3979_v12, 0.0  ;;  %v4044_v16 = vmul.f32 %v10612_v26, %v3979_v12  ;;  %v3815_v4 = vadd.f32 %v3814_v34, %v3725_v22  ;;  %v10765_v53 = vpop.f32.mrf.mxu0  ;;  %v5162_v22 = vld [vmem:[#allocation2 + $0x5c] sm:$0x1]  ;;  %v5603_v34 = vrot.slane %v8831_v61, 1 }
 0x329   : > { %v4310_v44 = vor.u32 %v4308_v40, %v4307_v30  ;;  %v10780_v39 = vpop.f32.mrf.mxu1  ;;  %v5306_v46 = vunpack.c.l.b16 %v5162_v22 }
 0x32a   : > { %v4076_v0 = vsel %vm4011_vm12, %v3979_v12, %v4044_v16  ;;  %v3904_v63 = vadd.f32 %v10726_v49, %v3815_v4  ;;  %6288 = vmatmul.bf16.gmra.mxu0 %v10750_v38  ;;  %v4311_v12 = vrot.slane %v4307_v30, 4  ;;  %v11983_v16 = vld [vmem:[#allocation27_spill] sm:$0xff]  ;;  %v11984_v4 = vld [vmem:[#allocation26_spill] sm:$0xff]  ;;  %v5605_v28 = vsel %vm1424_vm10, %v5603_v34, %v5604_v7 }
 0x32b   : > { %v4514_v6 = vsel %vm9588_vm8, %v4310_v44, %v4513_v41  ;;  %v4108_v20 = vpack.c.bf16 %v4076_v0, %v4076_v0  ;;  %v10772_v29 = vld [vmem:[#allocation2 + $0x84] sm:$0xff]   ;;  %5966 = vmatmul.bf16.gmra.mxu2 %v5403_v3  ;;  %v2918_v17 = vadd.f32 %v11984_v4, %v11983_v16  ;;  %v10792_v0 = vpack.c.b16 %v5306_v46, %v5306_v46 }
 0x32c   : > { %v10774_v43 = vld [vmem:[#allocation2 + $0x84] sm:$0xf0]  ;;  %4515 = vst [vmem:[#allocation2 + $0x90] sm:$0xf] %v4514_v6  ;;  %v3947_v55 = vadd.f32 %v3904_v63, %v10341_v5  ;;  %v4517_v5 = vld [vmem:[#allocation2 + $0x98] sm:$0x1]  ;;  %5902 = vmatmul.bf16.gmra.mxu1 %v10772_v29 }
 0x32d   : > { %v4313_v49 = vshrl.u32 %v4108_v20, 16  ;;  %v4316_v50 = vshll.u32 %v4108_v20, 16  ;;  %v3730_v52 = vpop.f32.mrf.mxu2  ;;  %v5409_v20 = vrot.slane %v5407_v24, 1  ;;  %v5405_v3 = vshrl.u32 %v10620_v13, 16 }
 0x32e   : > { %v3980_v35 = vadd.f32 %v10608_v21, %v3947_v55  ;;  %v5412_v59 = vshll.u32 %v10792_v0, 16 }
 0x32f   : > { %v4315_v48 = vrot.slane %v4313_v49, 7  ;;  %v3816_v31 = vpop.f32.mrf.mxu3  ;;  %v9080_v49 = vld [vmem:[#allocation2 + $0x54] sm:$0xe]  ;;  %v5410_v24 = vor.u32 %v5409_v20, %v5405_v3  ;;  %v4524_v20 = vld [vmem:[#allocation2 + $0xa4] sm:$0x1] }
 0x330   : > { %vm4012_vm13 = vcmp.gt.f32.partialorder %v3980_v35, 0.0  ;;  %v4045_v19 = vmul.f32 %v10612_v26, %v3980_v35  ;;  %v3817_v33 = vadd.f32 %v3816_v31, %v3727_v27  ;;  %v10787_v41 = vpop.f32.mrf.mxu0  ;;  %v9081_v16 = vor.u32 %v9080_v49, %v10622_v62 }
 0x331   : > { %v4318_v15 = vor.u32 %v4316_v50, %v4315_v48  ;;  %v4320_v40 = vrot.slane %v4315_v48, 4  ;;  %v10799_v55 = vpop.f32.mrf.mxu1  ;;  %v4520_v48 = vld [vmem:[#allocation2 + $0x9c] sm:$0xf]  ;;  %v5607_v62 = vrot.slane %v10792_v0, 1  ;;  %v5419_v0 = vshll.u32 %v10662_v56, 16 }
 0x332   : > { %v4077_v8 = vsel %vm4012_vm13, %v3980_v35, %v4045_v19  ;;  %v3906_v44 = vadd.f32 %v10744_v47, %v3817_v33  ;;  %v5163_v33 = vld [vmem:[#allocation2 + $0x68] sm:$0x1] }
 0x333   : > { %v4319_v27 = vsel %vm9579_vm7, %v4311_v12, %v4318_v15  ;;  %v4518_v63 = vsel %vm9530_vm2, %v4320_v40, %v4517_v5  ;;  %v4109_v30 = vpack.c.bf16 %v4077_v8, %v4077_v8  ;;  %v5414_v15 = vrot.slane %v5412_v59, 1 }
 0x334   : > { %4516 = vst [vmem:[#allocation2 + $0x94] sm:$0xf] %v4319_v27  ;;  %v3948_v6 = vadd.f32 %v3906_v44, %v2918_v17  ;;  %6055 = vmatmul.bf16.gmra.mxu3 %v5605_v28  ;;  %v5307_v8 = vunpack.c.l.b16 %v5163_v33 }
 0x335   : > { %4519 = vst [vmem:[#allocation2 + $0x98] sm:$0x1] %v4518_v63  ;;  %v4322_v22 = vshrl.u32 %v4109_v30, 16  ;;  %v4325_v35 = vshll.u32 %v4109_v30, 16  ;;  %v3732_v7 = vpop.f32.mrf.mxu2  ;;  %v5415_v17 = vsel %vm1167_vm9, %v5410_v24, %v5414_v15 }
 0x336   : > { %v3981_v47 = vadd.f32 %v10608_v21, %v3948_v6  ;;  %v10822_v59 = vpack.c.b16 %v5307_v8, %v5307_v8 }
 0x337   : > { %v4324_v61 = vrot.slane %v4322_v22, 7  ;;  %v3819_v46 = vpop.f32.mrf.mxu3 }
 0x338   : > { %vm4013_vm14 = vcmp.gt.f32.partialorder %v3981_v47, 0.0  ;;  %v4046_v50 = vmul.f32 %v10612_v26, %v3981_v47  ;;  %v3820_v31 = vadd.f32 %v3819_v46, %v3730_v52  ;;  %v10805_v19 = vpop.f32.mrf.mxu0  ;;  %v11985_v52 = vld [vmem:[#allocation28_spill] sm:$0xff] }
 0x339   : > { %v4327_v5 = vor.u32 %v4325_v35, %v4324_v61  ;;  %v10814_v27 = vpop.f32.mrf.mxu1  ;;  %v4328_v49 = vrot.slane %v4324_v61, 4 }
 0x33a   : > { %v4078_v12 = vsel %vm4013_vm14, %v3981_v47, %v4046_v50  ;;  %v3909_v13 = vadd.f32 %v10765_v53, %v3820_v31  ;;  %6293 = vmatmul.bf16.gmra.mxu0 %v10585_v36  ;;  %v5606_v36 = vrot.slane %v9081_v16, 1  ;;  %v11986_v50 = vld [vmem:[#allocation21_spill] sm:$0xff]  ;;  %v11987_v31 = vld [vmem:[#allocation20_spill] sm:$0xff]  ;;  %v5424_v16 = vshll.u32 %v10822_v59, 16 }
 0x33b   : > { %v4521_v40 = vsel %vm9588_vm8, %v4327_v5, %v4520_v48  ;;  %v4110_v34 = vpack.c.bf16 %v4078_v12, %v4078_v12  ;;  %5971 = vmatmul.bf16.gmra.mxu2 %v5415_v17  ;;  %v10817_v6 = vld [vmem:[#allocation2 + $0x90] sm:$0xff]   ;;  %v2923_v24 = vadd.f32 %v11987_v31, %v11986_v50  ;;  %v5421_v17 = vrot.slane %v5419_v0, 1  ;;  %v8832_v31 = vld [vmem:[#allocation2 + $0x60] sm:$0xf0] }
 0x33c   : > { %4522 = vst [vmem:[#allocation2 + $0x9c] sm:$0xf] %v4521_v40  ;;  %v3949_v4 = vadd.f32 %v3909_v13, %v11985_v52  ;;  %5907 = vmatmul.bf16.gmra.mxu1 %v10817_v6  ;;  %v10830_v12 = vld [vmem:[#allocation2 + $0x54] sm:$0xff]   ;;  %v5608_v40 = vsel %vm1424_vm10, %v5606_v36, %v5607_v62 }
 0x33d   : > { %v4330_v44 = vshrl.u32 %v4110_v34, 16  ;;  %v4333_v30 = vshll.u32 %v4110_v34, 16  ;;  %v3735_v3 = vpop.f32.mrf.mxu2 }
 0x33e   : > { %v3982_v53 = vadd.f32 %v10608_v21, %v3949_v4  ;;  %v8434_v4 = vld [vmem:[#allocation9 + $0x48] sm:$0xff] }
 0x33f   : > { %v4332_v63 = vrot.slane %v4330_v44, 7  ;;  %v3821_v28 = vpop.f32.mrf.mxu3  ;;  %v5417_v44 = vshrl.u32 %v10662_v56, 16  ;;  %6350 = vmatpush.bf16.msrb.mxu1 %v8434_v4 }
 0x340   : > { %vm4014_vm15 = vcmp.gt.f32.partialorder %v3982_v53, 0.0  ;;  %v4047_v22 = vmul.f32 %v10612_v26, %v3982_v53  ;;  %v3822_v47 = vadd.f32 %v3821_v28, %v3732_v7  ;;  %v10824_v48 = vpop.f32.mrf.mxu0  ;;  %v10832_v7 = vld [vmem:[#allocation2 + $0x54] sm:$0xf0]  ;;  %v4527_v28 = vld [vmem:[#allocation2 + $0xa8] sm:$0xf] }
 0x341   : > { %v4335_v35 = vor.u32 %v4333_v30, %v4332_v63  ;;  %v4337_v46 = vrot.slane %v4332_v63, 4  ;;  %11988 = vst [vmem:[#allocation25_spill] sm:$0xff] %v10832_v7  ;;  %v10840_v52 = vpop.f32.mrf.mxu1 }
 0x342   : > { %v4079_v5 = vsel %vm4014_vm15, %v3982_v53, %v4047_v22  ;;  %v3911_v33 = vadd.f32 %v10787_v41, %v3822_v47  ;;  %v5426_v22 = vrot.slane %v5424_v16, 1 }
 0x343   : > { %v4336_v13 = vsel %vm9579_vm7, %v4328_v49, %v4335_v35  ;;  %v4525_v61 = vsel %vm9530_vm2, %v4337_v46, %v4524_v20  ;;  %v4111_v15 = vpack.c.bf16 %v4079_v5, %v4079_v5  ;;  %v10847_v35 = vor.u32 %v5421_v17, %v5417_v44 }
 0x344   : > { %4523 = vst [vmem:[#allocation2 + $0xa0] sm:$0xf] %v4336_v13  ;;  %v3950_v34 = vadd.f32 %v3911_v33, %v2923_v24  ;;  %6060 = vmatmul.bf16.gmra.mxu3 %v5608_v40  ;;  %v11989_v13 = vld [vmem:[#allocation22_spill] sm:$0xff]  ;;  %v8833_v40 = vld [vmem:[#allocation2 + $0x60] sm:$0xe] }
 0x345   : > { %4526 = vst [vmem:[#allocation2 + $0xa4] sm:$0x1] %v4525_v61  ;;  %v4339_v41 = vshrl.u32 %v4111_v15, 16  ;;  %v4342_v63 = vshll.u32 %v4111_v15, 16  ;;  %v3737_v20 = vpop.f32.mrf.mxu2  ;;  %v5427_v15 = vsel %vm1167_vm9, %v10847_v35, %v5426_v22  ;;  %v8834_v16 = vor.u32 %v8833_v40, %v8832_v31 }
 0x346   : > { %v3983_v8 = vadd.f32 %v10608_v21, %v3950_v34 }
 0x347   : > { %v4341_v53 = vrot.slane %v4339_v41, 7  ;;  %v3824_v30 = vpop.f32.mrf.mxu3  ;;  %v5609_v31 = vrot.slane %v8834_v16, 1 }
 0x348   : > { %vm4015_vm0 = vcmp.gt.f32.partialorder %v3983_v8, 0.0  ;;  %v4048_v36 = vmul.f32 %v10612_v26, %v3983_v8  ;;  %v3825_v62 = vadd.f32 %v3824_v30, %v3735_v3  ;;  %v10845_v49 = vpop.f32.mrf.mxu0  ;;  %v5164_v3 = vld [vmem:[#allocation2 + $0x74] sm:$0x1]  ;;  %v5431_v30 = vshll.u32 %v10694_v25, 16 }
 0x349   : > { %v4344_v47 = vor.u32 %v4342_v63, %v4341_v53  ;;  %v10860_v34 = vpop.f32.mrf.mxu1  ;;  %v5308_v4 = vunpack.c.l.b16 %v5164_v3  ;;  %v5610_v63 = vrot.slane %v10822_v59, 1  ;;  %v11991_v3 = vld [vmem:[#allocation29_spill] sm:$0xff] }
 0x34a   : > { %v4080_v46 = vsel %vm4015_vm0, %v3983_v8, %v4048_v36  ;;  %v3914_v50 = vadd.f32 %v10805_v19, %v3825_v62  ;;  %6298 = vmatmul.bf16.gmra.mxu0 %v10830_v12 }
 0x34b   : > { %v4528_v24 = vsel %vm9588_vm8, %v4344_v47, %v4527_v28  ;;  %v4112_v0 = vpack.c.bf16 %v4080_v46, %v4080_v46  ;;  %v10852_v5 = vld [vmem:[#allocation2 + $0x9c] sm:$0xff]   ;;  %5976 = vmatmul.bf16.gmra.mxu2 %v5427_v15  ;;  %v4531_v28 = vld [vmem:[#allocation2 + $0xb0] sm:$0x1]  ;;  %v4345_v47 = vrot.slane %v4341_v53, 4  ;;  %v10872_v15 = vpack.c.b16 %v5308_v4, %v5308_v4 }
 0x34c   : > { %v10854_v33 = vld [vmem:[#allocation2 + $0x9c] sm:$0xf0]  ;;  %4529 = vst [vmem:[#allocation2 + $0xa8] sm:$0xf] %v4528_v24  ;;  %v3951_v61 = vadd.f32 %v3914_v50, %v11989_v13  ;;  %5912 = vmatmul.bf16.gmra.mxu1 %v10852_v5  ;;  %v5479_v7 = vshll.u32 %v10852_v5, 16 }
 0x34d   : > { %v4347_v19 = vshrl.u32 %v4112_v0, 16  ;;  %v4350_v8 = vshll.u32 %v4112_v0, 16  ;;  %v3740_v22 = vpop.f32.mrf.mxu2  ;;  %v11990_v0 = vld [vmem:[#allocation23_spill] sm:$0xff] }
 0x34e   : > { %v3984_v41 = vadd.f32 %v10608_v21, %v3951_v61  ;;  %v2928_v13 = vadd.f32 %v11991_v3, %v11990_v0 }
 0x34f   : > { %v4349_v17 = vrot.slane %v4347_v19, 7  ;;  %v3826_v44 = vpop.f32.mrf.mxu3  ;;  %v5611_v19 = vsel %vm1424_vm10, %v5609_v31, %v5610_v63  ;;  %v4534_v63 = vld [vmem:[#allocation2 + $0xb4] sm:$0xf] }
 0x350   : > { %vm4016_vm1 = vcmp.gt.f32.partialorder %v3984_v41, 0.0  ;;  %v4049_v36 = vmul.f32 %v10612_v26, %v3984_v41  ;;  %v3827_v62 = vadd.f32 %v3826_v44, %v3737_v20  ;;  %v10867_v24 = vpop.f32.mrf.mxu0  ;;  %v5429_v44 = vshrl.u32 %v10694_v25, 16 }
 0x351   : > { %v4352_v46 = vor.u32 %v4350_v8, %v4349_v17  ;;  %v4354_v50 = vrot.slane %v4349_v17, 4  ;;  %v5433_v17 = vrot.slane %v5431_v30, 1 }
 0x352   : > { %v4081_v59 = vsel %vm4016_vm1, %v3984_v41, %v4049_v36  ;;  %v3916_v61 = vadd.f32 %v10824_v48, %v3827_v62  ;;  %v10879_v41 = vpop.f32.mrf.mxu1  ;;  %v8433_v48 = vld [vmem:[#allocation9 + $0x40] sm:$0xff]  ;;  %v5436_v36 = vshll.u32 %v10872_v15, 16  ;;  %v9083_v62 = vld [vmem:[#allocation2 + $0x6c] sm:$0xe] }
 0x353   : > { %v4353_v20 = vsel %vm9579_vm7, %v4345_v47, %v4352_v46  ;;  %v4532_v40 = vsel %vm9530_vm2, %v4354_v50, %v4531_v28  ;;  %v4113_v53 = vpack.c.bf16 %v4081_v59, %v4081_v59  ;;  %6351 = vmatpush.bf16.msrb.mxu1 %v8433_v48  ;;  %v5434_v0 = vor.u32 %v5433_v17, %v5429_v44 }
 0x354   : > { %4530 = vst [vmem:[#allocation2 + $0xac] sm:$0xf] %v4353_v20  ;;  %v3952_v16 = vadd.f32 %v3916_v61, %v2928_v13  ;;  %6065 = vmatmul.bf16.gmra.mxu3 %v5611_v19  ;;  %v5438_v61 = vrot.slane %v5436_v36, 1 }
 0x355   : > { %4533 = vst [vmem:[#allocation2 + $0xb0] sm:$0x1] %v4532_v40  ;;  %v4356_v8 = vshrl.u32 %v4113_v53, 16  ;;  %v4359_v47 = vshll.u32 %v4113_v53, 16  ;;  %v3742_v31 = vpop.f32.mrf.mxu2  ;;  %v9084_v53 = vor.u32 %v9083_v62, %v10696_v51  ;;  %v5613_v51 = vrot.slane %v10872_v15, 1 }
 0x356   : > { %v3985_v4 = vadd.f32 %v10608_v21, %v3952_v16  ;;  %v5165_v21 = vld [vmem:[#allocation2 + $0x80] sm:$0x1]  ;;  %v5439_v19 = vsel %vm1167_vm9, %v5434_v0, %v5438_v61  ;;  %v4538_v62 = vld [vmem:[#allocation2 + $0xbc] sm:$0x1]  ;;  %v11993_v61 = vld [vmem:[#allocation30_spill] sm:$0xff]  ;;  %v5443_v15 = vshll.u32 %v10737_v1, 16 }
 0x357   : > { %v4358_v28 = vrot.slane %v4356_v8, 7  ;;  %v3829_v46 = vpop.f32.mrf.mxu3  ;;  %v5309_v16 = vunpack.c.l.b16 %v5165_v21 }
 0x358   : > { %vm4017_vm3 = vcmp.gt.f32.partialorder %v3985_v4, 0.0  ;;  %v4050_v30 = vmul.f32 %v10612_v26, %v3985_v4  ;;  %v3830_v50 = vadd.f32 %v3829_v46, %v3740_v22  ;;  %v10885_v13 = vpop.f32.mrf.mxu0  ;;  %v11992_v26 = vld [vmem:[#allocation24_spill] sm:$0xff]  ;;  %v8989_v46 = vld [vmem:[#allocation6 + $0x3] ss:$0 sm:$0xff] }
 0x359   : > { %v4361_v3 = vor.u32 %v4359_v47, %v4358_v28  ;;  %v10900_v0 = vpack.c.b16 %v5309_v16, %v5309_v16 }
 0x35a   : > { %v4082_v59 = vsel %vm4017_vm3, %v3985_v4, %v4050_v30  ;;  %v3919_v25 = vadd.f32 %v10845_v49, %v3830_v50  ;;  %6303 = vmatmul.bf16.gmra.mxu0 %v10662_v56  ;;  %v10894_v8 = vpop.f32.mrf.mxu1  ;;  %v8988_v49 = vld [vmem:[#allocation6 + $0x2] ss:$0 sm:$0xff]  ;;  %v5612_v56 = vrot.slane %v9084_v53, 1 }
 0x35b   : > { %v4535_v20 = vsel %vm9588_vm8, %v4361_v3, %v4534_v63  ;;  %v4114_v40 = vpack.c.bf16 %v4082_v59, %v4082_v59  ;;  %5981 = vmatmul.bf16.gmra.mxu2 %v5439_v19  ;;  %v10896_v47 = vld [vmem:[#allocation2 + $0xa8] sm:$0xff]   ;;  %v4362_v3 = vrot.slane %v4358_v28, 4 }
 0x35c   : > { %4536 = vst [vmem:[#allocation2 + $0xb4] sm:$0xf] %v4535_v20  ;;  %v3953_v22 = vadd.f32 %v3919_v25, %v11992_v26  ;;  %5917 = vmatmul.bf16.gmra.mxu1 %v10896_v47  ;;  %v2933_v20 = vadd.f32 %v10680_v11, %v11993_v61  ;;  %v10908_v26 = vld [vmem:[#allocation2 + $0x6c] sm:$0xff]   ;;  %v5614_v16 = vsel %vm1424_vm10, %v5612_v56, %v5613_v51  ;;  %v8448_v61 = vld [vmem:[#allocation9 + $0xb8] sm:$0xff] }
 0x35d   : > { %v4364_v17 = vshrl.u32 %v4114_v40, 16  ;;  %v4367_v44 = vshll.u32 %v4114_v40, 16  ;;  %v5942_v50 = vpop.f32.mrf.mxu2  ;;  %6433 = vmatpush.bf16.msra.mxu2 %v8448_v61  ;;  %v8496_v61 = vld [vmem:[#allocation9 + $0x238] sm:$0xff] }
 0x35e   : > { %v3986_v48 = vadd.f32 %v8988_v49, %v3953_v22  ;;  %7420 = vmatpush.bf16.msra.mxu1 %v8496_v61  ;;  %v4580_v61 = vld [vmem:[#allocation2 + $0x8] sm:$0x1] }
 0x35f   : > { %v4366_v4 = vrot.slane %v4364_v17, 7  ;;  %v3831_v36 = vpop.f32.mrf.mxu3  ;;  %v5943_v17 = vadd.f32 %v5942_v50, %v10701_v58  ;;  %v8480_v50 = vld [vmem:[#allocation9 + $0x1b8] sm:$0xff] }
 0x360   : > { %vm4018_vm4 = vcmp.gt.f32.partialorder %v3986_v48, 0.0  ;;  %v4051_v63 = vmul.f32 %v8989_v46, %v3986_v48  ;;  %v3832_v30 = vadd.f32 %v3831_v36, %v3742_v31  ;;  %v10902_v25 = vpop.f32.mrf.mxu0  ;;  %v10910_v31 = vld [vmem:[#allocation2 + $0x6c] sm:$0xf0]  ;;  %7242 = vmatpush.bf16.msra.mxu3 %v8480_v50  ;;  %v5455_v50 = vshll.u32 %v10772_v29, 16 }
 0x361   : > { %v4369_v21 = vor.u32 %v4367_v44, %v4366_v4  ;;  %v4371_v59 = vrot.slane %v4366_v4, 4  ;;  %11994 = vst [vmem:[#allocation19_spill] sm:$0xff] %v10910_v31  ;;  %v5445_v44 = vrot.slane %v5443_v15, 1  ;;  %v8835_v15 = vld [vmem:[#allocation2 + $0x78] sm:$0xf0]  ;;  %v8479_v31 = vld [vmem:[#allocation9 + $0x1b0] sm:$0xff] }
 0x362   : > { %v4083_v40 = vsel %vm4018_vm4, %v3986_v48, %v4051_v63  ;;  %v3921_v53 = vadd.f32 %v10867_v24, %v3832_v30  ;;  %v5448_v24 = vshll.u32 %v10900_v0, 16  ;;  %v10919_v4 = vpop.f32.mrf.mxu1  ;;  %v5441_v63 = vshrl.u32 %v10737_v1, 16 }
 0x363   : > { %v4370_v22 = vsel %vm9579_vm7, %v4362_v3, %v4369_v21  ;;  %v4539_v28 = vsel %vm9530_vm2, %v4371_v59, %v4538_v62  ;;  %v4115_v19 = vpack.c.bf16 %v4083_v40, %v4083_v40  ;;  %v4541_v21 = vld [vmem:[#allocation2 + $0xc0] sm:$0xf] }
 0x364   : > { %4537 = vst [vmem:[#allocation2 + $0xb8] sm:$0xf] %v4370_v22  ;;  %v3954_v11 = vadd.f32 %v3921_v53, %v2933_v20  ;;  %6070 = vmatmul.bf16.gmra.mxu3 %v5614_v16  ;;  %v5450_v58 = vrot.slane %v5448_v24, 1  ;;  %v10926_v53 = vor.u32 %v5445_v44, %v5441_v63  ;;  %v5166_v16 = vld [vmem:[#allocation2 + $0x8c] sm:$0x1] }
 0x365   : > { %4540 = vst [vmem:[#allocation2 + $0xbc] sm:$0x1] %v4539_v28  ;;  %v4373_v48 = vshrl.u32 %v4115_v19, 16  ;;  %v4376_v62 = vshll.u32 %v4115_v19, 16  ;;  %v5944_v59 = vpop.f32.mrf.mxu2  ;;  %v8836_v24 = vld [vmem:[#allocation2 + $0x78] sm:$0xe]  ;;  %v5310_v63 = vunpack.c.l.b16 %v5166_v16  ;;  %7243 = vmatpush.bf16.msra.mxu3 %v8479_v31 }
 0x366   : > { %v3987_v36 = vadd.f32 %v8988_v49, %v3954_v11  ;;  %v5945_v11 = vadd.f32 %v5944_v59, %v10720_v10  ;;  %v8837_v23 = vor.u32 %v8836_v24, %v8835_v15  ;;  %v4545_v10 = vld [vmem:[#allocation2 + $0xc8] sm:$0x1] }
 0x367   : > { %v4375_v30 = vrot.slane %v4373_v48, 7  ;;  %v6031_v3 = vpop.f32.mrf.mxu3 }
 0x368   : > { %vm4019_vm5 = vcmp.gt.f32.partialorder %v3987_v36, 0.0  ;;  %v4052_v56 = vmul.f32 %v8989_v46, %v3987_v36  ;;  %v10922_v51 = vadd.f32 %v6031_v3, %v5943_v17  ;;  %v10924_v40 = vpop.f32.mrf.mxu0  ;;  %v5451_v17 = vsel %vm1167_vm9, %v10926_v53, %v5450_v58 }
 0x369   : > { %v4378_v20 = vor.u32 %v4376_v62, %v4375_v30 }
 0x36a   : > { %v4084_v49 = vsel %vm4019_vm5, %v3987_v36, %v4052_v56  ;;  %6308 = vmatmul.bf16.gmra.mxu0 %v10908_v26  ;;  %v10938_v44 = vpop.f32.mrf.mxu1  ;;  %v8488_v36 = vld [vmem:[#allocation9 + $0x1f8] sm:$0xff]  ;;  %v5616_v56 = vrot.slane %v10900_v0, 1 }
 0x36b   : > { %v4542_v22 = vsel %vm9588_vm8, %v4378_v20, %v4541_v21  ;;  %v4116_v28 = vpack.c.bf16 %v4084_v49, %v4084_v49  ;;  %v10930_v46 = vld [vmem:[#allocation2 + $0xb4] sm:$0xff]   ;;  %5986 = vmatmul.bf16.gmra.mxu2 %v5451_v17  ;;  %7331 = vmatpush.bf16.msra.mxu0 %v8488_v36  ;;  %v4379_v20 = vrot.slane %v4375_v30, 4  ;;  %v5457_v30 = vrot.slane %v5455_v50, 1 }
 0x36c   : > { %v10932_v19 = vld [vmem:[#allocation2 + $0xb4] sm:$0xf0]  ;;  %4543 = vst [vmem:[#allocation2 + $0xc0] sm:$0xf] %v4542_v22  ;;  %5922 = vmatmul.bf16.gmra.mxu1 %v10930_v46  ;;  %v5615_v22 = vrot.slane %v8837_v23, 1  ;;  %v5453_v23 = vshrl.u32 %v10772_v29, 16 }
 0x36d   : > { %v4381_v48 = vshrl.u32 %v4116_v28, 16  ;;  %v4384_v3 = vshll.u32 %v4116_v28, 16  ;;  %v5947_v58 = vpop.f32.mrf.mxu2  ;;  %v5326_v28 = vpack.c.b16 %v5310_v63, %v5310_v63  ;;  %v9086_v63 = vld [vmem:[#allocation2 + $0x84] sm:$0xe] }
 0x36e   : > { %v5948_v24 = vadd.f32 %v5947_v58, %v10734_v18  ;;  %v5458_v32 = vor.u32 %v5457_v30, %v5453_v23  ;;  %v9087_v18 = vor.u32 %v9086_v63, %v10774_v43  ;;  %v10976_v63 = vld [vmem:[#allocation2 + $0x84] sm:$0xff]  }
 0x36f   : > { %v4383_v62 = vrot.slane %v4381_v48, 7  ;;  %v6033_v21 = vpop.f32.mrf.mxu3  ;;  %v5460_v36 = vshll.u32 %v5326_v28, 16 }
 0x370   : > { %v10942_v59 = vadd.f32 %v6033_v21, %v5945_v11  ;;  %v10945_v16 = vpop.f32.mrf.mxu0  ;;  %v5617_v11 = vsel %vm1424_vm10, %v5615_v22, %v5616_v56  ;;  %v5167_v56 = vld [vmem:[#allocation2 + $0x98] sm:$0x1] }
 0x371   : > { %v4386_v49 = vor.u32 %v4384_v3, %v4383_v62  ;;  %v4388_v15 = vrot.slane %v4383_v62, 4  ;;  %v5311_v58 = vunpack.c.l.b16 %v5167_v56 }
 0x372   : > { %v10953_v48 = vpop.f32.mrf.mxu1 }
 0x373   : > { %v4387_v0 = vsel %vm9579_vm7, %v4379_v20, %v4386_v49  ;;  %v4546_v17 = vsel %vm9530_vm2, %v4388_v15, %v4545_v10  ;;  %v5462_v10 = vrot.slane %v5460_v36, 1  ;;  %v4724_v49 = vunpack.c.l.b16 %v4580_v61 }
 0x374   : > { %4544 = vst [vmem:[#allocation2 + $0xc4] sm:$0xf] %v4387_v0  ;;  %6075 = vmatmul.bf16.gmra.mxu3 %v5617_v11  ;;  %v5618_v0 = vrot.slane %v9087_v18, 1  ;;  %v5327_v43 = vpack.c.b16 %v5311_v58, %v5311_v58  ;;  %v5467_v36 = vshll.u32 %v10817_v6, 16  ;;  %v5465_v58 = vshrl.u32 %v10817_v6, 16 }
 0x375   : > { %4547 = vst [vmem:[#allocation2 + $0xc8] sm:$0x1] %v4546_v17  ;;  %v5949_v3 = vpop.f32.mrf.mxu2  ;;  %v5463_v29 = vsel %vm1167_vm9, %v5458_v32, %v5462_v10  ;;  %v5619_v17 = vrot.slane %v5326_v28, 1  ;;  %v10973_v23 = vpack.c.b16 %v4724_v49, %v4724_v49 }
 0x376   : > { %v5950_v50 = vadd.f32 %v5949_v3, %v10760_v57  ;;  %v5472_v56 = vshll.u32 %v5327_v43, 16 }
 0x377   : > { %v6036_v62 = vpop.f32.mrf.mxu3  ;;  %v5620_v28 = vsel %vm1424_vm10, %v5618_v0, %v5619_v17  ;;  %v4764_v18 = vshll.u32 %v10973_v23, 16  ;;  %v8447_v0 = vld [vmem:[#allocation9 + $0xb0] sm:$0xff] }
 0x378   : > { %v10956_v60 = vadd.f32 %v6036_v62, %v5948_v24  ;;  %v10958_v21 = vpop.f32.mrf.mxu0  ;;  %v8990_v24 = vld [vmem:[#allocation2] sm:$0xff]   ;;  %v10978_v62 = vld [vmem:[#allocation2 + $0x84] sm:$0xf0]  ;;  %6434 = vmatpush.bf16.msra.mxu2 %v8447_v0  ;;  %v5622_v0 = vrot.slane %v5327_v43, 1 }
 0x379   : > { %v4759_v57 = vshll.u32 %v8990_v24, 16  ;;  %11996 = vst [vmem:[#allocation16_spill] sm:$0xff] %v10978_v62  ;;  %v4757_v3 = vshrl.u32 %v8990_v24, 16  ;;  %v5474_v62 = vrot.slane %v5472_v56, 1  ;;  %v8839_v56 = vld [vmem:[#allocation2 + $0x90] sm:$0xe] }
 0x37a   : > { %6313 = vmatmul.bf16.gmra.mxu0 %v10737_v1  ;;  %v10964_v20 = vpop.f32.mrf.mxu1 }
 0x37b   : > { %5991 = vmatmul.bf16.gmra.mxu2 %v5463_v29  ;;  %v10966_v22 = vld [vmem:[#allocation2 + $0xc0] sm:$0xff]   ;;  %v4761_v10 = vrot.slane %v4759_v57, 1  ;;  %v8838_v57 = vld [vmem:[#allocation2 + $0x90] sm:$0xf0] }
 0x37c   : > { %5927 = vmatmul.bf16.gmra.mxu1 %v10966_v22 }
 0x37d   : > { %v5952_v1 = vpop.f32.mrf.mxu2  ;;  %v4762_v17 = vor.u32 %v4761_v10, %v4757_v3  ;;  %v8840_v10 = vor.u32 %v8839_v56, %v8838_v57  ;;  %v5477_v56 = vshrl.u32 %v10852_v5, 16 }
 0x37e   : > { %v5953_v32 = vadd.f32 %v5952_v1, %v10780_v39  ;;  %v4766_v39 = vrot.slane %v4764_v18, 1  ;;  %v8487_v18 = vld [vmem:[#allocation9 + $0x1f0] sm:$0xff] }
 0x37f   : > { %v6038_v15 = vpop.f32.mrf.mxu3  ;;  %7332 = vmatpush.bf16.msra.mxu0 %v8487_v18 }
 0x380   : > { %v10968_v11 = vadd.f32 %v6038_v15, %v5950_v50  ;;  %v10971_v30 = vpop.f32.mrf.mxu0  ;;  %v5469_v50 = vrot.slane %v5467_v36, 1  ;;  %v5168_v36 = vld [vmem:[#allocation2 + $0xa4] sm:$0x1]  ;;  %v4767_v3 = vsel %vm1167_vm9, %v4762_v17, %v4766_v39  ;;  %v4771_v39 = vshll.u32 %v10598_v9, 16 }
 0x381   : > { %11995 = vst [vmem:[#allocation18_spill] sm:$0xff] %v10971_v30 }
 0x382   : > { %v10982_v61 = vpop.f32.mrf.mxu1  ;;  %v10990_v1 = vor.u32 %v5469_v50, %v5465_v58  ;;  %v4581_v50 = vld [vmem:[#allocation2 + $0x14] sm:$0x1]  ;;  %v5312_v58 = vunpack.c.l.b16 %v5168_v36  ;;  %v5481_v36 = vrot.slane %v5479_v7, 1  ;;  %v5169_v7 = vld [vmem:[#allocation2 + $0xb0] sm:$0x1] }
 0x383   : > { %v4725_v30 = vunpack.c.l.b16 %v4581_v50  ;;  %v4773_v50 = vrot.slane %v4771_v39, 1 }
 0x384   : > { %6080 = vmatmul.bf16.gmra.mxu3 %v5620_v28  ;;  %11998 = vst [vmem:[#allocation27_spill] sm:$0xff] %v10990_v1  ;;  %v5328_v17 = vpack.c.b16 %v5312_v58, %v5312_v58 }
 0x385   : > { %v5954_v15 = vpop.f32.mrf.mxu2 }
 0x386   : > { %v5955_v28 = vadd.f32 %v5954_v15, %v10799_v55  ;;  %v5621_v15 = vrot.slane %v8840_v10, 1  ;;  %v9089_v10 = vld [vmem:[#allocation2 + $0x9c] sm:$0xe] }
 0x387   : > { %v6041_v29 = vpop.f32.mrf.mxu3  ;;  %v9090_v5 = vor.u32 %v9089_v10, %v10854_v33  ;;  %v5491_v10 = vshll.u32 %v10896_v47, 16 }
 0x388   : > { %v10986_v49 = vadd.f32 %v6041_v29, %v5953_v32  ;;  %v10988_v24 = vpop.f32.mrf.mxu0  ;;  %v5475_v32 = vsel %vm1167_vm9, %v10990_v1, %v5474_v62  ;;  %v8495_v62 = vld [vmem:[#allocation9 + $0x230] sm:$0xff]  ;;  %v5623_v57 = vsel %vm1424_vm10, %v5621_v15, %v5622_v0  ;;  %v4769_v0 = vshrl.u32 %v10598_v9, 16 }
 0x389   : > { %11997 = vst [vmem:[#allocation17_spill] sm:$0xff] %v10988_v24  ;;  %7421 = vmatpush.bf16.msra.mxu1 %v8495_v62  ;;  %v5482_v62 = vor.u32 %v5481_v36, %v5477_v56 }
 0x38a   : > { %6318 = vmatmul.bf16.gmra.mxu0 %v10976_v63  ;;  %v10996_v29 = vpop.f32.mrf.mxu1 }
 0x38b   : > { %5996 = vmatmul.bf16.gmra.mxu2 %v5475_v32 }
 0x38c   : > { %6352 = vmatmul.bf16.vlgmr.msrb.gmra.mxu1 %v4767_v3  ;;  %v5484_v3 = vshll.u32 %v5328_v17, 16 }
 0x38e   : > { %v5957_v55 = vpop.f32.mrf.mxu2 }
 0x38f   : > { %v6043_v31 = vpop.f32.mrf.mxu3  ;;  %v5958_v43 = vadd.f32 %v5957_v55, %v10814_v27  ;;  %v5486_v55 = vrot.slane %v5484_v3, 1  ;;  %v5625_v3 = vrot.slane %v5328_v17, 1 }
 0x390   : > { %v11000_v24 = vadd.f32 %v6043_v31, %v5955_v28  ;;  %v11002_v1 = vpop.f32.mrf.mxu0  ;;  %v11009_v28 = vpack.c.b16 %v4725_v30, %v4725_v30  ;;  %v4774_v30 = vor.u32 %v4773_v50, %v4769_v0 }
 0x391   : > { %11999 = vst [vmem:[#allocation26_spill] sm:$0xff] %v11002_v1  ;;  %v5487_v39 = vsel %vm1167_vm9, %v5482_v62, %v5486_v55  ;;  %v11032_v62 = vld [vmem:[#allocation2 + $0x9c] sm:$0xf0] }
 0x392   : > { %v11007_v32 = vpop.f32.mrf.mxu1  ;;  %v4776_v27 = vshll.u32 %v11009_v28, 16  ;;  %12004 = vst [vmem:[#allocation23_spill] sm:$0xff] %v11032_v62 }
 0x394   : > { %6085 = vmatmul.bf16.gmra.mxu3 %v5623_v57  ;;  %v4582_v57 = vld [vmem:[#allocation2 + $0x20] sm:$0x1]  ;;  %v4778_v56 = vrot.slane %v4776_v27, 1 }
 0x395   : > { %v4726_v50 = vunpack.c.l.b16 %v4582_v57 }
 0x396   : > { %v5959_v31 = vpop.f32.mrf.mxu2 }
 0x397   : > { %v6046_v18 = vpop.f32.mrf.mxu3  ;;  %v5960_v15 = vadd.f32 %v5959_v31, %v10840_v52  ;;  %v11030_v31 = vld [vmem:[#allocation2 + $0x9c] sm:$0xff]  }
 0x398   : > { %v11012_v58 = vadd.f32 %v6046_v18, %v5958_v43  ;;  %v11014_v1 = vpop.f32.mrf.mxu0  ;;  %v5313_v43 = vunpack.c.l.b16 %v5169_v7  ;;  %v4779_v18 = vsel %vm1167_vm9, %v4774_v30, %v4778_v56  ;;  %v11035_v7 = vpack.c.b16 %v4726_v50, %v4726_v50  ;;  %v8991_v30 = vld [vmem:[#allocation2 + $0x18] sm:$0xff]   ;;  %v8446_v50 = vld [vmem:[#allocation9 + $0xa8] sm:$0xff] }
 0x399   : > { %12001 = vst [vmem:[#allocation21_spill] sm:$0xff] %v11014_v1  ;;  %v5624_v1 = vrot.slane %v9090_v5, 1  ;;  %v4783_v5 = vshll.u32 %v8991_v30, 16  ;;  %v5489_v56 = vshrl.u32 %v10896_v47, 16  ;;  %6435 = vmatpush.bf16.msra.mxu2 %v8446_v50  ;;  %v5503_v50 = vshll.u32 %v10930_v46, 16 }
 0x39a   : > { %12000 = vst [vmem:[#allocation28_spill] sm:$0xff] %v11012_v58  ;;  %6323 = vmatmul.bf16.gmra.mxu0 %v10817_v6  ;;  %v11022_v36 = vpop.f32.mrf.mxu1  ;;  %v5329_v33 = vpack.c.b16 %v5313_v43, %v5313_v43  ;;  %v4788_v43 = vshll.u32 %v11035_v7, 16  ;;  %v5170_v58 = vld [vmem:[#allocation2 + $0xbc] sm:$0x1] }
 0x39b   : > { %6001 = vmatmul.bf16.gmra.mxu2 %v5487_v39  ;;  %v5626_v27 = vsel %vm1424_vm10, %v5624_v1, %v5625_v3  ;;  %v5493_v39 = vrot.slane %v5491_v10, 1  ;;  %v8478_v3 = vld [vmem:[#allocation9 + $0x1a8] sm:$0xff]  ;;  %v4785_v62 = vrot.slane %v4783_v5, 1  ;;  %v4781_v10 = vshrl.u32 %v8991_v30, 16 }
 0x39c   : > { %6357 = vmatmul.bf16.gmra.mxu1 %v4779_v18  ;;  %v5496_v55 = vshll.u32 %v5329_v33, 16  ;;  %7244 = vmatpush.bf16.msra.mxu3 %v8478_v3 }
 0x39d   : > { %v4786_v5 = vor.u32 %v4785_v62, %v4781_v10  ;;  %v8477_v10 = vld [vmem:[#allocation9 + $0x1a0] sm:$0xff] }
 0x39e   : > { %v5962_v6 = vpop.f32.mrf.mxu2  ;;  %v5498_v1 = vrot.slane %v5496_v55, 1 }
 0x39f   : > { %v6048_v9 = vpop.f32.mrf.mxu3  ;;  %v5963_v17 = vadd.f32 %v5962_v6, %v10860_v34  ;;  %v11046_v6 = vor.u32 %v5493_v39, %v5489_v56  ;;  %v5314_v56 = vunpack.c.l.b16 %v5170_v58  ;;  %v4795_v58 = vshll.u32 %v10654_v45, 16 }
 0x3a0   : > { %v11025_v0 = vadd.f32 %v6048_v9, %v5960_v15  ;;  %v11027_v52 = vpop.f32.mrf.mxu0  ;;  %7245 = vmatpush.bf16.msra.mxu3 %v8477_v10 }
 0x3a1   : > { %12003 = vst [vmem:[#allocation22_spill] sm:$0xff] %v11027_v52  ;;  %v8841_v52 = vld [vmem:[#allocation2 + $0xa8] sm:$0xf0]  ;;  %v5499_v55 = vsel %vm1167_vm9, %v11046_v6, %v5498_v1  ;;  %v8485_v1 = vld [vmem:[#allocation9 + $0x1e0] sm:$0xff] }
 0x3a2   : > { %12002 = vst [vmem:[#allocation20_spill] sm:$0xff] %v11025_v0  ;;  %v11038_v15 = vpop.f32.mrf.mxu1  ;;  %v4790_v0 = vrot.slane %v4788_v43, 1  ;;  %v5628_v43 = vrot.slane %v5329_v33, 1 }
 0x3a3   : > { %12007 = vst [vmem:[#allocation30_spill] sm:$0xff] %v11046_v6  ;;  %v8494_v6 = vld [vmem:[#allocation9 + $0x228] sm:$0xff] }
 0x3a4   : > { %6090 = vmatmul.bf16.gmra.mxu3 %v5626_v27  ;;  %v8486_v27 = vld [vmem:[#allocation9 + $0x1e8] sm:$0xff]  ;;  %v4791_v30 = vsel %vm1167_vm9, %v4786_v5, %v4790_v0  ;;  %7422 = vmatpush.bf16.msra.mxu1 %v8494_v6 }
 0x3a5   : > { %7333 = vmatpush.bf16.msra.mxu0 %v8486_v27 }
 0x3a6   : > { %v5964_v18 = vpop.f32.mrf.mxu2 }
 0x3a7   : > { %v6051_v57 = vpop.f32.mrf.mxu3 }
 0x3a8   : > { %v11042_v9 = vadd.f32 %v6051_v57, %v5963_v17  ;;  %v11044_v34 = vpop.f32.mrf.mxu0  ;;  %v5965_v17 = vadd.f32 %v5964_v18, %v10879_v41  ;;  %v8842_v57 = vld [vmem:[#allocation2 + $0xa8] sm:$0xe]  ;;  %v8445_v18 = vld [vmem:[#allocation9 + $0xa0] sm:$0xff] }
 0x3a9   : > { %12006 = vst [vmem:[#allocation24_spill] sm:$0xff] %v11044_v34  ;;  %v8843_v39 = vor.u32 %v8842_v57, %v8841_v52  ;;  %6436 = vmatpush.bf16.msra.mxu2 %v8445_v18  ;;  %7334 = vmatpush.bf16.msra.mxu0 %v8485_v1  ;;  %v5505_v52 = vrot.slane %v5503_v50, 1  ;;  %v8484_v57 = vld [vmem:[#allocation9 + $0x1d8] sm:$0xff]  ;;  %v8443_v50 = vld [vmem:[#allocation9 + $0x90] sm:$0xff] }
 0x3aa   : > { %12005 = vst [vmem:[#allocation29_spill] sm:$0xff] %v11042_v9  ;;  %6328 = vmatmul.bf16.gmra.mxu0 %v11030_v31  ;;  %v11052_v9 = vpop.f32.mrf.mxu1 }
 0x3ab   : > { %6006 = vmatmul.bf16.gmra.mxu2 %v5499_v55  ;;  %v5627_v27 = vrot.slane %v8843_v39, 1  ;;  %v11060_v55 = vpack.c.b16 %v5314_v56, %v5314_v56  ;;  %v8476_v39 = vld [vmem:[#allocation9 + $0x198] sm:$0xff]  ;;  %v5501_v56 = vshrl.u32 %v10930_v46, 16  ;;  %v4800_v46 = vshll.u32 %v10677_v54, 16 }
 0x3ac   : > { %6362 = vmatmul.bf16.gmra.mxu1 %v4791_v30  ;;  %v9092_v30 = vld [vmem:[#allocation2 + $0xb4] sm:$0xe]  ;;  %7246 = vmatpush.bf16.msra.mxu3 %v8476_v39 }
 0x3ad   : > { %v5629_v0 = vsel %vm1424_vm10, %v5627_v27, %v5628_v43  ;;  %7335 = vmatpush.bf16.msra.mxu0 %v8484_v57  ;;  %v4797_v43 = vrot.slane %v4795_v58, 1  ;;  %v8475_v27 = vld [vmem:[#allocation9 + $0x190] sm:$0xff]  ;;  %v8482_v58 = vld [vmem:[#allocation9 + $0x1c8] sm:$0xff]  ;;  %v4802_v54 = vrot.slane %v4800_v46, 1 }
 0x3ae   : > { %v5967_v41 = vpop.f32.mrf.mxu2  ;;  %v11090_v46 = vld [vmem:[#allocation2 + $0xb4] sm:$0xff]  }
 0x3af   : > { %v6053_v3 = vpop.f32.mrf.mxu3  ;;  %v5968_v33 = vadd.f32 %v5967_v41, %v10894_v8  ;;  %v5506_v8 = vor.u32 %v5505_v52, %v5501_v56  ;;  %v8483_v41 = vld [vmem:[#allocation9 + $0x1d0] sm:$0xff]  ;;  %v4584_v56 = vld [vmem:[#allocation2 + $0x38] sm:$0x1] }
 0x3b0   : > { %v11056_v34 = vadd.f32 %v6053_v3, %v5965_v17  ;;  %v11058_v62 = vpop.f32.mrf.mxu0  ;;  %v8444_v17 = vld [vmem:[#allocation9 + $0x98] sm:$0xff]  ;;  %v5508_v3 = vshll.u32 %v11060_v55, 16  ;;  %7247 = vmatpush.bf16.msra.mxu3 %v8475_v27 }
 0x3b1   : > { %12009 = vst [vmem:[#allocation32_spill] sm:$0xff] %v11058_v62  ;;  %6437 = vmatpush.bf16.msra.mxu2 %v8444_v17  ;;  %v5171_v62 = vld [vmem:[#allocation2 + $0xc8] sm:$0x1]  ;;  %7336 = vmatpush.bf16.msra.mxu0 %v8483_v41  ;;  %v8473_v41 = vld [vmem:[#allocation9 + $0x180] sm:$0xff] }
 0x3b2   : > { %12008 = vst [vmem:[#allocation31_spill] sm:$0xff] %v11056_v34  ;;  %v11065_v5 = vpop.f32.mrf.mxu1  ;;  %v5510_v34 = vrot.slane %v5508_v3, 1  ;;  %v8442_v17 = vld [vmem:[#allocation9 + $0x88] sm:$0xff] }
 0x3b3   : > { %v8474_v3 = vld [vmem:[#allocation9 + $0x188] sm:$0xff] }
 0x3b4   : > { %6095 = vmatmul.bf16.gmra.mxu3 %v5629_v0  ;;  %v4793_v0 = vshrl.u32 %v10654_v45, 16  ;;  %v5511_v39 = vsel %vm1167_vm9, %v5506_v8, %v5510_v34  ;;  %v5315_v45 = vunpack.c.l.b16 %v5171_v62  ;;  %v8481_v8 = vld [vmem:[#allocation9 + $0x1c0] sm:$0xff] }
 0x3b5   : > { %6438 = vmatpush.bf16.msra.mxu2 %v8443_v50  ;;  %7337 = vmatpush.bf16.msra.mxu0 %v8482_v58 }
 0x3b6   : > { %v5969_v1 = vpop.f32.mrf.mxu2  ;;  %v4798_v57 = vor.u32 %v4797_v43, %v4793_v0  ;;  %7248 = vmatpush.bf16.msra.mxu3 %v8474_v3  ;;  %v11085_v62 = vpack.c.b16 %v5315_v45, %v5315_v45  ;;  %v5515_v0 = vshll.u32 %v10966_v22, 16 }
 0x3b7   : > { %v6056_v18 = vpop.f32.mrf.mxu3  ;;  %v5970_v52 = vadd.f32 %v5969_v1, %v10919_v4  ;;  %v8441_v1 = vld [vmem:[#allocation9 + $0x80] sm:$0xff] }
 0x3b8   : > { %v11069_v6 = vadd.f32 %v6056_v18, %v5968_v33  ;;  %v11071_v10 = vpop.f32.mrf.mxu0  ;;  %v9093_v33 = vor.u32 %v9092_v30, %v10932_v19  ;;  %v4803_v43 = vsel %vm1167_vm9, %v4798_v57, %v4802_v54  ;;  %v5631_v19 = vrot.slane %v11060_v55, 1  ;;  %v6554_v54 = vld [vmem:[#allocation2 + $0x20] sm:$0x1] }
 0x3b9   : > { %12010 = vst [vmem:[#allocation33_spill] sm:$0xff] %v11071_v10  ;;  %6439 = vmatpush.bf16.msra.mxu2 %v8442_v17  ;;  %v4728_v30 = vunpack.c.l.b16 %v4584_v56  ;;  %v11092_v17 = vld [vmem:[#allocation2 + $0xb4] sm:$0xf0]  ;;  %7338 = vmatpush.bf16.msra.mxu0 %v8481_v8  ;;  %v5517_v45 = vrot.slane %v5515_v0, 1  ;;  %v8845_v10 = vld [vmem:[#allocation2 + $0xc0] sm:$0xe] }
 0x3ba   : > { %6333 = vmatmul.bf16.gmra.mxu0 %v10896_v47  ;;  %v11079_v18 = vpop.f32.mrf.mxu1  ;;  %v5630_v47 = vrot.slane %v9093_v33, 1  ;;  %12012 = vst [vmem:[#allocation35_spill] sm:$0xff] %v11092_v17  ;;  %7249 = vmatpush.bf16.msra.mxu3 %v8473_v41  ;;  %v5520_v33 = vshll.u32 %v11085_v62, 16  ;;  %v8844_v41 = vld [vmem:[#allocation2 + $0xc0] sm:$0xf0] }
 0x3bb   : > { %6011 = vmatmul.bf16.gmra.mxu2 %v5511_v39  ;;  %v11095_v58 = vpack.c.b16 %v4728_v30, %v4728_v30 }
 0x3bc   : > { %6367 = vmatmul.bf16.gmra.mxu1 %v4803_v43  ;;  %v5632_v55 = vsel %vm1424_vm10, %v5630_v47, %v5631_v19  ;;  %v5513_v43 = vshrl.u32 %v10966_v22, 16  ;;  %v5522_v30 = vrot.slane %v5520_v33, 1  ;;  %v8846_v33 = vor.u32 %v8845_v10, %v8844_v41 }
 0x3bd   : > { %6440 = vmatpush.bf16.msra.mxu2 %v8441_v1 }
 0x3be   : > { %v5972_v34 = vpop.f32.mrf.mxu2  ;;  %v5633_v10 = vrot.slane %v8846_v33, 1 }
 0x3bf   : > { %v6058_v50 = vpop.f32.mrf.mxu3  ;;  %v5973_v57 = vadd.f32 %v5972_v34, %v10938_v44  ;;  %v6698_v44 = vunpack.c.l.b16 %v6554_v54  ;;  %v5518_v34 = vor.u32 %v5517_v45, %v5513_v43  ;;  %v4585_v45 = vld [vmem:[#allocation2 + $0x44] sm:$0x1] }
 0x3c0   : > { %v11083_v4 = vadd.f32 %v6058_v50, %v5970_v52  ;;  %v11087_v27 = vpop.f32.mrf.mxu0  ;;  %v8992_v52 = vld [vmem:[#allocation2 + $0x30] sm:$0xff]   ;;  %v4812_v50 = vshll.u32 %v11095_v58, 16  ;;  %v8791_v43 = vld [vmem:[#allocation2] sm:$0xf0] }
 0x3c1   : > { %12011 = vst [vmem:[#allocation34_spill] sm:$0xff] %v11087_v27  ;;  %v4807_v39 = vshll.u32 %v8992_v52, 16  ;;  %v5523_v27 = vsel %vm1167_vm9, %v5518_v34, %v5522_v30 }
 0x3c2   : > { %v11099_v56 = vpop.f32.mrf.mxu1  ;;  %v4814_v17 = vrot.slane %v4812_v50, 1  ;;  %v5634_v50 = vrot.slane %v11085_v62, 1 }
 0x3c3   : > { %v4809_v1 = vrot.slane %v4807_v39, 1  ;;  %v11112_v39 = vld [vmem:[#allocation2 + $0x18] sm:$0xff]  }
 0x3c4   : > { %6100 = vmatmul.bf16.gmra.mxu3 %v5632_v55  ;;  %v4805_v55 = vshrl.u32 %v8992_v52, 16  ;;  %v5635_v62 = vsel %vm1424_vm10, %v5633_v10, %v5634_v50 }
 0x3c6   : > { %v5974_v19 = vpop.f32.mrf.mxu2  ;;  %v4810_v22 = vor.u32 %v4809_v1, %v4805_v55  ;;  %v6733_v1 = vshll.u32 %v11112_v39, 16 }
 0x3c7   : > { %v6061_v3 = vpop.f32.mrf.mxu3  ;;  %v5975_v0 = vadd.f32 %v5974_v19, %v10953_v48  ;;  %v8792_v48 = vld [vmem:[#allocation2] sm:$0xe] }
 0x3c8   : > { %v11103_v47 = vadd.f32 %v6061_v3, %v5973_v57  ;;  %v11105_v8 = vpop.f32.mrf.mxu0  ;;  %v11114_v3 = vpack.c.b16 %v6698_v44, %v6698_v44  ;;  %v4815_v52 = vsel %vm1167_vm9, %v4810_v22, %v4814_v17  ;;  %v4729_v44 = vunpack.c.l.b16 %v4585_v45  ;;  %v11126_v22 = vld [vmem:[#allocation2 + $0x24] sm:$0xff]  }
 0x3c9   : > { %12013 = vst [vmem:[#allocation36_spill] sm:$0xff] %v11105_v8  ;;  %v8793_v55 = vor.u32 %v8792_v48, %v8791_v43  ;;  %v4819_v17 = vshll.u32 %v10750_v38, 16  ;;  %v6731_v45 = vshrl.u32 %v11112_v39, 16 }
 0x3ca   : > { %6338 = vmatmul.bf16.gmra.mxu0 %v11090_v46  ;;  %v11110_v57 = vpop.f32.mrf.mxu1  ;;  %12014 = vst [vmem:[#allocation37_spill] sm:$0xff] %v11114_v3  ;;  %v6738_v41 = vshll.u32 %v11114_v3, 16 }
 0x3cb   : > { %6016 = vmatmul.bf16.gmra.mxu2 %v5523_v27  ;;  %v8493_v27 = vld [vmem:[#allocation9 + $0x220] sm:$0xff]  ;;  %v5012_v48 = vrot.slane %v8793_v55, 1  ;;  %v4821_v50 = vrot.slane %v4819_v17, 1  ;;  %v4586_v17 = vld [vmem:[#allocation2 + $0x50] sm:$0x1] }
 0x3cc   : > { %6372 = vmatmul.bf16.gmra.mxu1 %v4815_v52  ;;  %v6735_v52 = vrot.slane %v6733_v1, 1  ;;  %v6740_v43 = vrot.slane %v6738_v41, 1  ;;  %v6555_v1 = vld [vmem:[#allocation2 + $0x2c] sm:$0x1] }
 0x3cd   : > { %7423 = vmatpush.bf16.msra.mxu1 %v8493_v27  ;;  %v5013_v27 = vrot.slane %v10973_v23, 1 }
 0x3ce   : > { %v5977_v30 = vpop.f32.mrf.mxu2 }
 0x3cf   : > { %v6063_v54 = vpop.f32.mrf.mxu3 }
 0x3d0   : > { %v11118_v19 = vadd.f32 %v6063_v54, %v5975_v0  ;;  %v11121_v34 = vpop.f32.mrf.mxu0  ;;  %v11128_v0 = vld [vmem:[#allocation2 + $0x24] sm:$0xf0]  ;;  %v5978_v54 = vadd.f32 %v5977_v30, %v10964_v20  ;;  %v4817_v20 = vshrl.u32 %v10750_v38, 16 }
 0x3d1   : > { %12016 = vst [vmem:[#allocation39_spill] sm:$0xff] %v11121_v34  ;;  %v11133_v34 = vpack.c.b16 %v4729_v44, %v4729_v44  ;;  %v5014_v44 = vsel %vm1424_vm10, %v5012_v48, %v5013_v27 }
 0x3d2   : > { %12015 = vst [vmem:[#allocation38_spill] sm:$0xff] %v11118_v19  ;;  %v11131_v33 = vpop.f32.mrf.mxu1  ;;  %v4822_v55 = vor.u32 %v4821_v50, %v4817_v20  ;;  %v9095_v19 = vld [vmem:[#allocation2 + $0xc] sm:$0xe] }
 0x3d3   : > { %12017 = vst [vmem:[#allocation40_spill] sm:$0xff] %v11128_v0  ;;  %v6736_v0 = vor.u32 %v6735_v52, %v6731_v45  ;;  %v4824_v30 = vshll.u32 %v11133_v34, 16  ;;  %v6745_v45 = vshll.u32 %v11126_v22, 16  ;;  %v9096_v20 = vor.u32 %v9095_v19, %v10600_v14 }
 0x3d4   : > { %6105 = vmatmul.bf16.gmra.mxu3 %v5635_v62 }
 0x3d5   : > { %v6741_v41 = vsel %vm1167_vm9, %v6736_v0, %v6740_v43  ;;  %v4826_v52 = vrot.slane %v4824_v30, 1  ;;  %v6743_v30 = vshrl.u32 %v11126_v22, 16 }
 0x3d6   : > { %v5979_v8 = vpop.f32.mrf.mxu2 }
 0x3d7   : > { %v6066_v3 = vpop.f32.mrf.mxu3  ;;  %v5980_v23 = vadd.f32 %v5979_v8, %v10982_v61  ;;  %v6747_v8 = vrot.slane %v6745_v45, 1 }
 0x3d8   : > { %v11137_v10 = vadd.f32 %v6066_v3, %v5978_v54  ;;  %v11139_v62 = vpop.f32.mrf.mxu0  ;;  %v6699_v3 = vunpack.c.l.b16 %v6555_v1 }
 0x3d9   : > { %12019 = vst [vmem:[#allocation42_spill] sm:$0xff] %v11139_v62  ;;  %v4827_v62 = vsel %vm1167_vm9, %v4822_v55, %v4826_v52 }
 0x3da   : > { %12018 = vst [vmem:[#allocation41_spill] sm:$0xff] %v11137_v10  ;;  %7339 = vmatmul.bf16.vlgmr.msra.gmra.mxu0 %v6741_v41  ;;  %v11146_v54 = vpop.f32.mrf.mxu1  ;;  %v4730_v10 = vunpack.c.l.b16 %v4586_v17  ;;  %v11152_v43 = vpack.c.b16 %v6699_v3, %v6699_v3  ;;  %v5015_v3 = vrot.slane %v9096_v20, 1  ;;  %v4587_v20 = vld [vmem:[#allocation2 + $0x5c] sm:$0x1] }
 0x3db   : > { %6441 = vmatmul.bf16.vlgmr.msra.gmra.mxu2 %v5014_v44 }
 0x3dc   : > { %6377 = vmatmul.bf16.gmra.mxu1 %v4827_v62  ;;  %12021 = vst [vmem:[#allocation44_spill] sm:$0xff] %v11152_v43  ;;  %v11156_v27 = vpack.c.b16 %v4730_v10, %v4730_v10  ;;  %v6750_v1 = vshll.u32 %v11152_v43, 16  ;;  %v6748_v62 = vor.u32 %v6747_v8, %v6743_v30 }
 0x3de   : > { %v5982_v0 = vpop.f32.mrf.mxu2  ;;  %v4836_v55 = vshll.u32 %v11156_v27, 16 }
 0x3df   : > { %v6068_v38 = vpop.f32.mrf.mxu3  ;;  %v5983_v50 = vadd.f32 %v5982_v0, %v10996_v29  ;;  %v6752_v29 = vrot.slane %v6750_v1, 1 }
 0x3e0   : > { %v11150_v48 = vadd.f32 %v6068_v38, %v5980_v23  ;;  %v11154_v61 = vpop.f32.mrf.mxu0  ;;  %v6556_v23 = vld [vmem:[#allocation2 + $0x38] sm:$0x1]  ;;  %v4838_v45 = vrot.slane %v4836_v55, 1 }
 0x3e1   : > { %12022 = vst [vmem:[#allocation45_spill] sm:$0xff] %v11154_v61  ;;  %v6753_v14 = vsel %vm1167_vm9, %v6748_v62, %v6752_v29  ;;  %v6700_v19 = vunpack.c.l.b16 %v6556_v23  ;;  %v8492_v55 = vld [vmem:[#allocation9 + $0x218] sm:$0xff]  ;;  %v6565_v23 = vld [vmem:[#allocation2 + $0xa4] sm:$0x1] }
 0x3e2   : > { %12020 = vst [vmem:[#allocation43_spill] sm:$0xff] %v11150_v48  ;;  %v11163_v44 = vpop.f32.mrf.mxu1  ;;  %v4839_v1 = vsel %vm1167_vm9, %v10767_v2, %v4838_v45  ;;  %7424 = vmatpush.bf16.msra.mxu1 %v8492_v55  ;;  %v4843_v2 = vshll.u32 %v10830_v12, 16  ;;  %v11191_v45 = vld [vmem:[#allocation2 + $0x3c] sm:$0xff]  }
 0x3e3   : > { %v11178_v30 = vpack.c.b16 %v6700_v19, %v6700_v19  ;;  %v9340_v19 = vld [vmem:[#allocation2 + $0x9c] sm:$0xf0] }
 0x3e4   : > { %7250 = vmatmul.bf16.vlgmr.msra.gmra.mxu3 %v11112_v39  ;;  %v5016_v39 = vrot.slane %v11009_v28, 1 }
 0x3e5   : > { %12025 = vst [vmem:[#allocation48_spill] sm:$0xff] %v11178_v30  ;;  %v6762_v29 = vshll.u32 %v11178_v30, 16 }
 0x3e6   : > { %v5984_v10 = vpop.f32.mrf.mxu2  ;;  %v5017_v0 = vsel %vm1424_vm10, %v5015_v3, %v5016_v39  ;;  %v4731_v3 = vunpack.c.l.b16 %v4587_v20  ;;  %v8794_v39 = vld [vmem:[#allocation2 + $0x18] sm:$0xf0] }
 0x3e7   : > { %v6071_v41 = vpop.f32.mrf.mxu3  ;;  %v5985_v38 = vadd.f32 %v5984_v10, %v11007_v32  ;;  %v6764_v61 = vrot.slane %v6762_v29, 1 }
 0x3e8   : > { %v11166_v17 = vadd.f32 %v6071_v41, %v5983_v50  ;;  %v11169_v52 = vpop.f32.mrf.mxu0  ;;  %v11176_v50 = vld [vmem:[#allocation2 + $0x30] sm:$0xff]   ;;  %v11199_v55 = vpack.c.b16 %v4731_v3, %v4731_v3 }
 0x3e9   : > { %12024 = vst [vmem:[#allocation47_spill] sm:$0xff] %v11169_v52  ;;  %v6757_v32 = vshll.u32 %v11176_v50, 16  ;;  %v6755_v43 = vshrl.u32 %v11176_v50, 16 }
 0x3ea   : > { %12023 = vst [vmem:[#allocation46_spill] sm:$0xff] %v11166_v17  ;;  %7344 = vmatmul.bf16.gmra.mxu0 %v6753_v14  ;;  %v11174_v8 = vpop.f32.mrf.mxu1  ;;  %v11188_v14 = vld [vmem:[#allocation2 + $0x9c] sm:$0xff]   ;;  %v4845_v17 = vrot.slane %v4843_v2, 1  ;;  %v4848_v3 = vshll.u32 %v11199_v55, 16 }
 0x3eb   : > { %6446 = vmatmul.bf16.gmra.mxu2 %v5017_v0  ;;  %12028 = vst [vmem:[#allocation51_spill] sm:$0xff] %v11188_v14  ;;  %v6709_v0 = vunpack.c.l.b16 %v6565_v23  ;;  %v6759_v20 = vrot.slane %v6757_v32, 1 }
 0x3ec   : > { %6382 = vmatmul.bf16.gmra.mxu1 %v4839_v1  ;;  %v8795_v1 = vld [vmem:[#allocation2 + $0x18] sm:$0xe] }
 0x3ed   : > { %v8796_v30 = vor.u32 %v8795_v1, %v8794_v39  ;;  %v11202_v48 = vpack.c.b16 %v6709_v0, %v6709_v0  ;;  %v6557_v39 = vld [vmem:[#allocation2 + $0x44] sm:$0x1] }
 0x3ee   : > { %v5987_v41 = vpop.f32.mrf.mxu2 }
 0x3ef   : > { %v6073_v28 = vpop.f32.mrf.mxu3  ;;  %v5018_v14 = vrot.slane %v8796_v30, 1 }
 0x3f0   : > { %v11182_v62 = vadd.f32 %v6073_v28, %v5985_v38  ;;  %v11185_v10 = vpop.f32.mrf.mxu0  ;;  %v11193_v38 = vld [vmem:[#allocation2 + $0x3c] sm:$0xf0]  ;;  %v5988_v28 = vadd.f32 %v5987_v41, %v11022_v36  ;;  %v5019_v36 = vrot.slane %v11035_v7, 1  ;;  %v6760_v41 = vor.u32 %v6759_v20, %v6755_v43  ;;  %v4588_v43 = vld [vmem:[#allocation2 + $0x68] sm:$0x1] }
 0x3f1   : > { %12027 = vst [vmem:[#allocation50_spill] sm:$0xff] %v11185_v10  ;;  %v9341_v10 = vld [vmem:[#allocation2 + $0x9c] sm:$0xe]  ;;  %v6701_v20 = vunpack.c.l.b16 %v6557_v39  ;;  %v6767_v39 = vshrl.u32 %v11191_v45, 16 }
 0x3f2   : > { %12026 = vst [vmem:[#allocation49_spill] sm:$0xff] %v11182_v62  ;;  %v11197_v52 = vpop.f32.mrf.mxu1  ;;  %v9342_v1 = vor.u32 %v9341_v10, %v9340_v19  ;;  %v6765_v29 = vsel %vm1167_vm9, %v6760_v41, %v6764_v61  ;;  %v5020_v7 = vsel %vm1424_vm10, %v5018_v14, %v5019_v36  ;;  %v6769_v61 = vshll.u32 %v11191_v45, 16 }
 0x3f3   : > { %12029 = vst [vmem:[#allocation52_spill] sm:$0xff] %v11193_v38  ;;  %v4841_v38 = vshrl.u32 %v10830_v12, 16  ;;  %v4850_v12 = vrot.slane %v4848_v3, 1  ;;  %v4732_v19 = vunpack.c.l.b16 %v4588_v43  ;;  %v11224_v14 = vpack.c.b16 %v6701_v20, %v6701_v20 }
 0x3f4   : > { %7255 = vmatmul.bf16.gmra.mxu3 %v11126_v22  ;;  %v7019_v0 = vrot.slane %v9342_v1, 1  ;;  %v6771_v36 = vrot.slane %v6769_v61, 1 }
 0x3f5   : > { %v4846_v2 = vor.u32 %v4845_v17, %v4841_v38  ;;  %12032 = vst [vmem:[#allocation55_spill] sm:$0xff] %v11224_v14  ;;  %v11228_v41 = vpack.c.b16 %v4732_v19, %v4732_v19  ;;  %v6774_v1 = vshll.u32 %v11224_v14, 16 }
 0x3f6   : > { %v5989_v22 = vpop.f32.mrf.mxu2 }
 0x3f7   : > { %v6076_v62 = vpop.f32.mrf.mxu3  ;;  %v4851_v30 = vsel %vm1167_vm9, %v4846_v2, %v4850_v12  ;;  %v6772_v2 = vor.u32 %v6771_v36, %v6767_v39  ;;  %v6776_v20 = vrot.slane %v6774_v1, 1 }
 0x3f8   : > { %v11204_v23 = vadd.f32 %v6076_v62, %v5988_v28  ;;  %v11207_v32 = vpop.f32.mrf.mxu0  ;;  %v7020_v62 = vrot.slane %v11202_v48, 1  ;;  %v5990_v28 = vadd.f32 %v5989_v22, %v11038_v15 }
 0x3f9   : > { %12030 = vst [vmem:[#allocation53_spill] sm:$0xff] %v11207_v32 }
 0x3fa   : > { %7349 = vmatmul.bf16.gmra.mxu0 %v6765_v29  ;;  %v11215_v32 = vpop.f32.mrf.mxu1  ;;  %v11218_v10 = vsel %vm1424_vm10, %v7019_v0, %v7020_v62  ;;  %v4860_v62 = vshll.u32 %v11228_v41, 16 }
 0x3fb   : > { %6451 = vmatmul.bf16.gmra.mxu2 %v5020_v7  ;;  %12031 = vst [vmem:[#allocation54_spill] sm:$0xff] %v11218_v10 }
 0x3fc   : > { %6387 = vmatmul.bf16.gmra.mxu1 %v4851_v30  ;;  %v4862_v61 = vrot.slane %v4860_v62, 1 }
 0x3fe   : > { %v5992_v15 = vpop.f32.mrf.mxu2 }
 0x3ff   : > { %v6078_v17 = vpop.f32.mrf.mxu3  ;;  %v5993_v3 = vadd.f32 %v5992_v15, %v11052_v9  ;;  %v11246_v15 = vld [vmem:[#allocation2 + $0x48] sm:$0xff]  }
 0x400   : > { %v11222_v38 = vadd.f32 %v6078_v17, %v5990_v28  ;;  %v11226_v22 = vpop.f32.mrf.mxu0  ;;  %v6558_v28 = vld [vmem:[#allocation2 + $0x50] sm:$0x1]  ;;  %v6265_v17 = vadd.f32 %v10885_v13, %v10922_v51  ;;  %v6781_v51 = vshll.u32 %v11246_v15, 16 }
 0x401   : > { %12033 = vst [vmem:[#allocation56_spill] sm:$0xff] %v11226_v22  ;;  %v6702_v9 = vunpack.c.l.b16 %v6558_v28  ;;  %v8797_v28 = vld [vmem:[#allocation2 + $0x30] sm:$0xf0] }
 0x402   : > { %v11234_v29 = vpop.f32.mrf.mxu1 }
 0x403   : > { %v11250_v39 = vpack.c.b16 %v6702_v9, %v6702_v9  ;;  %v11263_v9 = vld [vmem:[#allocation2 + $0x54] sm:$0xf0] }
 0x404   : > { %7260 = vmatmul.bf16.gmra.mxu3 %v11176_v50  ;;  %v6777_v50 = vsel %vm1167_vm9, %v6772_v2, %v6776_v20  ;;  %v4863_v2 = vsel %vm1167_vm9, %v10847_v35, %v4862_v61  ;;  %v4867_v20 = vshll.u32 %v10908_v26, 16  ;;  %12038 = vst [vmem:[#allocation61_spill] sm:$0xff] %v11263_v9  ;;  %v6267_v35 = vadd.f32 %v10902_v25, %v10942_v59  ;;  %v11274_v9 = vld [vmem:[#allocation2 + $0xb4] sm:$0xff]  }
 0x405   : > { %12035 = vst [vmem:[#allocation58_spill] sm:$0xff] %v11250_v39  ;;  %v5025_v59 = vrot.slane %v11095_v58, 1 }
 0x406   : > { %v5994_v43 = vpop.f32.mrf.mxu2  ;;  %v4869_v25 = vrot.slane %v4867_v20, 1 }
 0x407   : > { %v6081_v0 = vpop.f32.mrf.mxu3  ;;  %v5995_v30 = vadd.f32 %v5994_v43, %v11065_v5  ;;  %v8491_v5 = vld [vmem:[#allocation9 + $0x210] sm:$0xff]  ;;  %v6786_v43 = vshll.u32 %v11250_v39, 16 }
 0x408   : > { %v11237_v7 = vadd.f32 %v6081_v0, %v5993_v3  ;;  %v11239_v12 = vpop.f32.mrf.mxu0  ;;  %v4589_v3 = vld [vmem:[#allocation2 + $0x74] sm:$0x1]  ;;  %7425 = vmatpush.bf16.msra.mxu1 %v8491_v5  ;;  %v9344_v5 = vld [vmem:[#allocation2 + $0xb4] sm:$0xe] }
 0x409   : > { %12034 = vst [vmem:[#allocation57_spill] sm:$0xff] %v11239_v12  ;;  %v6788_v39 = vrot.slane %v6786_v43, 1 }
 0x40a   : > { %7354 = vmatmul.bf16.gmra.mxu0 %v6777_v50  ;;  %v6353_v19 = vpop.f32.mrf.mxu1  ;;  %v11261_v50 = vld [vmem:[#allocation2 + $0x54] sm:$0xff]  }
 0x40b   : > { %6456 = vmatmul.bf16.gmra.mxu2 %v10690_v42  ;;  %v11248_v36 = vadd.f32 %v6353_v19, %v6265_v17  ;;  %v4733_v42 = vunpack.c.l.b16 %v4589_v3  ;;  %v8798_v17 = vld [vmem:[#allocation2 + $0x30] sm:$0xe] }
 0x40c   : > { %6392 = vmatmul.bf16.gmra.mxu1 %v4863_v2  ;;  %v6779_v2 = vshrl.u32 %v11246_v15, 16 }
 0x40d   : > { %v11269_v3 = vpack.c.b16 %v4733_v42, %v4733_v42 }
 0x40e   : > { %v5997_v13 = vpop.f32.mrf.mxu2 }
 0x40f   : > { %v6083_v1 = vpop.f32.mrf.mxu3  ;;  %v5998_v61 = vadd.f32 %v5997_v13, %v11079_v18  ;;  %v4872_v43 = vshll.u32 %v11269_v3, 16 }
 0x410   : > { %v11254_v0 = vadd.f32 %v6083_v1, %v5995_v30  ;;  %v11257_v62 = vpop.f32.mrf.mxu0  ;;  %v6783_v30 = vrot.slane %v6781_v51, 1  ;;  %v8799_v1 = vor.u32 %v8798_v17, %v8797_v28  ;;  %v6559_v28 = vld [vmem:[#allocation2 + $0x5c] sm:$0x1] }
 0x411   : > { %12037 = vst [vmem:[#allocation60_spill] sm:$0xff] %v11257_v62  ;;  %v6567_v62 = vld [vmem:[#allocation2 + $0xbc] sm:$0x1] }
 0x412   : > { %12036 = vst [vmem:[#allocation59_spill] sm:$0xff] %v11254_v0  ;;  %v6355_v19 = vpop.f32.mrf.mxu1  ;;  %v6711_v18 = vunpack.c.l.b16 %v6567_v62  ;;  %v6784_v42 = vor.u32 %v6783_v30, %v6779_v2  ;;  %v6270_v62 = vadd.f32 %v10924_v40, %v10956_v60  ;;  %v4590_v30 = vld [vmem:[#allocation2 + $0x80] sm:$0x1] }
 0x413   : > { %v11272_v10 = vadd.f32 %v6355_v19, %v6267_v35  ;;  %v4865_v35 = vshrl.u32 %v10908_v26, 16  ;;  %v5024_v19 = vrot.slane %v8799_v1, 1  ;;  %v4734_v60 = vunpack.c.l.b16 %v4590_v30 }
 0x414   : > { %7265 = vmatmul.bf16.gmra.mxu3 %v11191_v45  ;;  %v9343_v45 = vld [vmem:[#allocation2 + $0xb4] sm:$0xf0]  ;;  %v11283_v14 = vpack.c.b16 %v6711_v18, %v6711_v18  ;;  %v6789_v22 = vsel %vm1167_vm9, %v6784_v42, %v6788_v39  ;;  %v4874_v18 = vrot.slane %v4872_v43, 1  ;;  %v9098_v39 = vld [vmem:[#allocation2 + $0x3c] sm:$0xe]  ;;  %v6272_v43 = vadd.f32 %v10945_v16, %v10968_v11 }
 0x415   : > { %v9345_v20 = vor.u32 %v9344_v5, %v9343_v45  ;;  %v4870_v0 = vor.u32 %v4869_v25, %v4865_v35  ;;  %v5026_v58 = vsel %vm1424_vm10, %v5024_v19, %v5025_v59  ;;  %v6793_v5 = vshll.u32 %v11261_v50, 16 }
 0x416   : > { %v5999_v51 = vpop.f32.mrf.mxu2  ;;  %v7026_v2 = vrot.slane %v11283_v14, 1  ;;  %v9099_v35 = vor.u32 %v9098_v39, %v10752_v37  ;;  %v6791_v19 = vshrl.u32 %v11261_v50, 16  ;;  %v5028_v16 = vrot.slane %v11133_v34, 1 }
 0x417   : > { %v6086_v12 = vpop.f32.mrf.mxu3  ;;  %v7025_v26 = vrot.slane %v9345_v20, 1  ;;  %v4875_v40 = vsel %vm1167_vm9, %v4870_v0, %v4874_v18  ;;  %v6795_v42 = vrot.slane %v6793_v5, 1  ;;  %v6275_v5 = vadd.f32 %v10958_v21, %v10986_v49 }
 0x418   : > { %v11277_v13 = vadd.f32 %v6086_v12, %v5998_v61  ;;  %v11279_v17 = vpop.f32.mrf.mxu0  ;;  %v6703_v12 = vunpack.c.l.b16 %v6559_v28  ;;  %v6000_v61 = vadd.f32 %v5999_v51, %v11099_v56  ;;  %v11304_v28 = vpack.c.b16 %v4734_v60, %v4734_v60 }
 0x419   : > { %12039 = vst [vmem:[#allocation62_spill] sm:$0xff] %v11279_v17 }
 0x41a   : > { %7359 = vmatmul.bf16.gmra.mxu0 %v6789_v22  ;;  %v6358_v1 = vpop.f32.mrf.mxu1  ;;  %v11295_v22 = vsel %vm1424_vm10, %v7025_v26, %v7026_v2  ;;  %v11300_v59 = vpack.c.b16 %v6703_v12, %v6703_v12  ;;  %v4884_v30 = vshll.u32 %v11304_v28, 16  ;;  %v6560_v26 = vld [vmem:[#allocation2 + $0x68] sm:$0x1]  ;;  %v5027_v2 = vrot.slane %v9099_v35, 1 }
 0x41b   : > { %6461 = vmatmul.bf16.gmra.mxu2 %v5026_v58  ;;  %v11291_v17 = vadd.f32 %v6358_v1, %v6270_v62  ;;  %12040 = vst [vmem:[#allocation63_spill] sm:$0xff] %v11295_v22  ;;  %v6796_v62 = vor.u32 %v6795_v42, %v6791_v19  ;;  %v6704_v18 = vunpack.c.l.b16 %v6560_v26  ;;  %v4591_v42 = vld [vmem:[#allocation2 + $0x8c] sm:$0x1]  ;;  %v9101_v22 = vld [vmem:[#allocation2 + $0x54] sm:$0xe] }
 0x41c   : > { %6397 = vmatmul.bf16.gmra.mxu1 %v4875_v40  ;;  %v6798_v20 = vshll.u32 %v11300_v59, 16  ;;  %v4886_v39 = vrot.slane %v4884_v30, 1  ;;  %v5029_v40 = vsel %vm1424_vm10, %v5027_v2, %v5028_v16  ;;  %v4891_v30 = vshll.u32 %v10976_v63, 16  ;;  %v11341_v26 = vld [vmem:[#allocation2 + $0x6c] sm:$0xff]  }
 0x41d   : > { %v11330_v35 = vpack.c.b16 %v6704_v18, %v6704_v18 }
 0x41e   : > { %v6002_v25 = vpop.f32.mrf.mxu2  ;;  %v6800_v11 = vrot.slane %v6798_v20, 1 }
 0x41f   : > { %v6088_v45 = vpop.f32.mrf.mxu3  ;;  %v6003_v0 = vadd.f32 %v6002_v25, %v11110_v57  ;;  %v11326_v25 = vld [vmem:[#allocation2 + $0x60] sm:$0xff]  }
 0x420   : > { %v11298_v56 = vadd.f32 %v6088_v45, %v6000_v61  ;;  %v11302_v51 = vpop.f32.mrf.mxu0  ;;  %v6801_v1 = vsel %vm1167_vm9, %v6796_v62, %v6800_v11  ;;  %v6805_v49 = vshll.u32 %v11326_v25, 16  ;;  %v8800_v62 = vld [vmem:[#allocation2 + $0x48] sm:$0xf0]  ;;  %v8801_v11 = vld [vmem:[#allocation2 + $0x48] sm:$0xe] }
 0x422   : > { %v6360_v58 = vpop.f32.mrf.mxu1 }
 0x423   : > { %v11313_v12 = vadd.f32 %v6360_v58, %v6272_v43  ;;  %v4735_v58 = vunpack.c.l.b16 %v4591_v42 }
 0x424   : > { %7270 = vmatmul.bf16.gmra.mxu3 %v11246_v15 }
 0x426   : > { %v6004_v15 = vpop.f32.mrf.mxu2 }
 0x427   : > { %v6091_v61 = vpop.f32.mrf.mxu3  ;;  %v6005_v45 = vadd.f32 %v6004_v15, %v11131_v33  ;;  %v8490_v33 = vld [vmem:[#allocation9 + $0x208] sm:$0xff]  ;;  %v11343_v15 = vld [vmem:[#allocation2 + $0x6c] sm:$0xf0] }
 0x428   : > { %v11316_v37 = vadd.f32 %v6091_v61, %v6003_v0  ;;  %v11319_v57 = vpop.f32.mrf.mxu0  ;;  %v4887_v0 = vsel %vm1167_vm9, %v10926_v53, %v4886_v39  ;;  %v6810_v61 = vshll.u32 %v11330_v35, 16  ;;  %7426 = vmatpush.bf16.msra.mxu1 %v8490_v33  ;;  %12041 = vst [vmem:[#allocation64_spill] sm:$0xff] %v11343_v15  ;;  %v12042_v53 = vld [vmem:[#allocation18_spill] sm:$0xff]  ;;  %v11349_v39 = vpack.c.b16 %v4735_v58, %v4735_v58 }
 0x429   : > { %v6277_v2 = vadd.f32 %v12042_v53, %v11000_v24  ;;  %v5031_v24 = vrot.slane %v11156_v27, 1  ;;  %v6561_v58 = vld [vmem:[#allocation2 + $0x74] sm:$0x1] }
 0x42a   : > { %7364 = vmatmul.bf16.gmra.mxu0 %v6801_v1  ;;  %v6363_v60 = vpop.f32.mrf.mxu1  ;;  %v6807_v1 = vrot.slane %v6805_v49, 1  ;;  %v4896_v49 = vshll.u32 %v11349_v39, 16 }
 0x42b   : > { %6466 = vmatmul.bf16.gmra.mxu2 %v5029_v40  ;;  %v11328_v34 = vadd.f32 %v6363_v60, %v6275_v5  ;;  %v8802_v5 = vor.u32 %v8801_v11, %v8800_v62  ;;  %v6812_v60 = vrot.slane %v6810_v61, 1  ;;  %v12043_v61 = vld [vmem:[#allocation28_spill] sm:$0xff] }
 0x42c   : > { %6402 = vmatmul.bf16.gmra.mxu1 %v4887_v0 }
 0x42d   : > { %v5030_v62 = vrot.slane %v8802_v5, 1  ;;  %v6817_v5 = vshll.u32 %v11341_v26, 16 }
 0x42e   : > { %v6007_v21 = vpop.f32.mrf.mxu2 }
 0x42f   : > { %v6093_v43 = vpop.f32.mrf.mxu3  ;;  %v6008_v16 = vadd.f32 %v6007_v21, %v11146_v54  ;;  %v4889_v21 = vshrl.u32 %v10976_v63, 16  ;;  %v5032_v27 = vsel %vm1424_vm10, %v5030_v62, %v5031_v24  ;;  %v12047_v62 = vld [vmem:[#allocation25_spill] sm:$0xff] }
 0x430   : > { %v11334_v19 = vadd.f32 %v6093_v43, %v6005_v45  ;;  %v11337_v20 = vpop.f32.mrf.mxu0  ;;  %v6803_v45 = vshrl.u32 %v11326_v25, 16  ;;  %v4893_v43 = vrot.slane %v4891_v30, 1  ;;  %v12044_v30 = vld [vmem:[#allocation17_spill] sm:$0xff] }
 0x432   : > { %v6365_v18 = vpop.f32.mrf.mxu1  ;;  %v6808_v33 = vor.u32 %v6807_v1, %v6803_v45  ;;  %v4592_v1 = vld [vmem:[#allocation2 + $0x98] sm:$0x1] }
 0x433   : > { %v11352_v40 = vadd.f32 %v6365_v18, %v6277_v2  ;;  %v4894_v2 = vor.u32 %v4893_v43, %v4889_v21  ;;  %v6705_v18 = vunpack.c.l.b16 %v6561_v58  ;;  %v6819_v58 = vrot.slane %v6817_v5, 1 }
 0x434   : > { %7275 = vmatmul.bf16.gmra.mxu3 %v11261_v50  ;;  %v6813_v53 = vsel %vm1167_vm9, %v6808_v33, %v6812_v60  ;;  %v4736_v33 = vunpack.c.l.b16 %v4592_v1 }
 0x436   : > { %v6009_v50 = vpop.f32.mrf.mxu2 }
 0x437   : > { %v6096_v42 = vpop.f32.mrf.mxu3  ;;  %v6010_v11 = vadd.f32 %v6009_v50, %v11163_v44  ;;  %v11372_v50 = vpack.c.b16 %v6705_v18, %v6705_v18 }
 0x438   : > { %v11354_v0 = vadd.f32 %v6096_v42, %v6008_v16  ;;  %v11357_v54 = vpop.f32.mrf.mxu0  ;;  %v6280_v16 = vadd.f32 %v12044_v30, %v12043_v61  ;;  %v4898_v42 = vrot.slane %v4896_v49, 1  ;;  %v11376_v49 = vpack.c.b16 %v4736_v33, %v4736_v33  ;;  %v12048_v61 = vld [vmem:[#allocation20_spill] sm:$0xff]  ;;  %v12049_v30 = vld [vmem:[#allocation26_spill] sm:$0xff] }
 0x439   : > { %12045 = vst [vmem:[#allocation18_spill] sm:$0xff] %v11372_v50  ;;  %v5034_v33 = vrot.slane %v11199_v55, 1 }
 0x43a   : > { %7369 = vmatmul.bf16.gmra.mxu0 %v6813_v53  ;;  %v6368_v45 = vpop.f32.mrf.mxu1  ;;  %v4899_v43 = vsel %vm1167_vm9, %v4894_v2, %v4898_v42  ;;  %v9102_v53 = vor.u32 %v9101_v22, %v12047_v62  ;;  %v4908_v5 = vshll.u32 %v11376_v49, 16 }
 0x43b   : > { %6471 = vmatmul.bf16.gmra.mxu2 %v5032_v27  ;;  %v11366_v63 = vadd.f32 %v6368_v45, %v6280_v16  ;;  %v6282_v16 = vadd.f32 %v12049_v30, %v12048_v61  ;;  %v6822_v27 = vshll.u32 %v11372_v50, 16 }
 0x43c   : > { %6407 = vmatmul.bf16.gmra.mxu1 %v4899_v43  ;;  %v5033_v43 = vrot.slane %v9102_v53, 1  ;;  %v4910_v30 = vrot.slane %v4908_v5, 1  ;;  %v11398_v53 = vld [vmem:[#allocation2 + $0x78] sm:$0xff]  }
 0x43d   : > { %v6824_v62 = vrot.slane %v6822_v27, 1  ;;  %v4593_v27 = vld [vmem:[#allocation2 + $0xa4] sm:$0x1] }
 0x43e   : > { %v6012_v44 = vpop.f32.mrf.mxu2 }
 0x43f   : > { %v6098_v60 = vpop.f32.mrf.mxu3  ;;  %v6013_v2 = vadd.f32 %v6012_v44, %v11174_v8 }
 0x440   : > { %v11370_v21 = vadd.f32 %v6098_v60, %v6010_v11  ;;  %v11374_v24 = vpop.f32.mrf.mxu0  ;;  %v6815_v11 = vshrl.u32 %v11341_v26, 16  ;;  %v6562_v60 = vld [vmem:[#allocation2 + $0x80] sm:$0x1] }
 0x441   : > { %12046 = vst [vmem:[#allocation28_spill] sm:$0xff] %v11374_v24  ;;  %v6706_v61 = vunpack.c.l.b16 %v6562_v60  ;;  %v12055_v60 = vld [vmem:[#allocation27_spill] sm:$0xff] }
 0x442   : > { %v6370_v1 = vpop.f32.mrf.mxu1  ;;  %v6820_v45 = vor.u32 %v6819_v58, %v6815_v11  ;;  %v12052_v58 = vld [vmem:[#allocation21_spill] sm:$0xff]  ;;  %v4911_v5 = vsel %vm1167_vm9, %v12055_v60, %v4910_v30  ;;  %v12058_v30 = vld [vmem:[#allocation31_spill] sm:$0xff] }
 0x443   : > { %v11385_v18 = vadd.f32 %v6370_v1, %v6282_v16  ;;  %v12051_v16 = vld [vmem:[#allocation29_spill] sm:$0xff] }
 0x444   : > { %7280 = vmatmul.bf16.gmra.mxu3 %v11326_v25  ;;  %v6825_v44 = vsel %vm1167_vm9, %v6820_v45, %v6824_v62  ;;  %v6285_v11 = vadd.f32 %v12052_v58, %v12051_v16  ;;  %v4915_v58 = vshll.u32 %v11030_v31, 16 }
 0x446   : > { %v6014_v25 = vpop.f32.mrf.mxu2 }
 0x447   : > { %v6101_v42 = vpop.f32.mrf.mxu3  ;;  %v6015_v1 = vadd.f32 %v6014_v25, %v11197_v52  ;;  %v6829_v52 = vshll.u32 %v11398_v53, 16  ;;  %v8489_v25 = vld [vmem:[#allocation9 + $0x200] sm:$0xff] }
 0x448   : > { %v11388_v22 = vadd.f32 %v6101_v42, %v6013_v2  ;;  %v11391_v8 = vpop.f32.mrf.mxu0  ;;  %v5035_v2 = vsel %vm1424_vm10, %v5033_v43, %v5034_v33  ;;  %v4737_v43 = vunpack.c.l.b16 %v4593_v27  ;;  %v8803_v33 = vld [vmem:[#allocation2 + $0x60] sm:$0xf0]  ;;  %7427 = vmatpush.bf16.msra.mxu1 %v8489_v25  ;;  %v8804_v27 = vld [vmem:[#allocation2 + $0x60] sm:$0xe] }
 0x449   : > { %12050 = vst [vmem:[#allocation17_spill] sm:$0xff] %v11391_v8  ;;  %v11402_v8 = vpack.c.b16 %v6706_v61, %v6706_v61  ;;  %v6831_v60 = vrot.slane %v6829_v52, 1  ;;  %v8805_v25 = vor.u32 %v8804_v27, %v8803_v33  ;;  %v6563_v52 = vld [vmem:[#allocation2 + $0x8c] sm:$0x1] }
 0x44a   : > { %7374 = vmatmul.bf16.gmra.mxu0 %v6825_v44  ;;  %v6373_v42 = vpop.f32.mrf.mxu1 }
 0x44b   : > { %6476 = vmatmul.bf16.gmra.mxu2 %v5035_v2  ;;  %v11400_v55 = vadd.f32 %v6373_v42, %v6285_v11  ;;  %12054 = vst [vmem:[#allocation20_spill] sm:$0xff] %v11402_v8  ;;  %v6834_v16 = vshll.u32 %v11402_v8, 16  ;;  %v11413_v11 = vld [vmem:[#allocation2 + $0x84] sm:$0xff]   ;;  %v6827_v8 = vshrl.u32 %v11398_v53, 16 }
 0x44c   : > { %6412 = vmatmul.bf16.gmra.mxu1 %v4911_v5  ;;  %v11415_v2 = vld [vmem:[#allocation2 + $0x84] sm:$0xf0] }
 0x44d   : > { %12053 = vst [vmem:[#allocation25_spill] sm:$0xff] %v11400_v55  ;;  %v11421_v55 = vpack.c.b16 %v4737_v43, %v4737_v43  ;;  %v6836_v50 = vrot.slane %v6834_v16, 1  ;;  %v5036_v43 = vrot.slane %v8805_v25, 1  ;;  %v12061_v16 = vld [vmem:[#allocation24_spill] sm:$0xff]  ;;  %v6841_v25 = vshll.u32 %v11413_v11, 16 }
 0x44e   : > { %v6017_v44 = vpop.f32.mrf.mxu2  ;;  %12057 = vst [vmem:[#allocation29_spill] sm:$0xff] %v11415_v2  ;;  %v4917_v2 = vrot.slane %v4915_v58, 1 }
 0x44f   : > { %v6103_v45 = vpop.f32.mrf.mxu3 }
 0x450   : > { %v11406_v62 = vadd.f32 %v6103_v45, %v6015_v1  ;;  %v11411_v61 = vpop.f32.mrf.mxu0  ;;  %v12059_v1 = vld [vmem:[#allocation22_spill] sm:$0xff]  ;;  %v6018_v45 = vadd.f32 %v6017_v44, %v11215_v32  ;;  %v4913_v32 = vshrl.u32 %v11030_v31, 16  ;;  %v4920_v44 = vshll.u32 %v11421_v55, 16 }
 0x451   : > { %12056 = vst [vmem:[#allocation26_spill] sm:$0xff] %v11411_v61  ;;  %v6287_v42 = vadd.f32 %v12059_v1, %v12058_v30  ;;  %v5037_v30 = vrot.slane %v11228_v41, 1  ;;  %v6832_v1 = vor.u32 %v6831_v60, %v6827_v8  ;;  %v6707_v41 = vunpack.c.l.b16 %v6563_v52 }
 0x452   : > { %v6375_v5 = vpop.f32.mrf.mxu1  ;;  %v4918_v27 = vor.u32 %v4917_v2, %v4913_v32  ;;  %v4922_v60 = vrot.slane %v4920_v44, 1  ;;  %v9104_v32 = vld [vmem:[#allocation2 + $0x6c] sm:$0xe]  ;;  %v6843_v44 = vrot.slane %v6841_v25, 1  ;;  %v6564_v25 = vld [vmem:[#allocation2 + $0x98] sm:$0x1] }
 0x453   : > { %v11424_v61 = vadd.f32 %v6375_v5, %v6287_v42  ;;  %v6837_v33 = vsel %vm1167_vm9, %v6832_v1, %v6836_v50  ;;  %v6290_v42 = vadd.f32 %v12061_v16, %v11069_v6  ;;  %v5038_v58 = vsel %vm1424_vm10, %v5036_v43, %v5037_v30  ;;  %v12063_v43 = vld [vmem:[#allocation32_spill] sm:$0xff] }
 0x454   : > { %7285 = vmatmul.bf16.gmra.mxu3 %v11341_v26  ;;  %v4923_v2 = vsel %vm1167_vm9, %v4918_v27, %v4922_v60  ;;  %v12064_v27 = vld [vmem:[#allocation19_spill] sm:$0xff] }
 0x455   : > { %12060 = vst [vmem:[#allocation21_spill] sm:$0xff] %v11424_v61  ;;  %v9105_v16 = vor.u32 %v9104_v32, %v12064_v27 }
 0x456   : > { %v6019_v26 = vpop.f32.mrf.mxu2 }
 0x457   : > { %v6106_v15 = vpop.f32.mrf.mxu3 }
 0x458   : > { %v11426_v24 = vadd.f32 %v6106_v15, %v6018_v45  ;;  %v6020_v15 = vadd.f32 %v6019_v26, %v11234_v29  ;;  %v4594_v45 = vld [vmem:[#allocation2 + $0xb0] sm:$0x1]  ;;  %v7340_v31 = vpop.f32.mrf.mxu0  ;;  %v11442_v26 = vpack.c.b16 %v6707_v41, %v6707_v41 }
 0x459   : > { %v4738_v1 = vunpack.c.l.b16 %v4594_v45 }
 0x45a   : > { %7379 = vmatmul.bf16.gmra.mxu0 %v6837_v33  ;;  %v6378_v8 = vpop.f32.mrf.mxu1  ;;  %v6292_v33 = vadd.f32 %v12063_v43, %v11083_v4  ;;  %v5040_v4 = vrot.slane %v11269_v3, 1  ;;  %v6708_v43 = vunpack.c.l.b16 %v6564_v25  ;;  %v4595_v3 = vld [vmem:[#allocation2 + $0xbc] sm:$0x1] }
 0x45b   : > { %6481 = vmatmul.bf16.gmra.mxu2 %v5038_v58  ;;  %v11436_v5 = vadd.f32 %v6378_v8, %v6290_v42  ;;  %v11447_v52 = vpack.c.b16 %v4738_v1, %v4738_v1  ;;  %v6839_v42 = vshrl.u32 %v11413_v11, 16 }
 0x45c   : > { %6417 = vmatmul.bf16.gmra.mxu1 %v4923_v2  ;;  %v5039_v2 = vrot.slane %v9105_v16, 1 }
 0x45d   : > { %12062 = vst [vmem:[#allocation27_spill] sm:$0xff] %v11436_v5  ;;  %v6844_v41 = vor.u32 %v6843_v44, %v6839_v42  ;;  %v4932_v60 = vshll.u32 %v11447_v52, 16  ;;  %v12066_v44 = vld [vmem:[#allocation33_spill] sm:$0xff] }
 0x45e   : > { %v6442_v29 = vpop.f32.mrf.mxu2  ;;  %v6295_v27 = vadd.f32 %v12066_v44, %v11103_v47  ;;  %v5041_v42 = vsel %vm1424_vm10, %v5039_v2, %v5040_v4  ;;  %v4739_v4 = vunpack.c.l.b16 %v4595_v3  ;;  %v12069_v44 = vld [vmem:[#allocation38_spill] sm:$0xff] }
 0x45f   : > { %v6108_v50 = vpop.f32.mrf.mxu3  ;;  %v11445_v30 = vadd.f32 %v6442_v29, %v11248_v36 }
 0x460   : > { %v11440_v6 = vadd.f32 %v6108_v50, %v6020_v15  ;;  %v6846_v15 = vshll.u32 %v11442_v26, 16  ;;  %v7342_v8 = vpop.f32.mrf.mxu0 }
 0x462   : > { %v6380_v58 = vpop.f32.mrf.mxu1  ;;  %v6848_v1 = vrot.slane %v6846_v15, 1  ;;  %v11470_v15 = vpack.c.b16 %v6708_v43, %v6708_v43  ;;  %v4939_v43 = vshll.u32 %v11090_v46, 16 }
 0x463   : > { %v11455_v45 = vadd.f32 %v6380_v58, %v6292_v33  ;;  %v4934_v33 = vrot.slane %v4932_v60, 1  ;;  %v8851_v58 = vld [vmem:[#allocation2 + $0x90] sm:$0xff]  }
 0x464   : > { %7290 = vmatmul.bf16.gmra.mxu3 %v11398_v53  ;;  %v6849_v29 = vsel %vm1167_vm9, %v6844_v41, %v6848_v1  ;;  %v8806_v1 = vld [vmem:[#allocation2 + $0x78] sm:$0xf0] }
 0x465   : > { %12065 = vst [vmem:[#allocation31_spill] sm:$0xff] %v11455_v45 }
 0x466   : > { %v6444_v53 = vpop.f32.mrf.mxu2 }
 0x467   : > { %v7251_v36 = vpop.f32.mrf.mxu3  ;;  %v11462_v32 = vadd.f32 %v6444_v53, %v11272_v10  ;;  %v6853_v53 = vshll.u32 %v8851_v58, 16 }
 0x468   : > { %v11458_v50 = vadd.f32 %v7340_v31, %v7251_v36  ;;  %v12068_v36 = vld [vmem:[#allocation30_spill] sm:$0xff]  ;;  %v7345_v47 = vpop.f32.mrf.mxu0 }
 0x469   : > { %v4935_v41 = vsel %vm1167_vm9, %v12068_v36, %v4934_v33 }
 0x46a   : > { %7384 = vmatmul.bf16.gmra.mxu0 %v6849_v29  ;;  %v6383_v31 = vpop.f32.mrf.mxu1  ;;  %v6858_v29 = vshll.u32 %v11470_v15, 16 }
 0x46b   : > { %6486 = vmatmul.bf16.gmra.mxu2 %v5041_v42  ;;  %v11468_v16 = vadd.f32 %v6383_v31, %v6295_v27  ;;  %v12070_v27 = vld [vmem:[#allocation34_spill] sm:$0xff]  ;;  %v6855_v42 = vrot.slane %v6853_v53, 1  ;;  %v4937_v53 = vshrl.u32 %v11090_v46, 16 }
 0x46c   : > { %6422 = vmatmul.bf16.gmra.mxu1 %v4935_v41  ;;  %v6297_v33 = vadd.f32 %v12070_v27, %v12069_v44  ;;  %v6860_v3 = vrot.slane %v6858_v29, 1 }
 0x46d   : > { %12067 = vst [vmem:[#allocation22_spill] sm:$0xff] %v11468_v16  ;;  %v4941_v16 = vrot.slane %v4939_v43, 1  ;;  %v12072_v43 = vld [vmem:[#allocation41_spill] sm:$0xff] }
 0x46e   : > { %v6447_v60 = vpop.f32.mrf.mxu2 }
 0x46f   : > { %v7253_v10 = vpop.f32.mrf.mxu3  ;;  %v11477_v2 = vadd.f32 %v6447_v60, %v11291_v17  ;;  %v6851_v17 = vshrl.u32 %v8851_v58, 16  ;;  %v4942_v29 = vor.u32 %v4941_v16, %v4937_v53 }
 0x470   : > { %v11474_v25 = vadd.f32 %v7342_v8, %v7253_v10  ;;  %v8807_v8 = vld [vmem:[#allocation2 + $0x78] sm:$0xe]  ;;  %v11484_v10 = vpack.c.b16 %v4739_v4, %v4739_v4 }
 0x471   : > { %v8808_v36 = vor.u32 %v8807_v8, %v8806_v1  ;;  %v6856_v61 = vor.u32 %v6855_v42, %v6851_v17 }
 0x472   : > { %v6385_v31 = vpop.f32.mrf.mxu1  ;;  %v4944_v4 = vshll.u32 %v11484_v10, 16 }
 0x473   : > { %v11486_v41 = vadd.f32 %v6385_v31, %v6297_v33  ;;  %v5042_v1 = vrot.slane %v8808_v36, 1  ;;  %v6861_v27 = vsel %vm1167_vm9, %v6856_v61, %v6860_v3  ;;  %v7347_v33 = vpop.f32.mrf.mxu0 }
 0x474   : > { %7295 = vmatmul.bf16.gmra.mxu3 %v11413_v11  ;;  %v5043_v11 = vrot.slane %v11304_v28, 1  ;;  %v4946_v42 = vrot.slane %v4944_v4, 1  ;;  %v12077_v4 = vld [vmem:[#allocation39_spill] sm:$0xff] }
 0x475   : > { %12071 = vst [vmem:[#allocation24_spill] sm:$0xff] %v11486_v41 }
 0x476   : > { %v6449_v5 = vpop.f32.mrf.mxu2  ;;  %v5044_v31 = vsel %vm1424_vm10, %v5042_v1, %v5043_v11  ;;  %v4947_v36 = vsel %vm1167_vm9, %v4942_v29, %v4946_v42  ;;  %v12076_v11 = vld [vmem:[#allocation43_spill] sm:$0xff] }
 0x477   : > { %v7256_v60 = vpop.f32.mrf.mxu3  ;;  %v11492_v44 = vadd.f32 %v6449_v5, %v11313_v12  ;;  %v12075_v5 = vld [vmem:[#allocation51_spill] sm:$0xff]  ;;  %v6302_v1 = vadd.f32 %v12077_v4, %v12076_v11  ;;  %v5046_v11 = vrot.slane %v11349_v39, 1  ;;  %v8852_v39 = vld [vmem:[#allocation2 + $0xa8] sm:$0xff]  }
 0x478   : > { %v11488_v45 = vadd.f32 %v7345_v47, %v7256_v60  ;;  %v12073_v47 = vld [vmem:[#allocation36_spill] sm:$0xff]  ;;  %v6865_v46 = vshll.u32 %v12075_v5, 16 }
 0x479   : > { %v6300_v8 = vadd.f32 %v12073_v47, %v12072_v43  ;;  %v9107_v60 = vld [vmem:[#allocation2 + $0x84] sm:$0xe]  ;;  %v6863_v47 = vshrl.u32 %v12075_v5, 16 }
 0x47a   : > { %7389 = vmatmul.bf16.gmra.mxu0 %v6861_v27  ;;  %v6388_v28 = vpop.f32.mrf.mxu1  ;;  %v6867_v53 = vrot.slane %v6865_v46, 1  ;;  %v12078_v27 = vld [vmem:[#allocation16_spill] sm:$0xff]  ;;  %v8855_v46 = vld [vmem:[#allocation2 + $0x18] sm:$0xe] }
 0x47b   : > { %6491 = vmatmul.bf16.gmra.mxu2 %v5044_v31  ;;  %v11500_v12 = vadd.f32 %v6388_v28, %v6300_v8  ;;  %v9108_v43 = vor.u32 %v9107_v60, %v12078_v27  ;;  %v6870_v8 = vshll.u32 %v11202_v48, 16  ;;  %v7350_v29 = vpop.f32.mrf.mxu0  ;;  %v8854_v28 = vld [vmem:[#allocation2 + $0x18] sm:$0xf0] }
 0x47c   : > { %6427 = vmatmul.bf16.gmra.mxu1 %v4947_v36  ;;  %v6868_v42 = vor.u32 %v6867_v53, %v6863_v47  ;;  %v8856_v48 = vor.u32 %v8855_v46, %v8854_v28  ;;  %v12081_v53 = vld [vmem:[#allocation46_spill] sm:$0xff] }
 0x47d   : > { %12074 = vst [vmem:[#allocation32_spill] sm:$0xff] %v11500_v12  ;;  %v6872_v60 = vrot.slane %v6870_v8, 1  ;;  %v12082_v47 = vld [vmem:[#allocation42_spill] sm:$0xff] }
 0x47e   : > { %v6452_v16 = vpop.f32.mrf.mxu2 }
 0x47f   : > { %v7258_v17 = vpop.f32.mrf.mxu3  ;;  %v11507_v3 = vadd.f32 %v6452_v16, %v11328_v34  ;;  %v6566_v34 = vld [vmem:[#allocation2 + $0xb0] sm:$0x1]  ;;  %v5045_v16 = vrot.slane %v9108_v43, 1  ;;  %v6873_v27 = vsel %vm1167_vm9, %v6868_v42, %v6872_v60  ;;  %v6986_v43 = vrot.slane %v8856_v48, 1 }
 0x480   : > { %v11504_v61 = vadd.f32 %v7347_v33, %v7258_v17  ;;  %v6877_v60 = vshll.u32 %v8852_v39, 16 }
 0x482   : > { %v6390_v31 = vpop.f32.mrf.mxu1 }
 0x483   : > { %v11514_v33 = vadd.f32 %v6390_v31, %v6302_v1  ;;  %v6710_v1 = vunpack.c.l.b16 %v6566_v34  ;;  %v12080_v31 = vld [vmem:[#allocation37_spill] sm:$0xff]  ;;  %v7352_v28 = vpop.f32.mrf.mxu0 }
 0x484   : > { %7300 = vmatmul.bf16.gmra.mxu3 %v8851_v58 }
 0x485   : > { %12079 = vst [vmem:[#allocation19_spill] sm:$0xff] %v11514_v33  ;;  %v6987_v33 = vrot.slane %v12080_v31, 1 }
 0x486   : > { %v6454_v58 = vpop.f32.mrf.mxu2 }
 0x487   : > { %v7261_v17 = vpop.f32.mrf.mxu3  ;;  %v11520_v4 = vadd.f32 %v6454_v58, %v11352_v40  ;;  %v11529_v40 = vpack.c.b16 %v6710_v1, %v6710_v1  ;;  %v6988_v42 = vsel %vm1424_vm10, %v6986_v43, %v6987_v33  ;;  %v12086_v1 = vld [vmem:[#allocation45_spill] sm:$0xff]  ;;  %v6875_v43 = vshrl.u32 %v8852_v39, 16 }
 0x488   : > { %v11516_v36 = vadd.f32 %v7350_v29, %v7261_v17  ;;  %v6305_v29 = vadd.f32 %v12082_v47, %v12081_v53  ;;  %v5047_v17 = vsel %vm1424_vm10, %v5045_v16, %v5046_v11  ;;  %v9110_v16 = vld [vmem:[#allocation2 + $0x24] sm:$0xe]  ;;  %v8809_v11 = vld [vmem:[#allocation2 + $0x90] sm:$0xf0]  ;;  %v8810_v53 = vld [vmem:[#allocation2 + $0x90] sm:$0xe] }
 0x489   : > { %12084 = vst [vmem:[#allocation30_spill] sm:$0xff] %v11529_v40  ;;  %v6882_v48 = vshll.u32 %v11529_v40, 16  ;;  %v6879_v47 = vrot.slane %v6877_v60, 1  ;;  %v12088_v60 = vld [vmem:[#allocation44_spill] sm:$0xff] }
 0x48a   : > { %7394 = vmatmul.bf16.gmra.mxu0 %v6873_v27  ;;  %v6393_v12 = vpop.f32.mrf.mxu1  ;;  %v6990_v40 = vrot.slane %v12088_v60, 1  ;;  %v5052_v60 = vrot.slane %v11421_v55, 1 }
 0x48b   : > { %6496 = vmatmul.bf16.gmra.mxu2 %v5047_v17  ;;  %v11527_v8 = vadd.f32 %v6393_v12, %v6305_v29  ;;  %v12085_v12 = vld [vmem:[#allocation49_spill] sm:$0xff]  ;;  %v8811_v29 = vor.u32 %v8810_v53, %v8809_v11  ;;  %v12089_v11 = vld [vmem:[#allocation47_spill] sm:$0xff] }
 0x48c   : > { %7428 = vmatmul.bf16.vlgmr.msra.gmra.mxu1 %v6988_v42  ;;  %v6307_v31 = vadd.f32 %v12086_v1, %v12085_v12 }
 0x48d   : > { %12083 = vst [vmem:[#allocation33_spill] sm:$0xff] %v11527_v8  ;;  %v6880_v8 = vor.u32 %v6879_v47, %v6875_v43  ;;  %v9113_v47 = vld [vmem:[#allocation2 + $0x9c] sm:$0xe] }
 0x48e   : > { %v6457_v46 = vpop.f32.mrf.mxu2  ;;  %v12091_v43 = vld [vmem:[#allocation23_spill] sm:$0xff] }
 0x48f   : > { %v7263_v58 = vpop.f32.mrf.mxu3  ;;  %v11535_v27 = vadd.f32 %v6457_v46, %v11366_v63  ;;  %v5049_v46 = vrot.slane %v11376_v49, 1  ;;  %v6889_v49 = vshll.u32 %v11274_v9, 16 }
 0x490   : > { %v11532_v34 = vadd.f32 %v7352_v28, %v7263_v58  ;;  %v6884_v28 = vrot.slane %v6882_v48, 1  ;;  %v12087_v58 = vld [vmem:[#allocation40_spill] sm:$0xff] }
 0x491   : > { %v9111_v63 = vor.u32 %v9110_v16, %v12087_v58  ;;  %v6894_v58 = vshll.u32 %v11283_v14, 16  ;;  %v12093_v14 = vld [vmem:[#allocation53_spill] sm:$0xff] }
 0x492   : > { %v6395_v33 = vpop.f32.mrf.mxu1  ;;  %v6885_v12 = vsel %vm1167_vm9, %v6880_v8, %v6884_v28  ;;  %v6891_v8 = vrot.slane %v6889_v49, 1  ;;  %v9114_v28 = vor.u32 %v9113_v47, %v12091_v43  ;;  %v6315_v49 = vadd.f32 %v12093_v14, %v11237_v7  ;;  %v12094_v7 = vld [vmem:[#allocation59_spill] sm:$0xff] }
 0x493   : > { %v11541_v17 = vadd.f32 %v6395_v33, %v6307_v31  ;;  %v6989_v1 = vrot.slane %v9111_v63, 1  ;;  %v6310_v31 = vadd.f32 %v12089_v11, %v11204_v23  ;;  %v12090_v33 = vld [vmem:[#allocation50_spill] sm:$0xff]  ;;  %v6887_v23 = vshrl.u32 %v11274_v9, 16 }
 0x494   : > { %7305 = vmatmul.bf16.gmra.mxu3 %v12075_v5  ;;  %v5048_v5 = vrot.slane %v8811_v29, 1  ;;  %v6312_v29 = vadd.f32 %v12090_v33, %v11222_v38  ;;  %v8853_v33 = vld [vmem:[#allocation2 + $0xc0] sm:$0xff]  }
 0x496   : > { %v6459_v42 = vpop.f32.mrf.mxu2  ;;  %v5050_v48 = vsel %vm1424_vm10, %v5048_v5, %v5049_v46  ;;  %v8857_v46 = vld [vmem:[#allocation2 + $0x30] sm:$0xf0]  ;;  %v6892_v5 = vor.u32 %v6891_v8, %v6887_v23  ;;  %v9116_v23 = vld [vmem:[#allocation2 + $0x3c] sm:$0xe] }
 0x497   : > { %v11546_v41 = vadd.f32 %v6459_v42, %v11385_v18  ;;  %v6991_v18 = vsel %vm1424_vm10, %v6989_v1, %v6990_v40  ;;  %v8858_v40 = vld [vmem:[#allocation2 + $0x30] sm:$0xe]  ;;  %v5051_v1 = vrot.slane %v9114_v28, 1  ;;  %v6901_v28 = vshll.u32 %v8853_v33, 16 }
 0x498   : > { %v8859_v11 = vor.u32 %v8858_v40, %v8857_v46  ;;  %v12095_v46 = vld [vmem:[#allocation56_spill] sm:$0xff] }
 0x49a   : > { %7399 = vmatmul.bf16.gmra.mxu0 %v6885_v12  ;;  %v6398_v16 = vpop.f32.mrf.mxu1  ;;  %v6568_v12 = vld [vmem:[#allocation2 + $0xc8] sm:$0x1]  ;;  %v6992_v8 = vrot.slane %v8859_v11, 1  ;;  %v6899_v11 = vshrl.u32 %v8853_v33, 16 }
 0x49b   : > { %6501 = vmatmul.bf16.gmra.mxu2 %v5050_v48  ;;  %v11553_v53 = vadd.f32 %v6398_v16, %v6310_v31  ;;  %v6712_v31 = vunpack.c.l.b16 %v6568_v12  ;;  %v12092_v48 = vld [vmem:[#allocation48_spill] sm:$0xff]  ;;  %v6903_v12 = vrot.slane %v6901_v28, 1 }
 0x49c   : > { %7433 = vmatmul.bf16.gmra.mxu1 %v6991_v18  ;;  %v6993_v16 = vrot.slane %v12092_v48, 1  ;;  %v5053_v18 = vsel %vm1424_vm10, %v5051_v1, %v5052_v60  ;;  %v8813_v1 = vld [vmem:[#allocation2 + $0xa8] sm:$0xe] }
 0x49d   : > { %v11572_v55 = vpack.c.b16 %v6712_v31, %v6712_v31  ;;  %v12096_v31 = vld [vmem:[#allocation52_spill] sm:$0xff]  ;;  %v6904_v14 = vor.u32 %v6903_v12, %v6899_v11  ;;  %v12100_v12 = vld [vmem:[#allocation35_spill] sm:$0xff]  ;;  %v8861_v11 = vld [vmem:[#allocation2 + $0x48] sm:$0xe] }
 0x49e   : > { %v6994_v43 = vsel %vm1424_vm10, %v6992_v8, %v6993_v16  ;;  %v9117_v48 = vor.u32 %v9116_v23, %v12096_v31  ;;  %v5055_v16 = vrot.slane %v11447_v52, 1  ;;  %v9119_v52 = vld [vmem:[#allocation2 + $0xb4] sm:$0xe]  ;;  %v5058_v31 = vrot.slane %v11484_v10, 1 }
 0x49f   : > { %v6327_v10 = vadd.f32 %v11302_v51, %v11334_v19  ;;  %v6332_v51 = vadd.f32 %v11337_v20, %v11370_v21  ;;  %v12104_v20 = vld [vmem:[#allocation28_spill] sm:$0xff] }
 0x4a0   : > { %v6337_v21 = vadd.f32 %v12104_v20, %v11406_v62  ;;  %v8993_v20 = vld [vmem:[%s9514_s20] sm:$0xff] }
 0x4a2   : > { %v6400_v63 = vpop.f32.mrf.mxu1 }
 0x4a3   : > { %v11562_v42 = vadd.f32 %v6400_v63, %v6312_v29  ;;  %v8812_v63 = vld [vmem:[#allocation2 + $0xa8] sm:$0xf0] }
 0x4a4   : > { %7310 = vmatmul.bf16.gmra.mxu3 %v8852_v39  ;;  %v6896_v39 = vrot.slane %v6894_v58, 1  ;;  %v6906_v58 = vshll.u32 %v11572_v55, 16 }
 0x4a6   : > { %v6897_v38 = vsel %vm1167_vm9, %v6892_v5, %v6896_v39  ;;  %v6317_v5 = vadd.f32 %v12095_v46, %v12094_v7  ;;  %v8814_v39 = vor.u32 %v8813_v1, %v8812_v63  ;;  %v12099_v46 = vld [vmem:[#allocation60_spill] sm:$0xff] }
 0x4aa   : > { %7404 = vmatmul.bf16.gmra.mxu0 %v6897_v38  ;;  %v6403_v47 = vpop.f32.mrf.mxu1  ;;  %v6908_v38 = vrot.slane %v6906_v58, 1 }
 0x4ab   : > { %6506 = vmatmul.bf16.gmra.mxu2 %v5053_v18  ;;  %v11570_v29 = vadd.f32 %v6403_v47, %v6315_v49  ;;  %v5054_v49 = vrot.slane %v8814_v39, 1  ;;  %v12097_v47 = vld [vmem:[#allocation55_spill] sm:$0xff] }
 0x4ac   : > { %7438 = vmatmul.bf16.gmra.mxu1 %v6994_v43  ;;  %v6909_v18 = vsel %vm1167_vm9, %v6904_v14, %v6908_v38  ;;  %v6996_v8 = vrot.slane %v12097_v47, 1  ;;  %v12098_v43 = vld [vmem:[#allocation57_spill] sm:$0xff] }
 0x4ad   : > { %v6320_v28 = vadd.f32 %v12098_v43, %v11277_v13  ;;  %v5056_v7 = vsel %vm1424_vm10, %v5054_v49, %v5055_v16  ;;  %v8860_v13 = vld [vmem:[#allocation2 + $0x48] sm:$0xf0]  ;;  %v12101_v16 = vld [vmem:[#allocation58_spill] sm:$0xff] }
 0x4ae   : > { %v6999_v14 = vrot.slane %v12101_v16, 1  ;;  %v12102_v49 = vld [vmem:[#allocation62_spill] sm:$0xff] }
 0x4af   : > { %v9122_v43 = vld [vmem:[#allocation2 + $0x54] sm:$0xe] }
 0x4b2   : > { %v6405_v40 = vpop.f32.mrf.mxu1 }
 0x4b3   : > { %v11579_v60 = vadd.f32 %v6405_v40, %v6317_v5  ;;  %v6322_v5 = vadd.f32 %v12099_v46, %v11298_v56  ;;  %v9120_v40 = vor.u32 %v9119_v52, %v12100_v12  ;;  %v7002_v52 = vrot.slane %v11300_v59, 1 }
 0x4b4   : > { %7315 = vmatmul.bf16.gmra.mxu3 %v11274_v9  ;;  %v6995_v9 = vrot.slane %v9117_v48, 1  ;;  %v8862_v48 = vor.u32 %v8861_v11, %v8860_v13  ;;  %v6330_v46 = vadd.f32 %v11319_v57, %v11354_v0  ;;  %v8863_v13 = vld [vmem:[#allocation2 + $0x60] sm:$0xf0]  ;;  %v8864_v11 = vld [vmem:[#allocation2 + $0x60] sm:$0xe]  ;;  %v7005_v59 = vrot.slane %v11330_v35, 1 }
 0x4b5   : > { %v5057_v38 = vrot.slane %v9120_v40, 1  ;;  %v6335_v57 = vadd.f32 %v11357_v54, %v11388_v22  ;;  %v12107_v54 = vld [vmem:[#allocation17_spill] sm:$0xff] }
 0x4b6   : > { %v6997_v23 = vsel %vm1424_vm10, %v6995_v9, %v6996_v8  ;;  %v6998_v56 = vrot.slane %v8862_v48, 1  ;;  %v6340_v22 = vadd.f32 %v12107_v54, %v11426_v24 }
 0x4b8   : > { %v7000_v8 = vsel %vm1424_vm10, %v6998_v56, %v6999_v14  ;;  %v9125_v14 = vld [vmem:[#allocation2 + $0x6c] sm:$0xe]  ;;  %v12106_v56 = vld [vmem:[#allocation18_spill] sm:$0xff] }
 0x4ba   : > { %7409 = vmatmul.bf16.gmra.mxu0 %v6909_v18  ;;  %v6408_v63 = vpop.f32.mrf.mxu1  ;;  %v6325_v18 = vadd.f32 %v12102_v49, %v11316_v37 }
 0x4bb   : > { %6511 = vmatmul.bf16.gmra.mxu2 %v5056_v7  ;;  %v11588_v58 = vadd.f32 %v6408_v63, %v6320_v28  ;;  %v12103_v63 = vld [vmem:[#allocation61_spill] sm:$0xff] }
 0x4bc   : > { %7443 = vmatmul.bf16.gmra.mxu1 %v6997_v23  ;;  %v9123_v23 = vor.u32 %v9122_v43, %v12103_v63  ;;  %v12108_v63 = vld [vmem:[#allocation26_spill] sm:$0xff] }
 0x4bd   : > { %v6342_v62 = vadd.f32 %v12108_v63, %v11440_v6 }
 0x4be   : > { %v7001_v37 = vrot.slane %v9123_v23, 1 }
 0x4c0   : > { %v7003_v40 = vsel %vm1424_vm10, %v7001_v37, %v7002_v52  ;;  %v8866_v52 = vld [vmem:[#allocation2 + $0x78] sm:$0xf0] }
 0x4c2   : > { %v6410_v1 = vpop.f32.mrf.mxu1 }
 0x4c3   : > { %v11594_v39 = vadd.f32 %v6410_v1, %v6322_v5 }
 0x4c4   : > { %7320 = vmatmul.bf16.gmra.mxu3 %v8853_v33  ;;  %v5059_v33 = vsel %vm1424_vm10, %v5057_v38, %v5058_v31  ;;  %v8865_v38 = vor.u32 %v8864_v11, %v8863_v13 }
 0x4c6   : > { %v7004_v31 = vrot.slane %v8865_v38, 1 }
 0x4c8   : > { %v7006_v16 = vsel %vm1424_vm10, %v7004_v31, %v7005_v59  ;;  %v11646_v59 = vld [vmem:[#allocation6 + $0x4] ss:$0 sm:$0xff] }
 0x4ca   : > { %v6413_v9 = vpop.f32.mrf.mxu1 }
 0x4cb   : > { %6516 = vmatmul.bf16.gmra.mxu2 %v5059_v33  ;;  %v11601_v47 = vadd.f32 %v6413_v9, %v6325_v18  ;;  %v12105_v33 = vld [vmem:[#allocation64_spill] sm:$0xff] }
 0x4cc   : > { %7448 = vmatmul.bf16.gmra.mxu1 %v7000_v8  ;;  %v9126_v9 = vor.u32 %v9125_v14, %v12105_v33  ;;  %v7008_v8 = vrot.slane %v12106_v56, 1 }
 0x4ce   : > { %v7007_v35 = vrot.slane %v9126_v9, 1 }
 0x4d2   : > { %v6415_v28 = vpop.f32.mrf.mxu1 }
 0x4d3   : > { %v11606_v7 = vadd.f32 %v6415_v28, %v6327_v10  ;;  %v7009_v28 = vsel %vm1424_vm10, %v7007_v35, %v7008_v8  ;;  %v7014_v8 = vrot.slane %v11442_v26, 1 }
 0x4da   : > { %v6418_v5 = vpop.f32.mrf.mxu1 }
 0x4db   : > { %v11612_v12 = vadd.f32 %v6418_v5, %v6330_v46  ;;  %v11640_v46 = vpop.f32.mrf.mxu0  ;;  %v8867_v5 = vld [vmem:[#allocation2 + $0x78] sm:$0xe] }
 0x4dc   : > { %7453 = vmatmul.bf16.gmra.mxu1 %v7003_v40  ;;  %v11642_v40 = vpop.f32.mrf.mxu3  ;;  %v8868_v24 = vor.u32 %v8867_v5, %v8866_v52  ;;  %v8995_v52 = vld [vmem:[%s9514_s20 + $0x10] sm:$0xff] }
 0x4de   : > { %v7010_v11 = vrot.slane %v8868_v24, 1 }
 0x4e2   : > { %v6420_v19 = vpop.f32.mrf.mxu1 }
 0x4e3   : > { %v11617_v1 = vadd.f32 %v6420_v19, %v6332_v51  ;;  %v12109_v51 = vld [vmem:[#allocation20_spill] sm:$0xff] }
 0x4e4   : > { %v7011_v19 = vrot.slane %v12109_v51, 1  ;;  %v11653_v14 = vpop.f32.mrf.mxu3 }
 0x4e6   : > { %v7012_v6 = vsel %vm1424_vm10, %v7010_v11, %v7011_v19 }
 0x4ea   : > { %v6423_v0 = vpop.f32.mrf.mxu1 }
 0x4eb   : > { %v11622_v48 = vadd.f32 %v6423_v0, %v6335_v57  ;;  %v11650_v0 = vpop.f32.mrf.mxu0 }
 0x4ec   : > { %7458 = vmatmul.bf16.gmra.mxu1 %v7006_v16  ;;  %v9128_v16 = vld [vmem:[#allocation2 + $0x84] sm:$0xe]  ;;  %v11671_v63 = vpop.f32.mrf.mxu3 }
 0x4f2   : > { %v6425_v49 = vpop.f32.mrf.mxu1 }
 0x4f3   : > { %v11627_v18 = vadd.f32 %v6425_v49, %v6337_v21  ;;  %v11666_v54 = vpop.f32.mrf.mxu0 }
 0x4f4   : > { %v11685_v11 = vpop.f32.mrf.mxu3 }
 0x4fa   : > { %v6428_v43 = vpop.f32.mrf.mxu1 }
 0x4fb   : > { %v11633_v10 = vadd.f32 %v6428_v43, %v6340_v22  ;;  %v11668_v22 = vpop.f32.mrf.mxu2  ;;  %v8994_v43 = vld [vmem:[%s9514_s20 + $0x8] sm:$0xff]  ;;  %v11679_v51 = vpop.f32.mrf.mxu0 }
 0x4fc   : > { %7463 = vmatmul.bf16.gmra.mxu1 %v7009_v28 }
 0x502   : > { %v6430_v23 = vpop.f32.mrf.mxu1 }
 0x503   : > { %v11638_v37 = vadd.f32 %v6430_v23, %v6342_v62  ;;  %v11681_v19 = vpop.f32.mrf.mxu2 }
 0x50a   : > { %v7429_v13 = vpop.f32.mrf.mxu1 }
 0x50b   : > { %v7430_v38 = vadd.f32 %v7429_v13, %v11458_v50  ;;  %v12110_v50 = vld [vmem:[#allocation29_spill] sm:$0xff] }
 0x50c   : > { %7468 = vmatmul.bf16.gmra.mxu1 %v7012_v6  ;;  %v9129_v33 = vor.u32 %v9128_v16, %v12110_v50  ;;  %v8996_v16 = vld [vmem:[%s9514_s20 + $0x18] sm:$0xff]  ;;  %v11694_v50 = vpop.f32.mrf.mxu0 }
 0x50d   : > { %v7509_v57 = vadd.f32 %v7430_v38, %v11445_v30  ;;  %v8870_v38 = vld [vmem:[#allocation2 + $0x90] sm:$0xe] }
 0x50e   : > { %v7013_v56 = vrot.slane %v9129_v33, 1 }
 0x50f   : > { %v7542_v31 = vadd.f32 %v11646_v59, %v7509_v57 }
 0x511   : > { %v7574_v21 = vadd.f32 %v8993_v20, %v7542_v31  ;;  %v7017_v31 = vrot.slane %v11470_v15, 1 }
 0x512   : > { %v7431_v49 = vpop.f32.mrf.mxu1 }
 0x513   : > { %7606 = vst [vmem:[%s11658_s21] sm:$0xff] %v7574_v21  ;;  %v7432_v30 = vadd.f32 %v7431_v49, %v11474_v25 }
 0x515   : > { %v7510_v9 = vadd.f32 %v7432_v30, %v11462_v32  ;;  %v7015_v32 = vsel %vm1424_vm10, %v7013_v56, %v7014_v8 }
 0x517   : > { %v7543_v35 = vadd.f32 %v11646_v59, %v7510_v9  ;;  %v11699_v9 = vpop.f32.mrf.mxu3 }
 0x519   : > { %v7575_v28 = vadd.f32 %v8994_v43, %v7543_v35  ;;  %v8997_v35 = vld [vmem:[%s9514_s20 + $0x20] sm:$0xff] }
 0x51a   : > { %v7434_v25 = vpop.f32.mrf.mxu1 }
 0x51b   : > { %7607 = vst [vmem:[%s11658_s21 + $0x8] sm:$0xff] %v7575_v28  ;;  %v7435_v62 = vadd.f32 %v7434_v25, %v11488_v45  ;;  %v8869_v45 = vld [vmem:[#allocation2 + $0x90] sm:$0xf0]  ;;  %v11706_v28 = vpop.f32.mrf.mxu0 }
 0x51c   : > { %7473 = vmatmul.bf16.gmra.mxu1 %v7015_v32  ;;  %v8871_v6 = vor.u32 %v8870_v38, %v8869_v45  ;;  %v7356_v32 = vadd.f32 %v11640_v46, %v11642_v40  ;;  %v8999_v46 = vld [vmem:[%s9514_s20 + $0x30] sm:$0xff] }
 0x51d   : > { %v7511_v23 = vadd.f32 %v7435_v62, %v11477_v2 }
 0x51e   : > { %v7016_v49 = vrot.slane %v8871_v6, 1 }
 0x51f   : > { %v7544_v26 = vadd.f32 %v11646_v59, %v7511_v23  ;;  %v11711_v62 = vpop.f32.mrf.mxu3  ;;  %v8998_v23 = vld [vmem:[%s9514_s20 + $0x28] sm:$0xff] }
 0x520   : > { %v7018_v30 = vsel %vm1424_vm10, %v7016_v49, %v7017_v31  ;;  %v7361_v49 = vadd.f32 %v11666_v54, %v11671_v63 }
 0x521   : > { %v7576_v5 = vadd.f32 %v8995_v52, %v7544_v26 }
 0x522   : > { %v7436_v24 = vpop.f32.mrf.mxu1 }
 0x523   : > { %7608 = vst [vmem:[%s11658_s21 + $0x10] sm:$0xff] %v7576_v5  ;;  %v7437_v13 = vadd.f32 %v7436_v24, %v11504_v61  ;;  %v12111_v5 = vld [vmem:[#allocation54_spill] sm:$0xff]  ;;  %v11722_v45 = vpop.f32.mrf.mxu0 }
 0x525   : > { %v7512_v2 = vadd.f32 %v7437_v13, %v11492_v44  ;;  %v11696_v44 = vpop.f32.mrf.mxu2  ;;  %v7358_v13 = vadd.f32 %v11650_v0, %v11653_v14  ;;  %v12112_v14 = vld [vmem:[#allocation30_spill] sm:$0xff] }
 0x527   : > { %v7545_v57 = vadd.f32 %v11646_v59, %v7512_v2  ;;  %v11727_v38 = vpop.f32.mrf.mxu3 }
 0x529   : > { %v7577_v20 = vadd.f32 %v8996_v16, %v7545_v57  ;;  %v8872_v57 = vld [vmem:[#allocation2 + $0xa8] sm:$0xf0]  ;;  %v8873_v16 = vld [vmem:[#allocation2 + $0xa8] sm:$0xe] }
 0x52a   : > { %v7439_v21 = vpop.f32.mrf.mxu1 }
 0x52b   : > { %7609 = vst [vmem:[%s11658_s21 + $0x18] sm:$0xff] %v7577_v20  ;;  %v7440_v61 = vadd.f32 %v7439_v21, %v11516_v36  ;;  %v8874_v20 = vor.u32 %v8873_v16, %v8872_v57  ;;  %v7023_v21 = vrot.slane %v12112_v14, 1  ;;  %v12115_v16 = vld [vmem:[#allocation27_spill] sm:$0xff]  ;;  %v6569_v14 = vld [vmem:[#allocation2 + $0xd4] sm:$0x1] }
 0x52c   : > { %7478 = vmatmul.bf16.gmra.mxu1 %v7018_v30 }
 0x52d   : > { %v7513_v33 = vadd.f32 %v7440_v61, %v11507_v3  ;;  %v11708_v25 = vpop.f32.mrf.mxu2  ;;  %v9000_v61 = vld [vmem:[%s9514_s20 + $0x38] sm:$0xff] }
 0x52f   : > { %v7546_v15 = vadd.f32 %v11646_v59, %v7513_v33 }
 0x531   : > { %v7578_v56 = vadd.f32 %v8997_v35, %v7546_v15  ;;  %v7022_v15 = vrot.slane %v8874_v20, 1  ;;  %v12113_v35 = vld [vmem:[#allocation25_spill] sm:$0xff]  ;;  %v6468_v20 = vadd.f32 %v11696_v44, %v12115_v16 }
 0x532   : > { %v7441_v8 = vpop.f32.mrf.mxu1 }
 0x533   : > { %7610 = vst [vmem:[%s11658_s21 + $0x20] sm:$0xff] %v7578_v56  ;;  %v7442_v36 = vadd.f32 %v7441_v8, %v11532_v34  ;;  %v6463_v56 = vadd.f32 %v11668_v22, %v12113_v35  ;;  %v11738_v8 = vpop.f32.mrf.mxu0 }
 0x535   : > { %v7514_v43 = vadd.f32 %v7442_v36, %v11520_v4  ;;  %v11724_v2 = vpop.f32.mrf.mxu2 }
 0x537   : > { %v7547_v3 = vadd.f32 %v11646_v59, %v7514_v43  ;;  %v11743_v43 = vpop.f32.mrf.mxu3 }
 0x539   : > { %v7579_v26 = vadd.f32 %v8998_v23, %v7547_v3  ;;  %v7024_v3 = vsel %vm1424_vm10, %v7022_v15, %v7023_v21  ;;  %v9001_v23 = vld [vmem:[%s9514_s20 + $0x40] sm:$0xff]  ;;  %v6713_v21 = vunpack.c.l.b16 %v6569_v14 }
 0x53a   : > { %v7444_v52 = vpop.f32.mrf.mxu1 }
 0x53b   : > { %7611 = vst [vmem:[%s11658_s21 + $0x28] sm:$0xff] %v7579_v26  ;;  %v7445_v34 = vadd.f32 %v7444_v52, %v7356_v32  ;;  %v7363_v32 = vadd.f32 %v11679_v51, %v11685_v11  ;;  %v12114_v52 = vld [vmem:[#allocation21_spill] sm:$0xff]  ;;  %v6729_v15 = vpack.c.b16 %v6713_v21, %v6713_v21 }
 0x53c   : > { %7483 = vmatmul.bf16.gmra.mxu1 %v12111_v5  ;;  %v6552_v5 = vld [vmem:[#allocation2 + $0xcc] sm:$0xff]  }
 0x53d   : > { %v7515_v4 = vadd.f32 %v7445_v34, %v11535_v27  ;;  %v6465_v34 = vadd.f32 %v11681_v19, %v12114_v52  ;;  %v6913_v11 = vshll.u32 %v6552_v5, 16  ;;  %7325 = vmatmul.bf16.gmra.mxu3 %v6552_v5  ;;  %v7366_v19 = vadd.f32 %v11694_v50, %v11699_v9 }
 0x53f   : > { %v7548_v24 = vadd.f32 %v11646_v59, %v7515_v4 }
 0x541   : > { %v7580_v40 = vadd.f32 %v8999_v46, %v7548_v24  ;;  %v11753_v24 = vld [vmem:[#allocation2 + $0xcc] sm:$0xf0] }
 0x542   : > { %v7446_v6 = vpop.f32.mrf.mxu1 }
 0x543   : > { %7612 = vst [vmem:[%s11658_s21 + $0x30] sm:$0xff] %v7580_v40  ;;  %v7447_v27 = vadd.f32 %v7446_v6, %v7358_v13  ;;  %v11755_v13 = vpop.f32.mrf.mxu0  ;;  %v11759_v6 = vpop.f32.mrf.mxu3 }
 0x545   : > { %v7516_v31 = vadd.f32 %v7447_v27, %v11546_v41  ;;  %v11740_v41 = vpop.f32.mrf.mxu2  ;;  %v9002_v27 = vld [vmem:[%s9514_s20 + $0x48] sm:$0xff] }
 0x547   : > { %v7549_v0 = vadd.f32 %v11646_v59, %v7516_v31 }
 0x549   : > { %v7581_v30 = vadd.f32 %v9000_v61, %v7549_v0  ;;  %v6915_v61 = vrot.slane %v6913_v11, 1  ;;  %v7371_v11 = vadd.f32 %v11722_v45, %v11727_v38  ;;  %v7373_v38 = vadd.f32 %v11738_v8, %v11743_v43 }
 0x54a   : > { %v7449_v33 = vpop.f32.mrf.mxu1  ;;  %v7376_v43 = vadd.f32 %v11755_v13, %v11759_v6  ;;  %v9007_v6 = vld [vmem:[%s9514_s20 + $0x70] sm:$0xff] }
 0x54b   : > { %7613 = vst [vmem:[%s11658_s21 + $0x38] sm:$0xff] %v7581_v30  ;;  %v7450_v36 = vadd.f32 %v7449_v33, %v7361_v49  ;;  %v6911_v49 = vshrl.u32 %v6552_v5, 16  ;;  %v12116_v33 = vld [vmem:[#allocation63_spill] sm:$0xff]  ;;  %v11769_v35 = vpop.f32.mrf.mxu0 }
 0x54c   : > { %7488 = vmatmul.bf16.gmra.mxu1 %v7024_v3  ;;  %v7368_v3 = vadd.f32 %v11706_v28, %v11711_v62  ;;  %v7029_v62 = vrot.slane %v11572_v55, 1 }
 0x54d   : > { %v7517_v54 = vadd.f32 %v7450_v36, %v6463_v56  ;;  %v11757_v46 = vpop.f32.mrf.mxu2  ;;  %v11774_v56 = vpop.f32.mrf.mxu3  ;;  %v6916_v44 = vor.u32 %v6915_v61, %v6911_v49  ;;  %v6918_v36 = vshll.u32 %v6729_v15, 16  ;;  %v9131_v49 = vld [vmem:[#allocation2 + $0xcc] sm:$0xe] }
 0x54e   : > { %v7378_v13 = vadd.f32 %v11769_v35, %v11774_v56 }
 0x54f   : > { %v7550_v63 = vadd.f32 %v11646_v59, %v7517_v54  ;;  %v9003_v54 = vld [vmem:[%s9514_s20 + $0x50] sm:$0xff] }
 0x551   : > { %v7582_v22 = vadd.f32 %v9001_v23, %v7550_v63  ;;  %v6920_v23 = vrot.slane %v6918_v36, 1 }
 0x552   : > { %v7451_v26 = vpop.f32.mrf.mxu1 }
 0x553   : > { %7614 = vst [vmem:[%s11658_s21 + $0x40] sm:$0xff] %v7582_v22  ;;  %v7452_v4 = vadd.f32 %v7451_v26, %v7363_v32  ;;  %v12117_v22 = vld [vmem:[#allocation31_spill] sm:$0xff] }
 0x554   : > { %v6470_v26 = vadd.f32 %v11708_v25, %v12117_v22 }
 0x555   : > { %v7518_v40 = vadd.f32 %v7452_v4, %v6465_v34  ;;  %v11771_v50 = vpop.f32.mrf.mxu2  ;;  %v8875_v34 = vld [vmem:[#allocation2 + $0xc0] sm:$0xf0]  ;;  %v6921_v4 = vsel %vm1167_vm9, %v6916_v44, %v6920_v23  ;;  %v9132_v44 = vor.u32 %v9131_v49, %v11753_v24 }
 0x556   : > { %7414 = vmatmul.bf16.gmra.mxu0 %v6921_v4  ;;  %v12120_v4 = vld [vmem:[#allocation32_spill] sm:$0xff] }
 0x557   : > { %v7551_v51 = vadd.f32 %v11646_v59, %v7518_v40  ;;  %v8876_v40 = vld [vmem:[#allocation2 + $0xc0] sm:$0xe]  ;;  %v7031_v22 = vrot.slane %v9132_v44, 1 }
 0x559   : > { %v7583_v57 = vadd.f32 %v9002_v27, %v7551_v51  ;;  %v8877_v51 = vor.u32 %v8876_v40, %v8875_v34  ;;  %v9004_v27 = vld [vmem:[%s9514_s20 + $0x58] sm:$0xff] }
 0x55a   : > { %v7454_v31 = vpop.f32.mrf.mxu1 }
 0x55b   : > { %7615 = vst [vmem:[%s11658_s21 + $0x48] sm:$0xff] %v7583_v57  ;;  %v7455_v0 = vadd.f32 %v7454_v31, %v7366_v19  ;;  %v7380_v19 = vpop.f32.mrf.mxu0  ;;  %v7291_v31 = vpop.f32.mrf.mxu3 }
 0x55c   : > { %7493 = vmatmul.bf16.gmra.mxu1 %v12116_v33 }
 0x55d   : > { %v7519_v30 = vadd.f32 %v7455_v0, %v6468_v20  ;;  %v6482_v25 = vpop.f32.mrf.mxu2  ;;  %v7028_v20 = vrot.slane %v8877_v51, 1  ;;  %v12118_v0 = vld [vmem:[#allocation22_spill] sm:$0xff] }
 0x55e   : > { %v6473_v14 = vadd.f32 %v11724_v2, %v12118_v0  ;;  %v12119_v2 = vld [vmem:[#allocation24_spill] sm:$0xff] }
 0x55f   : > { %v7552_v9 = vadd.f32 %v11646_v59, %v7519_v30  ;;  %v7030_v55 = vsel %vm1424_vm10, %v7028_v20, %v7029_v62  ;;  %v9005_v30 = vld [vmem:[%s9514_s20 + $0x60] sm:$0xff]  ;;  %v6475_v36 = vadd.f32 %v11740_v41, %v12119_v2 }
 0x561   : > { %v7584_v63 = vadd.f32 %v9003_v54, %v7552_v9 }
 0x562   : > { %v7456_v32 = vpop.f32.mrf.mxu1 }
 0x563   : > { %7616 = vst [vmem:[%s11658_s21 + $0x50] sm:$0xff] %v7584_v63  ;;  %v7457_v52 = vadd.f32 %v7456_v32, %v7368_v3  ;;  %v7382_v3 = vpop.f32.mrf.mxu0  ;;  %v7293_v32 = vpop.f32.mrf.mxu3 }
 0x564   : > { %v7383_v44 = vadd.f32 %v7382_v3, %v7293_v32 }
 0x565   : > { %v7520_v5 = vadd.f32 %v7457_v52, %v6470_v26  ;;  %v6484_v54 = vpop.f32.mrf.mxu2  ;;  %v7032_v26 = vrot.slane %v6729_v15, 1  ;;  %v9006_v52 = vld [vmem:[%s9514_s20 + $0x68] sm:$0xff] }
 0x567   : > { %v7553_v28 = vadd.f32 %v11646_v59, %v7520_v5  ;;  %v7033_v41 = vsel %vm1424_vm10, %v7031_v22, %v7032_v26  ;;  %v6478_v5 = vadd.f32 %v11757_v46, %v12120_v4 }
 0x569   : > { %v7585_v57 = vadd.f32 %v9004_v27, %v7553_v28 }
 0x56a   : > { %v7459_v16 = vpop.f32.mrf.mxu1 }
 0x56b   : > { %7617 = vst [vmem:[%s11658_s21 + $0x58] sm:$0xff] %v7585_v57  ;;  %v7460_v21 = vadd.f32 %v7459_v16, %v7371_v11  ;;  %v7385_v51 = vpop.f32.mrf.mxu0  ;;  %v7296_v62 = vpop.f32.mrf.mxu3  ;;  %v12121_v16 = vld [vmem:[#allocation19_spill] sm:$0xff] }
 0x56c   : > { %7498 = vmatmul.bf16.gmra.mxu1 %v7030_v55  ;;  %v6480_v46 = vadd.f32 %v11771_v50, %v12121_v16 }
 0x56d   : > { %v7521_v61 = vadd.f32 %v7460_v21, %v6473_v14  ;;  %v6487_v28 = vpop.f32.mrf.mxu2 }
 0x56e   : > { %v6488_v32 = vadd.f32 %v6487_v28, %v11553_v53 }
 0x56f   : > { %v7554_v45 = vadd.f32 %v11646_v59, %v7521_v61  ;;  %v7381_v61 = vadd.f32 %v7380_v19, %v7291_v31  ;;  %v6485_v31 = vadd.f32 %v6484_v54, %v11541_v17 }
 0x571   : > { %v7586_v33 = vadd.f32 %v9005_v30, %v7554_v45  ;;  %v9008_v45 = vld [vmem:[%s9514_s20 + $0x78] sm:$0xff] }
 0x572   : > { %v7461_v9 = vpop.f32.mrf.mxu1 }
 0x573   : > { %7618 = vst [vmem:[%s11658_s21 + $0x60] sm:$0xff] %v7586_v33  ;;  %v7462_v63 = vadd.f32 %v7461_v9, %v7373_v38  ;;  %v7387_v14 = vpop.f32.mrf.mxu0  ;;  %v7298_v55 = vpop.f32.mrf.mxu3  ;;  %v12122_v38 = vld [vmem:[#allocation33_spill] sm:$0xff] }
 0x574   : > { %v6483_v30 = vadd.f32 %v6482_v25, %v12122_v38 }
 0x575   : > { %v7522_v23 = vadd.f32 %v7462_v63, %v6475_v36  ;;  %v6489_v21 = vpop.f32.mrf.mxu2  ;;  %v9009_v63 = vld [vmem:[%s9514_s20 + $0x80] sm:$0xff] }
 0x577   : > { %v7555_v8 = vadd.f32 %v11646_v59, %v7522_v23 }
 0x579   : > { %v7587_v24 = vadd.f32 %v9006_v52, %v7555_v8  ;;  %v9010_v52 = vld [vmem:[%s9514_s20 + $0x88] sm:$0xff] }
 0x57a   : > { %v7464_v34 = vpop.f32.mrf.mxu1 }
 0x57b   : > { %7619 = vst [vmem:[%s11658_s21 + $0x68] sm:$0xff] %v7587_v24  ;;  %v7465_v40 = vadd.f32 %v7464_v34, %v7376_v43  ;;  %v7390_v2 = vpop.f32.mrf.mxu0  ;;  %v7301_v22 = vpop.f32.mrf.mxu3  ;;  %v7386_v43 = vadd.f32 %v7385_v51, %v7296_v62  ;;  %v6490_v62 = vadd.f32 %v6489_v21, %v11562_v42 }
 0x57c   : > { %7503 = vmatmul.bf16.gmra.mxu1 %v7033_v41  ;;  %v7391_v16 = vadd.f32 %v7390_v2, %v7301_v22 }
 0x57d   : > { %v7523_v15 = vadd.f32 %v7465_v40, %v6478_v5  ;;  %v6492_v36 = vpop.f32.mrf.mxu2  ;;  %v7388_v40 = vadd.f32 %v7387_v14, %v7298_v55 }
 0x57e   : > { %v6493_v14 = vadd.f32 %v6492_v36, %v11570_v29 }
 0x57f   : > { %v7556_v11 = vadd.f32 %v11646_v59, %v7523_v15  ;;  %v9011_v15 = vld [vmem:[%s9514_s20 + $0x90] sm:$0xff] }
 0x581   : > { %v7588_v27 = vadd.f32 %v9007_v6, %v7556_v11 }
 0x582   : > { %v7466_v57 = vpop.f32.mrf.mxu1 }
 0x583   : > { %7620 = vst [vmem:[%s11658_s21 + $0x70] sm:$0xff] %v7588_v27  ;;  %v7467_v20 = vadd.f32 %v7466_v57, %v7378_v13  ;;  %v7392_v34 = vpop.f32.mrf.mxu0  ;;  %v7303_v5 = vpop.f32.mrf.mxu3 }
 0x585   : > { %v7524_v0 = vadd.f32 %v7467_v20, %v6480_v46  ;;  %v6494_v41 = vpop.f32.mrf.mxu2  ;;  %v9012_v46 = vld [vmem:[%s9514_s20 + $0x98] sm:$0xff] }
 0x587   : > { %v7557_v49 = vadd.f32 %v11646_v59, %v7524_v0 }
 0x589   : > { %v7589_v35 = vadd.f32 %v9008_v45, %v7557_v49 }
 0x58a   : > { %v7469_v56 = vpop.f32.mrf.mxu1 }
 0x58b   : > { %7621 = vst [vmem:[%s11658_s21 + $0x78] sm:$0xff] %v7589_v35  ;;  %v7470_v33 = vadd.f32 %v7469_v56, %v7381_v61  ;;  %v7395_v6 = vpop.f32.mrf.mxu0  ;;  %v7306_v27 = vpop.f32.mrf.mxu3  ;;  %v7393_v35 = vadd.f32 %v7392_v34, %v7303_v5  ;;  %v9013_v56 = vld [vmem:[%s9514_s20 + $0xa0] sm:$0xff] }
 0x58d   : > { %v7525_v50 = vadd.f32 %v7470_v33, %v6483_v30  ;;  %v6497_v53 = vpop.f32.mrf.mxu2  ;;  %v6495_v33 = vadd.f32 %v6494_v41, %v11579_v60 }
 0x58f   : > { %v7558_v9 = vadd.f32 %v11646_v59, %v7525_v50 }
 0x591   : > { %v7590_v23 = vadd.f32 %v9009_v63, %v7558_v9  ;;  %v9014_v63 = vld [vmem:[%s9514_s20 + $0xa8] sm:$0xff] }
 0x592   : > { %v7471_v19 = vpop.f32.mrf.mxu1 }
 0x593   : > { %7622 = vst [vmem:[%s11658_s21 + $0x80] sm:$0xff] %v7590_v23  ;;  %v7472_v26 = vadd.f32 %v7471_v19, %v7383_v44  ;;  %v7397_v42 = vpop.f32.mrf.mxu0  ;;  %v7308_v45 = vpop.f32.mrf.mxu3  ;;  %v7396_v44 = vadd.f32 %v7395_v6, %v7306_v27  ;;  %v9017_v27 = vld [vmem:[%s9514_s20 + $0xc0] sm:$0xff] }
 0x595   : > { %v7526_v25 = vadd.f32 %v7472_v26, %v6485_v31  ;;  %v6499_v21 = vpop.f32.mrf.mxu2  ;;  %v6498_v31 = vadd.f32 %v6497_v53, %v11588_v58 }
 0x597   : > { %v7559_v8 = vadd.f32 %v11646_v59, %v7526_v25 }
 0x599   : > { %v7591_v24 = vadd.f32 %v9010_v52, %v7559_v8  ;;  %v7398_v8 = vadd.f32 %v7397_v42, %v7308_v45 }
 0x59a   : > { %v7474_v3 = vpop.f32.mrf.mxu1 }
 0x59b   : > { %7623 = vst [vmem:[%s11658_s21 + $0x88] sm:$0xff] %v7591_v24  ;;  %v7475_v4 = vadd.f32 %v7474_v3, %v7386_v43  ;;  %v7400_v2 = vpop.f32.mrf.mxu0  ;;  %v7311_v22 = vpop.f32.mrf.mxu3  ;;  %v9015_v43 = vld [vmem:[%s9514_s20 + $0xb0] sm:$0xff]  ;;  %v6500_v3 = vadd.f32 %v6499_v21, %v11594_v39  ;;  %v9018_v21 = vld [vmem:[%s9514_s20 + $0xc8] sm:$0xff] }
 0x59d   : > { %v7527_v17 = vadd.f32 %v7475_v4, %v6488_v32  ;;  %v6502_v36 = vpop.f32.mrf.mxu2 }
 0x59f   : > { %v7560_v54 = vadd.f32 %v11646_v59, %v7527_v17  ;;  %v7401_v17 = vadd.f32 %v7400_v2, %v7311_v22 }
 0x5a1   : > { %v7592_v11 = vadd.f32 %v9011_v15, %v7560_v54  ;;  %v9016_v54 = vld [vmem:[%s9514_s20 + $0xb8] sm:$0xff] }
 0x5a2   : > { %v7476_v51 = vpop.f32.mrf.mxu1 }
 0x5a3   : > { %7624 = vst [vmem:[%s11658_s21 + $0x90] sm:$0xff] %v7592_v11  ;;  %v7477_v13 = vadd.f32 %v7476_v51, %v7388_v40  ;;  %v7402_v32 = vpop.f32.mrf.mxu0  ;;  %v7313_v4 = vpop.f32.mrf.mxu3  ;;  %v6503_v11 = vadd.f32 %v6502_v36, %v11601_v47 }
 0x5a5   : > { %v7528_v28 = vadd.f32 %v7477_v13, %v6490_v62  ;;  %v6504_v34 = vpop.f32.mrf.mxu2 }
 0x5a7   : > { %v7561_v57 = vadd.f32 %v11646_v59, %v7528_v28  ;;  %v7403_v28 = vadd.f32 %v7402_v32, %v7313_v4  ;;  %v9021_v32 = vld [vmem:[%s9514_s20 + $0xe0] sm:$0xff] }
 0x5a9   : > { %v7593_v20 = vadd.f32 %v9012_v46, %v7561_v57  ;;  %v6505_v46 = vadd.f32 %v6504_v34, %v11606_v7 }
 0x5aa   : > { %v7479_v0 = vpop.f32.mrf.mxu1 }
 0x5ab   : > { %7625 = vst [vmem:[%s11658_s21 + $0x98] sm:$0xff] %v7593_v20  ;;  %v7480_v49 = vadd.f32 %v7479_v0, %v7391_v16  ;;  %v7405_v62 = vpop.f32.mrf.mxu0  ;;  %v7316_v6 = vpop.f32.mrf.mxu3 }
 0x5ac   : > { %v7406_v42 = vadd.f32 %v7405_v62, %v7316_v6 }
 0x5ad   : > { %v7529_v55 = vadd.f32 %v7480_v49, %v6493_v14  ;;  %v6507_v39 = vpop.f32.mrf.mxu2 }
 0x5af   : > { %v7562_v61 = vadd.f32 %v11646_v59, %v7529_v55 }
 0x5b1   : > { %v7594_v38 = vadd.f32 %v9013_v56, %v7562_v61 }
 0x5b2   : > { %v7481_v30 = vpop.f32.mrf.mxu1 }
 0x5b3   : > { %7626 = vst [vmem:[%s11658_s21 + $0xa0] sm:$0xff] %v7594_v38  ;;  %v7482_v50 = vadd.f32 %v7481_v30, %v7393_v35  ;;  %v7407_v47 = vpop.f32.mrf.mxu0  ;;  %v7318_v55 = vpop.f32.mrf.mxu3  ;;  %v6508_v35 = vadd.f32 %v6507_v39, %v11612_v12 }
 0x5b4   : > { %v7408_v30 = vadd.f32 %v7407_v47, %v7318_v55 }
 0x5b5   : > { %v7530_v29 = vadd.f32 %v7482_v50, %v6495_v33  ;;  %v6509_v14 = vpop.f32.mrf.mxu2 }
 0x5b6   : > { %v6510_v36 = vadd.f32 %v6509_v14, %v11617_v1 }
 0x5b7   : > { %v7563_v9 = vadd.f32 %v11646_v59, %v7530_v29  ;;  %v9019_v29 = vld [vmem:[%s9514_s20 + $0xd0] sm:$0xff] }
 0x5b9   : > { %v7595_v23 = vadd.f32 %v9014_v63, %v7563_v9 }
 0x5ba   : > { %v7484_v19 = vpop.f32.mrf.mxu1 }
 0x5bb   : > { %7627 = vst [vmem:[%s11658_s21 + $0xa8] sm:$0xff] %v7595_v23  ;;  %v7485_v26 = vadd.f32 %v7484_v19, %v7396_v44  ;;  %v7410_v33 = vpop.f32.mrf.mxu0  ;;  %v7321_v44 = vpop.f32.mrf.mxu3  ;;  %v9020_v19 = vld [vmem:[%s9514_s20 + $0xd8] sm:$0xff] }
 0x5bc   : > { %v7411_v22 = vadd.f32 %v7410_v33, %v7321_v44 }
 0x5bd   : > { %v7531_v60 = vadd.f32 %v7485_v26, %v6498_v31  ;;  %v6512_v50 = vpop.f32.mrf.mxu2 }
 0x5bf   : > { %v7564_v25 = vadd.f32 %v11646_v59, %v7531_v60  ;;  %v6513_v60 = vadd.f32 %v6512_v50, %v11622_v48 }
 0x5c1   : > { %v7596_v52 = vadd.f32 %v9015_v43, %v7564_v25 }
 0x5c2   : > { %v7486_v24 = vpop.f32.mrf.mxu1 }
 0x5c3   : > { %7628 = vst [vmem:[%s11658_s21 + $0xb0] sm:$0xff] %v7596_v52  ;;  %v7487_v41 = vadd.f32 %v7486_v24, %v7398_v8  ;;  %v7412_v25 = vpop.f32.mrf.mxu0  ;;  %v7323_v52 = vpop.f32.mrf.mxu3 }
 0x5c5   : > { %v7532_v58 = vadd.f32 %v7487_v41, %v6500_v3  ;;  %v6514_v43 = vpop.f32.mrf.mxu2  ;;  %v7413_v3 = vadd.f32 %v7412_v25, %v7323_v52 }
 0x5c6   : > { %v6515_v4 = vadd.f32 %v6514_v43, %v11627_v18 }
 0x5c7   : > { %v7565_v5 = vadd.f32 %v11646_v59, %v7532_v58 }
 0x5c9   : > { %v7597_v40 = vadd.f32 %v9016_v54, %v7565_v5 }
 0x5ca   : > { %v7489_v15 = vpop.f32.mrf.mxu1 }
 0x5cb   : > { %7629 = vst [vmem:[%s11658_s21 + $0xb8] sm:$0xff] %v7597_v40  ;;  %v7490_v51 = vadd.f32 %v7489_v15, %v7401_v17  ;;  %v7326_v5 = vpop.f32.mrf.mxu3 }
 0x5cd   : > { %v7533_v13 = vadd.f32 %v7490_v51, %v6503_v11  ;;  %v6517_v54 = vpop.f32.mrf.mxu2  ;;  %v9022_v11 = vld [vmem:[%s9514_s20 + $0xe8] sm:$0xff] }
 0x5ce   : > { %v6518_v39 = vadd.f32 %v6517_v54, %v11633_v10 }
 0x5cf   : > { %v7566_v53 = vadd.f32 %v11646_v59, %v7533_v13 }
 0x5d1   : > { %v7598_v57 = vadd.f32 %v9017_v27, %v7566_v53 }
 0x5d2   : > { %v7491_v16 = vpop.f32.mrf.mxu1 }
 0x5d3   : > { %7630 = vst [vmem:[%s11658_s21 + $0xc0] sm:$0xff] %v7598_v57  ;;  %v7492_v20 = vadd.f32 %v7491_v16, %v7403_v28  ;;  %v7415_v48 = vpop.f32.mrf.mxu0  ;;  %v7328_v6 = vpop.f32.mrf.mxu3  ;;  %v9023_v16 = vld [vmem:[%s9514_s20 + $0xf0] sm:$0xff] }
 0x5d4   : > { %v7416_v40 = vadd.f32 %v7415_v48, %v7326_v5 }
 0x5d5   : > { %v7534_v0 = vadd.f32 %v7492_v20, %v6505_v46  ;;  %v6519_v27 = vpop.f32.mrf.mxu2 }
 0x5d6   : > { %v6520_v10 = vadd.f32 %v6519_v27, %v11638_v37 }
 0x5d7   : > { %v7567_v49 = vadd.f32 %v11646_v59, %v7534_v0 }
 0x5d9   : > { %v7599_v61 = vadd.f32 %v9018_v21, %v7567_v49  ;;  %v9024_v49 = vld [vmem:[%s9514_s20 + $0xf8] sm:$0xff] }
 0x5da   : > { %v7494_v45 = vpop.f32.mrf.mxu1 }
 0x5db   : > { %7631 = vst [vmem:[%s11658_s21 + $0xc8] sm:$0xff] %v7599_v61  ;;  %v7495_v56 = vadd.f32 %v7494_v45, %v7406_v42  ;;  %v7417_v53 = vpop.f32.mrf.mxu0 }
 0x5dc   : > { %v7418_v57 = vadd.f32 %v7417_v53, %v7328_v6 }
 0x5dd   : > { %v7535_v7 = vadd.f32 %v7495_v56, %v6508_v35 }
 0x5df   : > { %v7568_v38 = vadd.f32 %v11646_v59, %v7535_v7 }
 0x5e1   : > { %v7600_v9 = vadd.f32 %v9019_v29, %v7568_v38 }
 0x5e2   : > { %v7496_v2 = vpop.f32.mrf.mxu1 }
 0x5e3   : > { %7632 = vst [vmem:[%s11658_s21 + $0xd0] sm:$0xff] %v7600_v9  ;;  %v7497_v63 = vadd.f32 %v7496_v2, %v7408_v30 }
 0x5e5   : > { %v7536_v12 = vadd.f32 %v7497_v63, %v6510_v36 }
 0x5e7   : > { %v7569_v23 = vadd.f32 %v11646_v59, %v7536_v12 }
 0x5e9   : > { %v7601_v31 = vadd.f32 %v9020_v19, %v7569_v23 }
 0x5ea   : > { %v7499_v26 = vpop.f32.mrf.mxu1 }
 0x5eb   : > { %7633 = vst [vmem:[%s11658_s21 + $0xd8] sm:$0xff] %v7601_v31  ;;  %v7500_v8 = vadd.f32 %v7499_v26, %v7411_v22 }
 0x5ed   : > { %v7537_v1 = vadd.f32 %v7500_v8, %v6513_v60 }
 0x5ef   : > { %v7570_v24 = vadd.f32 %v11646_v59, %v7537_v1 }
 0x5f1   : > { %v7602_v34 = vadd.f32 %v9021_v32, %v7570_v24 }
 0x5f2   : > { %v7501_v41 = vpop.f32.mrf.mxu1 }
 0x5f3   : > { %7634 = vst [vmem:[%s11658_s21 + $0xe0] sm:$0xff] %v7602_v34  ;;  %v7502_v58 = vadd.f32 %v7501_v41, %v7413_v3 }
 0x5f5   : > { %v7538_v17 = vadd.f32 %v7502_v58, %v6515_v4 }
 0x5f7   : > { %v7571_v15 = vadd.f32 %v11646_v59, %v7538_v17 }
 0x5f9   : > { %v7603_v51 = vadd.f32 %v9022_v11, %v7571_v15 }
 0x5fa   : > { %v7504_v62 = vpop.f32.mrf.mxu1 }
 0x5fb   : > { %7635 = vst [vmem:[%s11658_s21 + $0xe8] sm:$0xff] %v7603_v51  ;;  %v7505_v13 = vadd.f32 %v7504_v62, %v7416_v40 }
 0x5fd   : > { %v7539_v18 = vadd.f32 %v7505_v13, %v6518_v39 }
 0x5ff   : > { %v7572_v28 = vadd.f32 %v11646_v59, %v7539_v18 }
 0x601   : > { %v7604_v46 = vadd.f32 %v9023_v16, %v7572_v28 }
 0x602   : > { %v7506_v20 = vpop.f32.mrf.mxu1 }
 0x603   : > { %7636 = vst [vmem:[%s11658_s21 + $0xf0] sm:$0xff] %v7604_v46  ;;  %v7507_v0 = vadd.f32 %v7506_v20, %v7418_v57 }
 0x605   : > { %v7540_v47 = vadd.f32 %v7507_v0, %v6520_v10 }
 0x607   : > { %v7573_v14 = vadd.f32 %v11646_v59, %v7540_v47 }
 0x609   : > { %v7605_v55 = vadd.f32 %v9024_v49, %v7573_v14 }
 0x60b   : > { %7637 = vst [vmem:[%s11658_s21 + $0xf8] sm:$0xff] %v7605_v55 }
 0x60c   : > { %9280 = shalt.err (!%p9277_p11)
}
 0x60d   : > { %s9370_s8 = smov 128   ;;  %s9371_s14 = smov 8  }
 0x60e   : > { %8908 = dma.vmem_to_hbm [thread:$0]  (%p9480_p7), %s7652_s13, 4096, %s7654_s19, %s7639_s24, %s9370_s8, %s9370_s8, %s9371_s14  }
 0x60f PF: > { %s7668_s20 = sand.u32 1, %s9348_s15   ;;  %p12123_p12 = scmp.ge.s32.totalorder %s9360_s18, 2 }
 0x610   : > { %s7669_s21 = scalar_lea.sflag [#allocation5], %s7668_s20 }
 0x611   : > { %p8925_p13 = pnand %p12123_p12, %p9432_p6 }
 0x613   : > { %p8926_p0 = pneg %p8925_p13 }
 0x615   : > { %9310 = dma.done.wait (%p8926_p0), %s7669_s21, 4096  }
 0x616   : > { %9312 = vsyncadd (%p8926_p0), %s7669_s21, 4294963200  ;;  %p19_p3 = scmp.ge.s32.totalorder %s9466_s23, 4   ;;  %s12124_s15 = smov %s9352_s16 }
 0x617   : > { %s12125_s16 = smov %s9356_s17  ;;  %s12126_s17 = smov %s9476_s27 }
 0x618   : > { %s12127_s18 = smov %s9466_s23  ;;  %21 = sbr.rel (!%p19_p3) target bundleno = 7 (0x7), region = 96 }
 0x61d   :  { %7675 = vsyncpa [#allocation4], 1 }
 0x61e   :  { %7677 = vsyncpa [#allocation4 + $0x1], 1 }
 0x61f   :  { %7678 = vsyncpa [#allocation7], 1 }
 0x620   :  { %7679 = vsyncpa [#allocation10], 1 }
 0x621   :  { %7680 = vsyncpa [#allocation5], 1 }
 0x622   :  { %7682 = vsyncpa [#allocation5 + $0x1], 1 }

</bundles_post_ra>
